<compile_context>
chip_gen: v5e
topology: v5e:2x2
jax: 0.10.0
libtpu: 0.0.40
codegen_flags: <defaults>
</compile_context>

<pallas_src>
import functools
import math

import jax
import jax.numpy as jnp
from jax.experimental import pallas as pl
from jax.experimental.pallas import tpu as pltpu

_VMEM_LIMIT = 32 * 1024 * 1024  # conservative scoped-VMEM budget (fits v7x's 64 MiB physical)


def _round_up(x, m):
    return (x + m - 1) // m * m


def _pick_lane_tile(d):
    """Pad d to a multiple of 128; 256-wide tiles (v6e/v7x MXU-native) when they
    divide evenly with no padding waste, else 128 (always fine on v5e)."""
    dp = _round_up(d, 128)
    return (256 if dp % 256 == 0 else 128), dp


def _pick_m_tile(d):
    """Pick an M (sublane) tile: multiple of 16 (bf16-safe), at most 512 rows."""
    dp = _round_up(d, 16)
    for t in (512, 256, 128, 64, 32, 16):
        if dp % t == 0:
            return t, dp
    return dp, dp


def _pick_k_tile(K, tm, tn):
    """Full-K single step when the double-buffered working set is small, else
    fall back to 256/128 K-chunks."""
    Kp = _round_up(K, 128)
    bytes_full = 2 * (tm * Kp * 2 + Kp * tn * 2) + 2 * (tm * tn * 4)  # bf16 A,B + f32 out
    if bytes_full <= _VMEM_LIMIT // 2:
        return Kp, Kp
    return (256 if Kp % 256 == 0 else 128), Kp


def _largest_tile(n, cap, mult):
    """Largest divisor of n that is <= cap and a multiple of `mult`."""
    cap = min(cap, n)
    cap -= cap % mult
    for t in range(cap, mult - 1, -mult):
        if n % t == 0:
            return t
    return n


# ----------------------------- Pallas kernels -----------------------------

def _conv_matmul_kernel_acc(a_ref, b_ref, o_ref, stats_ref):
    """bf16 matmul tiled over (M, N, K); f32 accumulation directly into the
    resident output tile; per-channel (sum, sum_sq) emitted on the last K step."""
    k = pl.program_id(2)

    @pl.when(k == 0)
    def _():
        o_ref[...] = jnp.zeros_like(o_ref)

    o_ref[...] += jnp.dot(a_ref[...], b_ref[...],
                          preferred_element_type=jnp.float32)

    @pl.when(k == pl.num_programs(2) - 1)
    def _():
        acc = o_ref[...]
        s1 = jnp.sum(acc, axis=0, keepdims=True)           # (1, tn)
        s2 = jnp.sum(acc * acc, axis=0, keepdims=True)      # (1, tn)
        stats_ref[0] = jnp.concatenate([s1, s2], axis=0)    # (2, tn)


def _conv_matmul_kernel_single(a_ref, b_ref, o_ref, stats_ref):
    """Single-K-step fast path: one MXU pass, no zero-init / accumulate revisit."""
    acc = jnp.dot(a_ref[...], b_ref[...], preferred_element_type=jnp.float32)
    o_ref[...] = acc
    s1 = jnp.sum(acc, axis=0, keepdims=True)
    s2 = jnp.sum(acc * acc, axis=0, keepdims=True)
    stats_ref[0] = jnp.concatenate([s1, s2], axis=0)


def _make_affine_kernel(has_residual, apply_relu):
    """Fused BatchNorm-affine (+ optional residual add) (+ optional ReLU)."""
    if has_residual:
        def kernel(x_ref, s_ref, b_ref, r_ref, o_ref):
            y = x_ref[...] * s_ref[...] + b_ref[...] + r_ref[...]
            if apply_relu:
                y = jnp.maximum(y, 0.0)
            o_ref[...] = y.astype(o_ref.dtype)
    else:
        def kernel(x_ref, s_ref, b_ref, o_ref):
            y = x_ref[...] * s_ref[...] + b_ref[...]
            if apply_relu:
                y = jnp.maximum(y, 0.0)
            o_ref[...] = y.astype(o_ref.dtype)
    return kernel


def _maxpool_kernel(p_ref, o_ref):
    """Max-reduce over the leading (kernel-window) axis."""
    o_ref[...] = jnp.max(p_ref[...], axis=0)


# ----------------------------- op wrappers -----------------------------

def conv2d(x_nhwc, wmat, kh, kw, cout, stride, padding):
    """Conv2d (bias=False) as im2col + tiled Pallas matmul.

    wmat: precomputed (kh*kw*Cin, Cout) bf16 weight matrix (hoisted out of the
    forward hot path). Returns the padded (Mp, Np) f32 output, per-channel
    (sum, sum_sq) stats for the following BN, the logical NHWC output shape,
    and the true row count M.
    """
    B, H, W, C = x_nhwc.shape
    Ho = (H + 2 * padding - kh) // stride + 1
    Wo = (W + 2 * padding - kw) // stride + 1

    xb = x_nhwc.astype(jnp.bfloat16)  # no-op if the producer already emitted bf16
    if padding:
        xb = jnp.pad(xb, ((0, 0), (padding, padding), (padding, padding), (0, 0)))
    # TODO(synk): the im2col patch tensor is still materialized in HBM (kh*kw
    # shifted copies); a fully implicit shifted-window index_map would remove
    # that traffic but is not expressible with plain Blocked index maps.
    cols = []
    for i in range(kh):
        for j in range(kw):
            cols.append(xb[:, i:i + stride * Ho:stride, j:j + stride * Wo:stride, :])
    patches = jnp.stack(cols, axis=3).reshape(B * Ho * Wo, kh * kw * C)

    M, K = patches.shape
    tm, Mp = _pick_m_tile(M)
    tn, Np = _pick_lane_tile(cout)
    tk, Kp = _pick_k_tile(K, tm, tn)

    a = patches if (Mp == M and Kp == K) else jnp.pad(patches, ((0, Mp - M), (0, Kp - K)))
    b = wmat if (Kp == K and Np == cout) else jnp.pad(wmat, ((0, Kp - K), (0, Np - cout)))

    n_mb = Mp // tm
    out_shapes = (jax.ShapeDtypeStruct((Mp, Np), jnp.float32),
                  jax.ShapeDtypeStruct((n_mb, 2, Np), jnp.float32))

    if tk == Kp:
        # whole reduction dimension resident -> 2-D grid, one MXU pass per tile
        out, stats = pl.pallas_call(
            _conv_matmul_kernel_single,
            out_shape=out_shapes,
            grid=(n_mb, Np // tn),
            in_specs=[pl.BlockSpec((tm, Kp), lambda m, n: (m, 0)),
                      pl.BlockSpec((Kp, tn), lambda m, n: (0, n))],
            out_specs=(pl.BlockSpec((tm, tn), lambda m, n: (m, n)),
                       pl.BlockSpec((1, 2, tn), lambda m, n: (m, 0, n))),
            compiler_params=pltpu.CompilerParams(
                dimension_semantics=("parallel", "parallel"),
                vmem_limit_bytes=_VMEM_LIMIT),
        )(a, b)
    else:
        out, stats = pl.pallas_call(
            _conv_matmul_kernel_acc,
            out_shape=out_shapes,
            grid=(n_mb, Np // tn, Kp // tk),
            in_specs=[pl.BlockSpec((tm, tk), lambda m, n, k: (m, k)),
                      pl.BlockSpec((tk, tn), lambda m, n, k: (k, n))],
            out_specs=(pl.BlockSpec((tm, tn), lambda m, n, k: (m, n)),
                       pl.BlockSpec((1, 2, tn), lambda m, n, k: (m, 0, n))),
            compiler_params=pltpu.CompilerParams(
                dimension_semantics=("parallel", "parallel", "arbitrary"),
                vmem_limit_bytes=_VMEM_LIMIT),
        )(a, b)
    return out, stats, (B, Ho, Wo, cout), M


def batchnorm(y_pad, stats, m_true, c_true, gamma, beta, *, relu,
              residual_pad=None, eps=1e-5, out_dtype=jnp.float32):
    """BatchNorm2d training-mode forward (batch stats, biased var) on a padded
    (Mp, Cp) slab. Mean/var come from the (sum, sum_sq) emitted by the conv
    kernel (no extra HBM pass over y); the per-element normalize+affine
    (+residual)(+ReLU) runs as a fused, M-tiled Pallas kernel.

    out_dtype=bfloat16 is used for intermediates that only feed the next conv
    (which would cast to bf16 anyway) -> same numerics, half the HBM traffic.
    """
    Mp, Cp = y_pad.shape
    s = jnp.sum(stats, axis=0)                              # (2, Cp); padded rows are zero
    mean = s[0] / m_true
    var = jnp.maximum(s[1] / m_true - mean * mean, 0.0)     # biased var (PyTorch training fwd)
    gp = jnp.pad(gamma, (0, Cp - c_true))
    bp = jnp.pad(beta, (0, Cp - c_true))
    scale = gp * jax.lax.rsqrt(var + eps)
    shift = bp - mean * scale

    tm = _largest_tile(Mp, 512, 16)
    args = [y_pad, scale.reshape(1, Cp), shift.reshape(1, Cp)]
    in_specs = [pl.BlockSpec((tm, Cp), lambda i: (i, 0)),
                pl.BlockSpec((1, Cp), lambda i: (0, 0)),
                pl.BlockSpec((1, Cp), lambda i: (0, 0))]
    if residual_pad is not None:
        args.append(residual_pad)
        in_specs.append(pl.BlockSpec((tm, Cp), lambda i: (i, 0)))

    out = pl.pallas_call(
        _make_affine_kernel(residual_pad is not None, relu),
        out_shape=jax.ShapeDtypeStruct((Mp, Cp), out_dtype),
        grid=(Mp // tm,),
        in_specs=in_specs,
        out_specs=pl.BlockSpec((tm, Cp), lambda i: (i, 0)),
        compiler_params=pltpu.CompilerParams(
            dimension_semantics=("parallel",),
            vmem_limit_bytes=_VMEM_LIMIT),
    )(*args)
    return out


def maxpool(x_nhwc, k=3, stride=2, padding=1):
    """MaxPool2d(k=3, s=2, p=1): window gather in JAX, M-tiled max-reduce in Pallas."""
    B, H, W, C = x_nhwc.shape
    neg = jnp.finfo(jnp.float32).min
    xp = jnp.pad(x_nhwc, ((0, 0), (padding, padding), (padding, padding), (0, 0)),
                 constant_values=neg)
    Ho = (H + 2 * padding - k) // stride + 1
    Wo = (W + 2 * padding - k) // stride + 1
    # TODO(synk): the k*k window stack is still materialized in HBM; an in-kernel
    # shifted-window reduction would remove that traffic (pool runs once per fwd).
    cols = []
    for i in range(k):
        for j in range(k):
            cols.append(xp[:, i:i + stride * Ho:stride, j:j + stride * Wo:stride, :])
    p = jnp.stack(cols, axis=0).reshape(k * k, B * Ho * Wo, C)

    M = B * Ho * Wo
    Mp, Cp = _round_up(M, 8), _round_up(C, 128)
    if Mp != M or Cp != C:
        p = jnp.pad(p, ((0, 0), (0, Mp - M), (0, Cp - C)), constant_values=neg)
    tm = _largest_tile(Mp, 512, 8)

    out = pl.pallas_call(
        _maxpool_kernel,
        out_shape=jax.ShapeDtypeStruct((Mp, Cp), jnp.float32),
        grid=(Mp // tm,),
        in_specs=[pl.BlockSpec((k * k, tm, Cp), lambda i: (0, i, 0))],
        out_specs=pl.BlockSpec((tm, Cp), lambda i: (i, 0)),
        compiler_params=pltpu.CompilerParams(
            dimension_semantics=("parallel",),
            vmem_limit_bytes=_VMEM_LIMIT),
    )(p)
    return out[:M, :C].reshape(B, Ho, Wo, C)


# ----------------------------- ResNet structure -----------------------------

EXPANSION = 1          # BasicBlock (ResNet-18 style, per the module's logger)
LAYERS = (2, 2, 2, 2)  # ResNet-18 layer counts
LAYER_CHANNELS = (64, 128, 256, 256)   # matches the spec module (layer4 = 256)
LAYER_STRIDES = (1, 2, 1, 1)           # matches the spec module


def build_config(layers=LAYERS):
    cfg = []
    in_ch = 64
    for li, (channels, stride) in enumerate(zip(LAYER_CHANNELS, LAYER_STRIDES)):
        blocks_cfg = []
        for bidx in range(layers[li]):
            s = stride if bidx == 0 else 1
            icin = in_ch if bidx == 0 else channels * EXPANSION
            has_down = (s != 1 or icin != channels * EXPANSION)
            blocks_cfg.append((icin, channels, s, has_down))
        cfg.append(blocks_cfg)
        in_ch = channels * EXPANSION
    return cfg


def _to_wmat(w):
    """(Cout, Cin, kh, kw) conv weight -> (kh*kw*Cin, Cout) bf16 matmul weight.
    Hoisted out of the per-forward hot path (done once at init)."""
    cout, cin, kh, kw = w.shape
    return jnp.transpose(w, (2, 3, 1, 0)).reshape(kh * kw * cin, cout).astype(jnp.bfloat16)


def init_params(key, cfg):
    counter = [0]

    def nk():
        counter[0] += 1
        return jax.random.fold_in(key, counter[0])

    def conv_wmat(cout, cin, k):
        fan_in = cin * k * k
        w = jax.random.normal(nk(), (cout, cin, k, k), jnp.float32) * (2.0 / fan_in) ** 0.5
        return _to_wmat(w)

    def bn(c):
        g = 1.0 + 0.05 * jax.random.normal(nk(), (c,), jnp.float32)
        b = 0.05 * jax.random.normal(nk(), (c,), jnp.float32)
        return g, b

    params = {'conv1_wm': conv_wmat(64, 1, 7)}
    params['bn1_g'], params['bn1_b'] = bn(64)
    params['layers'] = []
    for blocks_cfg in cfg:
        layer_params = []
        for (icin, channels, s, has_down) in blocks_cfg:
            p = {'w1m': conv_wmat(channels, icin, 3)}
            p['g1'], p['b1'] = bn(channels)
            p['w2m'] = conv_wmat(channels, channels, 3)
            p['g2'], p['b2'] = bn(channels)
            if has_down:
                p['wdm'] = conv_wmat(channels, icin, 1)
                p['gd'], p['bd'] = bn(channels)
            layer_params.append(p)
        params['layers'].append(layer_params)
    return params


def basic_block(x, p, channels, stride, has_down):
    """out = relu(bn2(conv2(relu(bn1(conv1(x))))) + identity)."""
    B, H, W, Cin = x.shape

    y1, st1, shp1, m1 = conv2d(x, p['w1m'], 3, 3, channels, stride, 1)
    # BN1 output only feeds conv2 (which casts to bf16 anyway) -> emit bf16.
    y1 = batchnorm(y1, st1, m1, channels, p['g1'], p['b1'], relu=True,
                   out_dtype=jnp.bfloat16)
    x1 = y1[:m1, :channels].reshape(shp1)

    y2, st2, shp2, m2 = conv2d(x1, p['w2m'], 3, 3, channels, 1, 1)
    Mp2, Cp2 = y2.shape

    if has_down:
        yd, std, _, md = conv2d(x, p['wdm'], 1, 1, channels, stride, 0)
        identity = batchnorm(yd, std, md, channels, p['gd'], p['bd'], relu=False)
    else:
        ident = x.reshape(B * H * W, Cin)
        identity = jnp.pad(ident, ((0, Mp2 - B * H * W), (0, Cp2 - Cin)))
    assert identity.shape == y2.shape, (identity.shape, y2.shape)

    out = batchnorm(y2, st2, m2, channels, p['g2'], p['b2'], relu=True,
                    residual_pad=identity)
    return out[:m2, :channels].reshape(shp2)


def resnet_forward(params, x_nchw, cfg):
    x = jnp.transpose(x_nchw, (0, 2, 3, 1)).astype(jnp.float32)  # NCHW -> NHWC

    # stem: conv1(7x7,s2,p3) -> bn1 -> relu -> maxpool(3,s2,p1)
    # (stem BN stays f32: its output also feeds the f32 residual of layer1 block0)
    y, st, shp, m = conv2d(x, params['conv1_wm'], 7, 7, 64, 2, 3)
    y = batchnorm(y, st, m, 64, params['bn1_g'], params['bn1_b'], relu=True)
    x = y[:m, :64].reshape(shp)
    x = maxpool(x)

    # TODO(synk): BN running-stat (momentum) updates are a training side effect
    # with no bearing on the forward output; not reproduced here.
    for layer_params, blocks_cfg in zip(params['layers'], cfg):
        for p, (_icin, channels, s, has_down) in zip(layer_params, blocks_cfg):
            x = basic_block(x, p, channels, s, has_down)

    return jnp.transpose(x, (0, 3, 1, 2))  # NHWC -> NCHW


if __name__ == "__main__":
    key = jax.random.PRNGKey(0)
    cfg = build_config()
    params = init_params(jax.random.fold_in(key, 1), cfg)
    x = jax.random.normal(jax.random.fold_in(key, 2), (2, 1, 32, 32), jnp.float32)

    fwd = jax.jit(functools.partial(resnet_forward, cfg=cfg))
    out = jax.block_until_ready(fwd(params, x))

    assert out.shape == (2, 256, 4, 4), out.shape
    assert bool(jnp.all(jnp.isfinite(out)))
    print("KERNEL_OK")
</pallas_src>

<mosaic_0001>
module attributes {stable_mosaic.version = 11 : i64} {
  func.func @_conv_matmul_kernel_single(%arg0: i32, %arg1: i32, %arg2: memref<512x128xbf16, #tpu.memory_space<vmem>>, %arg3: memref<128x128xbf16, #tpu.memory_space<vmem>>, %arg4: memref<512x128xf32, #tpu.memory_space<vmem>>, %arg5: memref<1x2x128xf32, #tpu.memory_space<vmem>>) attributes {dimension_semantics = [#tpu.dimension_semantics<parallel>, #tpu.dimension_semantics<parallel>], iteration_bounds = array<i64: 1, 1>, scalar_prefetch = 0 : i64, scratch_operands = 0 : i64, tpu.core_type = #tpu.core_type<tc>, window_params = [{transform_indices = @transform_0, window_bounds = array<i64: 512, 128>}, {transform_indices = @transform_1, window_bounds = array<i64: 128, 128>}, {transform_indices = @transform_2, window_bounds = array<i64: 512, 128>}, {transform_indices = @transform_3, window_bounds = array<i64: 1, 2, 128>}]} {
    %c0 = arith.constant 0 : index
    %c0_0 = arith.constant 0 : index
    %0 = vector.load %arg2[%c0, %c0_0] : memref<512x128xbf16, #tpu.memory_space<vmem>>, vector<512x128xbf16>
    %c0_1 = arith.constant 0 : index
    %c0_2 = arith.constant 0 : index
    %1 = vector.load %arg3[%c0_1, %c0_2] : memref<128x128xbf16, #tpu.memory_space<vmem>>, vector<128x128xbf16>
    %cst = arith.constant dense<0.000000e+00> : vector<512x128xf32>
    %2 = tpu.matmul %0, %1, %cst {dimension_numbers = #tpu.dot_dimension_numbers<[1], [0], [0], [1], [0, 0, 1, 1], [], []>} : vector<512x128xbf16>, vector<128x128xbf16>, vector<512x128xf32> -> vector<512x128xf32>
    %c0_3 = arith.constant 0 : index
    %c0_4 = arith.constant 0 : index
    %3 = vector.load %arg4[%c0_3, %c0_4] : memref<512x128xf32, #tpu.memory_space<vmem>>, vector<512x128xf32>
    tpu.vector_store %arg4[%c0_3, %c0_4], %2 {strides = array<i32>} : memref<512x128xf32, #tpu.memory_space<vmem>>, vector<512x128xf32>,
    %cst_5 = arith.constant dense<0.000000e+00> : vector<128xf32>
    %4 = vector.multi_reduction <add>, %2, %cst_5 [0] : vector<512x128xf32> to vector<128xf32>
    %5 = vector.shape_cast %4 : vector<128xf32> to vector<1x128xf32>
    %6 = arith.mulf %2, %2 : vector<512x128xf32>
    %cst_6 = arith.constant dense<0.000000e+00> : vector<128xf32>
    %7 = vector.multi_reduction <add>, %6, %cst_6 [0] : vector<512x128xf32> to vector<128xf32>
    %8 = vector.shape_cast %7 : vector<128xf32> to vector<1x128xf32>
    %9 = tpu.concatenate %5, %8 in 0 : vector<1x128xf32>, vector<1x128xf32> -> vector<2x128xf32>
    %c0_7 = arith.constant 0 : index
    %c0_8 = arith.constant 0 : index
    %c0_9 = arith.constant 0 : index
    %10 = vector.load %arg5[%c0_7, %c0_8, %c0_9] : memref<1x2x128xf32, #tpu.memory_space<vmem>>, vector<1x2x128xf32>
    %11 = vector.shape_cast %10 : vector<1x2x128xf32> to vector<2x128xf32>
    %12 = vector.shape_cast %9 : vector<2x128xf32> to vector<1x2x128xf32>
    tpu.vector_store %arg5[%c0_7, %c0_8, %c0_9], %12 {strides = array<i32>} : memref<1x2x128xf32, #tpu.memory_space<vmem>>, vector<1x2x128xf32>,
    return
  }
  func.func @transform_0(%arg0: i32, %arg1: i32) -> (i32, i32) {
    %c0_i32 = arith.constant 0 : i32
    %c0_i32_0 = arith.constant 0 : i32
    return %arg0, %c0_i32 : i32, i32
  }
  func.func @transform_1(%arg0: i32, %arg1: i32) -> (i32, i32) {
    %c0_i32 = arith.constant 0 : i32
    %c0_i32_0 = arith.constant 0 : i32
    return %c0_i32, %arg1 : i32, i32
  }
  func.func @transform_2(%arg0: i32, %arg1: i32) -> (i32, i32) {
    %c0_i32 = arith.constant 0 : i32
    return %arg0, %arg1 : i32, i32
  }
  func.func @transform_3(%arg0: i32, %arg1: i32) -> (i32, i32, i32) {
    %c0_i32 = arith.constant 0 : i32
    %c0_i32_0 = arith.constant 0 : i32
    return %arg0, %c0_i32, %arg1 : i32, i32, i32
  }
}

module attributes {stable_mosaic.version = 11 : i64} {
  func.func @kernel(%arg0: i32, %arg1: memref<512x128xf32, #tpu.memory_space<vmem>>, %arg2: memref<1x128xf32, #tpu.memory_space<vmem>>, %arg3: memref<1x128xf32, #tpu.memory_space<vmem>>, %arg4: memref<512x128xf32, #tpu.memory_space<vmem>>) attributes {dimension_semantics = [#tpu.dimension_semantics<parallel>], iteration_bounds = array<i64: 1>, scalar_prefetch = 0 : i64, scratch_operands = 0 : i64, tpu.core_type = #tpu.core_type<tc>, window_params = [{transform_indices = @transform_0, window_bounds = array<i64: 512, 128>}, {pipeline_mode = #tpu.pipeline_mode<synchronous>, transform_indices = @transform_1, window_bounds = array<i64: 1, 128>}, {pipeline_mode = #tpu.pipeline_mode<synchronous>, transform_indices = @transform_2, window_bounds = array<i64: 1, 128>}, {transform_indices = @transform_3, window_bounds = array<i64: 512, 128>}]} {
    %c0 = arith.constant 0 : index
    %c0_0 = arith.constant 0 : index
    %0 = vector.load %arg1[%c0, %c0_0] : memref<512x128xf32, #tpu.memory_space<vmem>>, vector<512x128xf32>
    %c0_1 = arith.constant 0 : index
    %c0_2 = arith.constant 0 : index
    %1 = vector.load %arg2[%c0_1, %c0_2] : memref<1x128xf32, #tpu.memory_space<vmem>>, vector<1x128xf32>
    %2 = vector.broadcast %1 : vector<1x128xf32> to vector<512x128xf32>
    %3 = arith.mulf %0, %2 : vector<512x128xf32>
    %c0_3 = arith.constant 0 : index
    %c0_4 = arith.constant 0 : index
    %4 = vector.load %arg3[%c0_3, %c0_4] : memref<1x128xf32, #tpu.memory_space<vmem>>, vector<1x128xf32>
    %5 = vector.broadcast %4 : vector<1x128xf32> to vector<512x128xf32>
    %6 = arith.addf %3, %5 : vector<512x128xf32>
    %cst = arith.constant 0.000000e+00 : f32
    %7 = vector.broadcast %cst : f32 to vector<512x128xf32>
    %8 = arith.maximumf %6, %7 : vector<512x128xf32>
    %c0_5 = arith.constant 0 : index
    %c0_6 = arith.constant 0 : index
    %9 = vector.load %arg4[%c0_5, %c0_6] : memref<512x128xf32, #tpu.memory_space<vmem>>, vector<512x128xf32>
    tpu.vector_store %arg4[%c0_5, %c0_6], %8 {strides = array<i32>} : memref<512x128xf32, #tpu.memory_space<vmem>>, vector<512x128xf32>,
    return
  }
  func.func @transform_0(%arg0: i32) -> (i32, i32) {
    %c0_i32 = arith.constant 0 : i32
    %c0_i32_0 = arith.constant 0 : i32
    return %arg0, %c0_i32 : i32, i32
  }
  func.func @transform_1(%arg0: i32) -> (i32, i32) {
    %c0_i32 = arith.constant 0 : i32
    %c0_i32_0 = arith.constant 0 : i32
    %c0_i32_1 = arith.constant 0 : i32
    return %c0_i32, %c0_i32_0 : i32, i32
  }
  func.func @transform_2(%arg0: i32) -> (i32, i32) {
    %c0_i32 = arith.constant 0 : i32
    %c0_i32_0 = arith.constant 0 : i32
    %c0_i32_1 = arith.constant 0 : i32
    return %c0_i32, %c0_i32_0 : i32, i32
  }
  func.func @transform_3(%arg0: i32) -> (i32, i32) {
    %c0_i32 = arith.constant 0 : i32
    %c0_i32_0 = arith.constant 0 : i32
    return %arg0, %c0_i32 : i32, i32
  }
}

module attributes {stable_mosaic.version = 11 : i64} {
  func.func @_maxpool_kernel(%arg0: i32, %arg1: memref<9x128x128xf32, #tpu.memory_space<vmem>>, %arg2: memref<128x128xf32, #tpu.memory_space<vmem>>) attributes {dimension_semantics = [#tpu.dimension_semantics<parallel>], iteration_bounds = array<i64: 1>, scalar_prefetch = 0 : i64, scratch_operands = 0 : i64, tpu.core_type = #tpu.core_type<tc>, window_params = [{transform_indices = @transform_0, window_bounds = array<i64: 9, 128, 128>}, {transform_indices = @transform_1, window_bounds = array<i64: 128, 128>}]} {
    %c0 = arith.constant 0 : index
    %c0_0 = arith.constant 0 : index
    %c0_1 = arith.constant 0 : index
    %0 = vector.load %arg1[%c0, %c0_0, %c0_1] : memref<9x128x128xf32, #tpu.memory_space<vmem>>, vector<9x128x128xf32>
    %cst = arith.constant dense<0xFF800000> : vector<128x128xf32>
    %1 = vector.multi_reduction <maximumf>, %0, %cst [0] : vector<9x128x128xf32> to vector<128x128xf32>
    %c0_2 = arith.constant 0 : index
    %c0_3 = arith.constant 0 : index
    %2 = vector.load %arg2[%c0_2, %c0_3] : memref<128x128xf32, #tpu.memory_space<vmem>>, vector<128x128xf32>
    tpu.vector_store %arg2[%c0_2, %c0_3], %1 {strides = array<i32>} : memref<128x128xf32, #tpu.memory_space<vmem>>, vector<128x128xf32>,
    return
  }
  func.func @transform_0(%arg0: i32) -> (i32, i32, i32) {
    %c0_i32 = arith.constant 0 : i32
    %c0_i32_0 = arith.constant 0 : i32
    %c0_i32_1 = arith.constant 0 : i32
    return %c0_i32, %arg0, %c0_i32_0 : i32, i32, i32
  }
  func.func @transform_1(%arg0: i32) -> (i32, i32) {
    %c0_i32 = arith.constant 0 : i32
    %c0_i32_0 = arith.constant 0 : i32
    return %arg0, %c0_i32 : i32, i32
  }
}

module attributes {stable_mosaic.version = 11 : i64} {
  func.func @kernel(%arg0: i32, %arg1: memref<128x128xf32, #tpu.memory_space<vmem>>, %arg2: memref<1x128xf32, #tpu.memory_space<vmem>>, %arg3: memref<1x128xf32, #tpu.memory_space<vmem>>, %arg4: memref<128x128xbf16, #tpu.memory_space<vmem>>) attributes {dimension_semantics = [#tpu.dimension_semantics<parallel>], iteration_bounds = array<i64: 1>, scalar_prefetch = 0 : i64, scratch_operands = 0 : i64, tpu.core_type = #tpu.core_type<tc>, window_params = [{transform_indices = @transform_0, window_bounds = array<i64: 128, 128>}, {pipeline_mode = #tpu.pipeline_mode<synchronous>, transform_indices = @transform_1, window_bounds = array<i64: 1, 128>}, {pipeline_mode = #tpu.pipeline_mode<synchronous>, transform_indices = @transform_2, window_bounds = array<i64: 1, 128>}, {transform_indices = @transform_3, window_bounds = array<i64: 128, 128>}]} {
    %c0 = arith.constant 0 : index
    %c0_0 = arith.constant 0 : index
    %0 = vector.load %arg1[%c0, %c0_0] : memref<128x128xf32, #tpu.memory_space<vmem>>, vector<128x128xf32>
    %c0_1 = arith.constant 0 : index
    %c0_2 = arith.constant 0 : index
    %1 = vector.load %arg2[%c0_1, %c0_2] : memref<1x128xf32, #tpu.memory_space<vmem>>, vector<1x128xf32>
    %2 = vector.broadcast %1 : vector<1x128xf32> to vector<128x128xf32>
    %3 = arith.mulf %0, %2 : vector<128x128xf32>
    %c0_3 = arith.constant 0 : index
    %c0_4 = arith.constant 0 : index
    %4 = vector.load %arg3[%c0_3, %c0_4] : memref<1x128xf32, #tpu.memory_space<vmem>>, vector<1x128xf32>
    %5 = vector.broadcast %4 : vector<1x128xf32> to vector<128x128xf32>
    %6 = arith.addf %3, %5 : vector<128x128xf32>
    %cst = arith.constant 0.000000e+00 : f32
    %7 = vector.broadcast %cst : f32 to vector<128x128xf32>
    %8 = arith.maximumf %6, %7 : vector<128x128xf32>
    %9 = arith.truncf %8 : vector<128x128xf32> to vector<128x128xbf16>
    %c0_5 = arith.constant 0 : index
    %c0_6 = arith.constant 0 : index
    %10 = vector.load %arg4[%c0_5, %c0_6] : memref<128x128xbf16, #tpu.memory_space<vmem>>, vector<128x128xbf16>
    tpu.vector_store %arg4[%c0_5, %c0_6], %9 {strides = array<i32>} : memref<128x128xbf16, #tpu.memory_space<vmem>>, vector<128x128xbf16>,
    return
  }
  func.func @transform_0(%arg0: i32) -> (i32, i32) {
    %c0_i32 = arith.constant 0 : i32
    %c0_i32_0 = arith.constant 0 : i32
    return %arg0, %c0_i32 : i32, i32
  }
  func.func @transform_1(%arg0: i32) -> (i32, i32) {
    %c0_i32 = arith.constant 0 : i32
    %c0_i32_0 = arith.constant 0 : i32
    %c0_i32_1 = arith.constant 0 : i32
    return %c0_i32, %c0_i32_0 : i32, i32
  }
  func.func @transform_2(%arg0: i32) -> (i32, i32) {
    %c0_i32 = arith.constant 0 : i32
    %c0_i32_0 = arith.constant 0 : i32
    %c0_i32_1 = arith.constant 0 : i32
    return %c0_i32, %c0_i32_0 : i32, i32
  }
  func.func @transform_3(%arg0: i32) -> (i32, i32) {
    %c0_i32 = arith.constant 0 : i32
    %c0_i32_0 = arith.constant 0 : i32
    return %arg0, %c0_i32 : i32, i32
  }
}

module attributes {stable_mosaic.version = 11 : i64} {
  func.func @_conv_matmul_kernel_single(%arg0: i32, %arg1: i32, %arg2: memref<128x640xbf16, #tpu.memory_space<vmem>>, %arg3: memref<640x128xbf16, #tpu.memory_space<vmem>>, %arg4: memref<128x128xf32, #tpu.memory_space<vmem>>, %arg5: memref<1x2x128xf32, #tpu.memory_space<vmem>>) attributes {dimension_semantics = [#tpu.dimension_semantics<parallel>, #tpu.dimension_semantics<parallel>], iteration_bounds = array<i64: 1, 1>, scalar_prefetch = 0 : i64, scratch_operands = 0 : i64, tpu.core_type = #tpu.core_type<tc>, window_params = [{transform_indices = @transform_0, window_bounds = array<i64: 128, 640>}, {transform_indices = @transform_1, window_bounds = array<i64: 640, 128>}, {transform_indices = @transform_2, window_bounds = array<i64: 128, 128>}, {transform_indices = @transform_3, window_bounds = array<i64: 1, 2, 128>}]} {
    %c0 = arith.constant 0 : index
    %c0_0 = arith.constant 0 : index
    %0 = vector.load %arg2[%c0, %c0_0] : memref<128x640xbf16, #tpu.memory_space<vmem>>, vector<128x640xbf16>
    %c0_1 = arith.constant 0 : index
    %c0_2 = arith.constant 0 : index
    %1 = vector.load %arg3[%c0_1, %c0_2] : memref<640x128xbf16, #tpu.memory_space<vmem>>, vector<640x128xbf16>
    %cst = arith.constant dense<0.000000e+00> : vector<128x128xf32>
    %2 = tpu.matmul %0, %1, %cst {dimension_numbers = #tpu.dot_dimension_numbers<[1], [0], [0], [1], [0, 0, 1, 1], [], []>} : vector<128x640xbf16>, vector<640x128xbf16>, vector<128x128xf32> -> vector<128x128xf32>
    %c0_3 = arith.constant 0 : index
    %c0_4 = arith.constant 0 : index
    %3 = vector.load %arg4[%c0_3, %c0_4] : memref<128x128xf32, #tpu.memory_space<vmem>>, vector<128x128xf32>
    tpu.vector_store %arg4[%c0_3, %c0_4], %2 {strides = array<i32>} : memref<128x128xf32, #tpu.memory_space<vmem>>, vector<128x128xf32>,
    %cst_5 = arith.constant dense<0.000000e+00> : vector<128xf32>
    %4 = vector.multi_reduction <add>, %2, %cst_5 [0] : vector<128x128xf32> to vector<128xf32>
    %5 = vector.shape_cast %4 : vector<128xf32> to vector<1x128xf32>
    %6 = arith.mulf %2, %2 : vector<128x128xf32>
    %cst_6 = arith.constant dense<0.000000e+00> : vector<128xf32>
    %7 = vector.multi_reduction <add>, %6, %cst_6 [0] : vector<128x128xf32> to vector<128xf32>
    %8 = vector.shape_cast %7 : vector<128xf32> to vector<1x128xf32>
    %9 = tpu.concatenate %5, %8 in 0 : vector<1x128xf32>, vector<1x128xf32> -> vector<2x128xf32>
    %c0_7 = arith.constant 0 : index
    %c0_8 = arith.constant 0 : index
    %c0_9 = arith.constant 0 : index
    %10 = vector.load %arg5[%c0_7, %c0_8, %c0_9] : memref<1x2x128xf32, #tpu.memory_space<vmem>>, vector<1x2x128xf32>
    %11 = vector.shape_cast %10 : vector<1x2x128xf32> to vector<2x128xf32>
    %12 = vector.shape_cast %9 : vector<2x128xf32> to vector<1x2x128xf32>
    tpu.vector_store %arg5[%c0_7, %c0_8, %c0_9], %12 {strides = array<i32>} : memref<1x2x128xf32, #tpu.memory_space<vmem>>, vector<1x2x128xf32>,
    return
  }
  func.func @transform_0(%arg0: i32, %arg1: i32) -> (i32, i32) {
    %c0_i32 = arith.constant 0 : i32
    %c0_i32_0 = arith.constant 0 : i32
    return %arg0, %c0_i32 : i32, i32
  }
  func.func @transform_1(%arg0: i32, %arg1: i32) -> (i32, i32) {
    %c0_i32 = arith.constant 0 : i32
    %c0_i32_0 = arith.constant 0 : i32
    return %c0_i32, %arg1 : i32, i32
  }
  func.func @transform_2(%arg0: i32, %arg1: i32) -> (i32, i32) {
    %c0_i32 = arith.constant 0 : i32
    return %arg0, %arg1 : i32, i32
  }
  func.func @transform_3(%arg0: i32, %arg1: i32) -> (i32, i32, i32) {
    %c0_i32 = arith.constant 0 : i32
    %c0_i32_0 = arith.constant 0 : i32
    return %arg0, %c0_i32, %arg1 : i32, i32, i32
  }
}

module attributes {stable_mosaic.version = 11 : i64} {
  func.func @kernel(%arg0: i32, %arg1: memref<128x128xf32, #tpu.memory_space<vmem>>, %arg2: memref<1x128xf32, #tpu.memory_space<vmem>>, %arg3: memref<1x128xf32, #tpu.memory_space<vmem>>, %arg4: memref<128x128xf32, #tpu.memory_space<vmem>>, %arg5: memref<128x128xf32, #tpu.memory_space<vmem>>) attributes {dimension_semantics = [#tpu.dimension_semantics<parallel>], iteration_bounds = array<i64: 1>, scalar_prefetch = 0 : i64, scratch_operands = 0 : i64, tpu.core_type = #tpu.core_type<tc>, window_params = [{transform_indices = @transform_0, window_bounds = array<i64: 128, 128>}, {pipeline_mode = #tpu.pipeline_mode<synchronous>, transform_indices = @transform_1, window_bounds = array<i64: 1, 128>}, {pipeline_mode = #tpu.pipeline_mode<synchronous>, transform_indices = @transform_2, window_bounds = array<i64: 1, 128>}, {transform_indices = @transform_3, window_bounds = array<i64: 128, 128>}, {transform_indices = @transform_4, window_bounds = array<i64: 128, 128>}]} {
    %c0 = arith.constant 0 : index
    %c0_0 = arith.constant 0 : index
    %0 = vector.load %arg1[%c0, %c0_0] : memref<128x128xf32, #tpu.memory_space<vmem>>, vector<128x128xf32>
    %c0_1 = arith.constant 0 : index
    %c0_2 = arith.constant 0 : index
    %1 = vector.load %arg2[%c0_1, %c0_2] : memref<1x128xf32, #tpu.memory_space<vmem>>, vector<1x128xf32>
    %2 = vector.broadcast %1 : vector<1x128xf32> to vector<128x128xf32>
    %3 = arith.mulf %0, %2 : vector<128x128xf32>
    %c0_3 = arith.constant 0 : index
    %c0_4 = arith.constant 0 : index
    %4 = vector.load %arg3[%c0_3, %c0_4] : memref<1x128xf32, #tpu.memory_space<vmem>>, vector<1x128xf32>
    %5 = vector.broadcast %4 : vector<1x128xf32> to vector<128x128xf32>
    %6 = arith.addf %3, %5 : vector<128x128xf32>
    %c0_5 = arith.constant 0 : index
    %c0_6 = arith.constant 0 : index
    %7 = vector.load %arg4[%c0_5, %c0_6] : memref<128x128xf32, #tpu.memory_space<vmem>>, vector<128x128xf32>
    %8 = arith.addf %6, %7 : vector<128x128xf32>
    %cst = arith.constant 0.000000e+00 : f32
    %9 = vector.broadcast %cst : f32 to vector<128x128xf32>
    %10 = arith.maximumf %8, %9 : vector<128x128xf32>
    %c0_7 = arith.constant 0 : index
    %c0_8 = arith.constant 0 : index
    %11 = vector.load %arg5[%c0_7, %c0_8] : memref<128x128xf32, #tpu.memory_space<vmem>>, vector<128x128xf32>
    tpu.vector_store %arg5[%c0_7, %c0_8], %10 {strides = array<i32>} : memref<128x128xf32, #tpu.memory_space<vmem>>, vector<128x128xf32>,
    return
  }
  func.func @transform_0(%arg0: i32) -> (i32, i32) {
    %c0_i32 = arith.constant 0 : i32
    %c0_i32_0 = arith.constant 0 : i32
    return %arg0, %c0_i32 : i32, i32
  }
  func.func @transform_1(%arg0: i32) -> (i32, i32) {
    %c0_i32 = arith.constant 0 : i32
    %c0_i32_0 = arith.constant 0 : i32
    %c0_i32_1 = arith.constant 0 : i32
    return %c0_i32, %c0_i32_0 : i32, i32
  }
  func.func @transform_2(%arg0: i32) -> (i32, i32) {
    %c0_i32 = arith.constant 0 : i32
    %c0_i32_0 = arith.constant 0 : i32
    %c0_i32_1 = arith.constant 0 : i32
    return %c0_i32, %c0_i32_0 : i32, i32
  }
  func.func @transform_3(%arg0: i32) -> (i32, i32) {
    %c0_i32 = arith.constant 0 : i32
    %c0_i32_0 = arith.constant 0 : i32
    return %arg0, %c0_i32 : i32, i32
  }
  func.func @transform_4(%arg0: i32) -> (i32, i32) {
    %c0_i32 = arith.constant 0 : i32
    %c0_i32_0 = arith.constant 0 : i32
    return %arg0, %c0_i32 : i32, i32
  }
}

module attributes {stable_mosaic.version = 11 : i64} {
  func.func @kernel(%arg0: i32, %arg1: memref<32x128xf32, #tpu.memory_space<vmem>>, %arg2: memref<1x128xf32, #tpu.memory_space<vmem>>, %arg3: memref<1x128xf32, #tpu.memory_space<vmem>>, %arg4: memref<32x128xf32, #tpu.memory_space<vmem>>) attributes {dimension_semantics = [#tpu.dimension_semantics<parallel>], iteration_bounds = array<i64: 1>, scalar_prefetch = 0 : i64, scratch_operands = 0 : i64, tpu.core_type = #tpu.core_type<tc>, window_params = [{transform_indices = @transform_0, window_bounds = array<i64: 32, 128>}, {pipeline_mode = #tpu.pipeline_mode<synchronous>, transform_indices = @transform_1, window_bounds = array<i64: 1, 128>}, {pipeline_mode = #tpu.pipeline_mode<synchronous>, transform_indices = @transform_2, window_bounds = array<i64: 1, 128>}, {transform_indices = @transform_3, window_bounds = array<i64: 32, 128>}]} {
    %c0 = arith.constant 0 : index
    %c0_0 = arith.constant 0 : index
    %0 = vector.load %arg1[%c0, %c0_0] : memref<32x128xf32, #tpu.memory_space<vmem>>, vector<32x128xf32>
    %c0_1 = arith.constant 0 : index
    %c0_2 = arith.constant 0 : index
    %1 = vector.load %arg2[%c0_1, %c0_2] : memref<1x128xf32, #tpu.memory_space<vmem>>, vector<1x128xf32>
    %2 = vector.broadcast %1 : vector<1x128xf32> to vector<32x128xf32>
    %3 = arith.mulf %0, %2 : vector<32x128xf32>
    %c0_3 = arith.constant 0 : index
    %c0_4 = arith.constant 0 : index
    %4 = vector.load %arg3[%c0_3, %c0_4] : memref<1x128xf32, #tpu.memory_space<vmem>>, vector<1x128xf32>
    %5 = vector.broadcast %4 : vector<1x128xf32> to vector<32x128xf32>
    %6 = arith.addf %3, %5 : vector<32x128xf32>
    %c0_5 = arith.constant 0 : index
    %c0_6 = arith.constant 0 : index
    %7 = vector.load %arg4[%c0_5, %c0_6] : memref<32x128xf32, #tpu.memory_space<vmem>>, vector<32x128xf32>
    tpu.vector_store %arg4[%c0_5, %c0_6], %6 {strides = array<i32>} : memref<32x128xf32, #tpu.memory_space<vmem>>, vector<32x128xf32>,
    return
  }
  func.func @transform_0(%arg0: i32) -> (i32, i32) {
    %c0_i32 = arith.constant 0 : i32
    %c0_i32_0 = arith.constant 0 : i32
    return %arg0, %c0_i32 : i32, i32
  }
  func.func @transform_1(%arg0: i32) -> (i32, i32) {
    %c0_i32 = arith.constant 0 : i32
    %c0_i32_0 = arith.constant 0 : i32
    %c0_i32_1 = arith.constant 0 : i32
    return %c0_i32, %c0_i32_0 : i32, i32
  }
  func.func @transform_2(%arg0: i32) -> (i32, i32) {
    %c0_i32 = arith.constant 0 : i32
    %c0_i32_0 = arith.constant 0 : i32
    %c0_i32_1 = arith.constant 0 : i32
    return %c0_i32, %c0_i32_0 : i32, i32
  }
  func.func @transform_3(%arg0: i32) -> (i32, i32) {
    %c0_i32 = arith.constant 0 : i32
    %c0_i32_0 = arith.constant 0 : i32
    return %arg0, %c0_i32 : i32, i32
  }
}

module attributes {stable_mosaic.version = 11 : i64} {
  func.func @_conv_matmul_kernel_single(%arg0: i32, %arg1: i32, %arg2: memref<32x128xbf16, #tpu.memory_space<vmem>>, %arg3: memref<128x128xbf16, #tpu.memory_space<vmem>>, %arg4: memref<32x128xf32, #tpu.memory_space<vmem>>, %arg5: memref<1x2x128xf32, #tpu.memory_space<vmem>>) attributes {dimension_semantics = [#tpu.dimension_semantics<parallel>, #tpu.dimension_semantics<parallel>], iteration_bounds = array<i64: 1, 1>, scalar_prefetch = 0 : i64, scratch_operands = 0 : i64, tpu.core_type = #tpu.core_type<tc>, window_params = [{transform_indices = @transform_0, window_bounds = array<i64: 32, 128>}, {transform_indices = @transform_1, window_bounds = array<i64: 128, 128>}, {transform_indices = @transform_2, window_bounds = array<i64: 32, 128>}, {transform_indices = @transform_3, window_bounds = array<i64: 1, 2, 128>}]} {
    %c0 = arith.constant 0 : index
    %c0_0 = arith.constant 0 : index
    %0 = vector.load %arg2[%c0, %c0_0] : memref<32x128xbf16, #tpu.memory_space<vmem>>, vector<32x128xbf16>
    %c0_1 = arith.constant 0 : index
    %c0_2 = arith.constant 0 : index
    %1 = vector.load %arg3[%c0_1, %c0_2] : memref<128x128xbf16, #tpu.memory_space<vmem>>, vector<128x128xbf16>
    %cst = arith.constant dense<0.000000e+00> : vector<32x128xf32>
    %2 = tpu.matmul %0, %1, %cst {dimension_numbers = #tpu.dot_dimension_numbers<[1], [0], [0], [1], [0, 0, 1, 1], [], []>} : vector<32x128xbf16>, vector<128x128xbf16>, vector<32x128xf32> -> vector<32x128xf32>
    %c0_3 = arith.constant 0 : index
    %c0_4 = arith.constant 0 : index
    %3 = vector.load %arg4[%c0_3, %c0_4] : memref<32x128xf32, #tpu.memory_space<vmem>>, vector<32x128xf32>
    tpu.vector_store %arg4[%c0_3, %c0_4], %2 {strides = array<i32>} : memref<32x128xf32, #tpu.memory_space<vmem>>, vector<32x128xf32>,
    %cst_5 = arith.constant dense<0.000000e+00> : vector<128xf32>
    %4 = vector.multi_reduction <add>, %2, %cst_5 [0] : vector<32x128xf32> to vector<128xf32>
    %5 = vector.shape_cast %4 : vector<128xf32> to vector<1x128xf32>
    %6 = arith.mulf %2, %2 : vector<32x128xf32>
    %cst_6 = arith.constant dense<0.000000e+00> : vector<128xf32>
    %7 = vector.multi_reduction <add>, %6, %cst_6 [0] : vector<32x128xf32> to vector<128xf32>
    %8 = vector.shape_cast %7 : vector<128xf32> to vector<1x128xf32>
    %9 = tpu.concatenate %5, %8 in 0 : vector<1x128xf32>, vector<1x128xf32> -> vector<2x128xf32>
    %c0_7 = arith.constant 0 : index
    %c0_8 = arith.constant 0 : index
    %c0_9 = arith.constant 0 : index
    %10 = vector.load %arg5[%c0_7, %c0_8, %c0_9] : memref<1x2x128xf32, #tpu.memory_space<vmem>>, vector<1x2x128xf32>
    %11 = vector.shape_cast %10 : vector<1x2x128xf32> to vector<2x128xf32>
    %12 = vector.shape_cast %9 : vector<2x128xf32> to vector<1x2x128xf32>
    tpu.vector_store %arg5[%c0_7, %c0_8, %c0_9], %12 {strides = array<i32>} : memref<1x2x128xf32, #tpu.memory_space<vmem>>, vector<1x2x128xf32>,
    return
  }
  func.func @transform_0(%arg0: i32, %arg1: i32) -> (i32, i32) {
    %c0_i32 = arith.constant 0 : i32
    %c0_i32_0 = arith.constant 0 : i32
    return %arg0, %c0_i32 : i32, i32
  }
  func.func @transform_1(%arg0: i32, %arg1: i32) -> (i32, i32) {
    %c0_i32 = arith.constant 0 : i32
    %c0_i32_0 = arith.constant 0 : i32
    return %c0_i32, %arg1 : i32, i32
  }
  func.func @transform_2(%arg0: i32, %arg1: i32) -> (i32, i32) {
    %c0_i32 = arith.constant 0 : i32
    return %arg0, %arg1 : i32, i32
  }
  func.func @transform_3(%arg0: i32, %arg1: i32) -> (i32, i32, i32) {
    %c0_i32 = arith.constant 0 : i32
    %c0_i32_0 = arith.constant 0 : i32
    return %arg0, %c0_i32, %arg1 : i32, i32, i32
  }
}

module attributes {stable_mosaic.version = 11 : i64} {
  func.func @kernel(%arg0: i32, %arg1: memref<32x128xf32, #tpu.memory_space<vmem>>, %arg2: memref<1x128xf32, #tpu.memory_space<vmem>>, %arg3: memref<1x128xf32, #tpu.memory_space<vmem>>, %arg4: memref<32x128xbf16, #tpu.memory_space<vmem>>) attributes {dimension_semantics = [#tpu.dimension_semantics<parallel>], iteration_bounds = array<i64: 1>, scalar_prefetch = 0 : i64, scratch_operands = 0 : i64, tpu.core_type = #tpu.core_type<tc>, window_params = [{transform_indices = @transform_0, window_bounds = array<i64: 32, 128>}, {pipeline_mode = #tpu.pipeline_mode<synchronous>, transform_indices = @transform_1, window_bounds = array<i64: 1, 128>}, {pipeline_mode = #tpu.pipeline_mode<synchronous>, transform_indices = @transform_2, window_bounds = array<i64: 1, 128>}, {transform_indices = @transform_3, window_bounds = array<i64: 32, 128>}]} {
    %c0 = arith.constant 0 : index
    %c0_0 = arith.constant 0 : index
    %0 = vector.load %arg1[%c0, %c0_0] : memref<32x128xf32, #tpu.memory_space<vmem>>, vector<32x128xf32>
    %c0_1 = arith.constant 0 : index
    %c0_2 = arith.constant 0 : index
    %1 = vector.load %arg2[%c0_1, %c0_2] : memref<1x128xf32, #tpu.memory_space<vmem>>, vector<1x128xf32>
    %2 = vector.broadcast %1 : vector<1x128xf32> to vector<32x128xf32>
    %3 = arith.mulf %0, %2 : vector<32x128xf32>
    %c0_3 = arith.constant 0 : index
    %c0_4 = arith.constant 0 : index
    %4 = vector.load %arg3[%c0_3, %c0_4] : memref<1x128xf32, #tpu.memory_space<vmem>>, vector<1x128xf32>
    %5 = vector.broadcast %4 : vector<1x128xf32> to vector<32x128xf32>
    %6 = arith.addf %3, %5 : vector<32x128xf32>
    %cst = arith.constant 0.000000e+00 : f32
    %7 = vector.broadcast %cst : f32 to vector<32x128xf32>
    %8 = arith.maximumf %6, %7 : vector<32x128xf32>
    %9 = arith.truncf %8 : vector<32x128xf32> to vector<32x128xbf16>
    %c0_5 = arith.constant 0 : index
    %c0_6 = arith.constant 0 : index
    %10 = vector.load %arg4[%c0_5, %c0_6] : memref<32x128xbf16, #tpu.memory_space<vmem>>, vector<32x128xbf16>
    tpu.vector_store %arg4[%c0_5, %c0_6], %9 {strides = array<i32>} : memref<32x128xbf16, #tpu.memory_space<vmem>>, vector<32x128xbf16>,
    return
  }
  func.func @transform_0(%arg0: i32) -> (i32, i32) {
    %c0_i32 = arith.constant 0 : i32
    %c0_i32_0 = arith.constant 0 : i32
    return %arg0, %c0_i32 : i32, i32
  }
  func.func @transform_1(%arg0: i32) -> (i32, i32) {
    %c0_i32 = arith.constant 0 : i32
    %c0_i32_0 = arith.constant 0 : i32
    %c0_i32_1 = arith.constant 0 : i32
    return %c0_i32, %c0_i32_0 : i32, i32
  }
  func.func @transform_2(%arg0: i32) -> (i32, i32) {
    %c0_i32 = arith.constant 0 : i32
    %c0_i32_0 = arith.constant 0 : i32
    %c0_i32_1 = arith.constant 0 : i32
    return %c0_i32, %c0_i32_0 : i32, i32
  }
  func.func @transform_3(%arg0: i32) -> (i32, i32) {
    %c0_i32 = arith.constant 0 : i32
    %c0_i32_0 = arith.constant 0 : i32
    return %arg0, %c0_i32 : i32, i32
  }
}

module attributes {stable_mosaic.version = 11 : i64} {
  func.func @_conv_matmul_kernel_single(%arg0: i32, %arg1: i32, %arg2: memref<32x640xbf16, #tpu.memory_space<vmem>>, %arg3: memref<640x128xbf16, #tpu.memory_space<vmem>>, %arg4: memref<32x128xf32, #tpu.memory_space<vmem>>, %arg5: memref<1x2x128xf32, #tpu.memory_space<vmem>>) attributes {dimension_semantics = [#tpu.dimension_semantics<parallel>, #tpu.dimension_semantics<parallel>], iteration_bounds = array<i64: 1, 1>, scalar_prefetch = 0 : i64, scratch_operands = 0 : i64, tpu.core_type = #tpu.core_type<tc>, window_params = [{transform_indices = @transform_0, window_bounds = array<i64: 32, 640>}, {transform_indices = @transform_1, window_bounds = array<i64: 640, 128>}, {transform_indices = @transform_2, window_bounds = array<i64: 32, 128>}, {transform_indices = @transform_3, window_bounds = array<i64: 1, 2, 128>}]} {
    %c0 = arith.constant 0 : index
    %c0_0 = arith.constant 0 : index
    %0 = vector.load %arg2[%c0, %c0_0] : memref<32x640xbf16, #tpu.memory_space<vmem>>, vector<32x640xbf16>
    %c0_1 = arith.constant 0 : index
    %c0_2 = arith.constant 0 : index
    %1 = vector.load %arg3[%c0_1, %c0_2] : memref<640x128xbf16, #tpu.memory_space<vmem>>, vector<640x128xbf16>
    %cst = arith.constant dense<0.000000e+00> : vector<32x128xf32>
    %2 = tpu.matmul %0, %1, %cst {dimension_numbers = #tpu.dot_dimension_numbers<[1], [0], [0], [1], [0, 0, 1, 1], [], []>} : vector<32x640xbf16>, vector<640x128xbf16>, vector<32x128xf32> -> vector<32x128xf32>
    %c0_3 = arith.constant 0 : index
    %c0_4 = arith.constant 0 : index
    %3 = vector.load %arg4[%c0_3, %c0_4] : memref<32x128xf32, #tpu.memory_space<vmem>>, vector<32x128xf32>
    tpu.vector_store %arg4[%c0_3, %c0_4], %2 {strides = array<i32>} : memref<32x128xf32, #tpu.memory_space<vmem>>, vector<32x128xf32>,
    %cst_5 = arith.constant dense<0.000000e+00> : vector<128xf32>
    %4 = vector.multi_reduction <add>, %2, %cst_5 [0] : vector<32x128xf32> to vector<128xf32>
    %5 = vector.shape_cast %4 : vector<128xf32> to vector<1x128xf32>
    %6 = arith.mulf %2, %2 : vector<32x128xf32>
    %cst_6 = arith.constant dense<0.000000e+00> : vector<128xf32>
    %7 = vector.multi_reduction <add>, %6, %cst_6 [0] : vector<32x128xf32> to vector<128xf32>
    %8 = vector.shape_cast %7 : vector<128xf32> to vector<1x128xf32>
    %9 = tpu.concatenate %5, %8 in 0 : vector<1x128xf32>, vector<1x128xf32> -> vector<2x128xf32>
    %c0_7 = arith.constant 0 : index
    %c0_8 = arith.constant 0 : index
    %c0_9 = arith.constant 0 : index
    %10 = vector.load %arg5[%c0_7, %c0_8, %c0_9] : memref<1x2x128xf32, #tpu.memory_space<vmem>>, vector<1x2x128xf32>
    %11 = vector.shape_cast %10 : vector<1x2x128xf32> to vector<2x128xf32>
    %12 = vector.shape_cast %9 : vector<2x128xf32> to vector<1x2x128xf32>
    tpu.vector_store %arg5[%c0_7, %c0_8, %c0_9], %12 {strides = array<i32>} : memref<1x2x128xf32, #tpu.memory_space<vmem>>, vector<1x2x128xf32>,
    return
  }
  func.func @transform_0(%arg0: i32, %arg1: i32) -> (i32, i32) {
    %c0_i32 = arith.constant 0 : i32
    %c0_i32_0 = arith.constant 0 : i32
    return %arg0, %c0_i32 : i32, i32
  }
  func.func @transform_1(%arg0: i32, %arg1: i32) -> (i32, i32) {
    %c0_i32 = arith.constant 0 : i32
    %c0_i32_0 = arith.constant 0 : i32
    return %c0_i32, %arg1 : i32, i32
  }
  func.func @transform_2(%arg0: i32, %arg1: i32) -> (i32, i32) {
    %c0_i32 = arith.constant 0 : i32
    return %arg0, %arg1 : i32, i32
  }
  func.func @transform_3(%arg0: i32, %arg1: i32) -> (i32, i32, i32) {
    %c0_i32 = arith.constant 0 : i32
    %c0_i32_0 = arith.constant 0 : i32
    return %arg0, %c0_i32, %arg1 : i32, i32, i32
  }
}

module attributes {stable_mosaic.version = 11 : i64} {
  func.func @_conv_matmul_kernel_single(%arg0: i32, %arg1: i32, %arg2: memref<32x128xbf16, #tpu.memory_space<vmem>>, %arg3: memref<128x256xbf16, #tpu.memory_space<vmem>>, %arg4: memref<32x256xf32, #tpu.memory_space<vmem>>, %arg5: memref<1x2x256xf32, #tpu.memory_space<vmem>>) attributes {dimension_semantics = [#tpu.dimension_semantics<parallel>, #tpu.dimension_semantics<parallel>], iteration_bounds = array<i64: 1, 1>, scalar_prefetch = 0 : i64, scratch_operands = 0 : i64, tpu.core_type = #tpu.core_type<tc>, window_params = [{transform_indices = @transform_0, window_bounds = array<i64: 32, 128>}, {transform_indices = @transform_1, window_bounds = array<i64: 128, 256>}, {transform_indices = @transform_2, window_bounds = array<i64: 32, 256>}, {transform_indices = @transform_3, window_bounds = array<i64: 1, 2, 256>}]} {
    %c0 = arith.constant 0 : index
    %c0_0 = arith.constant 0 : index
    %0 = vector.load %arg2[%c0, %c0_0] : memref<32x128xbf16, #tpu.memory_space<vmem>>, vector<32x128xbf16>
    %c0_1 = arith.constant 0 : index
    %c0_2 = arith.constant 0 : index
    %1 = vector.load %arg3[%c0_1, %c0_2] : memref<128x256xbf16, #tpu.memory_space<vmem>>, vector<128x256xbf16>
    %cst = arith.constant dense<0.000000e+00> : vector<32x256xf32>
    %2 = tpu.matmul %0, %1, %cst {dimension_numbers = #tpu.dot_dimension_numbers<[1], [0], [0], [1], [0, 0, 1, 1], [], []>} : vector<32x128xbf16>, vector<128x256xbf16>, vector<32x256xf32> -> vector<32x256xf32>
    %c0_3 = arith.constant 0 : index
    %c0_4 = arith.constant 0 : index
    %3 = vector.load %arg4[%c0_3, %c0_4] : memref<32x256xf32, #tpu.memory_space<vmem>>, vector<32x256xf32>
    tpu.vector_store %arg4[%c0_3, %c0_4], %2 {strides = array<i32>} : memref<32x256xf32, #tpu.memory_space<vmem>>, vector<32x256xf32>,
    %cst_5 = arith.constant dense<0.000000e+00> : vector<256xf32>
    %4 = vector.multi_reduction <add>, %2, %cst_5 [0] : vector<32x256xf32> to vector<256xf32>
    %5 = vector.shape_cast %4 : vector<256xf32> to vector<1x256xf32>
    %6 = arith.mulf %2, %2 : vector<32x256xf32>
    %cst_6 = arith.constant dense<0.000000e+00> : vector<256xf32>
    %7 = vector.multi_reduction <add>, %6, %cst_6 [0] : vector<32x256xf32> to vector<256xf32>
    %8 = vector.shape_cast %7 : vector<256xf32> to vector<1x256xf32>
    %9 = tpu.concatenate %5, %8 in 0 : vector<1x256xf32>, vector<1x256xf32> -> vector<2x256xf32>
    %c0_7 = arith.constant 0 : index
    %c0_8 = arith.constant 0 : index
    %c0_9 = arith.constant 0 : index
    %10 = vector.load %arg5[%c0_7, %c0_8, %c0_9] : memref<1x2x256xf32, #tpu.memory_space<vmem>>, vector<1x2x256xf32>
    %11 = vector.shape_cast %10 : vector<1x2x256xf32> to vector<2x256xf32>
    %12 = vector.shape_cast %9 : vector<2x256xf32> to vector<1x2x256xf32>
    tpu.vector_store %arg5[%c0_7, %c0_8, %c0_9], %12 {strides = array<i32>} : memref<1x2x256xf32, #tpu.memory_space<vmem>>, vector<1x2x256xf32>,
    return
  }
  func.func @transform_0(%arg0: i32, %arg1: i32) -> (i32, i32) {
    %c0_i32 = arith.constant 0 : i32
    %c0_i32_0 = arith.constant 0 : i32
    return %arg0, %c0_i32 : i32, i32
  }
  func.func @transform_1(%arg0: i32, %arg1: i32) -> (i32, i32) {
    %c0_i32 = arith.constant 0 : i32
    %c0_i32_0 = arith.constant 0 : i32
    return %c0_i32, %arg1 : i32, i32
  }
  func.func @transform_2(%arg0: i32, %arg1: i32) -> (i32, i32) {
    %c0_i32 = arith.constant 0 : i32
    return %arg0, %arg1 : i32, i32
  }
  func.func @transform_3(%arg0: i32, %arg1: i32) -> (i32, i32, i32) {
    %c0_i32 = arith.constant 0 : i32
    %c0_i32_0 = arith.constant 0 : i32
    return %arg0, %c0_i32, %arg1 : i32, i32, i32
  }
}

module attributes {stable_mosaic.version = 11 : i64} {
  func.func @kernel(%arg0: i32, %arg1: memref<32x128xf32, #tpu.memory_space<vmem>>, %arg2: memref<1x128xf32, #tpu.memory_space<vmem>>, %arg3: memref<1x128xf32, #tpu.memory_space<vmem>>, %arg4: memref<32x128xf32, #tpu.memory_space<vmem>>, %arg5: memref<32x128xf32, #tpu.memory_space<vmem>>) attributes {dimension_semantics = [#tpu.dimension_semantics<parallel>], iteration_bounds = array<i64: 1>, scalar_prefetch = 0 : i64, scratch_operands = 0 : i64, tpu.core_type = #tpu.core_type<tc>, window_params = [{transform_indices = @transform_0, window_bounds = array<i64: 32, 128>}, {pipeline_mode = #tpu.pipeline_mode<synchronous>, transform_indices = @transform_1, window_bounds = array<i64: 1, 128>}, {pipeline_mode = #tpu.pipeline_mode<synchronous>, transform_indices = @transform_2, window_bounds = array<i64: 1, 128>}, {transform_indices = @transform_3, window_bounds = array<i64: 32, 128>}, {transform_indices = @transform_4, window_bounds = array<i64: 32, 128>}]} {
    %c0 = arith.constant 0 : index
    %c0_0 = arith.constant 0 : index
    %0 = vector.load %arg1[%c0, %c0_0] : memref<32x128xf32, #tpu.memory_space<vmem>>, vector<32x128xf32>
    %c0_1 = arith.constant 0 : index
    %c0_2 = arith.constant 0 : index
    %1 = vector.load %arg2[%c0_1, %c0_2] : memref<1x128xf32, #tpu.memory_space<vmem>>, vector<1x128xf32>
    %2 = vector.broadcast %1 : vector<1x128xf32> to vector<32x128xf32>
    %3 = arith.mulf %0, %2 : vector<32x128xf32>
    %c0_3 = arith.constant 0 : index
    %c0_4 = arith.constant 0 : index
    %4 = vector.load %arg3[%c0_3, %c0_4] : memref<1x128xf32, #tpu.memory_space<vmem>>, vector<1x128xf32>
    %5 = vector.broadcast %4 : vector<1x128xf32> to vector<32x128xf32>
    %6 = arith.addf %3, %5 : vector<32x128xf32>
    %c0_5 = arith.constant 0 : index
    %c0_6 = arith.constant 0 : index
    %7 = vector.load %arg4[%c0_5, %c0_6] : memref<32x128xf32, #tpu.memory_space<vmem>>, vector<32x128xf32>
    %8 = arith.addf %6, %7 : vector<32x128xf32>
    %cst = arith.constant 0.000000e+00 : f32
    %9 = vector.broadcast %cst : f32 to vector<32x128xf32>
    %10 = arith.maximumf %8, %9 : vector<32x128xf32>
    %c0_7 = arith.constant 0 : index
    %c0_8 = arith.constant 0 : index
    %11 = vector.load %arg5[%c0_7, %c0_8] : memref<32x128xf32, #tpu.memory_space<vmem>>, vector<32x128xf32>
    tpu.vector_store %arg5[%c0_7, %c0_8], %10 {strides = array<i32>} : memref<32x128xf32, #tpu.memory_space<vmem>>, vector<32x128xf32>,
    return
  }
  func.func @transform_0(%arg0: i32) -> (i32, i32) {
    %c0_i32 = arith.constant 0 : i32
    %c0_i32_0 = arith.constant 0 : i32
    return %arg0, %c0_i32 : i32, i32
  }
  func.func @transform_1(%arg0: i32) -> (i32, i32) {
    %c0_i32 = arith.constant 0 : i32
    %c0_i32_0 = arith.constant 0 : i32
    %c0_i32_1 = arith.constant 0 : i32
    return %c0_i32, %c0_i32_0 : i32, i32
  }
  func.func @transform_2(%arg0: i32) -> (i32, i32) {
    %c0_i32 = arith.constant 0 : i32
    %c0_i32_0 = arith.constant 0 : i32
    %c0_i32_1 = arith.constant 0 : i32
    return %c0_i32, %c0_i32_0 : i32, i32
  }
  func.func @transform_3(%arg0: i32) -> (i32, i32) {
    %c0_i32 = arith.constant 0 : i32
    %c0_i32_0 = arith.constant 0 : i32
    return %arg0, %c0_i32 : i32, i32
  }
  func.func @transform_4(%arg0: i32) -> (i32, i32) {
    %c0_i32 = arith.constant 0 : i32
    %c0_i32_0 = arith.constant 0 : i32
    return %arg0, %c0_i32 : i32, i32
  }
}

module attributes {stable_mosaic.version = 11 : i64} {
  func.func @_conv_matmul_kernel_single(%arg0: i32, %arg1: i32, %arg2: memref<32x1152xbf16, #tpu.memory_space<vmem>>, %arg3: memref<1152x128xbf16, #tpu.memory_space<vmem>>, %arg4: memref<32x128xf32, #tpu.memory_space<vmem>>, %arg5: memref<1x2x128xf32, #tpu.memory_space<vmem>>) attributes {dimension_semantics = [#tpu.dimension_semantics<parallel>, #tpu.dimension_semantics<parallel>], iteration_bounds = array<i64: 1, 1>, scalar_prefetch = 0 : i64, scratch_operands = 0 : i64, tpu.core_type = #tpu.core_type<tc>, window_params = [{transform_indices = @transform_0, window_bounds = array<i64: 32, 1152>}, {transform_indices = @transform_1, window_bounds = array<i64: 1152, 128>}, {transform_indices = @transform_2, window_bounds = array<i64: 32, 128>}, {transform_indices = @transform_3, window_bounds = array<i64: 1, 2, 128>}]} {
    %c0 = arith.constant 0 : index
    %c0_0 = arith.constant 0 : index
    %0 = vector.load %arg2[%c0, %c0_0] : memref<32x1152xbf16, #tpu.memory_space<vmem>>, vector<32x1152xbf16>
    %c0_1 = arith.constant 0 : index
    %c0_2 = arith.constant 0 : index
    %1 = vector.load %arg3[%c0_1, %c0_2] : memref<1152x128xbf16, #tpu.memory_space<vmem>>, vector<1152x128xbf16>
    %cst = arith.constant dense<0.000000e+00> : vector<32x128xf32>
    %2 = tpu.matmul %0, %1, %cst {dimension_numbers = #tpu.dot_dimension_numbers<[1], [0], [0], [1], [0, 0, 1, 1], [], []>} : vector<32x1152xbf16>, vector<1152x128xbf16>, vector<32x128xf32> -> vector<32x128xf32>
    %c0_3 = arith.constant 0 : index
    %c0_4 = arith.constant 0 : index
    %3 = vector.load %arg4[%c0_3, %c0_4] : memref<32x128xf32, #tpu.memory_space<vmem>>, vector<32x128xf32>
    tpu.vector_store %arg4[%c0_3, %c0_4], %2 {strides = array<i32>} : memref<32x128xf32, #tpu.memory_space<vmem>>, vector<32x128xf32>,
    %cst_5 = arith.constant dense<0.000000e+00> : vector<128xf32>
    %4 = vector.multi_reduction <add>, %2, %cst_5 [0] : vector<32x128xf32> to vector<128xf32>
    %5 = vector.shape_cast %4 : vector<128xf32> to vector<1x128xf32>
    %6 = arith.mulf %2, %2 : vector<32x128xf32>
    %cst_6 = arith.constant dense<0.000000e+00> : vector<128xf32>
    %7 = vector.multi_reduction <add>, %6, %cst_6 [0] : vector<32x128xf32> to vector<128xf32>
    %8 = vector.shape_cast %7 : vector<128xf32> to vector<1x128xf32>
    %9 = tpu.concatenate %5, %8 in 0 : vector<1x128xf32>, vector<1x128xf32> -> vector<2x128xf32>
    %c0_7 = arith.constant 0 : index
    %c0_8 = arith.constant 0 : index
    %c0_9 = arith.constant 0 : index
    %10 = vector.load %arg5[%c0_7, %c0_8, %c0_9] : memref<1x2x128xf32, #tpu.memory_space<vmem>>, vector<1x2x128xf32>
    %11 = vector.shape_cast %10 : vector<1x2x128xf32> to vector<2x128xf32>
    %12 = vector.shape_cast %9 : vector<2x128xf32> to vector<1x2x128xf32>
    tpu.vector_store %arg5[%c0_7, %c0_8, %c0_9], %12 {strides = array<i32>} : memref<1x2x128xf32, #tpu.memory_space<vmem>>, vector<1x2x128xf32>,
    return
  }
  func.func @transform_0(%arg0: i32, %arg1: i32) -> (i32, i32) {
    %c0_i32 = arith.constant 0 : i32
    %c0_i32_0 = arith.constant 0 : i32
    return %arg0, %c0_i32 : i32, i32
  }
  func.func @transform_1(%arg0: i32, %arg1: i32) -> (i32, i32) {
    %c0_i32 = arith.constant 0 : i32
    %c0_i32_0 = arith.constant 0 : i32
    return %c0_i32, %arg1 : i32, i32
  }
  func.func @transform_2(%arg0: i32, %arg1: i32) -> (i32, i32) {
    %c0_i32 = arith.constant 0 : i32
    return %arg0, %arg1 : i32, i32
  }
  func.func @transform_3(%arg0: i32, %arg1: i32) -> (i32, i32, i32) {
    %c0_i32 = arith.constant 0 : i32
    %c0_i32_0 = arith.constant 0 : i32
    return %arg0, %c0_i32, %arg1 : i32, i32, i32
  }
}

module attributes {stable_mosaic.version = 11 : i64} {
  func.func @_conv_matmul_kernel_single(%arg0: i32, %arg1: i32, %arg2: memref<32x1152xbf16, #tpu.memory_space<vmem>>, %arg3: memref<1152x256xbf16, #tpu.memory_space<vmem>>, %arg4: memref<32x256xf32, #tpu.memory_space<vmem>>, %arg5: memref<1x2x256xf32, #tpu.memory_space<vmem>>) attributes {dimension_semantics = [#tpu.dimension_semantics<parallel>, #tpu.dimension_semantics<parallel>], iteration_bounds = array<i64: 1, 1>, scalar_prefetch = 0 : i64, scratch_operands = 0 : i64, tpu.core_type = #tpu.core_type<tc>, window_params = [{transform_indices = @transform_0, window_bounds = array<i64: 32, 1152>}, {transform_indices = @transform_1, window_bounds = array<i64: 1152, 256>}, {transform_indices = @transform_2, window_bounds = array<i64: 32, 256>}, {transform_indices = @transform_3, window_bounds = array<i64: 1, 2, 256>}]} {
    %c0 = arith.constant 0 : index
    %c0_0 = arith.constant 0 : index
    %0 = vector.load %arg2[%c0, %c0_0] : memref<32x1152xbf16, #tpu.memory_space<vmem>>, vector<32x1152xbf16>
    %c0_1 = arith.constant 0 : index
    %c0_2 = arith.constant 0 : index
    %1 = vector.load %arg3[%c0_1, %c0_2] : memref<1152x256xbf16, #tpu.memory_space<vmem>>, vector<1152x256xbf16>
    %cst = arith.constant dense<0.000000e+00> : vector<32x256xf32>
    %2 = tpu.matmul %0, %1, %cst {dimension_numbers = #tpu.dot_dimension_numbers<[1], [0], [0], [1], [0, 0, 1, 1], [], []>} : vector<32x1152xbf16>, vector<1152x256xbf16>, vector<32x256xf32> -> vector<32x256xf32>
    %c0_3 = arith.constant 0 : index
    %c0_4 = arith.constant 0 : index
    %3 = vector.load %arg4[%c0_3, %c0_4] : memref<32x256xf32, #tpu.memory_space<vmem>>, vector<32x256xf32>
    tpu.vector_store %arg4[%c0_3, %c0_4], %2 {strides = array<i32>} : memref<32x256xf32, #tpu.memory_space<vmem>>, vector<32x256xf32>,
    %cst_5 = arith.constant dense<0.000000e+00> : vector<256xf32>
    %4 = vector.multi_reduction <add>, %2, %cst_5 [0] : vector<32x256xf32> to vector<256xf32>
    %5 = vector.shape_cast %4 : vector<256xf32> to vector<1x256xf32>
    %6 = arith.mulf %2, %2 : vector<32x256xf32>
    %cst_6 = arith.constant dense<0.000000e+00> : vector<256xf32>
    %7 = vector.multi_reduction <add>, %6, %cst_6 [0] : vector<32x256xf32> to vector<256xf32>
    %8 = vector.shape_cast %7 : vector<256xf32> to vector<1x256xf32>
    %9 = tpu.concatenate %5, %8 in 0 : vector<1x256xf32>, vector<1x256xf32> -> vector<2x256xf32>
    %c0_7 = arith.constant 0 : index
    %c0_8 = arith.constant 0 : index
    %c0_9 = arith.constant 0 : index
    %10 = vector.load %arg5[%c0_7, %c0_8, %c0_9] : memref<1x2x256xf32, #tpu.memory_space<vmem>>, vector<1x2x256xf32>
    %11 = vector.shape_cast %10 : vector<1x2x256xf32> to vector<2x256xf32>
    %12 = vector.shape_cast %9 : vector<2x256xf32> to vector<1x2x256xf32>
    tpu.vector_store %arg5[%c0_7, %c0_8, %c0_9], %12 {strides = array<i32>} : memref<1x2x256xf32, #tpu.memory_space<vmem>>, vector<1x2x256xf32>,
    return
  }
  func.func @transform_0(%arg0: i32, %arg1: i32) -> (i32, i32) {
    %c0_i32 = arith.constant 0 : i32
    %c0_i32_0 = arith.constant 0 : i32
    return %arg0, %c0_i32 : i32, i32
  }
  func.func @transform_1(%arg0: i32, %arg1: i32) -> (i32, i32) {
    %c0_i32 = arith.constant 0 : i32
    %c0_i32_0 = arith.constant 0 : i32
    return %c0_i32, %arg1 : i32, i32
  }
  func.func @transform_2(%arg0: i32, %arg1: i32) -> (i32, i32) {
    %c0_i32 = arith.constant 0 : i32
    return %arg0, %arg1 : i32, i32
  }
  func.func @transform_3(%arg0: i32, %arg1: i32) -> (i32, i32, i32) {
    %c0_i32 = arith.constant 0 : i32
    %c0_i32_0 = arith.constant 0 : i32
    return %arg0, %c0_i32, %arg1 : i32, i32, i32
  }
}

module attributes {stable_mosaic.version = 11 : i64} {
  func.func @kernel(%arg0: i32, %arg1: memref<32x256xf32, #tpu.memory_space<vmem>>, %arg2: memref<1x256xf32, #tpu.memory_space<vmem>>, %arg3: memref<1x256xf32, #tpu.memory_space<vmem>>, %arg4: memref<32x256xbf16, #tpu.memory_space<vmem>>) attributes {dimension_semantics = [#tpu.dimension_semantics<parallel>], iteration_bounds = array<i64: 1>, scalar_prefetch = 0 : i64, scratch_operands = 0 : i64, tpu.core_type = #tpu.core_type<tc>, window_params = [{transform_indices = @transform_0, window_bounds = array<i64: 32, 256>}, {pipeline_mode = #tpu.pipeline_mode<synchronous>, transform_indices = @transform_1, window_bounds = array<i64: 1, 256>}, {pipeline_mode = #tpu.pipeline_mode<synchronous>, transform_indices = @transform_2, window_bounds = array<i64: 1, 256>}, {transform_indices = @transform_3, window_bounds = array<i64: 32, 256>}]} {
    %c0 = arith.constant 0 : index
    %c0_0 = arith.constant 0 : index
    %0 = vector.load %arg1[%c0, %c0_0] : memref<32x256xf32, #tpu.memory_space<vmem>>, vector<32x256xf32>
    %c0_1 = arith.constant 0 : index
    %c0_2 = arith.constant 0 : index
    %1 = vector.load %arg2[%c0_1, %c0_2] : memref<1x256xf32, #tpu.memory_space<vmem>>, vector<1x256xf32>
    %2 = vector.broadcast %1 : vector<1x256xf32> to vector<32x256xf32>
    %3 = arith.mulf %0, %2 : vector<32x256xf32>
    %c0_3 = arith.constant 0 : index
    %c0_4 = arith.constant 0 : index
    %4 = vector.load %arg3[%c0_3, %c0_4] : memref<1x256xf32, #tpu.memory_space<vmem>>, vector<1x256xf32>
    %5 = vector.broadcast %4 : vector<1x256xf32> to vector<32x256xf32>
    %6 = arith.addf %3, %5 : vector<32x256xf32>
    %cst = arith.constant 0.000000e+00 : f32
    %7 = vector.broadcast %cst : f32 to vector<32x256xf32>
    %8 = arith.maximumf %6, %7 : vector<32x256xf32>
    %9 = arith.truncf %8 : vector<32x256xf32> to vector<32x256xbf16>
    %c0_5 = arith.constant 0 : index
    %c0_6 = arith.constant 0 : index
    %10 = vector.load %arg4[%c0_5, %c0_6] : memref<32x256xbf16, #tpu.memory_space<vmem>>, vector<32x256xbf16>
    tpu.vector_store %arg4[%c0_5, %c0_6], %9 {strides = array<i32>} : memref<32x256xbf16, #tpu.memory_space<vmem>>, vector<32x256xbf16>,
    return
  }
  func.func @transform_0(%arg0: i32) -> (i32, i32) {
    %c0_i32 = arith.constant 0 : i32
    %c0_i32_0 = arith.constant 0 : i32
    return %arg0, %c0_i32 : i32, i32
  }
  func.func @transform_1(%arg0: i32) -> (i32, i32) {
    %c0_i32 = arith.constant 0 : i32
    %c0_i32_0 = arith.constant 0 : i32
    %c0_i32_1 = arith.constant 0 : i32
    return %c0_i32, %c0_i32_0 : i32, i32
  }
  func.func @transform_2(%arg0: i32) -> (i32, i32) {
    %c0_i32 = arith.constant 0 : i32
    %c0_i32_0 = arith.constant 0 : i32
    %c0_i32_1 = arith.constant 0 : i32
    return %c0_i32, %c0_i32_0 : i32, i32
  }
  func.func @transform_3(%arg0: i32) -> (i32, i32) {
    %c0_i32 = arith.constant 0 : i32
    %c0_i32_0 = arith.constant 0 : i32
    return %arg0, %c0_i32 : i32, i32
  }
}

module attributes {stable_mosaic.version = 11 : i64} {
  func.func @kernel(%arg0: i32, %arg1: memref<32x256xf32, #tpu.memory_space<vmem>>, %arg2: memref<1x256xf32, #tpu.memory_space<vmem>>, %arg3: memref<1x256xf32, #tpu.memory_space<vmem>>, %arg4: memref<32x256xf32, #tpu.memory_space<vmem>>) attributes {dimension_semantics = [#tpu.dimension_semantics<parallel>], iteration_bounds = array<i64: 1>, scalar_prefetch = 0 : i64, scratch_operands = 0 : i64, tpu.core_type = #tpu.core_type<tc>, window_params = [{transform_indices = @transform_0, window_bounds = array<i64: 32, 256>}, {pipeline_mode = #tpu.pipeline_mode<synchronous>, transform_indices = @transform_1, window_bounds = array<i64: 1, 256>}, {pipeline_mode = #tpu.pipeline_mode<synchronous>, transform_indices = @transform_2, window_bounds = array<i64: 1, 256>}, {transform_indices = @transform_3, window_bounds = array<i64: 32, 256>}]} {
    %c0 = arith.constant 0 : index
    %c0_0 = arith.constant 0 : index
    %0 = vector.load %arg1[%c0, %c0_0] : memref<32x256xf32, #tpu.memory_space<vmem>>, vector<32x256xf32>
    %c0_1 = arith.constant 0 : index
    %c0_2 = arith.constant 0 : index
    %1 = vector.load %arg2[%c0_1, %c0_2] : memref<1x256xf32, #tpu.memory_space<vmem>>, vector<1x256xf32>
    %2 = vector.broadcast %1 : vector<1x256xf32> to vector<32x256xf32>
    %3 = arith.mulf %0, %2 : vector<32x256xf32>
    %c0_3 = arith.constant 0 : index
    %c0_4 = arith.constant 0 : index
    %4 = vector.load %arg3[%c0_3, %c0_4] : memref<1x256xf32, #tpu.memory_space<vmem>>, vector<1x256xf32>
    %5 = vector.broadcast %4 : vector<1x256xf32> to vector<32x256xf32>
    %6 = arith.addf %3, %5 : vector<32x256xf32>
    %c0_5 = arith.constant 0 : index
    %c0_6 = arith.constant 0 : index
    %7 = vector.load %arg4[%c0_5, %c0_6] : memref<32x256xf32, #tpu.memory_space<vmem>>, vector<32x256xf32>
    tpu.vector_store %arg4[%c0_5, %c0_6], %6 {strides = array<i32>} : memref<32x256xf32, #tpu.memory_space<vmem>>, vector<32x256xf32>,
    return
  }
  func.func @transform_0(%arg0: i32) -> (i32, i32) {
    %c0_i32 = arith.constant 0 : i32
    %c0_i32_0 = arith.constant 0 : i32
    return %arg0, %c0_i32 : i32, i32
  }
  func.func @transform_1(%arg0: i32) -> (i32, i32) {
    %c0_i32 = arith.constant 0 : i32
    %c0_i32_0 = arith.constant 0 : i32
    %c0_i32_1 = arith.constant 0 : i32
    return %c0_i32, %c0_i32_0 : i32, i32
  }
  func.func @transform_2(%arg0: i32) -> (i32, i32) {
    %c0_i32 = arith.constant 0 : i32
    %c0_i32_0 = arith.constant 0 : i32
    %c0_i32_1 = arith.constant 0 : i32
    return %c0_i32, %c0_i32_0 : i32, i32
  }
  func.func @transform_3(%arg0: i32) -> (i32, i32) {
    %c0_i32 = arith.constant 0 : i32
    %c0_i32_0 = arith.constant 0 : i32
    return %arg0, %c0_i32 : i32, i32
  }
}

module attributes {stable_mosaic.version = 11 : i64} {
  func.func @_conv_matmul_kernel_single(%arg0: i32, %arg1: i32, %arg2: memref<32x2304xbf16, #tpu.memory_space<vmem>>, %arg3: memref<2304x256xbf16, #tpu.memory_space<vmem>>, %arg4: memref<32x256xf32, #tpu.memory_space<vmem>>, %arg5: memref<1x2x256xf32, #tpu.memory_space<vmem>>) attributes {dimension_semantics = [#tpu.dimension_semantics<parallel>, #tpu.dimension_semantics<parallel>], iteration_bounds = array<i64: 1, 1>, scalar_prefetch = 0 : i64, scratch_operands = 0 : i64, tpu.core_type = #tpu.core_type<tc>, window_params = [{transform_indices = @transform_0, window_bounds = array<i64: 32, 2304>}, {transform_indices = @transform_1, window_bounds = array<i64: 2304, 256>}, {transform_indices = @transform_2, window_bounds = array<i64: 32, 256>}, {transform_indices = @transform_3, window_bounds = array<i64: 1, 2, 256>}]} {
    %c0 = arith.constant 0 : index
    %c0_0 = arith.constant 0 : index
    %0 = vector.load %arg2[%c0, %c0_0] : memref<32x2304xbf16, #tpu.memory_space<vmem>>, vector<32x2304xbf16>
    %c0_1 = arith.constant 0 : index
    %c0_2 = arith.constant 0 : index
    %1 = vector.load %arg3[%c0_1, %c0_2] : memref<2304x256xbf16, #tpu.memory_space<vmem>>, vector<2304x256xbf16>
    %cst = arith.constant dense<0.000000e+00> : vector<32x256xf32>
    %2 = tpu.matmul %0, %1, %cst {dimension_numbers = #tpu.dot_dimension_numbers<[1], [0], [0], [1], [0, 0, 1, 1], [], []>} : vector<32x2304xbf16>, vector<2304x256xbf16>, vector<32x256xf32> -> vector<32x256xf32>
    %c0_3 = arith.constant 0 : index
    %c0_4 = arith.constant 0 : index
    %3 = vector.load %arg4[%c0_3, %c0_4] : memref<32x256xf32, #tpu.memory_space<vmem>>, vector<32x256xf32>
    tpu.vector_store %arg4[%c0_3, %c0_4], %2 {strides = array<i32>} : memref<32x256xf32, #tpu.memory_space<vmem>>, vector<32x256xf32>,
    %cst_5 = arith.constant dense<0.000000e+00> : vector<256xf32>
    %4 = vector.multi_reduction <add>, %2, %cst_5 [0] : vector<32x256xf32> to vector<256xf32>
    %5 = vector.shape_cast %4 : vector<256xf32> to vector<1x256xf32>
    %6 = arith.mulf %2, %2 : vector<32x256xf32>
    %cst_6 = arith.constant dense<0.000000e+00> : vector<256xf32>
    %7 = vector.multi_reduction <add>, %6, %cst_6 [0] : vector<32x256xf32> to vector<256xf32>
    %8 = vector.shape_cast %7 : vector<256xf32> to vector<1x256xf32>
    %9 = tpu.concatenate %5, %8 in 0 : vector<1x256xf32>, vector<1x256xf32> -> vector<2x256xf32>
    %c0_7 = arith.constant 0 : index
    %c0_8 = arith.constant 0 : index
    %c0_9 = arith.constant 0 : index
    %10 = vector.load %arg5[%c0_7, %c0_8, %c0_9] : memref<1x2x256xf32, #tpu.memory_space<vmem>>, vector<1x2x256xf32>
    %11 = vector.shape_cast %10 : vector<1x2x256xf32> to vector<2x256xf32>
    %12 = vector.shape_cast %9 : vector<2x256xf32> to vector<1x2x256xf32>
    tpu.vector_store %arg5[%c0_7, %c0_8, %c0_9], %12 {strides = array<i32>} : memref<1x2x256xf32, #tpu.memory_space<vmem>>, vector<1x2x256xf32>,
    return
  }
  func.func @transform_0(%arg0: i32, %arg1: i32) -> (i32, i32) {
    %c0_i32 = arith.constant 0 : i32
    %c0_i32_0 = arith.constant 0 : i32
    return %arg0, %c0_i32 : i32, i32
  }
  func.func @transform_1(%arg0: i32, %arg1: i32) -> (i32, i32) {
    %c0_i32 = arith.constant 0 : i32
    %c0_i32_0 = arith.constant 0 : i32
    return %c0_i32, %arg1 : i32, i32
  }
  func.func @transform_2(%arg0: i32, %arg1: i32) -> (i32, i32) {
    %c0_i32 = arith.constant 0 : i32
    return %arg0, %arg1 : i32, i32
  }
  func.func @transform_3(%arg0: i32, %arg1: i32) -> (i32, i32, i32) {
    %c0_i32 = arith.constant 0 : i32
    %c0_i32_0 = arith.constant 0 : i32
    return %arg0, %c0_i32, %arg1 : i32, i32, i32
  }
}

module attributes {stable_mosaic.version = 11 : i64} {
  func.func @kernel(%arg0: i32, %arg1: memref<32x256xf32, #tpu.memory_space<vmem>>, %arg2: memref<1x256xf32, #tpu.memory_space<vmem>>, %arg3: memref<1x256xf32, #tpu.memory_space<vmem>>, %arg4: memref<32x256xf32, #tpu.memory_space<vmem>>, %arg5: memref<32x256xf32, #tpu.memory_space<vmem>>) attributes {dimension_semantics = [#tpu.dimension_semantics<parallel>], iteration_bounds = array<i64: 1>, scalar_prefetch = 0 : i64, scratch_operands = 0 : i64, tpu.core_type = #tpu.core_type<tc>, window_params = [{transform_indices = @transform_0, window_bounds = array<i64: 32, 256>}, {pipeline_mode = #tpu.pipeline_mode<synchronous>, transform_indices = @transform_1, window_bounds = array<i64: 1, 256>}, {pipeline_mode = #tpu.pipeline_mode<synchronous>, transform_indices = @transform_2, window_bounds = array<i64: 1, 256>}, {transform_indices = @transform_3, window_bounds = array<i64: 32, 256>}, {transform_indices = @transform_4, window_bounds = array<i64: 32, 256>}]} {
    %c0 = arith.constant 0 : index
    %c0_0 = arith.constant 0 : index
    %0 = vector.load %arg1[%c0, %c0_0] : memref<32x256xf32, #tpu.memory_space<vmem>>, vector<32x256xf32>
    %c0_1 = arith.constant 0 : index
    %c0_2 = arith.constant 0 : index
    %1 = vector.load %arg2[%c0_1, %c0_2] : memref<1x256xf32, #tpu.memory_space<vmem>>, vector<1x256xf32>
    %2 = vector.broadcast %1 : vector<1x256xf32> to vector<32x256xf32>
    %3 = arith.mulf %0, %2 : vector<32x256xf32>
    %c0_3 = arith.constant 0 : index
    %c0_4 = arith.constant 0 : index
    %4 = vector.load %arg3[%c0_3, %c0_4] : memref<1x256xf32, #tpu.memory_space<vmem>>, vector<1x256xf32>
    %5 = vector.broadcast %4 : vector<1x256xf32> to vector<32x256xf32>
    %6 = arith.addf %3, %5 : vector<32x256xf32>
    %c0_5 = arith.constant 0 : index
    %c0_6 = arith.constant 0 : index
    %7 = vector.load %arg4[%c0_5, %c0_6] : memref<32x256xf32, #tpu.memory_space<vmem>>, vector<32x256xf32>
    %8 = arith.addf %6, %7 : vector<32x256xf32>
    %cst = arith.constant 0.000000e+00 : f32
    %9 = vector.broadcast %cst : f32 to vector<32x256xf32>
    %10 = arith.maximumf %8, %9 : vector<32x256xf32>
    %c0_7 = arith.constant 0 : index
    %c0_8 = arith.constant 0 : index
    %11 = vector.load %arg5[%c0_7, %c0_8] : memref<32x256xf32, #tpu.memory_space<vmem>>, vector<32x256xf32>
    tpu.vector_store %arg5[%c0_7, %c0_8], %10 {strides = array<i32>} : memref<32x256xf32, #tpu.memory_space<vmem>>, vector<32x256xf32>,
    return
  }
  func.func @transform_0(%arg0: i32) -> (i32, i32) {
    %c0_i32 = arith.constant 0 : i32
    %c0_i32_0 = arith.constant 0 : i32
    return %arg0, %c0_i32 : i32, i32
  }
  func.func @transform_1(%arg0: i32) -> (i32, i32) {
    %c0_i32 = arith.constant 0 : i32
    %c0_i32_0 = arith.constant 0 : i32
    %c0_i32_1 = arith.constant 0 : i32
    return %c0_i32, %c0_i32_0 : i32, i32
  }
  func.func @transform_2(%arg0: i32) -> (i32, i32) {
    %c0_i32 = arith.constant 0 : i32
    %c0_i32_0 = arith.constant 0 : i32
    %c0_i32_1 = arith.constant 0 : i32
    return %c0_i32, %c0_i32_0 : i32, i32
  }
  func.func @transform_3(%arg0: i32) -> (i32, i32) {
    %c0_i32 = arith.constant 0 : i32
    %c0_i32_0 = arith.constant 0 : i32
    return %arg0, %c0_i32 : i32, i32
  }
  func.func @transform_4(%arg0: i32) -> (i32, i32) {
    %c0_i32 = arith.constant 0 : i32
    %c0_i32_0 = arith.constant 0 : i32
    return %arg0, %c0_i32 : i32, i32
  }
}

</mosaic_0001>

<bundles_post_ra>
// kernel: resnet_forward.40
= control target key start
LH: loop header
LB: loop body
LE: loop exit
PB: predicated region body
PF: predicated region fallthrough
CT: control target
= control target key end

     0   :  { %s893_s0 = inlined_call_operand.vmem [shape: f32[512,128], index: 0, kind: input, shape index: {}]   ;;  %s894_s1 = inlined_call_operand.vmem [shape: f32[1,128], index: 1, kind: input, shape index: {}]   ;;  %s895_s2 = inlined_call_operand.vmem [shape: f32[1,128], index: 2, kind: input, shape index: {}]   ;;  %s896_s3 = inlined_call_operand.vmem [shape: f32[512,128], index: 3, kind: output, shape index: {}]  }
   0x1   :  { %v14_v0 = vld [vmem:[%s893_s0] sm:$0xff]  ;;  %v15_v3 = vld [vmem:[%s893_s0 + $0x8] sm:$0xff]  ;;  %v16_v6 = vld [vmem:[%s893_s0 + $0x10] sm:$0xff] }
   0x2   :  { %v374_v1 = vld [vmem:[%s894_s1] ss:$0 sm:$0xff]  ;;  %v17_v7 = vld [vmem:[%s893_s0 + $0x18] sm:$0xff]  ;;  %v19_v12 = vld [vmem:[%s893_s0 + $0x28] sm:$0xff] }
   0x3   :  { %v379_v2 = vld [vmem:[%s895_s2] ss:$0 sm:$0xff]  ;;  %v82_v4 = vmul.f32 %v374_v1, %v14_v0  ;;  %v83_v5 = vmul.f32 %v374_v1, %v15_v3  ;;  %v84_v9 = vmul.f32 %v374_v1, %v16_v6  ;;  %v85_v10 = vmul.f32 %v374_v1, %v17_v7  ;;  %v20_v13 = vld [vmem:[%s893_s0 + $0x30] sm:$0xff]  ;;  %v21_v14 = vld [vmem:[%s893_s0 + $0x38] sm:$0xff] }
   0x4   :  { %v18_v8 = vld [vmem:[%s893_s0 + $0x20] sm:$0xff]  ;;  %v87_v17 = vmul.f32 %v374_v1, %v19_v12  ;;  %v88_v18 = vmul.f32 %v374_v1, %v20_v13  ;;  %v89_v22 = vmul.f32 %v374_v1, %v21_v14  ;;  %v23_v24 = vld [vmem:[%s893_s0 + $0x48] sm:$0xff]  ;;  %v24_v29 = vld [vmem:[%s893_s0 + $0x50] sm:$0xff] }
   0x5   :  { %v86_v11 = vmul.f32 %v374_v1, %v18_v8  ;;  %v150_v15 = vadd.f32 %v379_v2, %v82_v4  ;;  %v151_v16 = vadd.f32 %v379_v2, %v83_v5  ;;  %v152_v19 = vadd.f32 %v379_v2, %v84_v9  ;;  %v22_v23 = vld [vmem:[%s893_s0 + $0x40] sm:$0xff]  ;;  %v25_v30 = vld [vmem:[%s893_s0 + $0x58] sm:$0xff]  ;;  %v27_v35 = vld [vmem:[%s893_s0 + $0x68] sm:$0xff] }
   0x6   :  { %v153_v20 = vadd.f32 %v379_v2, %v85_v10  ;;  %v155_v27 = vadd.f32 %v379_v2, %v87_v17  ;;  %v156_v28 = vadd.f32 %v379_v2, %v88_v18  ;;  %v26_v31 = vld [vmem:[%s893_s0 + $0x60] sm:$0xff]  ;;  %v157_v34 = vadd.f32 %v379_v2, %v89_v22  ;;  %v28_v36 = vld [vmem:[%s893_s0 + $0x70] sm:$0xff]  ;;  %v29_v41 = vld [vmem:[%s893_s0 + $0x78] sm:$0xff] }
   0x7   :  { %v154_v21 = vadd.f32 %v379_v2, %v86_v11  ;;  %v214_v25 = vmax.f32 %v150_v15, 0.0  ;;  %v215_v26 = vmax.f32 %v151_v16, 0.0  ;;  %v216_v32 = vmax.f32 %v152_v19, 0.0  ;;  %v30_v54 = vld [vmem:[%s893_s0 + $0x80] sm:$0xff]  ;;  %v31_v55 = vld [vmem:[%s893_s0 + $0x88] sm:$0xff]  ;;  %v32_v58 = vld [vmem:[%s893_s0 + $0x90] sm:$0xff] }
   0x8   :  { %v217_v33 = vmax.f32 %v153_v20, 0.0  ;;  %v219_v38 = vmax.f32 %v155_v27, 0.0  ;;  %v90_v39 = vmul.f32 %v374_v1, %v22_v23  ;;  %v91_v40 = vmul.f32 %v374_v1, %v23_v24  ;;  %v33_v59 = vld [vmem:[%s893_s0 + $0x98] sm:$0xff]  ;;  %v34_v62 = vld [vmem:[%s893_s0 + $0xa0] sm:$0xff]  ;;  %v35_v5 = vld [vmem:[%s893_s0 + $0xa8] sm:$0xff] }
   0x9   :  { %278 = vst [vmem:[%s896_s3] sm:$0xff] %v214_v25  ;;  %v218_v37 = vmax.f32 %v154_v21, 0.0  ;;  %v220_v42 = vmax.f32 %v156_v28, 0.0  ;;  %v92_v43 = vmul.f32 %v374_v1, %v24_v29  ;;  %v93_v44 = vmul.f32 %v374_v1, %v25_v30  ;;  %v36_v10 = vld [vmem:[%s893_s0 + $0xb0] sm:$0xff]  ;;  %v37_v14 = vld [vmem:[%s893_s0 + $0xb8] sm:$0xff]  ;;  %v38_v18 = vld [vmem:[%s893_s0 + $0xc0] sm:$0xff] }
   0xa   :  { %279 = vst [vmem:[%s896_s3 + $0x8] sm:$0xff] %v215_v26  ;;  %v94_v45 = vmul.f32 %v374_v1, %v26_v31  ;;  %v158_v46 = vadd.f32 %v379_v2, %v90_v39  ;;  %v159_v47 = vadd.f32 %v379_v2, %v91_v40  ;;  %v95_v48 = vmul.f32 %v374_v1, %v27_v35  ;;  %v39_v22 = vld [vmem:[%s893_s0 + $0xc8] sm:$0xff]  ;;  %v40_v26 = vld [vmem:[%s893_s0 + $0xd0] sm:$0xff]  ;;  %v41_v30 = vld [vmem:[%s893_s0 + $0xd8] sm:$0xff] }
   0xb   :  { %280 = vst [vmem:[%s896_s3 + $0x10] sm:$0xff] %v216_v32  ;;  %v96_v49 = vmul.f32 %v374_v1, %v28_v36  ;;  %v221_v50 = vmax.f32 %v157_v34, 0.0  ;;  %v160_v51 = vadd.f32 %v379_v2, %v92_v43  ;;  %v161_v52 = vadd.f32 %v379_v2, %v93_v44  ;;  %v42_v34 = vld [vmem:[%s893_s0 + $0xe0] sm:$0xff] }
   0xc   :  { %281 = vst [vmem:[%s896_s3 + $0x18] sm:$0xff] %v217_v33  ;;  %v97_v53 = vmul.f32 %v374_v1, %v29_v41  ;;  %v222_v56 = vmax.f32 %v158_v46, 0.0  ;;  %v162_v57 = vadd.f32 %v379_v2, %v94_v45  ;;  %v223_v60 = vmax.f32 %v159_v47, 0.0  ;;  %v45_v46 = vld [vmem:[%s893_s0 + $0xf8] sm:$0xff] }
   0xd   :  { %282 = vst [vmem:[%s896_s3 + $0x20] sm:$0xff] %v218_v37  ;;  %v163_v61 = vadd.f32 %v379_v2, %v95_v48  ;;  %v224_v63 = vmax.f32 %v160_v51, 0.0  ;;  %v164_v0 = vadd.f32 %v379_v2, %v96_v49  ;;  %v98_v3 = vmul.f32 %v374_v1, %v30_v54  ;;  %v47_v54 = vld [vmem:[%s893_s0 + $0x108] sm:$0xff] }
   0xe   :  { %283 = vst [vmem:[%s896_s3 + $0x28] sm:$0xff] %v219_v38  ;;  %v99_v4 = vmul.f32 %v374_v1, %v31_v55  ;;  %v225_v6 = vmax.f32 %v161_v52, 0.0  ;;  %v165_v7 = vadd.f32 %v379_v2, %v97_v53  ;;  %v100_v8 = vmul.f32 %v374_v1, %v32_v58  ;;  %v43_v38 = vld [vmem:[%s893_s0 + $0xe8] sm:$0xff]  ;;  %v48_v58 = vld [vmem:[%s893_s0 + $0x110] sm:$0xff] }
   0xf   :  { %284 = vst [vmem:[%s896_s3 + $0x30] sm:$0xff] %v220_v42  ;;  %v101_v9 = vmul.f32 %v374_v1, %v33_v59  ;;  %v226_v11 = vmax.f32 %v162_v57, 0.0  ;;  %v166_v12 = vadd.f32 %v379_v2, %v98_v3  ;;  %v102_v13 = vmul.f32 %v374_v1, %v34_v62  ;;  %v44_v42 = vld [vmem:[%s893_s0 + $0xf0] sm:$0xff]  ;;  %v49_v62 = vld [vmem:[%s893_s0 + $0x118] sm:$0xff] }
  0x10   :  { %285 = vst [vmem:[%s896_s3 + $0x38] sm:$0xff] %v221_v50  ;;  %v227_v15 = vmax.f32 %v163_v61, 0.0  ;;  %v167_v16 = vadd.f32 %v379_v2, %v99_v4  ;;  %v103_v17 = vmul.f32 %v374_v1, %v35_v5  ;;  %v228_v19 = vmax.f32 %v164_v0, 0.0  ;;  %v46_v50 = vld [vmem:[%s893_s0 + $0x100] sm:$0xff] }
  0x11   :  { %286 = vst [vmem:[%s896_s3 + $0x40] sm:$0xff] %v222_v56  ;;  %v168_v20 = vadd.f32 %v379_v2, %v100_v8  ;;  %v104_v21 = vmul.f32 %v374_v1, %v36_v10  ;;  %v229_v23 = vmax.f32 %v165_v7, 0.0  ;;  %v169_v24 = vadd.f32 %v379_v2, %v101_v9  ;;  %v50_v4 = vld [vmem:[%s893_s0 + $0x120] sm:$0xff]  ;;  %v51_v8 = vld [vmem:[%s893_s0 + $0x128] sm:$0xff] }
  0x12   :  { %287 = vst [vmem:[%s896_s3 + $0x48] sm:$0xff] %v223_v60  ;;  %v105_v25 = vmul.f32 %v374_v1, %v37_v14  ;;  %v230_v27 = vmax.f32 %v166_v12, 0.0  ;;  %v170_v28 = vadd.f32 %v379_v2, %v102_v13  ;;  %v106_v29 = vmul.f32 %v374_v1, %v38_v18  ;;  %v52_v12 = vld [vmem:[%s893_s0 + $0x130] sm:$0xff] }
  0x13   :  { %288 = vst [vmem:[%s896_s3 + $0x50] sm:$0xff] %v224_v63  ;;  %v231_v31 = vmax.f32 %v167_v16, 0.0  ;;  %v171_v32 = vadd.f32 %v379_v2, %v103_v17  ;;  %v107_v33 = vmul.f32 %v374_v1, %v39_v22  ;;  %v232_v35 = vmax.f32 %v168_v20, 0.0  ;;  %v53_v16 = vld [vmem:[%s893_s0 + $0x138] sm:$0xff]  ;;  %v54_v20 = vld [vmem:[%s893_s0 + $0x140] sm:$0xff] }
  0x14   :  { %289 = vst [vmem:[%s896_s3 + $0x58] sm:$0xff] %v225_v6  ;;  %v172_v36 = vadd.f32 %v379_v2, %v104_v21  ;;  %v108_v37 = vmul.f32 %v374_v1, %v40_v26  ;;  %v233_v39 = vmax.f32 %v169_v24, 0.0  ;;  %v173_v40 = vadd.f32 %v379_v2, %v105_v25  ;;  %v55_v24 = vld [vmem:[%s893_s0 + $0x148] sm:$0xff] }
  0x15   :  { %290 = vst [vmem:[%s896_s3 + $0x60] sm:$0xff] %v226_v11  ;;  %v109_v41 = vmul.f32 %v374_v1, %v41_v30  ;;  %v234_v43 = vmax.f32 %v170_v28, 0.0  ;;  %v174_v44 = vadd.f32 %v379_v2, %v106_v29  ;;  %v110_v45 = vmul.f32 %v374_v1, %v42_v34  ;;  %v56_v28 = vld [vmem:[%s893_s0 + $0x150] sm:$0xff] }
  0x16   :  { %291 = vst [vmem:[%s896_s3 + $0x68] sm:$0xff] %v227_v15  ;;  %v235_v47 = vmax.f32 %v171_v32, 0.0  ;;  %v175_v48 = vadd.f32 %v379_v2, %v107_v33  ;;  %v111_v49 = vmul.f32 %v374_v1, %v43_v38  ;;  %v236_v51 = vmax.f32 %v172_v36, 0.0  ;;  %v57_v32 = vld [vmem:[%s893_s0 + $0x158] sm:$0xff]  ;;  %v58_v36 = vld [vmem:[%s893_s0 + $0x160] sm:$0xff] }
  0x17   :  { %292 = vst [vmem:[%s896_s3 + $0x70] sm:$0xff] %v228_v19  ;;  %v176_v52 = vadd.f32 %v379_v2, %v108_v37  ;;  %v112_v53 = vmul.f32 %v374_v1, %v44_v42  ;;  %v237_v55 = vmax.f32 %v173_v40, 0.0  ;;  %v177_v56 = vadd.f32 %v379_v2, %v109_v41  ;;  %v59_v40 = vld [vmem:[%s893_s0 + $0x168] sm:$0xff] }
  0x18   :  { %293 = vst [vmem:[%s896_s3 + $0x78] sm:$0xff] %v229_v23  ;;  %v113_v57 = vmul.f32 %v374_v1, %v45_v46  ;;  %v238_v59 = vmax.f32 %v174_v44, 0.0  ;;  %v178_v60 = vadd.f32 %v379_v2, %v110_v45  ;;  %v114_v61 = vmul.f32 %v374_v1, %v46_v50  ;;  %v60_v44 = vld [vmem:[%s893_s0 + $0x170] sm:$0xff] }
  0x19   :  { %294 = vst [vmem:[%s896_s3 + $0x80] sm:$0xff] %v230_v27  ;;  %v239_v63 = vmax.f32 %v175_v48, 0.0  ;;  %v179_v0 = vadd.f32 %v379_v2, %v111_v49  ;;  %v115_v3 = vmul.f32 %v374_v1, %v47_v54  ;;  %v240_v5 = vmax.f32 %v176_v52, 0.0  ;;  %v61_v48 = vld [vmem:[%s893_s0 + $0x178] sm:$0xff]  ;;  %v62_v52 = vld [vmem:[%s893_s0 + $0x180] sm:$0xff] }
  0x1a   :  { %295 = vst [vmem:[%s896_s3 + $0x88] sm:$0xff] %v231_v31  ;;  %v180_v6 = vadd.f32 %v379_v2, %v112_v53  ;;  %v116_v7 = vmul.f32 %v374_v1, %v48_v58  ;;  %v241_v9 = vmax.f32 %v177_v56, 0.0  ;;  %v181_v10 = vadd.f32 %v379_v2, %v113_v57  ;;  %v63_v56 = vld [vmem:[%s893_s0 + $0x188] sm:$0xff] }
  0x1b   :  { %296 = vst [vmem:[%s896_s3 + $0x90] sm:$0xff] %v232_v35  ;;  %v117_v11 = vmul.f32 %v374_v1, %v49_v62  ;;  %v242_v13 = vmax.f32 %v178_v60, 0.0  ;;  %v182_v14 = vadd.f32 %v379_v2, %v114_v61  ;;  %v118_v15 = vmul.f32 %v374_v1, %v50_v4  ;;  %v64_v60 = vld [vmem:[%s893_s0 + $0x190] sm:$0xff] }
  0x1c   :  { %297 = vst [vmem:[%s896_s3 + $0x98] sm:$0xff] %v233_v39  ;;  %v243_v17 = vmax.f32 %v179_v0, 0.0  ;;  %v183_v18 = vadd.f32 %v379_v2, %v115_v3  ;;  %v119_v19 = vmul.f32 %v374_v1, %v51_v8  ;;  %v244_v21 = vmax.f32 %v180_v6, 0.0  ;;  %v65_v0 = vld [vmem:[%s893_s0 + $0x198] sm:$0xff] }
  0x1d   :  { %298 = vst [vmem:[%s896_s3 + $0xa0] sm:$0xff] %v234_v43  ;;  %v184_v22 = vadd.f32 %v379_v2, %v116_v7  ;;  %v120_v23 = vmul.f32 %v374_v1, %v52_v12  ;;  %v245_v25 = vmax.f32 %v181_v10, 0.0  ;;  %v185_v26 = vadd.f32 %v379_v2, %v117_v11  ;;  %v77_v3 = vld [vmem:[%s893_s0 + $0x1f8] sm:$0xff]  ;;  %v66_v7 = vld [vmem:[%s893_s0 + $0x1a0] sm:$0xff]  ;;  %v67_v11 = vld [vmem:[%s893_s0 + $0x1a8] sm:$0xff] }
  0x1e   :  { %299 = vst [vmem:[%s896_s3 + $0xa8] sm:$0xff] %v235_v47  ;;  %v121_v27 = vmul.f32 %v374_v1, %v53_v16  ;;  %v246_v29 = vmax.f32 %v182_v14, 0.0  ;;  %v186_v30 = vadd.f32 %v379_v2, %v118_v15  ;;  %v122_v31 = vmul.f32 %v374_v1, %v54_v20  ;;  %v68_v15 = vld [vmem:[%s893_s0 + $0x1b0] sm:$0xff]  ;;  %v69_v20 = vld [vmem:[%s893_s0 + $0x1b8] sm:$0xff] }
  0x1f   :  { %300 = vst [vmem:[%s896_s3 + $0xb0] sm:$0xff] %v236_v51  ;;  %v247_v33 = vmax.f32 %v183_v18, 0.0  ;;  %v187_v34 = vadd.f32 %v379_v2, %v119_v19  ;;  %v123_v35 = vmul.f32 %v374_v1, %v55_v24  ;;  %v248_v37 = vmax.f32 %v184_v22, 0.0  ;;  %v70_v24 = vld [vmem:[%s893_s0 + $0x1c0] sm:$0xff] }
  0x20   :  { %301 = vst [vmem:[%s896_s3 + $0xb8] sm:$0xff] %v237_v55  ;;  %v188_v38 = vadd.f32 %v379_v2, %v120_v23  ;;  %v124_v39 = vmul.f32 %v374_v1, %v56_v28  ;;  %v249_v41 = vmax.f32 %v185_v26, 0.0  ;;  %v189_v42 = vadd.f32 %v379_v2, %v121_v27 }
  0x21   :  { %302 = vst [vmem:[%s896_s3 + $0xc0] sm:$0xff] %v238_v59  ;;  %v125_v43 = vmul.f32 %v374_v1, %v57_v32  ;;  %v250_v45 = vmax.f32 %v186_v30, 0.0  ;;  %v190_v46 = vadd.f32 %v379_v2, %v122_v31  ;;  %v126_v47 = vmul.f32 %v374_v1, %v58_v36 }
  0x22   :  { %303 = vst [vmem:[%s896_s3 + $0xc8] sm:$0xff] %v239_v63  ;;  %v251_v49 = vmax.f32 %v187_v34, 0.0  ;;  %v191_v50 = vadd.f32 %v379_v2, %v123_v35  ;;  %v127_v51 = vmul.f32 %v374_v1, %v59_v40  ;;  %v252_v53 = vmax.f32 %v188_v38, 0.0 }
  0x23   :  { %304 = vst [vmem:[%s896_s3 + $0xd0] sm:$0xff] %v240_v5  ;;  %v192_v54 = vadd.f32 %v379_v2, %v124_v39  ;;  %v128_v55 = vmul.f32 %v374_v1, %v60_v44  ;;  %v253_v57 = vmax.f32 %v189_v42, 0.0  ;;  %v193_v58 = vadd.f32 %v379_v2, %v125_v43 }
  0x24   :  { %305 = vst [vmem:[%s896_s3 + $0xd8] sm:$0xff] %v241_v9  ;;  %v129_v59 = vmul.f32 %v374_v1, %v61_v48  ;;  %v254_v61 = vmax.f32 %v190_v46, 0.0  ;;  %v194_v62 = vadd.f32 %v379_v2, %v126_v47  ;;  %v130_v63 = vmul.f32 %v374_v1, %v62_v52 }
  0x25   :  { %306 = vst [vmem:[%s896_s3 + $0xe0] sm:$0xff] %v242_v13  ;;  %v255_v4 = vmax.f32 %v191_v50, 0.0  ;;  %v195_v5 = vadd.f32 %v379_v2, %v127_v51  ;;  %v131_v6 = vmul.f32 %v374_v1, %v63_v56  ;;  %v256_v8 = vmax.f32 %v192_v54, 0.0 }
  0x26   :  { %307 = vst [vmem:[%s896_s3 + $0xe8] sm:$0xff] %v243_v17  ;;  %v196_v9 = vadd.f32 %v379_v2, %v128_v55  ;;  %v132_v10 = vmul.f32 %v374_v1, %v64_v60  ;;  %v257_v12 = vmax.f32 %v193_v58, 0.0  ;;  %v197_v13 = vadd.f32 %v379_v2, %v129_v59 }
  0x27   :  { %308 = vst [vmem:[%s896_s3 + $0xf0] sm:$0xff] %v244_v21  ;;  %v133_v14 = vmul.f32 %v374_v1, %v65_v0  ;;  %v145_v16 = vmul.f32 %v374_v1, %v77_v3  ;;  %v258_v17 = vmax.f32 %v194_v62, 0.0  ;;  %v198_v18 = vadd.f32 %v379_v2, %v130_v63 }
  0x28   :  { %309 = vst [vmem:[%s896_s3 + $0xf8] sm:$0xff] %v245_v25  ;;  %v134_v19 = vmul.f32 %v374_v1, %v66_v7  ;;  %v259_v21 = vmax.f32 %v195_v5, 0.0  ;;  %v199_v22 = vadd.f32 %v379_v2, %v131_v6  ;;  %v135_v23 = vmul.f32 %v374_v1, %v67_v11 }
  0x29   :  { %310 = vst [vmem:[%s896_s3 + $0x100] sm:$0xff] %v246_v29  ;;  %v784_v25 = vadd.f32 %v379_v2, %v145_v16  ;;  %v260_v26 = vmax.f32 %v196_v9, 0.0  ;;  %v200_v27 = vadd.f32 %v379_v2, %v132_v10  ;;  %v136_v28 = vmul.f32 %v374_v1, %v68_v15  ;;  %v71_v29 = vld [vmem:[%s893_s0 + $0x1c8] sm:$0xff] }
  0x2a   :  { %311 = vst [vmem:[%s896_s3 + $0x108] sm:$0xff] %v247_v33  ;;  %v261_v30 = vmax.f32 %v197_v13, 0.0  ;;  %v201_v31 = vadd.f32 %v379_v2, %v133_v14  ;;  %v137_v32 = vmul.f32 %v374_v1, %v69_v20  ;;  %v72_v33 = vld [vmem:[%s893_s0 + $0x1d0] sm:$0xff]  ;;  %v262_v34 = vmax.f32 %v198_v18, 0.0 }
  0x2b   :  { %312 = vst [vmem:[%s896_s3 + $0x110] sm:$0xff] %v248_v37  ;;  %v202_v35 = vadd.f32 %v379_v2, %v134_v19  ;;  %v138_v36 = vmul.f32 %v374_v1, %v70_v24  ;;  %v73_v37 = vld [vmem:[%s893_s0 + $0x1d8] sm:$0xff]  ;;  %v263_v38 = vmax.f32 %v199_v22, 0.0  ;;  %v203_v39 = vadd.f32 %v379_v2, %v135_v23 }
  0x2c   :  { %313 = vst [vmem:[%s896_s3 + $0x118] sm:$0xff] %v249_v41  ;;  %v139_v40 = vmul.f32 %v374_v1, %v71_v29  ;;  %v74_v41 = vld [vmem:[%s893_s0 + $0x1e0] sm:$0xff]  ;;  %v264_v42 = vmax.f32 %v200_v27, 0.0  ;;  %v204_v43 = vadd.f32 %v379_v2, %v136_v28  ;;  %v140_v44 = vmul.f32 %v374_v1, %v72_v33 }
  0x2d   :  { %314 = vst [vmem:[%s896_s3 + $0x120] sm:$0xff] %v250_v45  ;;  %v75_v45 = vld [vmem:[%s893_s0 + $0x1e8] sm:$0xff]  ;;  %v265_v46 = vmax.f32 %v201_v31, 0.0  ;;  %v205_v47 = vadd.f32 %v379_v2, %v137_v32  ;;  %v141_v48 = vmul.f32 %v374_v1, %v73_v37  ;;  %v266_v50 = vmax.f32 %v202_v35, 0.0 }
  0x2e   :  { %315 = vst [vmem:[%s896_s3 + $0x128] sm:$0xff] %v251_v49  ;;  %v76_v49 = vld [vmem:[%s893_s0 + $0x1f0] sm:$0xff]  ;;  %v206_v51 = vadd.f32 %v379_v2, %v138_v36  ;;  %v142_v52 = vmul.f32 %v374_v1, %v74_v41  ;;  %v207_v54 = vadd.f32 %v379_v2, %v139_v40  ;;  %v143_v55 = vmul.f32 %v374_v1, %v75_v45 }
  0x2f   :  { %316 = vst [vmem:[%s896_s3 + $0x130] sm:$0xff] %v252_v53  ;;  %v267_v53 = vmax.f32 %v203_v39, 0.0  ;;  %v268_v56 = vmax.f32 %v204_v43, 0.0  ;;  %v144_v58 = vmul.f32 %v374_v1, %v76_v49  ;;  %v269_v59 = vmax.f32 %v205_v47, 0.0 }
  0x30   :  { %317 = vst [vmem:[%s896_s3 + $0x138] sm:$0xff] %v253_v57  ;;  %v208_v57 = vadd.f32 %v379_v2, %v140_v44  ;;  %v209_v60 = vadd.f32 %v379_v2, %v141_v48  ;;  %v210_v62 = vadd.f32 %v379_v2, %v142_v52  ;;  %v271_v63 = vmax.f32 %v207_v54, 0.0 }
  0x31   :  { %318 = vst [vmem:[%s896_s3 + $0x140] sm:$0xff] %v254_v61  ;;  %v270_v61 = vmax.f32 %v206_v51, 0.0  ;;  %v211_v1 = vadd.f32 %v379_v2, %v143_v55  ;;  %v212_v3 = vadd.f32 %v379_v2, %v144_v58  ;;  %v277_v7 = vmax.f32 %v784_v25, 0.0 }
  0x32   :  { %319 = vst [vmem:[%s896_s3 + $0x148] sm:$0xff] %v255_v4  ;;  %v272_v0 = vmax.f32 %v208_v57, 0.0  ;;  %v273_v4 = vmax.f32 %v209_v60, 0.0  ;;  %v274_v5 = vmax.f32 %v210_v62, 0.0 }
  0x33   :  { %320 = vst [vmem:[%s896_s3 + $0x150] sm:$0xff] %v256_v8  ;;  %v275_v6 = vmax.f32 %v211_v1, 0.0  ;;  %v276_v2 = vmax.f32 %v212_v3, 0.0 }
  0x34   :  { %321 = vst [vmem:[%s896_s3 + $0x158] sm:$0xff] %v257_v12 }
  0x35   :  { %322 = vst [vmem:[%s896_s3 + $0x160] sm:$0xff] %v258_v17 }
  0x36   :  { %323 = vst [vmem:[%s896_s3 + $0x168] sm:$0xff] %v259_v21 }
  0x37   :  { %324 = vst [vmem:[%s896_s3 + $0x170] sm:$0xff] %v260_v26 }
  0x38   :  { %325 = vst [vmem:[%s896_s3 + $0x178] sm:$0xff] %v261_v30 }
  0x39   :  { %326 = vst [vmem:[%s896_s3 + $0x180] sm:$0xff] %v262_v34 }
  0x3a   :  { %327 = vst [vmem:[%s896_s3 + $0x188] sm:$0xff] %v263_v38 }
  0x3b   :  { %328 = vst [vmem:[%s896_s3 + $0x190] sm:$0xff] %v264_v42 }
  0x3c   :  { %329 = vst [vmem:[%s896_s3 + $0x198] sm:$0xff] %v265_v46 }
  0x3d   :  { %330 = vst [vmem:[%s896_s3 + $0x1a0] sm:$0xff] %v266_v50 }
  0x3e   :  { %331 = vst [vmem:[%s896_s3 + $0x1a8] sm:$0xff] %v267_v53 }
  0x3f   :  { %332 = vst [vmem:[%s896_s3 + $0x1b0] sm:$0xff] %v268_v56 }
  0x40   :  { %333 = vst [vmem:[%s896_s3 + $0x1b8] sm:$0xff] %v269_v59 }
  0x41   :  { %334 = vst [vmem:[%s896_s3 + $0x1c0] sm:$0xff] %v270_v61 }
  0x42   :  { %335 = vst [vmem:[%s896_s3 + $0x1c8] sm:$0xff] %v271_v63 }
  0x43   :  { %336 = vst [vmem:[%s896_s3 + $0x1d0] sm:$0xff] %v272_v0 }
  0x44   :  { %337 = vst [vmem:[%s896_s3 + $0x1d8] sm:$0xff] %v273_v4 }
  0x45   :  { %338 = vst [vmem:[%s896_s3 + $0x1e0] sm:$0xff] %v274_v5 }
  0x46   :  { %339 = vst [vmem:[%s896_s3 + $0x1e8] sm:$0xff] %v275_v6 }
  0x47   :  { %340 = vst [vmem:[%s896_s3 + $0x1f0] sm:$0xff] %v276_v2 }
  0x48   :  { %341 = vst [vmem:[%s896_s3 + $0x1f8] sm:$0xff] %v277_v7 }

// kernel: resnet_forward.39
= control target key start
LH: loop header
LB: loop body
LE: loop exit
PB: predicated region body
PF: predicated region fallthrough
CT: control target
= control target key end

     0   :  { %vm768_vm0 = vcmask 1040384   ;;  %s1626_s1 = inlined_call_operand.vmem [shape: bf16[128,128], index: 1, kind: input, shape index: {}]   ;;  %s1627_s0 = inlined_call_operand.vmem [shape: bf16[512,128], index: 0, kind: input, shape index: {}]   ;;  %s1628_s2 = inlined_call_operand.vmem [shape: f32[512,128], index: 2, kind: output, shape index: {0}]   ;;  %s1629_s3 = inlined_call_operand.vmem [shape: f32[1,2,128], index: 3, kind: output, shape index: {1}]  }
   0x1   :  { %v978_v0 = vld [vmem:[%s1626_s1 + $0x38] sm:$0xff]  ;;  %v977_v1 = vld [vmem:[%s1626_s1 + $0x30] sm:$0xff]  ;;  %v976_v2 = vld [vmem:[%s1626_s1 + $0x28] sm:$0xff] }
   0x2   :  { %333 = vmatpush.bf16.msra.mxu0 %v978_v0  ;;  %979 = vmatpush.bf16.msra.mxu1 %v978_v0  ;;  %v975_v3 = vld [vmem:[%s1626_s1 + $0x20] sm:$0xff]  ;;  %v974_v4 = vld [vmem:[%s1626_s1 + $0x18] sm:$0xff]  ;;  %v973_v5 = vld [vmem:[%s1626_s1 + $0x10] sm:$0xff] }
   0x3   :  { %980 = vmatpush.bf16.msra.mxu2 %v978_v0  ;;  %981 = vmatpush.bf16.msra.mxu3 %v978_v0  ;;  %v972_v6 = vld [vmem:[%s1626_s1 + $0x8] sm:$0xff]  ;;  %v971_v7 = vld [vmem:[%s1626_s1] sm:$0xff]  ;;  %v941_v13 = vld [vmem:[%s1627_s0 + $0x10] sm:$0xff] }
   0x4   :  { %v939_v8 = vld [vmem:[%s1627_s0] sm:$0xff]  ;;  %v940_v10 = vld [vmem:[%s1627_s0 + $0x8] sm:$0xff]  ;;  %v949_v14 = vld [vmem:[%s1627_s0 + $0x50] sm:$0xff] }
   0x5   :  { %v947_v9 = vld [vmem:[%s1627_s0 + $0x40] sm:$0xff]  ;;  %v948_v11 = vld [vmem:[%s1627_s0 + $0x48] sm:$0xff]  ;;  %v942_v16 = vld [vmem:[%s1627_s0 + $0x18] sm:$0xff] }
   0x6   :  { %334 = vmatpush.bf16.msra.mxu0 %v977_v1  ;;  %982 = vmatpush.bf16.msra.mxu1 %v977_v1  ;;  %v955_v12 = vld [vmem:[%s1627_s0 + $0x80] sm:$0xff]  ;;  %v956_v15 = vld [vmem:[%s1627_s0 + $0x88] sm:$0xff]  ;;  %v950_v17 = vld [vmem:[%s1627_s0 + $0x58] sm:$0xff] }
   0x7   :  { %983 = vmatpush.bf16.msra.mxu2 %v977_v1  ;;  %984 = vmatpush.bf16.msra.mxu3 %v977_v1  ;;  %v957_v18 = vld [vmem:[%s1627_s0 + $0x90] sm:$0xff]  ;;  %v963_v19 = vld [vmem:[%s1627_s0 + $0xc0] sm:$0xff]  ;;  %v958_v22 = vld [vmem:[%s1627_s0 + $0x98] sm:$0xff] }
   0x8   :  { %v943_v20 = vld [vmem:[%s1627_s0 + $0x20] sm:$0xff]  ;;  %v964_v23 = vld [vmem:[%s1627_s0 + $0xc8] sm:$0xff]  ;;  %v965_v27 = vld [vmem:[%s1627_s0 + $0xd0] sm:$0xff] }
   0x9   :  { %v951_v21 = vld [vmem:[%s1627_s0 + $0x60] sm:$0xff]  ;;  %v944_v24 = vld [vmem:[%s1627_s0 + $0x28] sm:$0xff]  ;;  %v945_v28 = vld [vmem:[%s1627_s0 + $0x30] sm:$0xff] }
   0xa   :  { %335 = vmatpush.bf16.msra.mxu0 %v976_v2  ;;  %985 = vmatpush.bf16.msra.mxu1 %v976_v2  ;;  %v952_v25 = vld [vmem:[%s1627_s0 + $0x68] sm:$0xff]  ;;  %v959_v26 = vld [vmem:[%s1627_s0 + $0xa0] sm:$0xff]  ;;  %v953_v29 = vld [vmem:[%s1627_s0 + $0x70] sm:$0xff] }
   0xb   :  { %986 = vmatpush.bf16.msra.mxu2 %v976_v2  ;;  %987 = vmatpush.bf16.msra.mxu3 %v976_v2  ;;  %v960_v30 = vld [vmem:[%s1627_s0 + $0xa8] sm:$0xff]  ;;  %v966_v31 = vld [vmem:[%s1627_s0 + $0xd8] sm:$0xff]  ;;  %v961_v34 = vld [vmem:[%s1627_s0 + $0xb0] sm:$0xff] }
   0xc   :  { %v946_v32 = vld [vmem:[%s1627_s0 + $0x38] sm:$0xff]  ;;  %v967_v35 = vld [vmem:[%s1627_s0 + $0xe0] sm:$0xff]  ;;  %v968_v39 = vld [vmem:[%s1627_s0 + $0xe8] sm:$0xff] }
   0xd   :  { %v954_v33 = vld [vmem:[%s1627_s0 + $0x78] sm:$0xff]  ;;  %v969_v51 = vld [vmem:[%s1627_s0 + $0xf0] sm:$0xff] }
   0xe   :  { %336 = vmatpush.bf16.msra.mxu0 %v975_v3  ;;  %988 = vmatpush.bf16.msra.mxu1 %v975_v3  ;;  %v962_v38 = vld [vmem:[%s1627_s0 + $0xb8] sm:$0xff] }
   0xf   :  { %989 = vmatpush.bf16.msra.mxu2 %v975_v3  ;;  %990 = vmatpush.bf16.msra.mxu3 %v975_v3  ;;  %v970_v0 = vld [vmem:[%s1627_s0 + $0xf8] sm:$0xff] }
  0x12   :  { %337 = vmatpush.bf16.msra.mxu0 %v974_v4  ;;  %991 = vmatpush.bf16.msra.mxu1 %v974_v4 }
  0x13   :  { %992 = vmatpush.bf16.msra.mxu2 %v974_v4  ;;  %993 = vmatpush.bf16.msra.mxu3 %v974_v4 }
  0x16   :  { %338 = vmatpush.bf16.msra.mxu0 %v973_v5  ;;  %994 = vmatpush.bf16.msra.mxu1 %v973_v5 }
  0x17   :  { %995 = vmatpush.bf16.msra.mxu2 %v973_v5  ;;  %996 = vmatpush.bf16.msra.mxu3 %v973_v5 }
  0x1a   :  { %339 = vmatpush.bf16.msra.mxu0 %v972_v6  ;;  %997 = vmatpush.bf16.msra.mxu1 %v972_v6 }
  0x1b   :  { %998 = vmatpush.bf16.msra.mxu2 %v972_v6  ;;  %999 = vmatpush.bf16.msra.mxu3 %v972_v6 }
  0x1e   :  { %340 = vmatpush.bf16.msra.mxu0 %v971_v7  ;;  %1000 = vmatpush.bf16.msra.mxu1 %v971_v7 }
  0x1f   :  { %1001 = vmatpush.bf16.msra.mxu2 %v971_v7  ;;  %1002 = vmatpush.bf16.msra.mxu3 %v971_v7 }
  0x21   :  { %341 = vmatmul.bf16.vlgmr.msra.gmra.mxu0 %v939_v8  ;;  %381 = vmatmul.bf16.vlgmr.msra.gmra.mxu1 %v947_v9 }
  0x22   :  { %421 = vmatmul.bf16.vlgmr.msra.gmra.mxu2 %v955_v12  ;;  %461 = vmatmul.bf16.vlgmr.msra.gmra.mxu3 %v963_v19 }
  0x31   :  { %346 = vmatmul.bf16.gmra.mxu0 %v940_v10  ;;  %386 = vmatmul.bf16.gmra.mxu1 %v948_v11 }
  0x32   :  { %426 = vmatmul.bf16.gmra.mxu2 %v956_v15  ;;  %466 = vmatmul.bf16.gmra.mxu3 %v964_v23 }
  0x41   :  { %351 = vmatmul.bf16.gmra.mxu0 %v941_v13  ;;  %391 = vmatmul.bf16.gmra.mxu1 %v949_v14 }
  0x42   :  { %431 = vmatmul.bf16.gmra.mxu2 %v957_v18  ;;  %471 = vmatmul.bf16.gmra.mxu3 %v965_v27 }
  0x51   :  { %356 = vmatmul.bf16.gmra.mxu0 %v942_v16  ;;  %396 = vmatmul.bf16.gmra.mxu1 %v950_v17 }
  0x52   :  { %436 = vmatmul.bf16.gmra.mxu2 %v958_v22  ;;  %476 = vmatmul.bf16.gmra.mxu3 %v966_v31 }
  0x61   :  { %361 = vmatmul.bf16.gmra.mxu0 %v943_v20  ;;  %401 = vmatmul.bf16.gmra.mxu1 %v951_v21 }
  0x62   :  { %441 = vmatmul.bf16.gmra.mxu2 %v959_v26  ;;  %481 = vmatmul.bf16.gmra.mxu3 %v967_v35 }
  0x71   :  { %366 = vmatmul.bf16.gmra.mxu0 %v944_v24  ;;  %406 = vmatmul.bf16.gmra.mxu1 %v952_v25 }
  0x72   :  { %446 = vmatmul.bf16.gmra.mxu2 %v960_v30  ;;  %486 = vmatmul.bf16.gmra.mxu3 %v968_v39 }
  0x81   :  { %371 = vmatmul.bf16.gmra.mxu0 %v945_v28  ;;  %411 = vmatmul.bf16.gmra.mxu1 %v953_v29 }
  0x82   :  { %451 = vmatmul.bf16.gmra.mxu2 %v961_v34  ;;  %491 = vmatmul.bf16.gmra.mxu3 %v969_v51 }
  0x91   :  { %376 = vmatmul.bf16.gmra.mxu0 %v946_v32  ;;  %416 = vmatmul.bf16.gmra.mxu1 %v954_v33 }
  0x92   :  { %456 = vmatmul.bf16.gmra.mxu2 %v962_v38  ;;  %496 = vmatmul.bf16.gmra.mxu3 %v970_v0 }
  0x9e   :  { %v342_v36 = vpop.f32.mrf.mxu0  ;;  %v1131_v37 = vpop.f32.mrf.mxu1 }
  0x9f   :  { %502 = vst [vmem:[%s1628_s2] sm:$0xff] %v342_v36  ;;  %v635_v42 = vmul.f32 %v342_v36, %v342_v36 }
  0xa0   :  { %518 = vst [vmem:[%s1628_s2 + $0x80] sm:$0xff] %v1131_v37 }
  0xa5   :  { %v1172_v56 = vpop.f32.mrf.mxu2  ;;  %v1241_v10 = vpop.f32.mrf.mxu3 }
  0xa6   :  { %v344_v40 = vpop.f32.mrf.mxu0  ;;  %v1146_v41 = vpop.f32.mrf.mxu1  ;;  %534 = vst [vmem:[%s1628_s2 + $0x100] sm:$0xff] %v1172_v56 }
  0xa7   :  { %503 = vst [vmem:[%s1628_s2 + $0x8] sm:$0xff] %v344_v40  ;;  %v566_v43 = vadd.f32 %v344_v40, %v342_v36  ;;  %v636_v44 = vmul.f32 %v344_v40, %v344_v40 }
  0xa8   :  { %519 = vst [vmem:[%s1628_s2 + $0x88] sm:$0xff] %v1146_v41 }
  0xa9   :  { %v699_v45 = vadd.f32 %v636_v44, %v635_v42  ;;  %550 = vst [vmem:[%s1628_s2 + $0x180] sm:$0xff] %v1241_v10 }
  0xad   :  { %v1189_v62 = vpop.f32.mrf.mxu2  ;;  %v1262_v14 = vpop.f32.mrf.mxu3 }
  0xae   :  { %v347_v46 = vpop.f32.mrf.mxu0  ;;  %v1155_v47 = vpop.f32.mrf.mxu1  ;;  %535 = vst [vmem:[%s1628_s2 + $0x108] sm:$0xff] %v1189_v62 }
  0xaf   :  { %504 = vst [vmem:[%s1628_s2 + $0x10] sm:$0xff] %v347_v46  ;;  %v567_v48 = vadd.f32 %v566_v43, %v347_v46  ;;  %v637_v49 = vmul.f32 %v347_v46, %v347_v46 }
  0xb0   :  { %520 = vst [vmem:[%s1628_s2 + $0x90] sm:$0xff] %v1155_v47 }
  0xb1   :  { %v700_v50 = vadd.f32 %v699_v45, %v637_v49  ;;  %551 = vst [vmem:[%s1628_s2 + $0x188] sm:$0xff] %v1262_v14 }
  0xb5   :  { %v1209_v3 = vpop.f32.mrf.mxu2  ;;  %v1283_v18 = vpop.f32.mrf.mxu3 }
  0xb6   :  { %v349_v52 = vpop.f32.mrf.mxu0  ;;  %v1167_v53 = vpop.f32.mrf.mxu1  ;;  %536 = vst [vmem:[%s1628_s2 + $0x110] sm:$0xff] %v1209_v3 }
  0xb7   :  { %505 = vst [vmem:[%s1628_s2 + $0x18] sm:$0xff] %v349_v52  ;;  %v568_v54 = vadd.f32 %v567_v48, %v349_v52  ;;  %v638_v55 = vmul.f32 %v349_v52, %v349_v52 }
  0xb8   :  { %521 = vst [vmem:[%s1628_s2 + $0x98] sm:$0xff] %v1167_v53 }
  0xb9   :  { %v701_v57 = vadd.f32 %v700_v50, %v638_v55  ;;  %552 = vst [vmem:[%s1628_s2 + $0x190] sm:$0xff] %v1283_v18 }
  0xbd   :  { %v1224_v6 = vpop.f32.mrf.mxu2  ;;  %v1304_v22 = vpop.f32.mrf.mxu3 }
  0xbe   :  { %v352_v58 = vpop.f32.mrf.mxu0  ;;  %v1182_v59 = vpop.f32.mrf.mxu1  ;;  %537 = vst [vmem:[%s1628_s2 + $0x118] sm:$0xff] %v1224_v6 }
  0xbf   :  { %506 = vst [vmem:[%s1628_s2 + $0x20] sm:$0xff] %v352_v58  ;;  %v1187_v60 = vadd.f32 %v568_v54, %v352_v58  ;;  %v639_v61 = vmul.f32 %v352_v58, %v352_v58 }
  0xc0   :  { %522 = vst [vmem:[%s1628_s2 + $0xa0] sm:$0xff] %v1182_v59 }
  0xc1   :  { %v1195_v63 = vadd.f32 %v701_v57, %v639_v61  ;;  %553 = vst [vmem:[%s1628_s2 + $0x198] sm:$0xff] %v1304_v22 }
  0xc5   :  { %v1239_v9 = vpop.f32.mrf.mxu2  ;;  %v1325_v26 = vpop.f32.mrf.mxu3 }
  0xc6   :  { %v354_v1 = vpop.f32.mrf.mxu0  ;;  %v1204_v2 = vpop.f32.mrf.mxu1  ;;  %538 = vst [vmem:[%s1628_s2 + $0x120] sm:$0xff] %v1239_v9 }
  0xc7   :  { %507 = vst [vmem:[%s1628_s2 + $0x28] sm:$0xff] %v354_v1  ;;  %v640_v31 = vmul.f32 %v354_v1, %v354_v1  ;;  %v570_v32 = vadd.f32 %v1187_v60, %v354_v1 }
  0xc8   :  { %523 = vst [vmem:[%s1628_s2 + $0xa8] sm:$0xff] %v1204_v2 }
  0xc9   :  { %554 = vst [vmem:[%s1628_s2 + $0x1a0] sm:$0xff] %v1325_v26  ;;  %v703_v34 = vadd.f32 %v1195_v63, %v640_v31 }
  0xcd   :  { %v1260_v13 = vpop.f32.mrf.mxu2  ;;  %v1346_v30 = vpop.f32.mrf.mxu3 }
  0xce   :  { %v357_v4 = vpop.f32.mrf.mxu0  ;;  %v1219_v5 = vpop.f32.mrf.mxu1  ;;  %539 = vst [vmem:[%s1628_s2 + $0x128] sm:$0xff] %v1260_v13 }
  0xcf   :  { %508 = vst [vmem:[%s1628_s2 + $0x30] sm:$0xff] %v357_v4  ;;  %v641_v33 = vmul.f32 %v357_v4, %v357_v4  ;;  %v571_v35 = vadd.f32 %v570_v32, %v357_v4 }
  0xd0   :  { %524 = vst [vmem:[%s1628_s2 + $0xb0] sm:$0xff] %v1219_v5 }
  0xd1   :  { %555 = vst [vmem:[%s1628_s2 + $0x1a8] sm:$0xff] %v1346_v30  ;;  %v704_v40 = vadd.f32 %v703_v34, %v641_v33 }
  0xd5   :  { %v1281_v17 = vpop.f32.mrf.mxu2  ;;  %v1369_v45 = vpop.f32.mrf.mxu3 }
  0xd6   :  { %v359_v7 = vpop.f32.mrf.mxu0  ;;  %v1234_v8 = vpop.f32.mrf.mxu1  ;;  %540 = vst [vmem:[%s1628_s2 + $0x130] sm:$0xff] %v1281_v17 }
  0xd7   :  { %509 = vst [vmem:[%s1628_s2 + $0x38] sm:$0xff] %v359_v7  ;;  %v642_v36 = vmul.f32 %v359_v7, %v359_v7  ;;  %v572_v42 = vadd.f32 %v571_v35, %v359_v7 }
  0xd8   :  { %525 = vst [vmem:[%s1628_s2 + $0xb8] sm:$0xff] %v1234_v8 }
  0xd9   :  { %v705_v46 = vadd.f32 %v704_v40, %v642_v36  ;;  %556 = vst [vmem:[%s1628_s2 + $0x1b0] sm:$0xff] %v1369_v45 }
  0xdd   :  { %v1302_v21 = vpop.f32.mrf.mxu2  ;;  %v1390_v4 = vpop.f32.mrf.mxu3 }
  0xde   :  { %v362_v11 = vpop.f32.mrf.mxu0  ;;  %v1255_v12 = vpop.f32.mrf.mxu1  ;;  %541 = vst [vmem:[%s1628_s2 + $0x138] sm:$0xff] %v1302_v21 }
  0xdf   :  { %510 = vst [vmem:[%s1628_s2 + $0x40] sm:$0xff] %v362_v11  ;;  %v643_v43 = vmul.f32 %v362_v11, %v362_v11  ;;  %v573_v48 = vadd.f32 %v572_v42, %v362_v11 }
  0xe0   :  { %526 = vst [vmem:[%s1628_s2 + $0xc0] sm:$0xff] %v1255_v12 }
  0xe1   :  { %v706_v50 = vadd.f32 %v705_v46, %v643_v43  ;;  %557 = vst [vmem:[%s1628_s2 + $0x1b8] sm:$0xff] %v1390_v4 }
  0xe5   :  { %v1323_v25 = vpop.f32.mrf.mxu2  ;;  %v1411_v43 = vpop.f32.mrf.mxu3 }
  0xe6   :  { %v364_v15 = vpop.f32.mrf.mxu0  ;;  %v1276_v16 = vpop.f32.mrf.mxu1  ;;  %542 = vst [vmem:[%s1628_s2 + $0x140] sm:$0xff] %v1323_v25 }
  0xe7   :  { %511 = vst [vmem:[%s1628_s2 + $0x48] sm:$0xff] %v364_v15  ;;  %v644_v49 = vmul.f32 %v364_v15, %v364_v15  ;;  %v574_v51 = vadd.f32 %v573_v48, %v364_v15 }
  0xe8   :  { %527 = vst [vmem:[%s1628_s2 + $0xc8] sm:$0xff] %v1276_v16 }
  0xe9   :  { %v707_v54 = vadd.f32 %v706_v50, %v644_v49  ;;  %558 = vst [vmem:[%s1628_s2 + $0x1c0] sm:$0xff] %v1411_v43  ;;  %v652_v49 = vmul.f32 %v1146_v41, %v1146_v41 }
  0xed   :  { %v1344_v29 = vpop.f32.mrf.mxu2 }
  0xee   :  { %v367_v19 = vpop.f32.mrf.mxu0  ;;  %v1297_v20 = vpop.f32.mrf.mxu1  ;;  %543 = vst [vmem:[%s1628_s2 + $0x148] sm:$0xff] %v1344_v29 }
  0xef   :  { %512 = vst [vmem:[%s1628_s2 + $0x50] sm:$0xff] %v367_v19  ;;  %v645_v52 = vmul.f32 %v367_v19, %v367_v19  ;;  %v575_v55 = vadd.f32 %v574_v51, %v367_v19 }
  0xf0   :  { %528 = vst [vmem:[%s1628_s2 + $0xd0] sm:$0xff] %v1297_v20 }
  0xf1   :  { %v708_v61 = vadd.f32 %v707_v54, %v645_v52 }
  0xf5   :  { %v1367_v44 = vpop.f32.mrf.mxu2 }
  0xf6   :  { %v369_v23 = vpop.f32.mrf.mxu0  ;;  %v1318_v24 = vpop.f32.mrf.mxu1  ;;  %544 = vst [vmem:[%s1628_s2 + $0x150] sm:$0xff] %v1367_v44 }
  0xf7   :  { %513 = vst [vmem:[%s1628_s2 + $0x58] sm:$0xff] %v369_v23  ;;  %v646_v57 = vmul.f32 %v369_v23, %v369_v23  ;;  %v576_v63 = vadd.f32 %v575_v55, %v369_v23  ;;  %v654_v55 = vmul.f32 %v1167_v53, %v1167_v53 }
  0xf8   :  { %529 = vst [vmem:[%s1628_s2 + $0xd8] sm:$0xff] %v1318_v24 }
  0xf9   :  { %v709_v7 = vadd.f32 %v708_v61, %v646_v57 }
  0xfd   :  { %v1388_v1 = vpop.f32.mrf.mxu2 }
  0xfe   :  { %v372_v27 = vpop.f32.mrf.mxu0  ;;  %v1339_v28 = vpop.f32.mrf.mxu1  ;;  %545 = vst [vmem:[%s1628_s2 + $0x158] sm:$0xff] %v1388_v1 }
  0xff   :  { %514 = vst [vmem:[%s1628_s2 + $0x60] sm:$0xff] %v372_v27  ;;  %v647_v0 = vmul.f32 %v372_v27, %v372_v27  ;;  %v577_v11 = vadd.f32 %v576_v63, %v372_v27  ;;  %v1439_v63 = vpop.f32.mrf.mxu3 }
 0x100   :  { %530 = vst [vmem:[%s1628_s2 + $0xe0] sm:$0xff] %v1339_v28 }
 0x101   :  { %v710_v19 = vadd.f32 %v709_v7, %v647_v0  ;;  %559 = vst [vmem:[%s1628_s2 + $0x1c8] sm:$0xff] %v1439_v63 }
 0x105   :  { %v1409_v42 = vpop.f32.mrf.mxu2 }
 0x106   :  { %v374_v38 = vpop.f32.mrf.mxu0  ;;  %v1362_v39 = vpop.f32.mrf.mxu1  ;;  %546 = vst [vmem:[%s1628_s2 + $0x160] sm:$0xff] %v1409_v42 }
 0x107   :  { %515 = vst [vmem:[%s1628_s2 + $0x68] sm:$0xff] %v374_v38  ;;  %v648_v15 = vmul.f32 %v374_v38, %v374_v38  ;;  %v578_v23 = vadd.f32 %v577_v11, %v374_v38  ;;  %v651_v38 = vmul.f32 %v1131_v37, %v1131_v37 }
 0x108   :  { %531 = vst [vmem:[%s1628_s2 + $0xe8] sm:$0xff] %v1362_v39 }
 0x109   :  { %v711_v32 = vadd.f32 %v710_v19, %v648_v15  ;;  %v657_v15 = vmul.f32 %v1219_v5, %v1219_v5 }
 0x10d   :  { %v1437_v61 = vpop.f32.mrf.mxu2 }
 0x10e   :  { %v377_v58 = vpop.f32.mrf.mxu0  ;;  %v1383_v60 = vpop.f32.mrf.mxu1  ;;  %547 = vst [vmem:[%s1628_s2 + $0x168] sm:$0xff] %v1437_v61 }
 0x10f   :  { %516 = vst [vmem:[%s1628_s2 + $0x70] sm:$0xff] %v377_v58  ;;  %v649_v31 = vmul.f32 %v377_v58, %v377_v58  ;;  %v579_v33 = vadd.f32 %v578_v23, %v377_v58 }
 0x110   :  { %532 = vst [vmem:[%s1628_s2 + $0xf0] sm:$0xff] %v1383_v60 }
 0x111   :  { %v712_v27 = vadd.f32 %v711_v32, %v649_v31 }
 0x116   :  { %v379_v34 = vpop.f32.mrf.mxu0  ;;  %v1404_v35 = vpop.f32.mrf.mxu1 }
 0x117   :  { %517 = vst [vmem:[%s1628_s2 + $0x78] sm:$0xff] %v379_v34  ;;  %v580_v36 = vadd.f32 %v579_v33, %v379_v34  ;;  %v650_v40 = vmul.f32 %v379_v34, %v379_v34  ;;  %v1461_v33 = vpop.f32.mrf.mxu2  ;;  %v1463_v34 = vpop.f32.mrf.mxu3 }
 0x118   :  { %533 = vst [vmem:[%s1628_s2 + $0xf8] sm:$0xff] %v1404_v35 }
 0x119   :  { %v581_v46 = vadd.f32 %v580_v36, %v1131_v37  ;;  %v713_v48 = vadd.f32 %v712_v27, %v650_v40  ;;  %v653_v37 = vmul.f32 %v1155_v47, %v1155_v47  ;;  %548 = vst [vmem:[%s1628_s2 + $0x170] sm:$0xff] %v1461_v33 }
 0x11a   :  { %560 = vst [vmem:[%s1628_s2 + $0x1d0] sm:$0xff] %v1463_v34 }
 0x11b   :  { %v582_v50 = vadd.f32 %v581_v46, %v1146_v41  ;;  %v714_v51 = vadd.f32 %v713_v48, %v651_v38  ;;  %v655_v41 = vmul.f32 %v1182_v59, %v1182_v59  ;;  %v661_v38 = vmul.f32 %v1297_v20, %v1297_v20 }
 0x11d   :  { %v583_v52 = vadd.f32 %v582_v50, %v1155_v47  ;;  %v715_v54 = vadd.f32 %v714_v51, %v652_v49 }
 0x11f   :  { %v584_v57 = vadd.f32 %v583_v52, %v1167_v53  ;;  %v716_v58 = vadd.f32 %v715_v54, %v653_v37  ;;  %v656_v53 = vmul.f32 %v1204_v2, %v1204_v2  ;;  %v1485_v51 = vpop.f32.mrf.mxu2  ;;  %v1487_v37 = vpop.f32.mrf.mxu3 }
 0x120   :  { %549 = vst [vmem:[%s1628_s2 + $0x178] sm:$0xff] %v1485_v51 }
 0x121   :  { %v585_v47 = vadd.f32 %v584_v57, %v1182_v59  ;;  %v717_v0 = vadd.f32 %v716_v58, %v654_v55  ;;  %v658_v59 = vmul.f32 %v1234_v8, %v1234_v8  ;;  %561 = vst [vmem:[%s1628_s2 + $0x1d8] sm:$0xff] %v1487_v37  ;;  %v664_v55 = vmul.f32 %v1362_v39, %v1362_v39 }
 0x123   :  { %v586_v7 = vadd.f32 %v585_v47, %v1204_v2  ;;  %v718_v11 = vadd.f32 %v717_v0, %v655_v41  ;;  %v659_v2 = vmul.f32 %v1255_v12, %v1255_v12  ;;  %v665_v41 = vmul.f32 %v1383_v60, %v1383_v60 }
 0x124   :  { %v666_v0 = vmul.f32 %v1404_v35, %v1404_v35 }
 0x125   :  { %v719_v19 = vadd.f32 %v718_v11, %v656_v53  ;;  %v587_v23 = vadd.f32 %v586_v7, %v1219_v5 }
 0x127   :  { %v588_v31 = vadd.f32 %v587_v23, %v1234_v8  ;;  %v720_v32 = vadd.f32 %v719_v19, %v657_v15  ;;  %v660_v8 = vmul.f32 %v1276_v16, %v1276_v16  ;;  %v1509_v53 = vpop.f32.mrf.mxu3 }
 0x128   :  { %562 = vst [vmem:[%s1628_s2 + $0x1e0] sm:$0xff] %v1509_v53 }
 0x129   :  { %v589_v5 = vadd.f32 %v588_v31, %v1255_v12  ;;  %v721_v27 = vadd.f32 %v720_v32, %v658_v59  ;;  %v662_v12 = vmul.f32 %v1318_v24, %v1318_v24  ;;  %v670_v31 = vmul.f32 %v1224_v6, %v1224_v6 }
 0x12b   :  { %v590_v36 = vadd.f32 %v589_v5, %v1276_v16  ;;  %v722_v40 = vadd.f32 %v721_v27, %v659_v2  ;;  %v672_v27 = vmul.f32 %v1260_v13, %v1260_v13 }
 0x12d   :  { %v591_v46 = vadd.f32 %v590_v36, %v1297_v20  ;;  %v723_v48 = vadd.f32 %v722_v40, %v660_v8  ;;  %v663_v20 = vmul.f32 %v1339_v28, %v1339_v28  ;;  %v673_v36 = vmul.f32 %v1281_v17, %v1281_v17 }
 0x12f   :  { %v592_v49 = vadd.f32 %v591_v46, %v1318_v24  ;;  %v724_v50 = vadd.f32 %v723_v48, %v661_v38  ;;  %v674_v46 = vmul.f32 %v1302_v21, %v1302_v21 }
 0x131   :  { %v593_v16 = vadd.f32 %v592_v49, %v1339_v28  ;;  %v725_v52 = vadd.f32 %v724_v50, %v662_v12 }
 0x133   :  { %v726_v24 = vadd.f32 %v725_v52, %v663_v20  ;;  %v594_v54 = vadd.f32 %v593_v16, %v1362_v39  ;;  %v667_v39 = vmul.f32 %v1172_v56, %v1172_v56  ;;  %v677_v20 = vmul.f32 %v1367_v44, %v1367_v44 }
 0x135   :  { %v727_v57 = vadd.f32 %v726_v24, %v664_v55  ;;  %v595_v58 = vadd.f32 %v594_v54, %v1383_v60  ;;  %v668_v60 = vmul.f32 %v1189_v62, %v1189_v62  ;;  %v678_v55 = vmul.f32 %v1388_v1, %v1388_v1 }
 0x137   :  { %v728_v47 = vadd.f32 %v727_v57, %v665_v41  ;;  %v596_v28 = vadd.f32 %v595_v58, %v1404_v35  ;;  %v669_v35 = vmul.f32 %v1209_v3, %v1209_v3  ;;  %v679_v41 = vmul.f32 %v1409_v42, %v1409_v42 }
 0x139   :  { %v597_v7 = vadd.f32 %v596_v28, %v1172_v56  ;;  %v729_v11 = vadd.f32 %v728_v47, %v666_v0  ;;  %v1527_v56 = vpop.f32.mrf.mxu3  ;;  %v680_v28 = vmul.f32 %v1437_v61, %v1437_v61 }
 0x13a   :  { %563 = vst [vmem:[%s1628_s2 + $0x1e8] sm:$0xff] %v1527_v56 }
 0x13b   :  { %v598_v15 = vadd.f32 %v597_v7, %v1189_v62  ;;  %v730_v19 = vadd.f32 %v729_v11, %v667_v39  ;;  %v671_v62 = vmul.f32 %v1239_v9, %v1239_v9  ;;  %v681_v39 = vmul.f32 %v1461_v33, %v1461_v33 }
 0x13d   :  { %v599_v23 = vadd.f32 %v598_v15, %v1209_v3  ;;  %v731_v59 = vadd.f32 %v730_v19, %v668_v60  ;;  %v682_v60 = vmul.f32 %v1485_v51, %v1485_v51 }
 0x13f   :  { %v600_v32 = vadd.f32 %v599_v23, %v1224_v6  ;;  %v732_v2 = vadd.f32 %v731_v59, %v669_v35 }
 0x141   :  { %v601_v5 = vadd.f32 %v600_v32, %v1239_v9  ;;  %v733_v3 = vadd.f32 %v732_v2, %v670_v31  ;;  %v1545_v9 = vpop.f32.mrf.mxu3 }
 0x142   :  { %564 = vst [vmem:[%s1628_s2 + $0x1f0] sm:$0xff] %v1545_v9 }
 0x143   :  { %v602_v8 = vadd.f32 %v601_v5, %v1260_v13  ;;  %v734_v6 = vadd.f32 %v733_v3, %v671_v62  ;;  %v675_v13 = vmul.f32 %v1323_v25, %v1323_v25 }
 0x145   :  { %v735_v40 = vadd.f32 %v734_v6, %v672_v27  ;;  %v603_v38 = vadd.f32 %v602_v8, %v1281_v17  ;;  %v676_v17 = vmul.f32 %v1344_v29, %v1344_v29 }
 0x147   :  { %v604_v48 = vadd.f32 %v603_v38, %v1302_v21  ;;  %v736_v12 = vadd.f32 %v735_v40, %v673_v36 }
 0x149   :  { %v605_v49 = vadd.f32 %v604_v48, %v1323_v25  ;;  %v737_v50 = vadd.f32 %v736_v12, %v674_v46  ;;  %v499_v25 = vpop.f32.mrf.mxu3 }
 0x14a   :  { %565 = vst [vmem:[%s1628_s2 + $0x1f8] sm:$0xff] %v499_v25 }
 0x14b   :  { %v606_v16 = vadd.f32 %v605_v49, %v1344_v29  ;;  %v738_v21 = vadd.f32 %v737_v50, %v675_v13  ;;  %v694_v50 = vmul.f32 %v1487_v37, %v1487_v37 }
 0x14d   :  { %v607_v52 = vadd.f32 %v606_v16, %v1367_v44  ;;  %v739_v24 = vadd.f32 %v738_v21, %v676_v17  ;;  %v695_v21 = vmul.f32 %v1509_v53, %v1509_v53 }
 0x14f   :  { %v608_v54 = vadd.f32 %v607_v52, %v1388_v1  ;;  %v740_v57 = vadd.f32 %v739_v24, %v677_v20  ;;  %v696_v52 = vmul.f32 %v1527_v56, %v1527_v56 }
 0x151   :  { %v741_v58 = vadd.f32 %v740_v57, %v678_v55  ;;  %v609_v29 = vadd.f32 %v608_v54, %v1409_v42  ;;  %v683_v42 = vmul.f32 %v1241_v10, %v1241_v10  ;;  %v697_v54 = vmul.f32 %v1545_v9, %v1545_v9 }
 0x152   :  { %v698_v57 = vmul.f32 %v499_v25, %v499_v25 }
 0x153   :  { %v742_v47 = vadd.f32 %v741_v58, %v679_v41  ;;  %v610_v44 = vadd.f32 %v609_v29, %v1437_v61  ;;  %v684_v61 = vmul.f32 %v1262_v14, %v1262_v14 }
 0x155   :  { %v743_v0 = vadd.f32 %v742_v47, %v680_v28  ;;  %v611_v1 = vadd.f32 %v610_v44, %v1461_v33  ;;  %v685_v33 = vmul.f32 %v1283_v18, %v1283_v18 }
 0x157   :  { %v744_v7 = vadd.f32 %v743_v0, %v681_v39  ;;  %v612_v11 = vadd.f32 %v611_v1, %v1485_v51  ;;  %v686_v51 = vmul.f32 %v1304_v22, %v1304_v22 }
 0x159   :  { %v613_v15 = vadd.f32 %v612_v11, %v1241_v10  ;;  %v745_v19 = vadd.f32 %v744_v7, %v682_v60  ;;  %v687_v10 = vmul.f32 %v1325_v26, %v1325_v26 }
 0x15b   :  { %v614_v35 = vadd.f32 %v613_v15, %v1262_v14  ;;  %v746_v23 = vadd.f32 %v745_v19, %v683_v42  ;;  %v688_v14 = vmul.f32 %v1346_v30, %v1346_v30 }
 0x15d   :  { %v615_v59 = vadd.f32 %v614_v35, %v1283_v18  ;;  %v747_v31 = vadd.f32 %v746_v23, %v684_v61  ;;  %v689_v18 = vmul.f32 %v1369_v45, %v1369_v45 }
 0x15f   :  { %v616_v32 = vadd.f32 %v615_v59, %v1304_v22  ;;  %v748_v2 = vadd.f32 %v747_v31, %v685_v33  ;;  %v690_v22 = vmul.f32 %v1390_v4, %v1390_v4 }
 0x161   :  { %v617_v62 = vadd.f32 %v616_v32, %v1325_v26  ;;  %v749_v5 = vadd.f32 %v748_v2, %v686_v51  ;;  %v691_v26 = vmul.f32 %v1411_v43, %v1411_v43 }
 0x163   :  { %v618_v3 = vadd.f32 %v617_v62, %v1346_v30  ;;  %v750_v27 = vadd.f32 %v749_v5, %v687_v10  ;;  %v692_v30 = vmul.f32 %v1439_v63, %v1439_v63 }
 0x165   :  { %v751_v8 = vadd.f32 %v750_v27, %v688_v14  ;;  %v619_v6 = vadd.f32 %v618_v3, %v1369_v45  ;;  %v693_v45 = vmul.f32 %v1463_v34, %v1463_v34 }
 0x167   :  { %v620_v36 = vadd.f32 %v619_v6, %v1390_v4  ;;  %v752_v40 = vadd.f32 %v751_v8, %v689_v18 }
 0x169   :  { %v621_v38 = vadd.f32 %v620_v36, %v1411_v43  ;;  %v753_v46 = vadd.f32 %v752_v40, %v690_v22 }
 0x16b   :  { %v622_v48 = vadd.f32 %v621_v38, %v1439_v63  ;;  %v754_v12 = vadd.f32 %v753_v46, %v691_v26 }
 0x16d   :  { %v623_v13 = vadd.f32 %v622_v48, %v1463_v34  ;;  %v755_v49 = vadd.f32 %v754_v12, %v692_v30 }
 0x16f   :  { %v624_v4 = vadd.f32 %v623_v13, %v1487_v37  ;;  %v756_v17 = vadd.f32 %v755_v49, %v693_v45 }
 0x171   :  { %v757_v43 = vadd.f32 %v756_v17, %v694_v50  ;;  %v625_v16 = vadd.f32 %v624_v4, %v1509_v53 }
 0x173   :  { %v758_v63 = vadd.f32 %v757_v43, %v695_v21  ;;  %v626_v20 = vadd.f32 %v625_v16, %v1527_v56 }
 0x175   :  { %v759_v34 = vadd.f32 %v758_v63, %v696_v52  ;;  %v627_v24 = vadd.f32 %v626_v20, %v1545_v9 }
 0x177   :  { %v760_v37 = vadd.f32 %v759_v34, %v697_v54  ;;  %v628_v55 = vadd.f32 %v627_v24, %v499_v25 }
 0x179   :  { %v629_v58 = vrot.slane %v628_v55, 4  ;;  %v761_v29 = vadd.f32 %v760_v37, %v698_v57 }
 0x17b   :  { %v630_v41 = vadd.f32 %v629_v58, %v628_v55  ;;  %v762_v47 = vrot.slane %v761_v29, 4 }
 0x17d   :  { %v631_v53 = vrot.slane %v630_v41, 2  ;;  %v763_v44 = vadd.f32 %v762_v47, %v761_v29 }
 0x17f   :  { %v632_v28 = vadd.f32 %v631_v53, %v630_v41  ;;  %v764_v0 = vrot.slane %v763_v44, 2 }
 0x181   :  { %v633_v1 = vrot.slane %v632_v28, 1  ;;  %v765_v39 = vadd.f32 %v764_v0, %v763_v44 }
 0x183   :  { %v766_v56 = vrot.slane %v765_v39, 1  ;;  %v634_v7 = vadd.f32 %v633_v1, %v632_v28 }
 0x185   :  { %v767_v11 = vadd.f32 %v766_v56, %v765_v39 }
 0x187   :  { %v769_v60 = vsel %vm768_vm0, %v634_v7, %v767_v11 }
 0x188   :  { %770 = vst [vmem:[%s1629_s3] sm:$0x3] %v769_v60 }

// kernel: resnet_forward.41
= control target key start
LH: loop header
LB: loop body
LE: loop exit
PB: predicated region body
PF: predicated region fallthrough
CT: control target
= control target key end

     0   :  { %s790_s0 = inlined_call_operand.vmem [shape: f32[9,128,128], index: 0, kind: input, shape index: {}]   ;;  %s791_s1 = inlined_call_operand.vmem [shape: f32[128,128], index: 1, kind: output, shape index: {}]  }
   0x1   :  { %v8_v0 = vld [vmem:[%s790_s0] sm:$0xff]  ;;  %v9_v6 = vld [vmem:[%s790_s0 + $0x8] sm:$0xff]  ;;  %v10_v15 = vld [vmem:[%s790_s0 + $0x10] sm:$0xff] }
   0x2   :  { %v24_v1 = vld [vmem:[%s790_s0 + $0x80] sm:$0xff]  ;;  %v25_v7 = vld [vmem:[%s790_s0 + $0x88] sm:$0xff]  ;;  %v26_v16 = vld [vmem:[%s790_s0 + $0x90] sm:$0xff] }
   0x3   :  { %v40_v2 = vld [vmem:[%s790_s0 + $0x100] sm:$0xff]  ;;  %v152_v3 = vmax.f32 %v8_v0, %v24_v1  ;;  %v41_v8 = vld [vmem:[%s790_s0 + $0x108] sm:$0xff]  ;;  %v160_v10 = vmax.f32 %v9_v6, %v25_v7  ;;  %v42_v17 = vld [vmem:[%s790_s0 + $0x110] sm:$0xff]  ;;  %v168_v20 = vmax.f32 %v10_v15, %v26_v16 }
   0x4   :  { %v56_v4 = vld [vmem:[%s790_s0 + $0x180] sm:$0xff]  ;;  %v57_v13 = vld [vmem:[%s790_s0 + $0x188] sm:$0xff]  ;;  %v58_v24 = vld [vmem:[%s790_s0 + $0x190] sm:$0xff] }
   0x5   :  { %v153_v5 = vmax.f32 %v152_v3, %v40_v2  ;;  %v72_v9 = vld [vmem:[%s790_s0 + $0x200] sm:$0xff]  ;;  %v161_v14 = vmax.f32 %v160_v10, %v41_v8  ;;  %v73_v19 = vld [vmem:[%s790_s0 + $0x208] sm:$0xff]  ;;  %v169_v26 = vmax.f32 %v168_v20, %v42_v17  ;;  %v11_v27 = vld [vmem:[%s790_s0 + $0x18] sm:$0xff] }
   0x6   :  { %v88_v11 = vld [vmem:[%s790_s0 + $0x280] sm:$0xff]  ;;  %v89_v22 = vld [vmem:[%s790_s0 + $0x288] sm:$0xff]  ;;  %v27_v28 = vld [vmem:[%s790_s0 + $0x98] sm:$0xff] }
   0x7   :  { %v154_v12 = vmax.f32 %v153_v5, %v56_v4  ;;  %v104_v21 = vld [vmem:[%s790_s0 + $0x300] sm:$0xff]  ;;  %v162_v23 = vmax.f32 %v161_v14, %v57_v13  ;;  %v43_v29 = vld [vmem:[%s790_s0 + $0x118] sm:$0xff]  ;;  %v74_v33 = vld [vmem:[%s790_s0 + $0x210] sm:$0xff]  ;;  %v176_v34 = vmax.f32 %v11_v27, %v27_v28  ;;  %v170_v38 = vmax.f32 %v169_v26, %v58_v24 }
   0x8   :  { %v120_v30 = vld [vmem:[%s790_s0 + $0x380] sm:$0xff]  ;;  %v105_v36 = vld [vmem:[%s790_s0 + $0x308] sm:$0xff]  ;;  %v90_v37 = vld [vmem:[%s790_s0 + $0x290] sm:$0xff] }
   0x9   :  { %v155_v18 = vmax.f32 %v154_v12, %v72_v9  ;;  %v136_v31 = vld [vmem:[%s790_s0 + $0x400] sm:$0xff]  ;;  %v163_v32 = vmax.f32 %v162_v23, %v73_v19  ;;  %v59_v39 = vld [vmem:[%s790_s0 + $0x198] sm:$0xff]  ;;  %v177_v41 = vmax.f32 %v176_v34, %v43_v29  ;;  %v121_v46 = vld [vmem:[%s790_s0 + $0x388] sm:$0xff]  ;;  %v171_v48 = vmax.f32 %v170_v38, %v74_v33 }
   0xa   :  { %v12_v42 = vld [vmem:[%s790_s0 + $0x20] sm:$0xff]  ;;  %v137_v47 = vld [vmem:[%s790_s0 + $0x408] sm:$0xff]  ;;  %v75_v49 = vld [vmem:[%s790_s0 + $0x218] sm:$0xff] }
   0xb   :  { %v156_v25 = vmax.f32 %v155_v18, %v88_v11  ;;  %v164_v40 = vmax.f32 %v163_v32, %v89_v22  ;;  %v28_v43 = vld [vmem:[%s790_s0 + $0xa0] sm:$0xff]  ;;  %v106_v52 = vld [vmem:[%s790_s0 + $0x310] sm:$0xff]  ;;  %v91_v53 = vld [vmem:[%s790_s0 + $0x298] sm:$0xff]  ;;  %v178_v54 = vmax.f32 %v177_v41, %v59_v39  ;;  %v172_v57 = vmax.f32 %v171_v48, %v90_v37 }
   0xc   :  { %v44_v44 = vld [vmem:[%s790_s0 + $0x120] sm:$0xff]  ;;  %v184_v50 = vmax.f32 %v12_v42, %v28_v43  ;;  %v13_v59 = vld [vmem:[%s790_s0 + $0x28] sm:$0xff]  ;;  %v122_v63 = vld [vmem:[%s790_s0 + $0x390] sm:$0xff] }
   0xd   :  { %v157_v35 = vmax.f32 %v156_v25, %v104_v21  ;;  %v165_v51 = vmax.f32 %v164_v40, %v105_v36  ;;  %v60_v55 = vld [vmem:[%s790_s0 + $0x1a0] sm:$0xff]  ;;  %v29_v60 = vld [vmem:[%s790_s0 + $0xa8] sm:$0xff]  ;;  %v138_v0 = vld [vmem:[%s790_s0 + $0x410] sm:$0xff]  ;;  %v179_v1 = vmax.f32 %v178_v54, %v75_v49  ;;  %v173_v4 = vmax.f32 %v172_v57, %v106_v52 }
   0xe   :  { %v185_v58 = vmax.f32 %v184_v50, %v44_v44  ;;  %v45_v61 = vld [vmem:[%s790_s0 + $0x128] sm:$0xff]  ;;  %v76_v2 = vld [vmem:[%s790_s0 + $0x220] sm:$0xff]  ;;  %v192_v3 = vmax.f32 %v13_v59, %v29_v60  ;;  %v107_v5 = vld [vmem:[%s790_s0 + $0x318] sm:$0xff] }
   0xf   :  { %v158_v45 = vmax.f32 %v157_v35, %v120_v30  ;;  %v166_v62 = vmax.f32 %v165_v51, %v121_v46  ;;  %v92_v6 = vld [vmem:[%s790_s0 + $0x2a0] sm:$0xff]  ;;  %v61_v8 = vld [vmem:[%s790_s0 + $0x1a8] sm:$0xff]  ;;  %v180_v10 = vmax.f32 %v179_v1, %v91_v53  ;;  %v14_v12 = vld [vmem:[%s790_s0 + $0x30] sm:$0xff]  ;;  %v174_v15 = vmax.f32 %v173_v4, %v122_v63 }
  0x10   :  { %v186_v7 = vmax.f32 %v185_v58, %v60_v55  ;;  %v193_v11 = vmax.f32 %v192_v3, %v45_v61  ;;  %v30_v13 = vld [vmem:[%s790_s0 + $0xb0] sm:$0xff]  ;;  %v123_v16 = vld [vmem:[%s790_s0 + $0x398] sm:$0xff]  ;;  %v77_v19 = vld [vmem:[%s790_s0 + $0x228] sm:$0xff] }
  0x11   :  { %v159_v56 = vmax.f32 %v158_v45, %v136_v31  ;;  %v167_v9 = vmax.f32 %v166_v62, %v137_v47  ;;  %v46_v14 = vld [vmem:[%s790_s0 + $0x130] sm:$0xff]  ;;  %v139_v17 = vld [vmem:[%s790_s0 + $0x418] sm:$0xff]  ;;  %v200_v20 = vmax.f32 %v14_v12, %v30_v13  ;;  %v181_v21 = vmax.f32 %v180_v10, %v107_v5  ;;  %v108_v22 = vld [vmem:[%s790_s0 + $0x320] sm:$0xff] }
  0x12   :  { %v187_v18 = vmax.f32 %v186_v7, %v76_v2  ;;  %v93_v23 = vld [vmem:[%s790_s0 + $0x2a8] sm:$0xff]  ;;  %v194_v24 = vmax.f32 %v193_v11, %v61_v8  ;;  %v62_v25 = vld [vmem:[%s790_s0 + $0x1b0] sm:$0xff]  ;;  %v175_v26 = vmax.f32 %v174_v15, %v138_v0  ;;  %v15_v29 = vld [vmem:[%s790_s0 + $0x38] sm:$0xff] }
  0x13   :  { %280 = vst [vmem:[%s791_s1] sm:$0xff] %v159_v56  ;;  %v201_v28 = vmax.f32 %v200_v20, %v46_v14  ;;  %v31_v30 = vld [vmem:[%s790_s0 + $0xb8] sm:$0xff]  ;;  %v182_v32 = vmax.f32 %v181_v21, %v123_v16  ;;  %v124_v33 = vld [vmem:[%s790_s0 + $0x3a0] sm:$0xff]  ;;  %v78_v36 = vld [vmem:[%s790_s0 + $0x230] sm:$0xff] }
  0x14   :  { %281 = vst [vmem:[%s791_s1 + $0x8] sm:$0xff] %v167_v9  ;;  %v188_v27 = vmax.f32 %v187_v18, %v92_v6  ;;  %v47_v31 = vld [vmem:[%s790_s0 + $0x138] sm:$0xff]  ;;  %v140_v34 = vld [vmem:[%s790_s0 + $0x420] sm:$0xff]  ;;  %v195_v35 = vmax.f32 %v194_v24, %v77_v19  ;;  %v208_v37 = vmax.f32 %v15_v29, %v31_v30  ;;  %v109_v39 = vld [vmem:[%s790_s0 + $0x328] sm:$0xff] }
  0x15   :  { %282 = vst [vmem:[%s791_s1 + $0x10] sm:$0xff] %v175_v26  ;;  %v94_v40 = vld [vmem:[%s790_s0 + $0x2b0] sm:$0xff]  ;;  %v202_v41 = vmax.f32 %v201_v28, %v62_v25  ;;  %v63_v42 = vld [vmem:[%s790_s0 + $0x1b8] sm:$0xff]  ;;  %v183_v43 = vmax.f32 %v182_v32, %v139_v17  ;;  %v16_v46 = vld [vmem:[%s790_s0 + $0x40] sm:$0xff] }
  0x16   :  { %v189_v38 = vmax.f32 %v188_v27, %v108_v22  ;;  %v196_v44 = vmax.f32 %v195_v35, %v93_v23  ;;  %v209_v45 = vmax.f32 %v208_v37, %v47_v31  ;;  %v32_v47 = vld [vmem:[%s790_s0 + $0xc0] sm:$0xff]  ;;  %v125_v50 = vld [vmem:[%s790_s0 + $0x3a8] sm:$0xff]  ;;  %v79_v53 = vld [vmem:[%s790_s0 + $0x238] sm:$0xff] }
  0x17   :  { %v48_v48 = vld [vmem:[%s790_s0 + $0x140] sm:$0xff]  ;;  %v141_v51 = vld [vmem:[%s790_s0 + $0x428] sm:$0xff]  ;;  %v203_v52 = vmax.f32 %v202_v41, %v78_v36  ;;  %v216_v54 = vmax.f32 %v16_v46, %v32_v47  ;;  %283 = vst [vmem:[%s791_s1 + $0x18] sm:$0xff] %v183_v43  ;;  %v110_v56 = vld [vmem:[%s790_s0 + $0x330] sm:$0xff] }
  0x18   :  { %v190_v49 = vmax.f32 %v189_v38, %v124_v33  ;;  %v197_v55 = vmax.f32 %v196_v44, %v109_v39  ;;  %v95_v57 = vld [vmem:[%s790_s0 + $0x2b8] sm:$0xff]  ;;  %v210_v58 = vmax.f32 %v209_v45, %v63_v42  ;;  %v64_v59 = vld [vmem:[%s790_s0 + $0x1c0] sm:$0xff]  ;;  %v17_v63 = vld [vmem:[%s790_s0 + $0x48] sm:$0xff] }
  0x19   :  { %v204_v61 = vmax.f32 %v203_v52, %v94_v40  ;;  %v217_v62 = vmax.f32 %v216_v54, %v48_v48  ;;  %v33_v0 = vld [vmem:[%s790_s0 + $0xc8] sm:$0xff]  ;;  %v126_v3 = vld [vmem:[%s790_s0 + $0x3b0] sm:$0xff]  ;;  %v80_v6 = vld [vmem:[%s790_s0 + $0x240] sm:$0xff] }
  0x1a   :  { %v191_v60 = vmax.f32 %v190_v49, %v140_v34  ;;  %v49_v1 = vld [vmem:[%s790_s0 + $0x148] sm:$0xff]  ;;  %v198_v2 = vmax.f32 %v197_v55, %v125_v50  ;;  %v142_v4 = vld [vmem:[%s790_s0 + $0x430] sm:$0xff]  ;;  %v211_v5 = vmax.f32 %v210_v58, %v79_v53  ;;  %v224_v7 = vmax.f32 %v17_v63, %v33_v0  ;;  %v111_v9 = vld [vmem:[%s790_s0 + $0x338] sm:$0xff] }
  0x1b   :  { %v205_v8 = vmax.f32 %v204_v61, %v110_v56  ;;  %v96_v10 = vld [vmem:[%s790_s0 + $0x2c0] sm:$0xff]  ;;  %v218_v11 = vmax.f32 %v217_v62, %v64_v59  ;;  %v65_v12 = vld [vmem:[%s790_s0 + $0x1c8] sm:$0xff]  ;;  %v18_v16 = vld [vmem:[%s790_s0 + $0x50] sm:$0xff] }
  0x1c   :  { %284 = vst [vmem:[%s791_s1 + $0x20] sm:$0xff] %v191_v60  ;;  %v199_v13 = vmax.f32 %v198_v2, %v141_v51  ;;  %v212_v14 = vmax.f32 %v211_v5, %v95_v57  ;;  %v225_v15 = vmax.f32 %v224_v7, %v49_v1  ;;  %v34_v17 = vld [vmem:[%s790_s0 + $0xd0] sm:$0xff]  ;;  %v127_v20 = vld [vmem:[%s790_s0 + $0x3b8] sm:$0xff]  ;;  %v81_v23 = vld [vmem:[%s790_s0 + $0x248] sm:$0xff] }
  0x1d   :  { %v50_v18 = vld [vmem:[%s790_s0 + $0x150] sm:$0xff]  ;;  %v206_v19 = vmax.f32 %v205_v8, %v126_v3  ;;  %v143_v21 = vld [vmem:[%s790_s0 + $0x438] sm:$0xff]  ;;  %v219_v22 = vmax.f32 %v218_v11, %v80_v6  ;;  %v232_v24 = vmax.f32 %v18_v16, %v34_v17  ;;  %v112_v26 = vld [vmem:[%s790_s0 + $0x340] sm:$0xff] }
  0x1e   :  { %285 = vst [vmem:[%s791_s1 + $0x28] sm:$0xff] %v199_v13  ;;  %v213_v25 = vmax.f32 %v212_v14, %v111_v9  ;;  %v97_v27 = vld [vmem:[%s790_s0 + $0x2c8] sm:$0xff]  ;;  %v226_v28 = vmax.f32 %v225_v15, %v65_v12  ;;  %v66_v29 = vld [vmem:[%s790_s0 + $0x1d0] sm:$0xff]  ;;  %v19_v33 = vld [vmem:[%s790_s0 + $0x58] sm:$0xff] }
  0x1f   :  { %v207_v30 = vmax.f32 %v206_v19, %v142_v4  ;;  %v220_v31 = vmax.f32 %v219_v22, %v96_v10  ;;  %v233_v32 = vmax.f32 %v232_v24, %v50_v18  ;;  %v35_v34 = vld [vmem:[%s790_s0 + $0xd8] sm:$0xff]  ;;  %v128_v37 = vld [vmem:[%s790_s0 + $0x3c0] sm:$0xff]  ;;  %v82_v40 = vld [vmem:[%s790_s0 + $0x250] sm:$0xff] }
  0x20   :  { %v51_v35 = vld [vmem:[%s790_s0 + $0x158] sm:$0xff]  ;;  %v214_v36 = vmax.f32 %v213_v25, %v127_v20  ;;  %v144_v38 = vld [vmem:[%s790_s0 + $0x440] sm:$0xff]  ;;  %v227_v39 = vmax.f32 %v226_v28, %v81_v23  ;;  %v240_v41 = vmax.f32 %v19_v33, %v35_v34  ;;  %v113_v43 = vld [vmem:[%s790_s0 + $0x348] sm:$0xff] }
  0x21   :  { %286 = vst [vmem:[%s791_s1 + $0x30] sm:$0xff] %v207_v30  ;;  %v221_v42 = vmax.f32 %v220_v31, %v112_v26  ;;  %v98_v44 = vld [vmem:[%s790_s0 + $0x2d0] sm:$0xff]  ;;  %v234_v45 = vmax.f32 %v233_v32, %v66_v29  ;;  %v67_v46 = vld [vmem:[%s790_s0 + $0x1d8] sm:$0xff]  ;;  %v20_v50 = vld [vmem:[%s790_s0 + $0x60] sm:$0xff] }
  0x22   :  { %v215_v47 = vmax.f32 %v214_v36, %v143_v21  ;;  %v228_v48 = vmax.f32 %v227_v39, %v97_v27  ;;  %v241_v49 = vmax.f32 %v240_v41, %v51_v35  ;;  %v36_v51 = vld [vmem:[%s790_s0 + $0xe0] sm:$0xff]  ;;  %v129_v54 = vld [vmem:[%s790_s0 + $0x3c8] sm:$0xff]  ;;  %v83_v57 = vld [vmem:[%s790_s0 + $0x258] sm:$0xff] }
  0x23   :  { %v52_v52 = vld [vmem:[%s790_s0 + $0x160] sm:$0xff]  ;;  %v222_v53 = vmax.f32 %v221_v42, %v128_v37  ;;  %v145_v55 = vld [vmem:[%s790_s0 + $0x448] sm:$0xff]  ;;  %v235_v56 = vmax.f32 %v234_v45, %v82_v40  ;;  %v248_v58 = vmax.f32 %v20_v50, %v36_v51  ;;  %v114_v60 = vld [vmem:[%s790_s0 + $0x350] sm:$0xff] }
  0x24   :  { %287 = vst [vmem:[%s791_s1 + $0x38] sm:$0xff] %v215_v47  ;;  %v229_v59 = vmax.f32 %v228_v48, %v113_v43  ;;  %v99_v61 = vld [vmem:[%s790_s0 + $0x2d8] sm:$0xff]  ;;  %v242_v62 = vmax.f32 %v241_v49, %v67_v46  ;;  %v68_v63 = vld [vmem:[%s790_s0 + $0x1e0] sm:$0xff]  ;;  %v21_v3 = vld [vmem:[%s790_s0 + $0x68] sm:$0xff] }
  0x25   :  { %v223_v0 = vmax.f32 %v222_v53, %v144_v38  ;;  %v236_v1 = vmax.f32 %v235_v56, %v98_v44  ;;  %v249_v2 = vmax.f32 %v248_v58, %v52_v52  ;;  %v37_v4 = vld [vmem:[%s790_s0 + $0xe8] sm:$0xff]  ;;  %v130_v7 = vld [vmem:[%s790_s0 + $0x3d0] sm:$0xff]  ;;  %v84_v10 = vld [vmem:[%s790_s0 + $0x260] sm:$0xff] }
  0x26   :  { %v53_v5 = vld [vmem:[%s790_s0 + $0x168] sm:$0xff]  ;;  %v230_v6 = vmax.f32 %v229_v59, %v129_v54  ;;  %v146_v8 = vld [vmem:[%s790_s0 + $0x450] sm:$0xff]  ;;  %v243_v9 = vmax.f32 %v242_v62, %v83_v57  ;;  %v256_v11 = vmax.f32 %v21_v3, %v37_v4  ;;  %v115_v13 = vld [vmem:[%s790_s0 + $0x358] sm:$0xff] }
  0x27   :  { %288 = vst [vmem:[%s791_s1 + $0x40] sm:$0xff] %v223_v0  ;;  %v237_v12 = vmax.f32 %v236_v1, %v114_v60  ;;  %v100_v14 = vld [vmem:[%s790_s0 + $0x2e0] sm:$0xff]  ;;  %v250_v15 = vmax.f32 %v249_v2, %v68_v63  ;;  %v69_v16 = vld [vmem:[%s790_s0 + $0x1e8] sm:$0xff]  ;;  %v22_v20 = vld [vmem:[%s790_s0 + $0x70] sm:$0xff] }
  0x28   :  { %v231_v17 = vmax.f32 %v230_v6, %v145_v55  ;;  %v244_v18 = vmax.f32 %v243_v9, %v99_v61  ;;  %v257_v19 = vmax.f32 %v256_v11, %v53_v5  ;;  %v38_v21 = vld [vmem:[%s790_s0 + $0xf0] sm:$0xff]  ;;  %v131_v24 = vld [vmem:[%s790_s0 + $0x3d8] sm:$0xff]  ;;  %v85_v27 = vld [vmem:[%s790_s0 + $0x268] sm:$0xff] }
  0x29   :  { %v54_v22 = vld [vmem:[%s790_s0 + $0x170] sm:$0xff]  ;;  %v238_v23 = vmax.f32 %v237_v12, %v130_v7  ;;  %v147_v25 = vld [vmem:[%s790_s0 + $0x458] sm:$0xff]  ;;  %v251_v26 = vmax.f32 %v250_v15, %v84_v10  ;;  %v264_v28 = vmax.f32 %v22_v20, %v38_v21  ;;  %v116_v30 = vld [vmem:[%s790_s0 + $0x360] sm:$0xff] }
  0x2a   :  { %289 = vst [vmem:[%s791_s1 + $0x48] sm:$0xff] %v231_v17  ;;  %v245_v29 = vmax.f32 %v244_v18, %v115_v13  ;;  %v101_v31 = vld [vmem:[%s790_s0 + $0x2e8] sm:$0xff]  ;;  %v258_v32 = vmax.f32 %v257_v19, %v69_v16  ;;  %v70_v33 = vld [vmem:[%s790_s0 + $0x1f0] sm:$0xff]  ;;  %v23_v37 = vld [vmem:[%s790_s0 + $0x78] sm:$0xff] }
  0x2b   :  { %v239_v34 = vmax.f32 %v238_v23, %v146_v8  ;;  %v252_v35 = vmax.f32 %v251_v26, %v100_v14  ;;  %v265_v36 = vmax.f32 %v264_v28, %v54_v22  ;;  %v39_v38 = vld [vmem:[%s790_s0 + $0xf8] sm:$0xff]  ;;  %v132_v41 = vld [vmem:[%s790_s0 + $0x3e0] sm:$0xff]  ;;  %v86_v43 = vld [vmem:[%s790_s0 + $0x270] sm:$0xff] }
  0x2c   :  { %v55_v39 = vld [vmem:[%s790_s0 + $0x178] sm:$0xff]  ;;  %v246_v40 = vmax.f32 %v245_v29, %v131_v24  ;;  %v259_v42 = vmax.f32 %v258_v32, %v85_v27  ;;  %v272_v44 = vmax.f32 %v23_v37, %v39_v38  ;;  %v117_v46 = vld [vmem:[%s790_s0 + $0x368] sm:$0xff]  ;;  %v148_v50 = vld [vmem:[%s790_s0 + $0x460] sm:$0xff] }
  0x2d   :  { %290 = vst [vmem:[%s791_s1 + $0x50] sm:$0xff] %v239_v34  ;;  %v253_v45 = vmax.f32 %v252_v35, %v116_v30  ;;  %v266_v47 = vmax.f32 %v265_v36, %v70_v33  ;;  %v71_v48 = vld [vmem:[%s790_s0 + $0x1f8] sm:$0xff]  ;;  %v102_v52 = vld [vmem:[%s790_s0 + $0x2f0] sm:$0xff]  ;;  %v133_v55 = vld [vmem:[%s790_s0 + $0x3e8] sm:$0xff] }
  0x2e   :  { %v247_v49 = vmax.f32 %v246_v40, %v147_v25  ;;  %v260_v51 = vmax.f32 %v259_v42, %v101_v31  ;;  %v273_v53 = vmax.f32 %v272_v44, %v55_v39  ;;  %v87_v57 = vld [vmem:[%s790_s0 + $0x278] sm:$0xff]  ;;  %v118_v59 = vld [vmem:[%s790_s0 + $0x370] sm:$0xff]  ;;  %v149_v62 = vld [vmem:[%s790_s0 + $0x468] sm:$0xff] }
  0x2f   :  { %v254_v54 = vmax.f32 %v253_v45, %v132_v41  ;;  %v267_v56 = vmax.f32 %v266_v47, %v86_v43  ;;  %v103_v0 = vld [vmem:[%s790_s0 + $0x2f8] sm:$0xff]  ;;  %v134_v2 = vld [vmem:[%s790_s0 + $0x3f0] sm:$0xff] }
  0x30   :  { %291 = vst [vmem:[%s791_s1 + $0x58] sm:$0xff] %v247_v49  ;;  %v261_v58 = vmax.f32 %v260_v51, %v117_v46  ;;  %v274_v60 = vmax.f32 %v273_v53, %v71_v48  ;;  %v119_v5 = vld [vmem:[%s790_s0 + $0x378] sm:$0xff]  ;;  %v150_v7 = vld [vmem:[%s790_s0 + $0x470] sm:$0xff] }
  0x31   :  { %v255_v61 = vmax.f32 %v254_v54, %v148_v50  ;;  %v268_v63 = vmax.f32 %v267_v56, %v102_v52  ;;  %v135_v10 = vld [vmem:[%s790_s0 + $0x3f8] sm:$0xff] }
  0x32   :  { %v262_v1 = vmax.f32 %v261_v58, %v133_v55  ;;  %v275_v3 = vmax.f32 %v274_v60, %v87_v57  ;;  %v151_v13 = vld [vmem:[%s790_s0 + $0x478] sm:$0xff] }
  0x33   :  { %292 = vst [vmem:[%s791_s1 + $0x60] sm:$0xff] %v255_v61  ;;  %v269_v4 = vmax.f32 %v268_v63, %v118_v59 }
  0x34   :  { %v263_v6 = vmax.f32 %v262_v1, %v149_v62  ;;  %v276_v8 = vmax.f32 %v275_v3, %v103_v0 }
  0x35   :  { %v270_v9 = vmax.f32 %v269_v4, %v134_v2 }
  0x36   :  { %293 = vst [vmem:[%s791_s1 + $0x68] sm:$0xff] %v263_v6  ;;  %v277_v11 = vmax.f32 %v276_v8, %v119_v5 }
  0x37   :  { %v271_v12 = vmax.f32 %v270_v9, %v150_v7 }
  0x38   :  { %v278_v14 = vmax.f32 %v277_v11, %v135_v10 }
  0x39   :  { %294 = vst [vmem:[%s791_s1 + $0x70] sm:$0xff] %v271_v12 }
  0x3a   :  { %v279_v15 = vmax.f32 %v278_v14, %v151_v13 }
  0x3c   :  { %295 = vst [vmem:[%s791_s1 + $0x78] sm:$0xff] %v279_v15 }

// kernel: resnet_forward.43
= control target key start
LH: loop header
LB: loop body
LE: loop exit
PB: predicated region body
PF: predicated region fallthrough
CT: control target
= control target key end

     0   :  { %s287_s0 = inlined_call_operand.vmem [shape: f32[128,128], index: 0, kind: input, shape index: {}]   ;;  %s288_s1 = inlined_call_operand.vmem [shape: f32[1,128], index: 1, kind: input, shape index: {}]   ;;  %s289_s2 = inlined_call_operand.vmem [shape: f32[1,128], index: 2, kind: input, shape index: {}]   ;;  %s290_s3 = inlined_call_operand.vmem [shape: bf16[128,128], index: 3, kind: output, shape index: {}]  }
   0x1   :  { %v14_v0 = vld [vmem:[%s287_s0] sm:$0xff]  ;;  %v15_v1 = vld [vmem:[%s287_s0 + $0x8] sm:$0xff]  ;;  %v16_v4 = vld [vmem:[%s287_s0 + $0x10] sm:$0xff] }
   0x2   :  { %v169_v2 = vld [vmem:[%s288_s1] ss:$0 sm:$0xff]  ;;  %v17_v5 = vld [vmem:[%s287_s0 + $0x18] sm:$0xff]  ;;  %v19_v11 = vld [vmem:[%s287_s0 + $0x28] sm:$0xff] }
   0x3   :  { %v203_v3 = vld [vmem:[%s289_s2] ss:$0 sm:$0xff]  ;;  %v34_v7 = vmul.f32 %v169_v2, %v14_v0  ;;  %v35_v8 = vmul.f32 %v169_v2, %v15_v1  ;;  %v36_v9 = vmul.f32 %v169_v2, %v16_v4  ;;  %v37_v10 = vmul.f32 %v169_v2, %v17_v5  ;;  %v20_v12 = vld [vmem:[%s287_s0 + $0x30] sm:$0xff]  ;;  %v21_v13 = vld [vmem:[%s287_s0 + $0x38] sm:$0xff] }
   0x4   :  { %v18_v6 = vld [vmem:[%s287_s0 + $0x20] sm:$0xff]  ;;  %v39_v15 = vmul.f32 %v169_v2, %v19_v11  ;;  %v40_v16 = vmul.f32 %v169_v2, %v20_v12  ;;  %v41_v17 = vmul.f32 %v169_v2, %v21_v13  ;;  %v23_v27 = vld [vmem:[%s287_s0 + $0x48] sm:$0xff]  ;;  %v24_v32 = vld [vmem:[%s287_s0 + $0x50] sm:$0xff] }
   0x5   :  { %v38_v14 = vmul.f32 %v169_v2, %v18_v6  ;;  %v54_v18 = vadd.f32 %v203_v3, %v34_v7  ;;  %v55_v19 = vadd.f32 %v203_v3, %v35_v8  ;;  %v56_v20 = vadd.f32 %v203_v3, %v36_v9  ;;  %v22_v26 = vld [vmem:[%s287_s0 + $0x40] sm:$0xff]  ;;  %v25_v33 = vld [vmem:[%s287_s0 + $0x58] sm:$0xff]  ;;  %v27_v39 = vld [vmem:[%s287_s0 + $0x68] sm:$0xff] }
   0x6   :  { %v57_v21 = vadd.f32 %v203_v3, %v37_v10  ;;  %v59_v23 = vadd.f32 %v203_v3, %v39_v15  ;;  %v60_v24 = vadd.f32 %v203_v3, %v40_v16  ;;  %v61_v25 = vadd.f32 %v203_v3, %v41_v17  ;;  %v26_v38 = vld [vmem:[%s287_s0 + $0x60] sm:$0xff]  ;;  %v28_v44 = vld [vmem:[%s287_s0 + $0x70] sm:$0xff]  ;;  %v29_v45 = vld [vmem:[%s287_s0 + $0x78] sm:$0xff] }
   0x7   :  { %v58_v22 = vadd.f32 %v203_v3, %v38_v14  ;;  %v70_v28 = vmax.f32 %v54_v18, 0.0  ;;  %v71_v29 = vmax.f32 %v55_v19, 0.0  ;;  %v72_v30 = vmax.f32 %v56_v20, 0.0 }
   0x8   :  { %v73_v31 = vmax.f32 %v57_v21, 0.0  ;;  %v75_v35 = vmax.f32 %v59_v23, 0.0  ;;  %v76_v36 = vmax.f32 %v60_v24, 0.0  ;;  %v77_v37 = vmax.f32 %v61_v25, 0.0 }
   0x9   :  { %v74_v34 = vmax.f32 %v58_v22, 0.0  ;;  %v125_v40 = vpack.c.bf16 %v71_v29, %v70_v28  ;;  %v42_v42 = vmul.f32 %v169_v2, %v22_v26  ;;  %v43_v43 = vmul.f32 %v169_v2, %v23_v27 }
   0xa   :  { %v130_v41 = vpack.c.bf16 %v73_v31, %v72_v30  ;;  %v140_v47 = vpack.c.bf16 %v77_v37, %v76_v36  ;;  %v44_v48 = vmul.f32 %v169_v2, %v24_v32  ;;  %v45_v49 = vmul.f32 %v169_v2, %v25_v33 }
   0xb   :  { %v135_v46 = vpack.c.bf16 %v75_v35, %v74_v34  ;;  %126 = vst [vmem:[%s290_s3] sm:$0xff] %v125_v40   ;;  %v62_v50 = vadd.f32 %v203_v3, %v42_v42  ;;  %v63_v51 = vadd.f32 %v203_v3, %v43_v43  ;;  %v46_v52 = vmul.f32 %v169_v2, %v26_v38 }
   0xc   :  { %v47_v53 = vmul.f32 %v169_v2, %v27_v39  ;;  %162 = vst [vmem:[%s290_s3 + $0x8] sm:$0xff] %v130_v41   ;;  %v64_v54 = vadd.f32 %v203_v3, %v44_v48  ;;  %v65_v55 = vadd.f32 %v203_v3, %v45_v49  ;;  %v48_v56 = vmul.f32 %v169_v2, %v28_v44 }
   0xd   :  { %v49_v57 = vmul.f32 %v169_v2, %v29_v45  ;;  %163 = vst [vmem:[%s290_s3 + $0x10] sm:$0xff] %v135_v46   ;;  %v78_v58 = vmax.f32 %v62_v50, 0.0  ;;  %v79_v59 = vmax.f32 %v63_v51, 0.0  ;;  %v66_v60 = vadd.f32 %v203_v3, %v46_v52 }
   0xe   :  { %v67_v61 = vadd.f32 %v203_v3, %v47_v53  ;;  %164 = vst [vmem:[%s290_s3 + $0x18] sm:$0xff] %v140_v47   ;;  %v80_v62 = vmax.f32 %v64_v54, 0.0  ;;  %v81_v63 = vmax.f32 %v65_v55, 0.0  ;;  %v68_v0 = vadd.f32 %v203_v3, %v48_v56 }
   0xf   :  { %v69_v1 = vadd.f32 %v203_v3, %v49_v57  ;;  %v145_v2 = vpack.c.bf16 %v79_v59, %v78_v58  ;;  %v82_v4 = vmax.f32 %v66_v60, 0.0 }
  0x10   :  { %v83_v5 = vmax.f32 %v67_v61, 0.0  ;;  %v150_v6 = vpack.c.bf16 %v81_v63, %v80_v62  ;;  %v84_v7 = vmax.f32 %v68_v0, 0.0 }
  0x11   :  { %v85_v8 = vmax.f32 %v69_v1, 0.0  ;;  %165 = vst [vmem:[%s290_s3 + $0x20] sm:$0xff] %v145_v2  }
  0x12   :  { %v155_v9 = vpack.c.bf16 %v83_v5, %v82_v4  ;;  %166 = vst [vmem:[%s290_s3 + $0x28] sm:$0xff] %v150_v6  }
  0x13   :  { %v160_v10 = vpack.c.bf16 %v85_v8, %v84_v7 }
  0x14   :  { %167 = vst [vmem:[%s290_s3 + $0x30] sm:$0xff] %v155_v9  }
  0x15   :  { %168 = vst [vmem:[%s290_s3 + $0x38] sm:$0xff] %v160_v10  }

// kernel: resnet_forward.45
= control target key start
LH: loop header
LB: loop body
LE: loop exit
PB: predicated region body
PF: predicated region fallthrough
CT: control target
= control target key end

     0   :  { %s354_s0 = inlined_call_operand.vmem [shape: f32[128,128], index: 0, kind: input, shape index: {}]   ;;  %s355_s1 = inlined_call_operand.vmem [shape: f32[1,128], index: 1, kind: input, shape index: {}]   ;;  %s356_s2 = inlined_call_operand.vmem [shape: f32[1,128], index: 2, kind: input, shape index: {}]   ;;  %s357_s3 = inlined_call_operand.vmem [shape: f32[128,128], index: 3, kind: input, shape index: {}]   ;;  %s358_s4 = inlined_call_operand.vmem [shape: f32[128,128], index: 4, kind: output, shape index: {}]  }
   0x1   :  { %v17_v0 = vld [vmem:[%s354_s0] sm:$0xff]  ;;  %v18_v4 = vld [vmem:[%s354_s0 + $0x8] sm:$0xff]  ;;  %v19_v5 = vld [vmem:[%s354_s0 + $0x10] sm:$0xff] }
   0x2   :  { %v174_v1 = vld [vmem:[%s355_s1] ss:$0 sm:$0xff]  ;;  %v74_v8 = vld [vmem:[%s357_s3 + $0x8] sm:$0xff]  ;;  %v20_v10 = vld [vmem:[%s354_s0 + $0x18] sm:$0xff] }
   0x3   :  { %v179_v2 = vld [vmem:[%s356_s2] ss:$0 sm:$0xff]  ;;  %v37_v3 = vmul.f32 %v174_v1, %v17_v0  ;;  %v38_v7 = vmul.f32 %v174_v1, %v18_v4  ;;  %v39_v9 = vmul.f32 %v174_v1, %v19_v5  ;;  %v75_v12 = vld [vmem:[%s357_s3 + $0x10] sm:$0xff]  ;;  %v40_v13 = vmul.f32 %v174_v1, %v20_v10  ;;  %v22_v15 = vld [vmem:[%s354_s0 + $0x28] sm:$0xff] }
   0x4   :  { %v73_v6 = vld [vmem:[%s357_s3] sm:$0xff]  ;;  %v76_v18 = vld [vmem:[%s357_s3 + $0x18] sm:$0xff]  ;;  %v42_v20 = vmul.f32 %v174_v1, %v22_v15  ;;  %v23_v21 = vld [vmem:[%s354_s0 + $0x30] sm:$0xff] }
   0x5   :  { %v57_v11 = vadd.f32 %v179_v2, %v37_v3  ;;  %v21_v14 = vld [vmem:[%s354_s0 + $0x20] sm:$0xff]  ;;  %v58_v16 = vadd.f32 %v179_v2, %v38_v7  ;;  %v59_v17 = vadd.f32 %v179_v2, %v39_v9  ;;  %v60_v23 = vadd.f32 %v179_v2, %v40_v13  ;;  %v78_v25 = vld [vmem:[%s357_s3 + $0x28] sm:$0xff]  ;;  %v24_v27 = vld [vmem:[%s354_s0 + $0x38] sm:$0xff] }
   0x6   :  { %v41_v19 = vmul.f32 %v174_v1, %v21_v14  ;;  %v77_v24 = vld [vmem:[%s357_s3 + $0x20] sm:$0xff]  ;;  %v43_v26 = vmul.f32 %v174_v1, %v23_v21  ;;  %v62_v31 = vadd.f32 %v179_v2, %v42_v20  ;;  %v79_v32 = vld [vmem:[%s357_s3 + $0x30] sm:$0xff]  ;;  %v44_v37 = vmul.f32 %v174_v1, %v24_v27  ;;  %v26_v38 = vld [vmem:[%s354_s0 + $0x48] sm:$0xff] }
   0x7   :  { %v89_v22 = vadd.f32 %v73_v6, %v57_v11  ;;  %v90_v28 = vadd.f32 %v74_v8, %v58_v16  ;;  %v91_v29 = vadd.f32 %v75_v12, %v59_v17  ;;  %v25_v33 = vld [vmem:[%s354_s0 + $0x40] sm:$0xff]  ;;  %v92_v35 = vadd.f32 %v76_v18, %v60_v23  ;;  %v27_v39 = vld [vmem:[%s354_s0 + $0x50] sm:$0xff]  ;;  %v80_v44 = vld [vmem:[%s357_s3 + $0x38] sm:$0xff] }
   0x8   :  { %v61_v30 = vadd.f32 %v179_v2, %v41_v19  ;;  %v63_v36 = vadd.f32 %v179_v2, %v43_v26  ;;  %v94_v43 = vadd.f32 %v78_v25, %v62_v31  ;;  %v28_v45 = vld [vmem:[%s354_s0 + $0x58] sm:$0xff]  ;;  %v64_v48 = vadd.f32 %v179_v2, %v44_v37  ;;  %v29_v50 = vld [vmem:[%s354_s0 + $0x60] sm:$0xff]  ;;  %v30_v51 = vld [vmem:[%s354_s0 + $0x68] sm:$0xff] }
   0x9   :  { %v105_v34 = vmax.f32 %v89_v22, 0.0  ;;  %v106_v40 = vmax.f32 %v90_v28, 0.0  ;;  %v107_v41 = vmax.f32 %v91_v29, 0.0  ;;  %v108_v46 = vmax.f32 %v92_v35, 0.0  ;;  %v81_v54 = vld [vmem:[%s357_s3 + $0x40] sm:$0xff]  ;;  %v31_v57 = vld [vmem:[%s354_s0 + $0x70] sm:$0xff] }
   0xa   :  { %v93_v42 = vadd.f32 %v77_v24, %v61_v30  ;;  %v95_v47 = vadd.f32 %v79_v32, %v63_v36  ;;  %v45_v49 = vmul.f32 %v174_v1, %v25_v33  ;;  %v110_v53 = vmax.f32 %v94_v43, 0.0  ;;  %v82_v61 = vld [vmem:[%s357_s3 + $0x48] sm:$0xff]  ;;  %v83_v62 = vld [vmem:[%s357_s3 + $0x50] sm:$0xff]  ;;  %v84_v4 = vld [vmem:[%s357_s3 + $0x58] sm:$0xff] }
   0xb   :  { %121 = vst [vmem:[%s358_s4] sm:$0xff] %v105_v34  ;;  %v46_v55 = vmul.f32 %v174_v1, %v26_v38  ;;  %v47_v56 = vmul.f32 %v174_v1, %v27_v39  ;;  %v96_v59 = vadd.f32 %v80_v44, %v64_v48  ;;  %v48_v63 = vmul.f32 %v174_v1, %v28_v45  ;;  %v32_v7 = vld [vmem:[%s354_s0 + $0x78] sm:$0xff]  ;;  %v85_v11 = vld [vmem:[%s357_s3 + $0x60] sm:$0xff]  ;;  %v86_v12 = vld [vmem:[%s357_s3 + $0x68] sm:$0xff] }
   0xc   :  { %122 = vst [vmem:[%s358_s4 + $0x8] sm:$0xff] %v106_v40  ;;  %v109_v52 = vmax.f32 %v93_v42, 0.0  ;;  %v111_v58 = vmax.f32 %v95_v47, 0.0  ;;  %v65_v60 = vadd.f32 %v179_v2, %v45_v49  ;;  %v49_v5 = vmul.f32 %v174_v1, %v29_v50  ;;  %v87_v18 = vld [vmem:[%s357_s3 + $0x70] sm:$0xff]  ;;  %v88_v27 = vld [vmem:[%s357_s3 + $0x78] sm:$0xff] }
   0xd   :  { %123 = vst [vmem:[%s358_s4 + $0x10] sm:$0xff] %v107_v41  ;;  %v66_v0 = vadd.f32 %v179_v2, %v46_v55  ;;  %v67_v3 = vadd.f32 %v179_v2, %v47_v56  ;;  %v50_v6 = vmul.f32 %v174_v1, %v30_v51  ;;  %v112_v8 = vmax.f32 %v96_v59, 0.0 }
   0xe   :  { %124 = vst [vmem:[%s358_s4 + $0x18] sm:$0xff] %v108_v46  ;;  %v97_v9 = vadd.f32 %v81_v54, %v65_v60  ;;  %v68_v10 = vadd.f32 %v179_v2, %v48_v63  ;;  %v51_v13 = vmul.f32 %v174_v1, %v31_v57  ;;  %v69_v16 = vadd.f32 %v179_v2, %v49_v5 }
   0xf   :  { %125 = vst [vmem:[%s358_s4 + $0x20] sm:$0xff] %v109_v52  ;;  %v98_v14 = vadd.f32 %v82_v61, %v66_v0  ;;  %v99_v15 = vadd.f32 %v83_v62, %v67_v3  ;;  %v70_v17 = vadd.f32 %v179_v2, %v50_v6  ;;  %v52_v22 = vmul.f32 %v174_v1, %v32_v7 }
  0x10   :  { %126 = vst [vmem:[%s358_s4 + $0x28] sm:$0xff] %v110_v53  ;;  %v113_v19 = vmax.f32 %v97_v9, 0.0  ;;  %v100_v20 = vadd.f32 %v84_v4, %v68_v10  ;;  %v71_v21 = vadd.f32 %v179_v2, %v51_v13  ;;  %v101_v25 = vadd.f32 %v85_v11, %v69_v16 }
  0x11   :  { %127 = vst [vmem:[%s358_s4 + $0x30] sm:$0xff] %v111_v58  ;;  %v114_v23 = vmax.f32 %v98_v14, 0.0  ;;  %v115_v24 = vmax.f32 %v99_v15, 0.0  ;;  %v102_v26 = vadd.f32 %v86_v12, %v70_v17  ;;  %v72_v1 = vadd.f32 %v179_v2, %v52_v22 }
  0x12   :  { %128 = vst [vmem:[%s358_s4 + $0x38] sm:$0xff] %v112_v8  ;;  %v116_v28 = vmax.f32 %v100_v20, 0.0  ;;  %v103_v29 = vadd.f32 %v87_v18, %v71_v21  ;;  %v117_v30 = vmax.f32 %v101_v25, 0.0 }
  0x13   :  { %129 = vst [vmem:[%s358_s4 + $0x40] sm:$0xff] %v113_v19  ;;  %v118_v31 = vmax.f32 %v102_v26, 0.0  ;;  %v104_v33 = vadd.f32 %v88_v27, %v72_v1 }
  0x14   :  { %130 = vst [vmem:[%s358_s4 + $0x48] sm:$0xff] %v114_v23  ;;  %v119_v32 = vmax.f32 %v103_v29, 0.0 }
  0x15   :  { %131 = vst [vmem:[%s358_s4 + $0x50] sm:$0xff] %v115_v24  ;;  %v120_v2 = vmax.f32 %v104_v33, 0.0 }
  0x16   :  { %132 = vst [vmem:[%s358_s4 + $0x58] sm:$0xff] %v116_v28 }
  0x17   :  { %133 = vst [vmem:[%s358_s4 + $0x60] sm:$0xff] %v117_v30 }
  0x18   :  { %134 = vst [vmem:[%s358_s4 + $0x68] sm:$0xff] %v118_v31 }
  0x19   :  { %135 = vst [vmem:[%s358_s4 + $0x70] sm:$0xff] %v119_v32 }
  0x1a   :  { %136 = vst [vmem:[%s358_s4 + $0x78] sm:$0xff] %v120_v2 }

// kernel: resnet_forward.54
= control target key start
LH: loop header
LB: loop body
LE: loop exit
PB: predicated region body
PF: predicated region fallthrough
CT: control target
= control target key end

     0   :  { %s94_s0 = inlined_call_operand.vmem [shape: f32[32,128], index: 0, kind: input, shape index: {}]   ;;  %s95_s1 = inlined_call_operand.vmem [shape: f32[1,128], index: 1, kind: input, shape index: {}]   ;;  %s96_s2 = inlined_call_operand.vmem [shape: f32[1,128], index: 2, kind: input, shape index: {}]   ;;  %s97_s3 = inlined_call_operand.vmem [shape: f32[32,128], index: 3, kind: output, shape index: {}]  }
   0x1   :  { %v14_v0 = vld [vmem:[%s94_s0] sm:$0xff]  ;;  %v15_v3 = vld [vmem:[%s94_s0 + $0x8] sm:$0xff]  ;;  %v16_v6 = vld [vmem:[%s94_s0 + $0x10] sm:$0xff] }
   0x2   :  { %v42_v1 = vld [vmem:[%s95_s1] ss:$0 sm:$0xff]  ;;  %v17_v7 = vld [vmem:[%s94_s0 + $0x18] sm:$0xff] }
   0x3   :  { %v43_v2 = vld [vmem:[%s96_s2] ss:$0 sm:$0xff]  ;;  %v22_v4 = vmul.f32 %v42_v1, %v14_v0  ;;  %v23_v5 = vmul.f32 %v42_v1, %v15_v3  ;;  %v24_v8 = vmul.f32 %v42_v1, %v16_v6  ;;  %v25_v9 = vmul.f32 %v42_v1, %v17_v7 }
   0x5   :  { %v30_v10 = vadd.f32 %v43_v2, %v22_v4  ;;  %v31_v11 = vadd.f32 %v43_v2, %v23_v5  ;;  %v32_v12 = vadd.f32 %v43_v2, %v24_v8  ;;  %v33_v13 = vadd.f32 %v43_v2, %v25_v9 }
   0x7   :  { %34 = vst [vmem:[%s97_s3] sm:$0xff] %v30_v10 }
   0x8   :  { %35 = vst [vmem:[%s97_s3 + $0x8] sm:$0xff] %v31_v11 }
   0x9   :  { %36 = vst [vmem:[%s97_s3 + $0x10] sm:$0xff] %v32_v12 }
   0xa   :  { %37 = vst [vmem:[%s97_s3 + $0x18] sm:$0xff] %v33_v13 }

// kernel: resnet_forward.42
= control target key start
LH: loop header
LB: loop body
LE: loop exit
PB: predicated region body
PF: predicated region fallthrough
CT: control target
= control target key end

     0   :  { %vm908_vm0 = vcmask 1040384   ;;  %s1810_s1 = inlined_call_operand.vmem [shape: bf16[640,128], index: 1, kind: input, shape index: {}]   ;;  %s1811_s0 = inlined_call_operand.vmem [shape: bf16[128,640], index: 0, kind: input, shape index: {}]   ;;  %s1812_s2 = inlined_call_operand.vmem [shape: f32[128,128], index: 2, kind: output, shape index: {0}]   ;;  %s1813_s3 = inlined_call_operand.vmem [shape: f32[1,2,128], index: 3, kind: output, shape index: {1}]  }
   0x1   :  { %v1286_v0 = vld [vmem:[%s1810_s1 + $0x38] sm:$0xff]  ;;  %v1285_v1 = vld [vmem:[%s1810_s1 + $0x30] sm:$0xff]  ;;  %v1284_v2 = vld [vmem:[%s1810_s1 + $0x28] sm:$0xff] }
   0x2   :  { %1319 = vmatpush.bf16.msra.mxu1 %v1286_v0  ;;  %1320 = vmatpush.bf16.msra.mxu2 %v1286_v0  ;;  %v1283_v3 = vld [vmem:[%s1810_s1 + $0x20] sm:$0xff]  ;;  %v1282_v4 = vld [vmem:[%s1810_s1 + $0x18] sm:$0xff]  ;;  %v1281_v5 = vld [vmem:[%s1810_s1 + $0x10] sm:$0xff] }
   0x3   :  { %1321 = vmatpush.bf16.msra.mxu3 %v1286_v0  ;;  %589 = vmatpush.bf16.msra.mxu0 %v1286_v0  ;;  %v1280_v6 = vld [vmem:[%s1810_s1 + $0x8] sm:$0xff]  ;;  %v1279_v7 = vld [vmem:[%s1810_s1] sm:$0xff]  ;;  %v961_v8 = vld [vmem:[%s1811_s0 + $0x50] sm:$0xf] }
   0x4   :  { %v1251_v9 = vld [vmem:[%s1811_s0 + $0x60] sm:$0xf0]  ;;  %v1001_v10 = vld [vmem:[%s1811_s0 + $0xa0] sm:$0xf]  ;;  %v1261_v11 = vld [vmem:[%s1811_s0 + $0xb0] sm:$0xf0] }
   0x5   :  { %v1041_v12 = vld [vmem:[%s1811_s0 + $0xf0] sm:$0xf]  ;;  %v1271_v13 = vld [vmem:[%s1811_s0 + $0x100] sm:$0xf0]  ;;  %v921_v14 = vld [vmem:[%s1811_s0] sm:$0xf]  ;;  %v962_v18 = vor.u32 %v1251_v9, %v961_v8  ;;  %v1002_v19 = vor.u32 %v1261_v11, %v1001_v10 }
   0x6   :  { %1322 = vmatpush.bf16.msra.mxu1 %v1285_v1  ;;  %1323 = vmatpush.bf16.msra.mxu2 %v1285_v1  ;;  %v1241_v15 = vld [vmem:[%s1811_s0 + $0x10] sm:$0xf0]  ;;  %v1302_v16 = vld [vmem:[%s1810_s1 + $0xb8] sm:$0xff]  ;;  %v1042_v20 = vor.u32 %v1271_v13, %v1041_v12  ;;  %v1300_v28 = vld [vmem:[%s1810_s1 + $0xa8] sm:$0xff] }
   0x7   :  { %1324 = vmatpush.bf16.msra.mxu3 %v1285_v1  ;;  %590 = vmatpush.bf16.msra.mxu0 %v1285_v1  ;;  %v1294_v17 = vld [vmem:[%s1810_s1 + $0x78] sm:$0xff]  ;;  %v922_v21 = vor.u32 %v1241_v15, %v921_v14  ;;  %v1301_v24 = vld [vmem:[%s1810_s1 + $0xb0] sm:$0xff]  ;;  %v1292_v29 = vld [vmem:[%s1810_s1 + $0x68] sm:$0xff] }
   0x8   :  { %v1310_v22 = vld [vmem:[%s1810_s1 + $0xf8] sm:$0xff]  ;;  %v1293_v25 = vld [vmem:[%s1810_s1 + $0x70] sm:$0xff]  ;;  %v1308_v30 = vld [vmem:[%s1810_s1 + $0xe8] sm:$0xff] }
   0x9   :  { %v1318_v23 = vld [vmem:[%s1810_s1 + $0x138] sm:$0xff]  ;;  %v1309_v26 = vld [vmem:[%s1810_s1 + $0xf0] sm:$0xff]  ;;  %v1316_v31 = vld [vmem:[%s1810_s1 + $0x128] sm:$0xff] }
   0xa   :  { %1325 = vmatpush.bf16.msra.mxu1 %v1284_v2  ;;  %1326 = vmatpush.bf16.msra.mxu2 %v1284_v2  ;;  %v1317_v27 = vld [vmem:[%s1810_s1 + $0x130] sm:$0xff]  ;;  %v1299_v32 = vld [vmem:[%s1810_s1 + $0xa0] sm:$0xff]  ;;  %v981_v36 = vld [vmem:[%s1811_s0 + $0x78] sm:$0xf] }
   0xb   :  { %1327 = vmatpush.bf16.msra.mxu3 %v1284_v2  ;;  %591 = vmatpush.bf16.msra.mxu0 %v1284_v2  ;;  %v1291_v33 = vld [vmem:[%s1810_s1 + $0x60] sm:$0xff]  ;;  %v1256_v37 = vld [vmem:[%s1811_s0 + $0x88] sm:$0xf0]  ;;  %v1021_v38 = vld [vmem:[%s1811_s0 + $0xc8] sm:$0xf] }
   0xc   :  { %v1307_v34 = vld [vmem:[%s1810_s1 + $0xe0] sm:$0xff]  ;;  %v1266_v39 = vld [vmem:[%s1811_s0 + $0xd8] sm:$0xf0]  ;;  %v1061_v40 = vld [vmem:[%s1811_s0 + $0x118] sm:$0xf]  ;;  %v982_v46 = vor.u32 %v1256_v37, %v981_v36 }
   0xd   :  { %v1315_v35 = vld [vmem:[%s1810_s1 + $0x120] sm:$0xff]  ;;  %v1276_v41 = vld [vmem:[%s1811_s0 + $0x128] sm:$0xf0]  ;;  %v941_v42 = vld [vmem:[%s1811_s0 + $0x28] sm:$0xf]  ;;  %v1022_v47 = vor.u32 %v1266_v39, %v1021_v38 }
   0xe   :  { %1328 = vmatpush.bf16.msra.mxu1 %v1283_v3  ;;  %1329 = vmatpush.bf16.msra.mxu2 %v1283_v3  ;;  %v1246_v43 = vld [vmem:[%s1811_s0 + $0x38] sm:$0xf0]  ;;  %v1062_v48 = vor.u32 %v1276_v41, %v1061_v40  ;;  %v1297_v52 = vld [vmem:[%s1810_s1 + $0x90] sm:$0xff]  ;;  %v1296_v56 = vld [vmem:[%s1810_s1 + $0x88] sm:$0xff] }
   0xf   :  { %1330 = vmatpush.bf16.msra.mxu3 %v1283_v3  ;;  %592 = vmatpush.bf16.msra.mxu0 %v1283_v3  ;;  %v1298_v44 = vld [vmem:[%s1810_s1 + $0x98] sm:$0xff]  ;;  %v942_v49 = vor.u32 %v1246_v43, %v941_v42  ;;  %v1289_v53 = vld [vmem:[%s1810_s1 + $0x50] sm:$0xff]  ;;  %v1288_v57 = vld [vmem:[%s1810_s1 + $0x48] sm:$0xff] }
  0x10   :  { %v1290_v45 = vld [vmem:[%s1810_s1 + $0x58] sm:$0xff]  ;;  %v1305_v54 = vld [vmem:[%s1810_s1 + $0xd0] sm:$0xff]  ;;  %v1304_v58 = vld [vmem:[%s1810_s1 + $0xc8] sm:$0xff] }
  0x11   :  { %v1306_v50 = vld [vmem:[%s1810_s1 + $0xd8] sm:$0xff]  ;;  %v1313_v55 = vld [vmem:[%s1810_s1 + $0x110] sm:$0xff]  ;;  %v1312_v59 = vld [vmem:[%s1810_s1 + $0x108] sm:$0xff] }
  0x12   :  { %1331 = vmatpush.bf16.msra.mxu1 %v1282_v4  ;;  %1332 = vmatpush.bf16.msra.mxu2 %v1282_v4  ;;  %v1314_v51 = vld [vmem:[%s1810_s1 + $0x118] sm:$0xff]  ;;  %v1295_v60 = vld [vmem:[%s1810_s1 + $0x80] sm:$0xff]  ;;  %v929_v2 = vld [vmem:[%s1811_s0 + $0x8] sm:$0xf] }
  0x13   :  { %1333 = vmatpush.bf16.msra.mxu3 %v1282_v4  ;;  %593 = vmatpush.bf16.msra.mxu0 %v1282_v4  ;;  %v1287_v61 = vld [vmem:[%s1810_s1 + $0x40] sm:$0xff]  ;;  %v923_v1 = vld [vmem:[%s1811_s0 + $0x14] sm:$0xf0]  ;;  %v1242_v3 = vld [vmem:[%s1811_s0 + $0x18] sm:$0xf0] }
  0x14   :  { %v1303_v62 = vld [vmem:[%s1810_s1 + $0xc0] sm:$0xff]  ;;  %v1240_v4 = vld [vmem:[%s1811_s0 + $0xc] sm:$0xf]  ;;  %v930_v9 = vor.u32 %v1242_v3, %v929_v2  ;;  %v949_v14 = vld [vmem:[%s1811_s0 + $0x30] sm:$0xf] }
  0x15   :  { %v1311_v63 = vld [vmem:[%s1810_s1 + $0x100] sm:$0xff]  ;;  %v1244_v12 = vld [vmem:[%s1811_s0 + $0x2c] sm:$0xf]  ;;  %v1254_v36 = vld [vmem:[%s1811_s0 + $0x7c] sm:$0xf] }
  0x16   :  { %1334 = vmatpush.bf16.msra.mxu1 %v1281_v5  ;;  %1335 = vmatpush.bf16.msra.mxu2 %v1281_v5  ;;  %v1239_v0 = vld [vmem:[%s1811_s0 + $0x4] sm:$0xf]  ;;  %v943_v13 = vld [vmem:[%s1811_s0 + $0x3c] sm:$0xf0]  ;;  %v983_v37 = vld [vmem:[%s1811_s0 + $0x8c] sm:$0xf0] }
  0x17   :  { %1336 = vmatpush.bf16.msra.mxu3 %v1281_v5  ;;  %594 = vmatpush.bf16.msra.mxu0 %v1281_v5  ;;  %v931_v5 = vld [vmem:[%s1811_s0 + $0x1c] sm:$0xf0]  ;;  %v926_v8 = vor.u32 %v1239_v0, %v923_v1  ;;  %v1247_v15 = vld [vmem:[%s1811_s0 + $0x40] sm:$0xf0]  ;;  %v1257_v39 = vld [vmem:[%s1811_s0 + $0x90] sm:$0xf0] }
  0x18   :  { %v934_v10 = vor.u32 %v1240_v4, %v931_v5  ;;  %v989_v38 = vld [vmem:[%s1811_s0 + $0x80] sm:$0xf]  ;;  %v1255_v40 = vld [vmem:[%s1811_s0 + $0x84] sm:$0xf]  ;;  %v991_v41 = vld [vmem:[%s1811_s0 + $0x94] sm:$0xf0] }
  0x19   :  { %v997_v42 = vld [vmem:[%s1811_s0 + $0x88] sm:$0xf]  ;;  %v1258_v43 = vld [vmem:[%s1811_s0 + $0x98] sm:$0xf0]  ;;  %v1265_v0 = vld [vmem:[%s1811_s0 + $0xd4] sm:$0xf] }
  0x1a   :  { %1337 = vmatpush.bf16.msra.mxu1 %v1280_v6  ;;  %1338 = vmatpush.bf16.msra.mxu2 %v1280_v6  ;;  %v1031_v1 = vld [vmem:[%s1811_s0 + $0xe4] sm:$0xf0]  ;;  %v1037_v2 = vld [vmem:[%s1811_s0 + $0xd8] sm:$0xf]  ;;  %v1268_v3 = vld [vmem:[%s1811_s0 + $0xe8] sm:$0xf0] }
  0x1b   :  { %1339 = vmatpush.bf16.msra.mxu3 %v1280_v6  ;;  %595 = vmatpush.bf16.msra.mxu0 %v1280_v6  ;;  %v937_v6 = vld [vmem:[%s1811_s0 + $0x10] sm:$0xf] }
  0x1e   :  { %1340 = vmatpush.bf16.msra.mxu1 %v1279_v7  ;;  %1341 = vmatpush.bf16.msra.mxu2 %v1279_v7 }
  0x1f   :  { %1342 = vmatpush.bf16.msra.mxu3 %v1279_v7  ;;  %596 = vmatpush.bf16.msra.mxu0 %v1279_v7  ;;  %v1243_v7 = vld [vmem:[%s1811_s0 + $0x20] sm:$0xf0] }
  0x20   :  { %v938_v11 = vor.u32 %v1243_v7, %v937_v6  ;;  %v1034_v6 = vor.u32 %v1265_v0, %v1031_v1  ;;  %v1038_v7 = vor.u32 %v1268_v3, %v1037_v2 }
  0x21   :  { %607 = vmatmul.bf16.vlgmr.msra.gmra.mxu1 %v962_v18  ;;  %617 = vmatmul.bf16.vlgmr.msra.gmra.mxu2 %v1002_v19  ;;  %v957_v18 = vld [vmem:[%s1811_s0 + $0x38] sm:$0xf]  ;;  %v1248_v19 = vld [vmem:[%s1811_s0 + $0x48] sm:$0xf0] }
  0x22   :  { %687 = vmatpush.bf16.msrb.mxu2 %v1302_v16  ;;  %638 = vmatpush.bf16.msrb.mxu1 %v1294_v17  ;;  %v1245_v16 = vld [vmem:[%s1811_s0 + $0x34] sm:$0xf]  ;;  %v951_v17 = vld [vmem:[%s1811_s0 + $0x44] sm:$0xf0] }
  0x23   :  { %627 = vmatmul.bf16.vlgmr.msra.gmra.mxu3 %v1042_v20  ;;  %597 = vmatmul.bf16.vlgmr.msra.gmra.mxu0 %v922_v21  ;;  %v946_v20 = vor.u32 %v1244_v12, %v943_v13  ;;  %v950_v21 = vor.u32 %v1247_v15, %v949_v14  ;;  %v1270_v12 = vld [vmem:[%s1811_s0 + $0xfc] sm:$0xf]  ;;  %v1051_v13 = vld [vmem:[%s1811_s0 + $0x10c] sm:$0xf0]  ;;  %v1057_v14 = vld [vmem:[%s1811_s0 + $0x100] sm:$0xf] }
  0x24   :  { %736 = vmatpush.bf16.msrb.mxu3 %v1310_v22  ;;  %785 = vmatpush.bf16.msrb.mxu0 %v1318_v23  ;;  %v954_v22 = vor.u32 %v1245_v16, %v951_v17  ;;  %v958_v23 = vor.u32 %v1248_v19, %v957_v18  ;;  %v1273_v15 = vld [vmem:[%s1811_s0 + $0x110] sm:$0xf0]  ;;  %v1054_v19 = vor.u32 %v1270_v12, %v1051_v13 }
  0x26   :  { %688 = vmatpush.bf16.msrb.mxu2 %v1301_v24  ;;  %639 = vmatpush.bf16.msrb.mxu1 %v1293_v25  ;;  %v1249_v24 = vld [vmem:[%s1811_s0 + $0x54] sm:$0xf]  ;;  %v963_v25 = vld [vmem:[%s1811_s0 + $0x64] sm:$0xf0] }
  0x28   :  { %737 = vmatpush.bf16.msrb.mxu3 %v1309_v26  ;;  %786 = vmatpush.bf16.msrb.mxu0 %v1317_v27  ;;  %v969_v26 = vld [vmem:[%s1811_s0 + $0x58] sm:$0xf]  ;;  %v1252_v27 = vld [vmem:[%s1811_s0 + $0x68] sm:$0xf0] }
  0x2a   :  { %689 = vmatpush.bf16.msrb.mxu2 %v1300_v28  ;;  %640 = vmatpush.bf16.msrb.mxu1 %v1292_v29  ;;  %v1250_v28 = vld [vmem:[%s1811_s0 + $0x5c] sm:$0xf]  ;;  %v971_v29 = vld [vmem:[%s1811_s0 + $0x6c] sm:$0xf0] }
  0x2c   :  { %738 = vmatpush.bf16.msrb.mxu3 %v1308_v30  ;;  %787 = vmatpush.bf16.msrb.mxu0 %v1316_v31  ;;  %v977_v30 = vld [vmem:[%s1811_s0 + $0x60] sm:$0xf]  ;;  %v1253_v31 = vld [vmem:[%s1811_s0 + $0x70] sm:$0xf0] }
  0x2e   :  { %690 = vmatpush.bf16.msrb.mxu2 %v1299_v32  ;;  %641 = vmatpush.bf16.msrb.mxu1 %v1291_v33  ;;  %v966_v32 = vor.u32 %v1249_v24, %v963_v25  ;;  %v970_v33 = vor.u32 %v1252_v27, %v969_v26  ;;  %v1274_v26 = vld [vmem:[%s1811_s0 + $0x11c] sm:$0xf]  ;;  %v1063_v27 = vld [vmem:[%s1811_s0 + $0x12c] sm:$0xf0] }
  0x30   :  { %739 = vmatpush.bf16.msrb.mxu3 %v1307_v34  ;;  %788 = vmatpush.bf16.msrb.mxu0 %v1315_v35  ;;  %v974_v34 = vor.u32 %v1250_v28, %v971_v29  ;;  %v978_v35 = vor.u32 %v1253_v31, %v977_v30  ;;  %v1069_v28 = vld [vmem:[%s1811_s0 + $0x120] sm:$0xf]  ;;  %v1277_v29 = vld [vmem:[%s1811_s0 + $0x130] sm:$0xf0]  ;;  %v1275_v30 = vld [vmem:[%s1811_s0 + $0x124] sm:$0xf] }
  0x31   :  { %612 = vmatmul.bf16.gmra.mxu1 %v982_v46  ;;  %622 = vmatmul.bf16.gmra.mxu2 %v1022_v47  ;;  %v994_v46 = vor.u32 %v1255_v40, %v991_v41  ;;  %v998_v47 = vor.u32 %v1258_v43, %v997_v42  ;;  %v1071_v31 = vld [vmem:[%s1811_s0 + $0x134] sm:$0xf0] }
  0x32   :  { %691 = vmatpush.bf16.msrb.mxu2 %v1298_v44  ;;  %642 = vmatpush.bf16.msrb.mxu1 %v1290_v45  ;;  %v986_v44 = vor.u32 %v1254_v36, %v983_v37  ;;  %v990_v45 = vor.u32 %v1257_v39, %v989_v38  ;;  %v1066_v36 = vor.u32 %v1274_v26, %v1063_v27 }
  0x33   :  { %632 = vmatmul.bf16.gmra.mxu3 %v1062_v48  ;;  %602 = vmatmul.bf16.gmra.mxu0 %v942_v49  ;;  %v1259_v48 = vld [vmem:[%s1811_s0 + $0xa4] sm:$0xf]  ;;  %v1003_v49 = vld [vmem:[%s1811_s0 + $0xb4] sm:$0xf0]  ;;  %v1070_v37 = vor.u32 %v1277_v29, %v1069_v28  ;;  %v1074_v39 = vor.u32 %v1275_v30, %v1071_v31 }
  0x34   :  { %740 = vmatpush.bf16.msrb.mxu3 %v1306_v50  ;;  %789 = vmatpush.bf16.msrb.mxu0 %v1314_v51  ;;  %v1009_v50 = vld [vmem:[%s1811_s0 + $0xa8] sm:$0xf]  ;;  %v1262_v51 = vld [vmem:[%s1811_s0 + $0xb8] sm:$0xf0] }
  0x36   :  { %692 = vmatpush.bf16.msrb.mxu2 %v1297_v52  ;;  %643 = vmatpush.bf16.msrb.mxu1 %v1289_v53  ;;  %v1260_v52 = vld [vmem:[%s1811_s0 + $0xac] sm:$0xf]  ;;  %v1011_v53 = vld [vmem:[%s1811_s0 + $0xbc] sm:$0xf0] }
  0x38   :  { %741 = vmatpush.bf16.msrb.mxu3 %v1305_v54  ;;  %790 = vmatpush.bf16.msrb.mxu0 %v1313_v55  ;;  %v1017_v54 = vld [vmem:[%s1811_s0 + $0xb0] sm:$0xf]  ;;  %v1263_v55 = vld [vmem:[%s1811_s0 + $0xc0] sm:$0xf0] }
  0x3a   :  { %693 = vmatpush.bf16.msrb.mxu2 %v1296_v56  ;;  %644 = vmatpush.bf16.msrb.mxu1 %v1288_v57  ;;  %v1006_v56 = vor.u32 %v1259_v48, %v1003_v49  ;;  %v1010_v57 = vor.u32 %v1262_v51, %v1009_v50 }
  0x3c   :  { %742 = vmatpush.bf16.msrb.mxu3 %v1304_v58  ;;  %791 = vmatpush.bf16.msrb.mxu0 %v1312_v59  ;;  %v1014_v58 = vor.u32 %v1260_v52, %v1011_v53  ;;  %v1018_v59 = vor.u32 %v1263_v55, %v1017_v54 }
  0x3e   :  { %694 = vmatpush.bf16.msrb.mxu2 %v1295_v60  ;;  %645 = vmatpush.bf16.msrb.mxu1 %v1287_v61  ;;  %v1264_v60 = vld [vmem:[%s1811_s0 + $0xcc] sm:$0xf]  ;;  %v1023_v61 = vld [vmem:[%s1811_s0 + $0xdc] sm:$0xf0] }
  0x3f   :  { %v1026_v4 = vor.u32 %v1264_v60, %v1023_v61 }
  0x40   :  { %743 = vmatpush.bf16.msrb.mxu3 %v1303_v62  ;;  %792 = vmatpush.bf16.msrb.mxu0 %v1311_v63  ;;  %v1029_v62 = vld [vmem:[%s1811_s0 + $0xd0] sm:$0xf]  ;;  %v1267_v63 = vld [vmem:[%s1811_s0 + $0xe0] sm:$0xf0] }
  0x41   :  { %646 = vmatmul.bf16.vlgmr.msrb.gmra.mxu1 %v926_v8  ;;  %695 = vmatmul.bf16.vlgmr.msrb.gmra.mxu2 %v930_v9  ;;  %v1030_v5 = vor.u32 %v1267_v63, %v1029_v62  ;;  %v1269_v8 = vld [vmem:[%s1811_s0 + $0xf4] sm:$0xf]  ;;  %v1043_v9 = vld [vmem:[%s1811_s0 + $0x104] sm:$0xf0] }
  0x42   :  { %v1046_v16 = vor.u32 %v1269_v8, %v1043_v9 }
  0x43   :  { %744 = vmatmul.bf16.vlgmr.msrb.gmra.mxu3 %v934_v10  ;;  %793 = vmatmul.bf16.vlgmr.msrb.gmra.mxu0 %v938_v11  ;;  %v1049_v10 = vld [vmem:[%s1811_s0 + $0xf8] sm:$0xf]  ;;  %v1272_v11 = vld [vmem:[%s1811_s0 + $0x108] sm:$0xf0] }
  0x44   :  { %v1050_v17 = vor.u32 %v1272_v11, %v1049_v10 }
  0x51   :  { %651 = vmatmul.bf16.gmra.mxu1 %v946_v20  ;;  %700 = vmatmul.bf16.gmra.mxu2 %v950_v21  ;;  %v1058_v20 = vor.u32 %v1273_v15, %v1057_v14 }
  0x53   :  { %749 = vmatmul.bf16.gmra.mxu3 %v954_v22  ;;  %798 = vmatmul.bf16.gmra.mxu0 %v958_v23 }
  0x61   :  { %656 = vmatmul.bf16.gmra.mxu1 %v966_v32  ;;  %705 = vmatmul.bf16.gmra.mxu2 %v970_v33  ;;  %v1077_v32 = vld [vmem:[%s1811_s0 + $0x128] sm:$0xf]  ;;  %v1278_v33 = vld [vmem:[%s1811_s0 + $0x138] sm:$0xf0] }
  0x62   :  { %v1078_v40 = vor.u32 %v1278_v33, %v1077_v32 }
  0x63   :  { %754 = vmatmul.bf16.gmra.mxu3 %v974_v34  ;;  %803 = vmatmul.bf16.gmra.mxu0 %v978_v35 }
  0x71   :  { %661 = vmatmul.bf16.gmra.mxu1 %v986_v44  ;;  %710 = vmatmul.bf16.gmra.mxu2 %v990_v45 }
  0x73   :  { %759 = vmatmul.bf16.gmra.mxu3 %v994_v46  ;;  %808 = vmatmul.bf16.gmra.mxu0 %v998_v47 }
  0x81   :  { %666 = vmatmul.bf16.gmra.mxu1 %v1006_v56  ;;  %715 = vmatmul.bf16.gmra.mxu2 %v1010_v57 }
  0x83   :  { %764 = vmatmul.bf16.gmra.mxu3 %v1014_v58  ;;  %813 = vmatmul.bf16.gmra.mxu0 %v1018_v59 }
  0x91   :  { %671 = vmatmul.bf16.gmra.mxu1 %v1026_v4  ;;  %720 = vmatmul.bf16.gmra.mxu2 %v1030_v5 }
  0x93   :  { %769 = vmatmul.bf16.gmra.mxu3 %v1034_v6  ;;  %818 = vmatmul.bf16.gmra.mxu0 %v1038_v7 }
  0x9e   :  { %v1699_v18 = vpop.f32.mrf.mxu1 }
  0xa0   :  { %v598_v21 = vpop.f32.mrf.mxu0 }
  0xa1   :  { %676 = vmatmul.bf16.gmra.mxu1 %v1046_v16  ;;  %725 = vmatmul.bf16.gmra.mxu2 %v1050_v17 }
  0xa3   :  { %774 = vmatmul.bf16.gmra.mxu3 %v1054_v19  ;;  %823 = vmatmul.bf16.gmra.mxu0 %v1058_v20 }
  0xa4   :  { %v1701_v22 = vpop.f32.mrf.mxu2 }
  0xa6   :  { %v1703_v23 = vpop.f32.mrf.mxu3  ;;  %v1705_v24 = vpop.f32.mrf.mxu1 }
  0xa8   :  { %v600_v25 = vpop.f32.mrf.mxu0 }
  0xac   :  { %v1731_v34 = vpop.f32.mrf.mxu2 }
  0xae   :  { %v1733_v35 = vpop.f32.mrf.mxu3  ;;  %v1735_v38 = vpop.f32.mrf.mxu1 }
  0xb0   :  { %v603_v41 = vpop.f32.mrf.mxu0 }
  0xb1   :  { %681 = vmatmul.bf16.gmra.mxu1 %v1066_v36  ;;  %730 = vmatmul.bf16.gmra.mxu2 %v1070_v37 }
  0xb3   :  { %779 = vmatmul.bf16.gmra.mxu3 %v1074_v39  ;;  %828 = vmatmul.bf16.gmra.mxu0 %v1078_v40 }
  0xb4   :  { %v1737_v42 = vpop.f32.mrf.mxu2 }
  0xb6   :  { %v1739_v43 = vpop.f32.mrf.mxu3  ;;  %v1741_v44 = vpop.f32.mrf.mxu1 }
  0xb8   :  { %v605_v45 = vpop.f32.mrf.mxu0 }
  0xbc   :  { %v1743_v46 = vpop.f32.mrf.mxu2 }
  0xbe   :  { %v1745_v47 = vpop.f32.mrf.mxu3  ;;  %v647_v48 = vpop.f32.mrf.mxu1 }
  0xbf   :  { %v648_v50 = vadd.f32 %v647_v48, %v598_v21 }
  0xc0   :  { %v794_v49 = vpop.f32.mrf.mxu0 }
  0xc4   :  { %v696_v51 = vpop.f32.mrf.mxu2 }
  0xc5   :  { %v697_v52 = vadd.f32 %v696_v51, %v648_v50 }
  0xc6   :  { %v745_v53 = vpop.f32.mrf.mxu3  ;;  %v649_v54 = vpop.f32.mrf.mxu1 }
  0xc7   :  { %v746_v55 = vadd.f32 %v745_v53, %v697_v52  ;;  %v650_v58 = vadd.f32 %v649_v54, %v600_v25 }
  0xc8   :  { %v796_v56 = vpop.f32.mrf.mxu0 }
  0xc9   :  { %v795_v57 = vadd.f32 %v794_v49, %v746_v55 }
  0xcb   :  { %834 = vst [vmem:[%s1812_s2] sm:$0xff] %v795_v57  ;;  %v871_v2 = vmul.f32 %v795_v57, %v795_v57 }
  0xcc   :  { %v698_v59 = vpop.f32.mrf.mxu2 }
  0xcd   :  { %v699_v60 = vadd.f32 %v698_v59, %v650_v58 }
  0xce   :  { %v747_v61 = vpop.f32.mrf.mxu3  ;;  %v652_v62 = vpop.f32.mrf.mxu1 }
  0xcf   :  { %v748_v63 = vadd.f32 %v747_v61, %v699_v60  ;;  %v653_v5 = vadd.f32 %v652_v62, %v603_v41 }
  0xd0   :  { %v799_v0 = vpop.f32.mrf.mxu0 }
  0xd1   :  { %v797_v1 = vadd.f32 %v796_v56, %v748_v63 }
  0xd3   :  { %835 = vst [vmem:[%s1812_s2 + $0x8] sm:$0xff] %v797_v1  ;;  %v850_v3 = vadd.f32 %v797_v1, %v795_v57  ;;  %v872_v4 = vmul.f32 %v797_v1, %v797_v1 }
  0xd4   :  { %v701_v6 = vpop.f32.mrf.mxu2 }
  0xd5   :  { %v887_v7 = vadd.f32 %v872_v4, %v871_v2  ;;  %v702_v8 = vadd.f32 %v701_v6, %v653_v5 }
  0xd6   :  { %v750_v9 = vpop.f32.mrf.mxu3  ;;  %v654_v10 = vpop.f32.mrf.mxu1 }
  0xd7   :  { %v751_v11 = vadd.f32 %v750_v9, %v702_v8  ;;  %v655_v16 = vadd.f32 %v654_v10, %v605_v45 }
  0xd8   :  { %v801_v12 = vpop.f32.mrf.mxu0 }
  0xd9   :  { %v800_v13 = vadd.f32 %v799_v0, %v751_v11 }
  0xdb   :  { %836 = vst [vmem:[%s1812_s2 + $0x10] sm:$0xff] %v800_v13  ;;  %v851_v14 = vadd.f32 %v850_v3, %v800_v13  ;;  %v873_v15 = vmul.f32 %v800_v13, %v800_v13 }
  0xdc   :  { %v703_v17 = vpop.f32.mrf.mxu2 }
  0xdd   :  { %v888_v19 = vadd.f32 %v887_v7, %v873_v15  ;;  %v704_v20 = vadd.f32 %v703_v17, %v655_v16 }
  0xde   :  { %v752_v21 = vpop.f32.mrf.mxu3  ;;  %v657_v25 = vpop.f32.mrf.mxu1 }
  0xdf   :  { %v753_v26 = vadd.f32 %v752_v21, %v704_v20  ;;  %v658_v31 = vadd.f32 %v657_v25, %v1699_v18 }
  0xe0   :  { %v804_v27 = vpop.f32.mrf.mxu0 }
  0xe1   :  { %v802_v28 = vadd.f32 %v801_v12, %v753_v26 }
  0xe3   :  { %837 = vst [vmem:[%s1812_s2 + $0x18] sm:$0xff] %v802_v28  ;;  %v852_v29 = vadd.f32 %v851_v14, %v802_v28  ;;  %v874_v30 = vmul.f32 %v802_v28, %v802_v28 }
  0xe4   :  { %v706_v32 = vpop.f32.mrf.mxu2 }
  0xe5   :  { %v889_v33 = vadd.f32 %v888_v19, %v874_v30  ;;  %v707_v36 = vadd.f32 %v706_v32, %v658_v31 }
  0xe6   :  { %v755_v37 = vpop.f32.mrf.mxu3  ;;  %v659_v39 = vpop.f32.mrf.mxu1 }
  0xe7   :  { %v756_v40 = vadd.f32 %v755_v37, %v707_v36  ;;  %v660_v50 = vadd.f32 %v659_v39, %v1705_v24 }
  0xe8   :  { %v806_v41 = vpop.f32.mrf.mxu0 }
  0xe9   :  { %v805_v45 = vadd.f32 %v804_v27, %v756_v40 }
  0xeb   :  { %838 = vst [vmem:[%s1812_s2 + $0x20] sm:$0xff] %v805_v45  ;;  %v853_v48 = vadd.f32 %v852_v29, %v805_v45  ;;  %v875_v49 = vmul.f32 %v805_v45, %v805_v45 }
  0xec   :  { %v708_v51 = vpop.f32.mrf.mxu2 }
  0xed   :  { %v890_v52 = vadd.f32 %v889_v33, %v875_v49  ;;  %v709_v53 = vadd.f32 %v708_v51, %v660_v50 }
  0xee   :  { %v757_v18 = vpop.f32.mrf.mxu3  ;;  %v662_v54 = vpop.f32.mrf.mxu1 }
  0xef   :  { %v758_v55 = vadd.f32 %v757_v18, %v709_v53  ;;  %v663_v60 = vadd.f32 %v662_v54, %v1735_v38 }
  0xf0   :  { %v809_v56 = vpop.f32.mrf.mxu0 }
  0xf1   :  { %v807_v57 = vadd.f32 %v806_v41, %v758_v55 }
  0xf3   :  { %839 = vst [vmem:[%s1812_s2 + $0x28] sm:$0xff] %v807_v57  ;;  %v854_v58 = vadd.f32 %v853_v48, %v807_v57  ;;  %v876_v59 = vmul.f32 %v807_v57, %v807_v57 }
  0xf4   :  { %v711_v61 = vpop.f32.mrf.mxu2 }
  0xf5   :  { %v891_v62 = vadd.f32 %v890_v52, %v876_v59  ;;  %v712_v63 = vadd.f32 %v711_v61, %v663_v60 }
  0xf6   :  { %v760_v24 = vpop.f32.mrf.mxu3  ;;  %v664_v0 = vpop.f32.mrf.mxu1 }
  0xf7   :  { %v761_v1 = vadd.f32 %v760_v24, %v712_v63  ;;  %v665_v6 = vadd.f32 %v664_v0, %v1741_v44 }
  0xf8   :  { %v811_v2 = vpop.f32.mrf.mxu0 }
  0xf9   :  { %v810_v3 = vadd.f32 %v809_v56, %v761_v1 }
  0xfb   :  { %840 = vst [vmem:[%s1812_s2 + $0x30] sm:$0xff] %v810_v3  ;;  %v855_v4 = vadd.f32 %v854_v58, %v810_v3  ;;  %v877_v5 = vmul.f32 %v810_v3, %v810_v3 }
  0xfc   :  { %v713_v7 = vpop.f32.mrf.mxu2 }
  0xfd   :  { %v892_v8 = vadd.f32 %v891_v62, %v877_v5  ;;  %v714_v9 = vadd.f32 %v713_v7, %v665_v6 }
  0xfe   :  { %v762_v38 = vpop.f32.mrf.mxu3  ;;  %v667_v10 = vpop.f32.mrf.mxu1 }
  0xff   :  { %v763_v11 = vadd.f32 %v762_v38, %v714_v9  ;;  %v668_v16 = vadd.f32 %v667_v10, %v1701_v22 }
 0x100   :  { %v814_v12 = vpop.f32.mrf.mxu0 }
 0x101   :  { %v812_v13 = vadd.f32 %v811_v2, %v763_v11 }
 0x103   :  { %841 = vst [vmem:[%s1812_s2 + $0x38] sm:$0xff] %v812_v13  ;;  %v856_v14 = vadd.f32 %v855_v4, %v812_v13  ;;  %v878_v15 = vmul.f32 %v812_v13, %v812_v13 }
 0x104   :  { %v716_v17 = vpop.f32.mrf.mxu2 }
 0x105   :  { %v893_v19 = vadd.f32 %v892_v8, %v878_v15  ;;  %v717_v20 = vadd.f32 %v716_v17, %v668_v16 }
 0x106   :  { %v765_v44 = vpop.f32.mrf.mxu3  ;;  %v669_v21 = vpop.f32.mrf.mxu1 }
 0x107   :  { %v766_v25 = vadd.f32 %v765_v44, %v717_v20  ;;  %v670_v28 = vadd.f32 %v669_v21, %v1731_v34 }
 0x108   :  { %v816_v26 = vpop.f32.mrf.mxu0 }
 0x109   :  { %v815_v27 = vadd.f32 %v814_v12, %v766_v25 }
 0x10b   :  { %842 = vst [vmem:[%s1812_s2 + $0x40] sm:$0xff] %v815_v27  ;;  %v857_v7 = vadd.f32 %v856_v14, %v815_v27 }
 0x10c   :  { %v718_v29 = vpop.f32.mrf.mxu2 }
 0x10d   :  { %v719_v30 = vadd.f32 %v718_v29, %v670_v28 }
 0x10e   :  { %v767_v31 = vpop.f32.mrf.mxu3  ;;  %v672_v32 = vpop.f32.mrf.mxu1 }
 0x10f   :  { %v768_v33 = vadd.f32 %v767_v31, %v719_v30  ;;  %v673_v37 = vadd.f32 %v672_v32, %v1737_v42 }
 0x110   :  { %v819_v22 = vpop.f32.mrf.mxu0 }
 0x111   :  { %v817_v36 = vadd.f32 %v816_v26, %v768_v33 }
 0x113   :  { %843 = vst [vmem:[%s1812_s2 + $0x48] sm:$0xff] %v817_v36  ;;  %v880_v8 = vmul.f32 %v817_v36, %v817_v36  ;;  %v858_v11 = vadd.f32 %v857_v7, %v817_v36 }
 0x114   :  { %v721_v39 = vpop.f32.mrf.mxu2 }
 0x115   :  { %v722_v40 = vadd.f32 %v721_v39, %v673_v37 }
 0x116   :  { %v770_v41 = vpop.f32.mrf.mxu3  ;;  %v674_v45 = vpop.f32.mrf.mxu1 }
 0x117   :  { %v771_v48 = vadd.f32 %v770_v41, %v722_v40  ;;  %v675_v50 = vadd.f32 %v674_v45, %v1743_v46 }
 0x118   :  { %v821_v49 = vpop.f32.mrf.mxu0 }
 0x119   :  { %v820_v34 = vadd.f32 %v819_v22, %v771_v48 }
 0x11b   :  { %844 = vst [vmem:[%s1812_s2 + $0x50] sm:$0xff] %v820_v34  ;;  %v881_v12 = vmul.f32 %v820_v34, %v820_v34  ;;  %v859_v17 = vadd.f32 %v858_v11, %v820_v34 }
 0x11c   :  { %v723_v51 = vpop.f32.mrf.mxu2 }
 0x11d   :  { %v724_v52 = vadd.f32 %v723_v51, %v675_v50 }
 0x11e   :  { %v772_v53 = vpop.f32.mrf.mxu3  ;;  %v677_v18 = vpop.f32.mrf.mxu1 }
 0x11f   :  { %v773_v54 = vadd.f32 %v772_v53, %v724_v52  ;;  %v678_v56 = vadd.f32 %v677_v18, %v1703_v23  ;;  %v879_v23 = vmul.f32 %v815_v27, %v815_v27 }
 0x120   :  { %v824_v42 = vpop.f32.mrf.mxu0 }
 0x121   :  { %v822_v55 = vadd.f32 %v821_v49, %v773_v54  ;;  %v894_v10 = vadd.f32 %v893_v19, %v879_v23 }
 0x123   :  { %845 = vst [vmem:[%s1812_s2 + $0x58] sm:$0xff] %v822_v55  ;;  %v895_v16 = vadd.f32 %v894_v10, %v880_v8  ;;  %v882_v20 = vmul.f32 %v822_v55, %v822_v55  ;;  %v860_v25 = vadd.f32 %v859_v17, %v822_v55 }
 0x124   :  { %v726_v57 = vpop.f32.mrf.mxu2 }
 0x125   :  { %v727_v58 = vadd.f32 %v726_v57, %v678_v56  ;;  %v896_v21 = vadd.f32 %v895_v16, %v881_v12 }
 0x126   :  { %v775_v59 = vpop.f32.mrf.mxu3  ;;  %v679_v60 = vpop.f32.mrf.mxu1 }
 0x127   :  { %v776_v61 = vadd.f32 %v775_v59, %v727_v58  ;;  %v680_v46 = vadd.f32 %v679_v60, %v1733_v35  ;;  %v897_v27 = vadd.f32 %v896_v21, %v882_v20 }
 0x128   :  { %v826_v63 = vpop.f32.mrf.mxu0 }
 0x129   :  { %v825_v62 = vadd.f32 %v824_v42, %v776_v61 }
 0x12b   :  { %846 = vst [vmem:[%s1812_s2 + $0x60] sm:$0xff] %v825_v62  ;;  %v883_v26 = vmul.f32 %v825_v62, %v825_v62  ;;  %v861_v19 = vadd.f32 %v860_v25, %v825_v62 }
 0x12c   :  { %v728_v24 = vpop.f32.mrf.mxu2 }
 0x12d   :  { %v729_v0 = vadd.f32 %v728_v24, %v680_v46  ;;  %v898_v31 = vadd.f32 %v897_v27, %v883_v26 }
 0x12e   :  { %v777_v1 = vpop.f32.mrf.mxu3  ;;  %v682_v2 = vpop.f32.mrf.mxu1 }
 0x12f   :  { %v778_v3 = vadd.f32 %v777_v1, %v729_v0  ;;  %v683_v5 = vadd.f32 %v682_v2, %v1739_v43 }
 0x130   :  { %v829_v35 = vpop.f32.mrf.mxu0 }
 0x131   :  { %v827_v4 = vadd.f32 %v826_v63, %v778_v3 }
 0x133   :  { %847 = vst [vmem:[%s1812_s2 + $0x68] sm:$0xff] %v827_v4  ;;  %v884_v28 = vmul.f32 %v827_v4, %v827_v4  ;;  %v862_v32 = vadd.f32 %v861_v19, %v827_v4 }
 0x134   :  { %v731_v6 = vpop.f32.mrf.mxu2 }
 0x135   :  { %v732_v9 = vadd.f32 %v731_v6, %v683_v5  ;;  %v899_v37 = vadd.f32 %v898_v31, %v884_v28 }
 0x136   :  { %v780_v38 = vpop.f32.mrf.mxu3  ;;  %v684_v15 = vpop.f32.mrf.mxu1 }
 0x137   :  { %v781_v13 = vadd.f32 %v780_v38, %v732_v9  ;;  %v685_v43 = vadd.f32 %v684_v15, %v1745_v47 }
 0x138   :  { %v831_v36 = vpop.f32.mrf.mxu0 }
 0x139   :  { %v830_v44 = vadd.f32 %v829_v35, %v781_v13 }
 0x13b   :  { %848 = vst [vmem:[%s1812_s2 + $0x70] sm:$0xff] %v830_v44  ;;  %v885_v33 = vmul.f32 %v830_v44, %v830_v44  ;;  %v863_v39 = vadd.f32 %v862_v32, %v830_v44 }
 0x13c   :  { %v733_v14 = vpop.f32.mrf.mxu2 }
 0x13d   :  { %v734_v29 = vadd.f32 %v733_v14, %v685_v43  ;;  %v900_v41 = vadd.f32 %v899_v37, %v885_v33 }
 0x13e   :  { %v782_v30 = vpop.f32.mrf.mxu3 }
 0x13f   :  { %v783_v22 = vadd.f32 %v782_v30, %v734_v29 }
 0x141   :  { %v832_v40 = vadd.f32 %v831_v36, %v783_v22 }
 0x143   :  { %849 = vst [vmem:[%s1812_s2 + $0x78] sm:$0xff] %v832_v40  ;;  %v864_v47 = vadd.f32 %v863_v39, %v832_v40  ;;  %v886_v45 = vmul.f32 %v832_v40, %v832_v40 }
 0x145   :  { %v865_v48 = vrot.slane %v864_v47, 4  ;;  %v901_v49 = vadd.f32 %v900_v41, %v886_v45 }
 0x147   :  { %v866_v34 = vadd.f32 %v865_v48, %v864_v47  ;;  %v902_v50 = vrot.slane %v901_v49, 4 }
 0x149   :  { %v867_v51 = vrot.slane %v866_v34, 2  ;;  %v903_v52 = vadd.f32 %v902_v50, %v901_v49 }
 0x14b   :  { %v868_v53 = vadd.f32 %v867_v51, %v866_v34  ;;  %v904_v18 = vrot.slane %v903_v52, 2 }
 0x14d   :  { %v869_v54 = vrot.slane %v868_v53, 1  ;;  %v905_v55 = vadd.f32 %v904_v18, %v903_v52 }
 0x14f   :  { %v906_v42 = vrot.slane %v905_v55, 1  ;;  %v870_v56 = vadd.f32 %v869_v54, %v868_v53 }
 0x151   :  { %v907_v57 = vadd.f32 %v906_v42, %v905_v55 }
 0x153   :  { %v909_v58 = vsel %vm908_vm0, %v870_v56, %v907_v57 }
 0x154   :  { %910 = vst [vmem:[%s1813_s3] sm:$0x3] %v909_v58 }

// kernel: resnet_forward.53
= control target key start
LH: loop header
LB: loop body
LE: loop exit
PB: predicated region body
PF: predicated region fallthrough
CT: control target
= control target key end

     0   :  { %vm138_vm0 = vcmask 1040384   ;;  %s272_s1 = inlined_call_operand.vmem [shape: bf16[128,128], index: 1, kind: input, shape index: {}]   ;;  %s273_s0 = inlined_call_operand.vmem [shape: bf16[32,128], index: 0, kind: input, shape index: {}]   ;;  %s274_s2 = inlined_call_operand.vmem [shape: f32[32,128], index: 2, kind: output, shape index: {0}]   ;;  %s275_s3 = inlined_call_operand.vmem [shape: f32[1,2,128], index: 3, kind: output, shape index: {1}]  }
   0x1   :  { %v198_v0 = vld [vmem:[%s272_s1 + $0x38] sm:$0xff]  ;;  %v197_v1 = vld [vmem:[%s272_s1 + $0x30] sm:$0xff]  ;;  %v196_v2 = vld [vmem:[%s272_s1 + $0x28] sm:$0xff] }
   0x2   :  { %93 = vmatpush.bf16.msra.mxu0 %v198_v0  ;;  %199 = vmatpush.bf16.msra.mxu1 %v198_v0  ;;  %v195_v3 = vld [vmem:[%s272_s1 + $0x20] sm:$0xff]  ;;  %v194_v4 = vld [vmem:[%s272_s1 + $0x18] sm:$0xff]  ;;  %v193_v5 = vld [vmem:[%s272_s1 + $0x10] sm:$0xff] }
   0x3   :  { %v192_v6 = vld [vmem:[%s272_s1 + $0x8] sm:$0xff]  ;;  %v191_v7 = vld [vmem:[%s272_s1] sm:$0xff] }
   0x4   :  { %v189_v8 = vld [vmem:[%s273_s0] sm:$0xff]  ;;  %v190_v9 = vld [vmem:[%s273_s0 + $0x8] sm:$0xff] }
   0x6   :  { %94 = vmatpush.bf16.msra.mxu0 %v197_v1  ;;  %200 = vmatpush.bf16.msra.mxu1 %v197_v1 }
   0xa   :  { %95 = vmatpush.bf16.msra.mxu0 %v196_v2  ;;  %201 = vmatpush.bf16.msra.mxu1 %v196_v2 }
   0xe   :  { %96 = vmatpush.bf16.msra.mxu0 %v195_v3  ;;  %202 = vmatpush.bf16.msra.mxu1 %v195_v3 }
  0x12   :  { %97 = vmatpush.bf16.msra.mxu0 %v194_v4  ;;  %203 = vmatpush.bf16.msra.mxu1 %v194_v4 }
  0x16   :  { %98 = vmatpush.bf16.msra.mxu0 %v193_v5  ;;  %204 = vmatpush.bf16.msra.mxu1 %v193_v5 }
  0x1a   :  { %99 = vmatpush.bf16.msra.mxu0 %v192_v6  ;;  %205 = vmatpush.bf16.msra.mxu1 %v192_v6 }
  0x1e   :  { %100 = vmatpush.bf16.msra.mxu0 %v191_v7  ;;  %206 = vmatpush.bf16.msra.mxu1 %v191_v7 }
  0x21   :  { %101 = vmatmul.bf16.vlgmr.msra.gmra.mxu0 %v189_v8  ;;  %106 = vmatmul.bf16.vlgmr.msra.gmra.mxu1 %v190_v9 }
  0x9e   :  { %v102_v10 = vpop.f32.mrf.mxu0  ;;  %v107_v11 = vpop.f32.mrf.mxu1 }
  0x9f   :  { %112 = vst [vmem:[%s274_s2] sm:$0xff] %v102_v10  ;;  %v125_v14 = vmul.f32 %v102_v10, %v102_v10  ;;  %v127_v17 = vmul.f32 %v107_v11, %v107_v11 }
  0xa0   :  { %114 = vst [vmem:[%s274_s2 + $0x10] sm:$0xff] %v107_v11 }
  0xa6   :  { %v104_v12 = vpop.f32.mrf.mxu0  ;;  %v109_v13 = vpop.f32.mrf.mxu1 }
  0xa7   :  { %113 = vst [vmem:[%s274_s2 + $0x8] sm:$0xff] %v104_v12  ;;  %v116_v15 = vadd.f32 %v104_v12, %v102_v10  ;;  %v126_v16 = vmul.f32 %v104_v12, %v104_v12  ;;  %v128_v21 = vmul.f32 %v109_v13, %v109_v13 }
  0xa8   :  { %115 = vst [vmem:[%s274_s2 + $0x18] sm:$0xff] %v109_v13 }
  0xa9   :  { %v129_v18 = vadd.f32 %v126_v16, %v125_v14  ;;  %v117_v19 = vadd.f32 %v116_v15, %v107_v11 }
  0xab   :  { %v118_v20 = vadd.f32 %v117_v19, %v109_v13  ;;  %v130_v22 = vadd.f32 %v129_v18, %v127_v17 }
  0xad   :  { %v119_v23 = vrot.slane %v118_v20, 4  ;;  %v131_v24 = vadd.f32 %v130_v22, %v128_v21 }
  0xaf   :  { %v120_v25 = vadd.f32 %v119_v23, %v118_v20  ;;  %v132_v26 = vrot.slane %v131_v24, 4 }
  0xb1   :  { %v121_v27 = vrot.slane %v120_v25, 2  ;;  %v133_v28 = vadd.f32 %v132_v26, %v131_v24 }
  0xb3   :  { %v122_v29 = vadd.f32 %v121_v27, %v120_v25  ;;  %v134_v30 = vrot.slane %v133_v28, 2 }
  0xb5   :  { %v123_v31 = vrot.slane %v122_v29, 1  ;;  %v135_v32 = vadd.f32 %v134_v30, %v133_v28 }
  0xb7   :  { %v136_v33 = vrot.slane %v135_v32, 1  ;;  %v124_v34 = vadd.f32 %v123_v31, %v122_v29 }
  0xb9   :  { %v137_v35 = vadd.f32 %v136_v33, %v135_v32 }
  0xbb   :  { %v139_v36 = vsel %vm138_vm0, %v124_v34, %v137_v35 }
  0xbc   :  { %140 = vst [vmem:[%s275_s3] sm:$0x3] %v139_v36 }

// kernel: resnet_forward.51
= control target key start
LH: loop header
LB: loop body
LE: loop exit
PB: predicated region body
PF: predicated region fallthrough
CT: control target
= control target key end

     0   :  { %s107_s0 = inlined_call_operand.vmem [shape: f32[32,128], index: 0, kind: input, shape index: {}]   ;;  %s108_s1 = inlined_call_operand.vmem [shape: f32[1,128], index: 1, kind: input, shape index: {}]   ;;  %s109_s2 = inlined_call_operand.vmem [shape: f32[1,128], index: 2, kind: input, shape index: {}]   ;;  %s110_s3 = inlined_call_operand.vmem [shape: bf16[32,128], index: 3, kind: output, shape index: {}]  }
   0x1   :  { %v14_v0 = vld [vmem:[%s107_s0] sm:$0xff]  ;;  %v15_v1 = vld [vmem:[%s107_s0 + $0x8] sm:$0xff]  ;;  %v16_v4 = vld [vmem:[%s107_s0 + $0x10] sm:$0xff] }
   0x2   :  { %v61_v2 = vld [vmem:[%s108_s1] ss:$0 sm:$0xff]  ;;  %v17_v5 = vld [vmem:[%s107_s0 + $0x18] sm:$0xff] }
   0x3   :  { %v62_v3 = vld [vmem:[%s109_s2] ss:$0 sm:$0xff]  ;;  %v22_v6 = vmul.f32 %v61_v2, %v14_v0  ;;  %v23_v7 = vmul.f32 %v61_v2, %v15_v1  ;;  %v24_v8 = vmul.f32 %v61_v2, %v16_v4  ;;  %v25_v9 = vmul.f32 %v61_v2, %v17_v5 }
   0x5   :  { %v30_v10 = vadd.f32 %v62_v3, %v22_v6  ;;  %v31_v11 = vadd.f32 %v62_v3, %v23_v7  ;;  %v32_v12 = vadd.f32 %v62_v3, %v24_v8  ;;  %v33_v13 = vadd.f32 %v62_v3, %v25_v9 }
   0x7   :  { %v34_v14 = vmax.f32 %v30_v10, 0.0  ;;  %v35_v15 = vmax.f32 %v31_v11, 0.0  ;;  %v36_v16 = vmax.f32 %v32_v12, 0.0  ;;  %v37_v17 = vmax.f32 %v33_v13, 0.0 }
   0x9   :  { %v53_v18 = vpack.c.bf16 %v35_v15, %v34_v14  ;;  %v58_v19 = vpack.c.bf16 %v37_v17, %v36_v16 }
   0xb   :  { %54 = vst [vmem:[%s110_s3] sm:$0xff] %v53_v18  }
   0xc   :  { %60 = vst [vmem:[%s110_s3 + $0x8] sm:$0xff] %v58_v19  }

// kernel: resnet_forward.55
= control target key start
LH: loop header
LB: loop body
LE: loop exit
PB: predicated region body
PF: predicated region fallthrough
CT: control target
= control target key end

     0   :  { %s126_s0 = inlined_call_operand.vmem [shape: f32[32,128], index: 0, kind: input, shape index: {}]   ;;  %s127_s1 = inlined_call_operand.vmem [shape: f32[1,128], index: 1, kind: input, shape index: {}]   ;;  %s128_s2 = inlined_call_operand.vmem [shape: f32[1,128], index: 2, kind: input, shape index: {}]   ;;  %s129_s3 = inlined_call_operand.vmem [shape: f32[32,128], index: 3, kind: input, shape index: {}]   ;;  %s130_s4 = inlined_call_operand.vmem [shape: f32[32,128], index: 4, kind: output, shape index: {}]  }
   0x1   :  { %v17_v0 = vld [vmem:[%s126_s0] sm:$0xff]  ;;  %v18_v4 = vld [vmem:[%s126_s0 + $0x8] sm:$0xff]  ;;  %v19_v5 = vld [vmem:[%s126_s0 + $0x10] sm:$0xff] }
   0x2   :  { %v57_v1 = vld [vmem:[%s127_s1] ss:$0 sm:$0xff]  ;;  %v20_v9 = vld [vmem:[%s126_s0 + $0x18] sm:$0xff]  ;;  %v38_v11 = vld [vmem:[%s129_s3 + $0x8] sm:$0xff] }
   0x3   :  { %v58_v2 = vld [vmem:[%s128_s2] ss:$0 sm:$0xff]  ;;  %v25_v3 = vmul.f32 %v57_v1, %v17_v0  ;;  %v26_v7 = vmul.f32 %v57_v1, %v18_v4  ;;  %v27_v8 = vmul.f32 %v57_v1, %v19_v5  ;;  %v39_v12 = vld [vmem:[%s129_s3 + $0x10] sm:$0xff]  ;;  %v28_v13 = vmul.f32 %v57_v1, %v20_v9  ;;  %v40_v16 = vld [vmem:[%s129_s3 + $0x18] sm:$0xff] }
   0x4   :  { %v37_v6 = vld [vmem:[%s129_s3] sm:$0xff] }
   0x5   :  { %v33_v10 = vadd.f32 %v58_v2, %v25_v3  ;;  %v34_v14 = vadd.f32 %v58_v2, %v26_v7  ;;  %v35_v15 = vadd.f32 %v58_v2, %v27_v8  ;;  %v36_v18 = vadd.f32 %v58_v2, %v28_v13 }
   0x7   :  { %v41_v17 = vadd.f32 %v37_v6, %v33_v10  ;;  %v42_v19 = vadd.f32 %v38_v11, %v34_v14  ;;  %v43_v20 = vadd.f32 %v39_v12, %v35_v15  ;;  %v44_v22 = vadd.f32 %v40_v16, %v36_v18 }
   0x9   :  { %v45_v21 = vmax.f32 %v41_v17, 0.0  ;;  %v46_v23 = vmax.f32 %v42_v19, 0.0  ;;  %v47_v24 = vmax.f32 %v43_v20, 0.0  ;;  %v48_v25 = vmax.f32 %v44_v22, 0.0 }
   0xb   :  { %49 = vst [vmem:[%s130_s4] sm:$0xff] %v45_v21 }
   0xc   :  { %50 = vst [vmem:[%s130_s4 + $0x8] sm:$0xff] %v46_v23 }
   0xd   :  { %51 = vst [vmem:[%s130_s4 + $0x10] sm:$0xff] %v47_v24 }
   0xe   :  { %52 = vst [vmem:[%s130_s4 + $0x18] sm:$0xff] %v48_v25 }

// kernel: resnet_forward.63
= control target key start
LH: loop header
LB: loop body
LE: loop exit
PB: predicated region body
PF: predicated region fallthrough
CT: control target
= control target key end

     0   :  { %vm215_vm0 = vcmask 1040384   ;;  %vm221_vm1 = vcmask 1041408   ;;  %s488_s1 = inlined_call_operand.vmem [shape: bf16[128,256], index: 1, kind: input, shape index: {}]   ;;  %s489_s0 = inlined_call_operand.vmem [shape: bf16[32,128], index: 0, kind: input, shape index: {}]   ;;  %s490_s2 = inlined_call_operand.vmem [shape: f32[32,256], index: 2, kind: output, shape index: {0}]   ;;  %s491_s3 = inlined_call_operand.vmem [shape: f32[1,2,256], index: 3, kind: output, shape index: {1}]  }
   0x1   :  { %v299_v0 = vld [vmem:[%s488_s1 + $0x70] sm:$0xf]  ;;  %v322_v1 = vld [vmem:[%s488_s1 + $0x74] sm:$0xf0]  ;;  %v321_v2 = vld [vmem:[%s488_s1 + $0x74] sm:$0xf] }
   0x2   :  { %v300_v3 = vor.u32 %v322_v1, %v299_v0  ;;  %v301_v4 = vld [vmem:[%s488_s1 + $0x78] sm:$0xf0]  ;;  %v291_v5 = vld [vmem:[%s488_s1 + $0x60] sm:$0xf]  ;;  %v320_v6 = vld [vmem:[%s488_s1 + $0x64] sm:$0xf0] }
   0x3   :  { %v304_v7 = vor.u32 %v321_v2, %v301_v4  ;;  %v319_v8 = vld [vmem:[%s488_s1 + $0x64] sm:$0xf]  ;;  %v293_v9 = vld [vmem:[%s488_s1 + $0x68] sm:$0xf0]  ;;  %v292_v10 = vor.u32 %v320_v6, %v291_v5  ;;  %v283_v12 = vld [vmem:[%s488_s1 + $0x50] sm:$0xf] }
   0x4   :  { %125 = vmatpush.bf16.msra.mxu0 %v300_v3  ;;  %323 = vmatpush.bf16.msra.mxu2 %v300_v3  ;;  %v296_v11 = vor.u32 %v319_v8, %v293_v9  ;;  %v318_v13 = vld [vmem:[%s488_s1 + $0x54] sm:$0xf0]  ;;  %v317_v14 = vld [vmem:[%s488_s1 + $0x54] sm:$0xf]  ;;  %v285_v15 = vld [vmem:[%s488_s1 + $0x58] sm:$0xf0] }
   0x5   :  { %144 = vmatpush.bf16.msra.mxu1 %v304_v7  ;;  %331 = vmatpush.bf16.msra.mxu3 %v304_v7  ;;  %v284_v16 = vor.u32 %v318_v13, %v283_v12  ;;  %v288_v17 = vor.u32 %v317_v14, %v285_v15  ;;  %v275_v18 = vld [vmem:[%s488_s1 + $0x40] sm:$0xf]  ;;  %v316_v19 = vld [vmem:[%s488_s1 + $0x44] sm:$0xf0]  ;;  %v315_v20 = vld [vmem:[%s488_s1 + $0x44] sm:$0xf] }
   0x6   :  { %v277_v21 = vld [vmem:[%s488_s1 + $0x48] sm:$0xf0]  ;;  %v276_v22 = vor.u32 %v316_v19, %v275_v18  ;;  %v267_v24 = vld [vmem:[%s488_s1 + $0x30] sm:$0xf]  ;;  %v314_v25 = vld [vmem:[%s488_s1 + $0x34] sm:$0xf0] }
   0x7   :  { %v280_v23 = vor.u32 %v315_v20, %v277_v21  ;;  %v313_v26 = vld [vmem:[%s488_s1 + $0x34] sm:$0xf]  ;;  %v269_v27 = vld [vmem:[%s488_s1 + $0x38] sm:$0xf0]  ;;  %v268_v28 = vor.u32 %v314_v25, %v267_v24  ;;  %v259_v30 = vld [vmem:[%s488_s1 + $0x20] sm:$0xf] }
   0x8   :  { %126 = vmatpush.bf16.msra.mxu0 %v292_v10  ;;  %324 = vmatpush.bf16.msra.mxu2 %v292_v10  ;;  %v272_v29 = vor.u32 %v313_v26, %v269_v27  ;;  %v312_v31 = vld [vmem:[%s488_s1 + $0x24] sm:$0xf0]  ;;  %v311_v32 = vld [vmem:[%s488_s1 + $0x24] sm:$0xf]  ;;  %v261_v33 = vld [vmem:[%s488_s1 + $0x28] sm:$0xf0] }
   0x9   :  { %145 = vmatpush.bf16.msra.mxu1 %v296_v11  ;;  %332 = vmatpush.bf16.msra.mxu3 %v296_v11  ;;  %v260_v34 = vor.u32 %v312_v31, %v259_v30  ;;  %v264_v35 = vor.u32 %v311_v32, %v261_v33  ;;  %v251_v36 = vld [vmem:[%s488_s1 + $0x10] sm:$0xf]  ;;  %v310_v37 = vld [vmem:[%s488_s1 + $0x14] sm:$0xf0]  ;;  %v309_v38 = vld [vmem:[%s488_s1 + $0x14] sm:$0xf] }
   0xa   :  { %v253_v39 = vld [vmem:[%s488_s1 + $0x18] sm:$0xf0]  ;;  %v252_v40 = vor.u32 %v310_v37, %v251_v36  ;;  %v243_v42 = vld [vmem:[%s488_s1] sm:$0xf]  ;;  %v308_v43 = vld [vmem:[%s488_s1 + $0x4] sm:$0xf0] }
   0xb   :  { %v256_v41 = vor.u32 %v309_v38, %v253_v39  ;;  %v307_v44 = vld [vmem:[%s488_s1 + $0x4] sm:$0xf]  ;;  %v245_v45 = vld [vmem:[%s488_s1 + $0x8] sm:$0xf0]  ;;  %v244_v46 = vor.u32 %v308_v43, %v243_v42 }
   0xc   :  { %127 = vmatpush.bf16.msra.mxu0 %v284_v16  ;;  %325 = vmatpush.bf16.msra.mxu2 %v284_v16  ;;  %v248_v47 = vor.u32 %v307_v44, %v245_v45  ;;  %v305_v48 = vld [vmem:[%s489_s0] sm:$0xff]  ;;  %v306_v49 = vld [vmem:[%s489_s0 + $0x8] sm:$0xff] }
   0xd   :  { %146 = vmatpush.bf16.msra.mxu1 %v288_v17  ;;  %333 = vmatpush.bf16.msra.mxu3 %v288_v17 }
  0x10   :  { %128 = vmatpush.bf16.msra.mxu0 %v276_v22  ;;  %326 = vmatpush.bf16.msra.mxu2 %v276_v22 }
  0x11   :  { %147 = vmatpush.bf16.msra.mxu1 %v280_v23  ;;  %334 = vmatpush.bf16.msra.mxu3 %v280_v23 }
  0x14   :  { %129 = vmatpush.bf16.msra.mxu0 %v268_v28  ;;  %327 = vmatpush.bf16.msra.mxu2 %v268_v28 }
  0x15   :  { %148 = vmatpush.bf16.msra.mxu1 %v272_v29  ;;  %335 = vmatpush.bf16.msra.mxu3 %v272_v29 }
  0x18   :  { %130 = vmatpush.bf16.msra.mxu0 %v260_v34  ;;  %328 = vmatpush.bf16.msra.mxu2 %v260_v34 }
  0x19   :  { %149 = vmatpush.bf16.msra.mxu1 %v264_v35  ;;  %336 = vmatpush.bf16.msra.mxu3 %v264_v35 }
  0x1c   :  { %131 = vmatpush.bf16.msra.mxu0 %v252_v40  ;;  %329 = vmatpush.bf16.msra.mxu2 %v252_v40 }
  0x1d   :  { %150 = vmatpush.bf16.msra.mxu1 %v256_v41  ;;  %337 = vmatpush.bf16.msra.mxu3 %v256_v41 }
  0x20   :  { %132 = vmatpush.bf16.msra.mxu0 %v244_v46  ;;  %330 = vmatpush.bf16.msra.mxu2 %v244_v46 }
  0x21   :  { %151 = vmatpush.bf16.msra.mxu1 %v248_v47  ;;  %338 = vmatpush.bf16.msra.mxu3 %v248_v47 }
  0x23   :  { %133 = vmatmul.bf16.vlgmr.msra.gmra.mxu0 %v305_v48  ;;  %138 = vmatmul.bf16.vlgmr.msra.gmra.mxu2 %v306_v49 }
  0x24   :  { %152 = vmatmul.bf16.vlgmr.msra.gmra.mxu1 %v305_v48  ;;  %157 = vmatmul.bf16.vlgmr.msra.gmra.mxu3 %v306_v49 }
  0xa0   :  { %v134_v50 = vpop.f32.mrf.mxu0 }
  0xa1   :  { %163 = vst [vmem:[%s490_s2] sm:$0xff] %v134_v50  ;;  %v153_v51 = vpop.f32.mrf.mxu1  ;;  %v189_v55 = vmul.f32 %v134_v50, %v134_v50 }
  0xa2   :  { %164 = vst [vmem:[%s490_s2 + $0x8] sm:$0xff] %v153_v51  ;;  %v190_v59 = vmul.f32 %v153_v51, %v153_v51 }
  0xa6   :  { %v139_v52 = vpop.f32.mrf.mxu2 }
  0xa7   :  { %167 = vst [vmem:[%s490_s2 + $0x20] sm:$0xff] %v139_v52  ;;  %v158_v53 = vpop.f32.mrf.mxu3  ;;  %v193_v0 = vmul.f32 %v139_v52, %v139_v52 }
  0xa8   :  { %168 = vst [vmem:[%s490_s2 + $0x28] sm:$0xff] %v158_v53  ;;  %v136_v54 = vpop.f32.mrf.mxu0  ;;  %v194_v2 = vmul.f32 %v158_v53, %v158_v53 }
  0xa9   :  { %165 = vst [vmem:[%s490_s2 + $0x10] sm:$0xff] %v136_v54  ;;  %v171_v56 = vadd.f32 %v136_v54, %v134_v50  ;;  %v191_v57 = vmul.f32 %v136_v54, %v136_v54  ;;  %v155_v58 = vpop.f32.mrf.mxu1 }
  0xaa   :  { %166 = vst [vmem:[%s490_s2 + $0x18] sm:$0xff] %v155_v58  ;;  %v180_v60 = vadd.f32 %v155_v58, %v153_v51  ;;  %v192_v61 = vmul.f32 %v155_v58, %v155_v58 }
  0xab   :  { %v197_v62 = vadd.f32 %v191_v57, %v189_v55  ;;  %v172_v1 = vadd.f32 %v171_v56, %v139_v52 }
  0xac   :  { %v206_v63 = vadd.f32 %v192_v61, %v190_v59  ;;  %v181_v4 = vadd.f32 %v180_v60, %v158_v53 }
  0xad   :  { %v198_v7 = vadd.f32 %v197_v62, %v193_v0 }
  0xae   :  { %v141_v3 = vpop.f32.mrf.mxu2  ;;  %v207_v11 = vadd.f32 %v206_v63, %v194_v2 }
  0xaf   :  { %169 = vst [vmem:[%s490_s2 + $0x30] sm:$0xff] %v141_v3  ;;  %v173_v5 = vadd.f32 %v172_v1, %v141_v3  ;;  %v195_v6 = vmul.f32 %v141_v3, %v141_v3  ;;  %v160_v8 = vpop.f32.mrf.mxu3 }
  0xb0   :  { %170 = vst [vmem:[%s490_s2 + $0x38] sm:$0xff] %v160_v8  ;;  %v182_v9 = vadd.f32 %v181_v4, %v160_v8  ;;  %v196_v10 = vmul.f32 %v160_v8, %v160_v8 }
  0xb1   :  { %v174_v12 = vrot.slane %v173_v5, 4  ;;  %v199_v13 = vadd.f32 %v198_v7, %v195_v6 }
  0xb2   :  { %v183_v14 = vrot.slane %v182_v9, 4  ;;  %v208_v15 = vadd.f32 %v207_v11, %v196_v10 }
  0xb3   :  { %v175_v16 = vadd.f32 %v174_v12, %v173_v5  ;;  %v200_v17 = vrot.slane %v199_v13, 4 }
  0xb4   :  { %v184_v18 = vadd.f32 %v183_v14, %v182_v9  ;;  %v209_v19 = vrot.slane %v208_v15, 4 }
  0xb5   :  { %v176_v20 = vrot.slane %v175_v16, 2  ;;  %v201_v21 = vadd.f32 %v200_v17, %v199_v13 }
  0xb6   :  { %v185_v22 = vrot.slane %v184_v18, 2  ;;  %v210_v23 = vadd.f32 %v209_v19, %v208_v15 }
  0xb7   :  { %v202_v24 = vrot.slane %v201_v21, 2  ;;  %v177_v25 = vadd.f32 %v176_v20, %v175_v16 }
  0xb8   :  { %v186_v26 = vadd.f32 %v185_v22, %v184_v18  ;;  %v211_v27 = vrot.slane %v210_v23, 2 }
  0xb9   :  { %v203_v28 = vadd.f32 %v202_v24, %v201_v21  ;;  %v178_v32 = vrot.slane %v177_v25, 1 }
  0xba   :  { %v187_v29 = vrot.slane %v186_v26, 1  ;;  %v212_v30 = vadd.f32 %v211_v27, %v210_v23 }
  0xbb   :  { %v204_v31 = vrot.slane %v203_v28, 1  ;;  %v179_v37 = vadd.f32 %v178_v32, %v177_v25 }
  0xbc   :  { %v213_v33 = vrot.slane %v212_v30, 1  ;;  %v188_v35 = vadd.f32 %v187_v29, %v186_v26 }
  0xbd   :  { %v205_v34 = vadd.f32 %v204_v31, %v203_v28 }
  0xbe   :  { %v214_v36 = vadd.f32 %v213_v33, %v212_v30 }
  0xbf   :  { %v216_v40 = vsel %vm215_vm0, %v179_v37, %v205_v34 }
  0xc0   :  { %v217_v38 = vsel %vm215_vm0, %v188_v35, %v214_v36 }
  0xc1   :  { %v220_v39 = vrot.slane %v217_v38, 6 }
  0xc3   :  { %v222_v41 = vsel %vm221_vm1, %v216_v40, %v220_v39 }
  0xc4   :  { %224 = vst [vmem:[%s491_s3] sm:$0xf] %v222_v41 }

// kernel: resnet_forward.50
= control target key start
LH: loop header
LB: loop body
LE: loop exit
PB: predicated region body
PF: predicated region fallthrough
CT: control target
= control target key end

     0   :  { %vm518_vm0 = vcmask 1040384   ;;  %s1002_s1 = inlined_call_operand.vmem [shape: bf16[640,128], index: 1, kind: input, shape index: {}]   ;;  %s1003_s0 = inlined_call_operand.vmem [shape: bf16[32,640], index: 0, kind: input, shape index: {}]   ;;  %s1004_s2 = inlined_call_operand.vmem [shape: f32[32,128], index: 2, kind: output, shape index: {0}]   ;;  %s1005_s3 = inlined_call_operand.vmem [shape: f32[1,2,128], index: 3, kind: output, shape index: {1}]  }
   0x1   :  { %v746_v0 = vld [vmem:[%s1002_s1 + $0x38] sm:$0xff]  ;;  %v745_v4 = vld [vmem:[%s1002_s1 + $0x30] sm:$0xff]  ;;  %v744_v8 = vld [vmem:[%s1002_s1 + $0x28] sm:$0xff] }
   0x2   :  { %v754_v1 = vld [vmem:[%s1002_s1 + $0x78] sm:$0xff]  ;;  %397 = vmatpush.bf16.msra.mxu0 %v746_v0  ;;  %v753_v5 = vld [vmem:[%s1002_s1 + $0x70] sm:$0xff]  ;;  %v752_v9 = vld [vmem:[%s1002_s1 + $0x68] sm:$0xff] }
   0x3   :  { %v762_v2 = vld [vmem:[%s1002_s1 + $0xb8] sm:$0xff]  ;;  %416 = vmatpush.bf16.msra.mxu1 %v754_v1  ;;  %v761_v6 = vld [vmem:[%s1002_s1 + $0xb0] sm:$0xff]  ;;  %v760_v10 = vld [vmem:[%s1002_s1 + $0xa8] sm:$0xff] }
   0x4   :  { %v770_v3 = vld [vmem:[%s1002_s1 + $0xf8] sm:$0xff]  ;;  %435 = vmatpush.bf16.msra.mxu2 %v762_v2  ;;  %v769_v7 = vld [vmem:[%s1002_s1 + $0xf0] sm:$0xff]  ;;  %v768_v11 = vld [vmem:[%s1002_s1 + $0xe8] sm:$0xff] }
   0x5   :  { %454 = vmatpush.bf16.msra.mxu3 %v770_v3  ;;  %v743_v12 = vld [vmem:[%s1002_s1 + $0x20] sm:$0xff]  ;;  %v742_v16 = vld [vmem:[%s1002_s1 + $0x18] sm:$0xff]  ;;  %v741_v20 = vld [vmem:[%s1002_s1 + $0x10] sm:$0xff] }
   0x6   :  { %398 = vmatpush.bf16.msra.mxu0 %v745_v4  ;;  %v751_v13 = vld [vmem:[%s1002_s1 + $0x60] sm:$0xff]  ;;  %v750_v17 = vld [vmem:[%s1002_s1 + $0x58] sm:$0xff]  ;;  %v749_v21 = vld [vmem:[%s1002_s1 + $0x50] sm:$0xff] }
   0x7   :  { %417 = vmatpush.bf16.msra.mxu1 %v753_v5  ;;  %v759_v14 = vld [vmem:[%s1002_s1 + $0xa0] sm:$0xff]  ;;  %v758_v18 = vld [vmem:[%s1002_s1 + $0x98] sm:$0xff]  ;;  %v757_v22 = vld [vmem:[%s1002_s1 + $0x90] sm:$0xff] }
   0x8   :  { %436 = vmatpush.bf16.msra.mxu2 %v761_v6  ;;  %v767_v15 = vld [vmem:[%s1002_s1 + $0xe0] sm:$0xff]  ;;  %v766_v19 = vld [vmem:[%s1002_s1 + $0xd8] sm:$0xff]  ;;  %v765_v23 = vld [vmem:[%s1002_s1 + $0xd0] sm:$0xff] }
   0x9   :  { %455 = vmatpush.bf16.msra.mxu3 %v769_v7  ;;  %v740_v24 = vld [vmem:[%s1002_s1 + $0x8] sm:$0xff]  ;;  %v739_v28 = vld [vmem:[%s1002_s1] sm:$0xff]  ;;  %v731_v33 = vld [vmem:[%s1003_s0 + $0x10] sm:$0xf0] }
   0xa   :  { %399 = vmatpush.bf16.msra.mxu0 %v744_v8  ;;  %v748_v25 = vld [vmem:[%s1002_s1 + $0x48] sm:$0xff]  ;;  %v747_v29 = vld [vmem:[%s1002_s1 + $0x40] sm:$0xff]  ;;  %v533_v35 = vld [vmem:[%s1003_s0 + $0x14] sm:$0xf0] }
   0xb   :  { %418 = vmatpush.bf16.msra.mxu1 %v752_v9  ;;  %v756_v26 = vld [vmem:[%s1002_s1 + $0x88] sm:$0xff]  ;;  %v755_v30 = vld [vmem:[%s1002_s1 + $0x80] sm:$0xff]  ;;  %v732_v37 = vld [vmem:[%s1003_s0 + $0x18] sm:$0xf0] }
   0xc   :  { %437 = vmatpush.bf16.msra.mxu2 %v760_v10  ;;  %v764_v27 = vld [vmem:[%s1002_s1 + $0xc8] sm:$0xff]  ;;  %v763_v31 = vld [vmem:[%s1002_s1 + $0xc0] sm:$0xff]  ;;  %v778_v40 = vld [vmem:[%s1002_s1 + $0x138] sm:$0xff] }
   0xd   :  { %456 = vmatpush.bf16.msra.mxu3 %v768_v11  ;;  %v531_v32 = vld [vmem:[%s1003_s0] sm:$0xf]  ;;  %v729_v34 = vld [vmem:[%s1003_s0 + $0x4] sm:$0xf]  ;;  %v539_v36 = vld [vmem:[%s1003_s0 + $0x8] sm:$0xf] }
   0xe   :  { %400 = vmatpush.bf16.msra.mxu0 %v743_v12  ;;  %v730_v38 = vld [vmem:[%s1003_s0 + $0xc] sm:$0xf]  ;;  %v541_v39 = vld [vmem:[%s1003_s0 + $0x1c] sm:$0xf0]  ;;  %v532_v41 = vor.u32 %v731_v33, %v531_v32  ;;  %v536_v42 = vor.u32 %v729_v34, %v533_v35  ;;  %v540_v43 = vor.u32 %v732_v37, %v539_v36  ;;  %v777_v45 = vld [vmem:[%s1002_s1 + $0x130] sm:$0xff] }
   0xf   :  { %419 = vmatpush.bf16.msra.mxu1 %v751_v13  ;;  %v544_v44 = vor.u32 %v730_v38, %v541_v39  ;;  %v776_v46 = vld [vmem:[%s1002_s1 + $0x128] sm:$0xff]  ;;  %v775_v47 = vld [vmem:[%s1002_s1 + $0x120] sm:$0xff]  ;;  %v736_v49 = vld [vmem:[%s1003_s0 + $0x38] sm:$0xf0] }
  0x10   :  { %438 = vmatpush.bf16.msra.mxu2 %v759_v14  ;;  %v551_v48 = vld [vmem:[%s1003_s0 + $0x28] sm:$0xf]  ;;  %v734_v50 = vld [vmem:[%s1003_s0 + $0x2c] sm:$0xf]  ;;  %v553_v51 = vld [vmem:[%s1003_s0 + $0x3c] sm:$0xf0] }
  0x11   :  { %457 = vmatpush.bf16.msra.mxu3 %v767_v15  ;;  %v559_v52 = vld [vmem:[%s1003_s0 + $0x30] sm:$0xf]  ;;  %v737_v53 = vld [vmem:[%s1003_s0 + $0x40] sm:$0xf0]  ;;  %v735_v54 = vld [vmem:[%s1003_s0 + $0x34] sm:$0xf]  ;;  %v552_v57 = vor.u32 %v736_v49, %v551_v48  ;;  %v556_v58 = vor.u32 %v734_v50, %v553_v51 }
  0x12   :  { %401 = vmatpush.bf16.msra.mxu0 %v742_v16  ;;  %v561_v55 = vld [vmem:[%s1003_s0 + $0x44] sm:$0xf0]  ;;  %v774_v56 = vld [vmem:[%s1002_s1 + $0x118] sm:$0xff]  ;;  %v560_v59 = vor.u32 %v737_v53, %v559_v52  ;;  %v773_v61 = vld [vmem:[%s1002_s1 + $0x110] sm:$0xff] }
  0x13   :  { %420 = vmatpush.bf16.msra.mxu1 %v750_v17  ;;  %v564_v60 = vor.u32 %v735_v54, %v561_v55  ;;  %v772_v62 = vld [vmem:[%s1002_s1 + $0x108] sm:$0xff]  ;;  %v771_v63 = vld [vmem:[%s1002_s1 + $0x100] sm:$0xff]  ;;  %v547_v0 = vld [vmem:[%s1003_s0 + $0x10] sm:$0xf] }
  0x14   :  { %439 = vmatpush.bf16.msra.mxu2 %v758_v18  ;;  %v733_v1 = vld [vmem:[%s1003_s0 + $0x20] sm:$0xf0]  ;;  %v567_v2 = vld [vmem:[%s1003_s0 + $0x38] sm:$0xf]  ;;  %v738_v3 = vld [vmem:[%s1003_s0 + $0x48] sm:$0xf0] }
  0x15   :  { %458 = vmatpush.bf16.msra.mxu3 %v766_v19  ;;  %v548_v4 = vor.u32 %v733_v1, %v547_v0  ;;  %v568_v5 = vor.u32 %v738_v3, %v567_v2 }
  0x16   :  { %402 = vmatpush.bf16.msra.mxu0 %v741_v20 }
  0x17   :  { %421 = vmatpush.bf16.msra.mxu1 %v749_v21 }
  0x18   :  { %440 = vmatpush.bf16.msra.mxu2 %v757_v22 }
  0x19   :  { %459 = vmatpush.bf16.msra.mxu3 %v765_v23 }
  0x1a   :  { %403 = vmatpush.bf16.msra.mxu0 %v740_v24 }
  0x1b   :  { %422 = vmatpush.bf16.msra.mxu1 %v748_v25 }
  0x1c   :  { %441 = vmatpush.bf16.msra.mxu2 %v756_v26 }
  0x1d   :  { %460 = vmatpush.bf16.msra.mxu3 %v764_v27 }
  0x1e   :  { %404 = vmatpush.bf16.msra.mxu0 %v739_v28 }
  0x1f   :  { %423 = vmatpush.bf16.msra.mxu1 %v747_v29 }
  0x20   :  { %442 = vmatpush.bf16.msra.mxu2 %v755_v30 }
  0x21   :  { %461 = vmatpush.bf16.msra.mxu3 %v763_v31  ;;  %405 = vmatmul.bf16.vlgmr.msra.gmra.mxu0 %v532_v41 }
  0x22   :  { %473 = vmatpush.bf16.msrb.mxu0 %v778_v40  ;;  %424 = vmatmul.bf16.vlgmr.msra.gmra.mxu1 %v536_v42 }
  0x23   :  { %779 = vmatpush.bf16.msrb.mxu1 %v778_v40  ;;  %443 = vmatmul.bf16.vlgmr.msra.gmra.mxu2 %v540_v43 }
  0x24   :  { %462 = vmatmul.bf16.vlgmr.msra.gmra.mxu3 %v544_v44 }
  0x26   :  { %474 = vmatpush.bf16.msrb.mxu0 %v777_v45 }
  0x27   :  { %780 = vmatpush.bf16.msrb.mxu1 %v777_v45 }
  0x2a   :  { %475 = vmatpush.bf16.msrb.mxu0 %v776_v46 }
  0x2b   :  { %781 = vmatpush.bf16.msrb.mxu1 %v776_v46 }
  0x2e   :  { %476 = vmatpush.bf16.msrb.mxu0 %v775_v47 }
  0x2f   :  { %782 = vmatpush.bf16.msrb.mxu1 %v775_v47 }
  0x31   :  { %410 = vmatmul.bf16.gmra.mxu0 %v552_v57 }
  0x32   :  { %477 = vmatpush.bf16.msrb.mxu0 %v774_v56  ;;  %429 = vmatmul.bf16.gmra.mxu1 %v556_v58 }
  0x33   :  { %783 = vmatpush.bf16.msrb.mxu1 %v774_v56  ;;  %448 = vmatmul.bf16.gmra.mxu2 %v560_v59 }
  0x34   :  { %467 = vmatmul.bf16.gmra.mxu3 %v564_v60 }
  0x36   :  { %478 = vmatpush.bf16.msrb.mxu0 %v773_v61 }
  0x37   :  { %784 = vmatpush.bf16.msrb.mxu1 %v773_v61 }
  0x3a   :  { %479 = vmatpush.bf16.msrb.mxu0 %v772_v62 }
  0x3b   :  { %785 = vmatpush.bf16.msrb.mxu1 %v772_v62 }
  0x3e   :  { %480 = vmatpush.bf16.msrb.mxu0 %v771_v63 }
  0x3f   :  { %786 = vmatpush.bf16.msrb.mxu1 %v771_v63 }
  0x41   :  { %481 = vmatmul.bf16.vlgmr.msrb.gmra.mxu0 %v548_v4 }
  0x42   :  { %486 = vmatmul.bf16.vlgmr.msrb.gmra.mxu1 %v568_v5 }
  0x9e   :  { %v406_v6 = vpop.f32.mrf.mxu0 }
  0x9f   :  { %v425_v7 = vpop.f32.mrf.mxu1 }
  0xa0   :  { %v426_v19 = vadd.f32 %v425_v7, %v406_v6 }
  0xa6   :  { %v444_v8 = vpop.f32.mrf.mxu2  ;;  %v408_v10 = vpop.f32.mrf.mxu0 }
  0xa7   :  { %v463_v9 = vpop.f32.mrf.mxu3  ;;  %v427_v11 = vpop.f32.mrf.mxu1  ;;  %v445_v22 = vadd.f32 %v444_v8, %v426_v19 }
  0xa8   :  { %v428_v29 = vadd.f32 %v427_v11, %v408_v10 }
  0xa9   :  { %v464_v24 = vadd.f32 %v463_v9, %v445_v22 }
  0xae   :  { %v446_v12 = vpop.f32.mrf.mxu2  ;;  %v411_v14 = vpop.f32.mrf.mxu0 }
  0xaf   :  { %v465_v13 = vpop.f32.mrf.mxu3  ;;  %v430_v15 = vpop.f32.mrf.mxu1  ;;  %v447_v33 = vadd.f32 %v446_v12, %v428_v29 }
  0xb0   :  { %v431_v20 = vadd.f32 %v430_v15, %v411_v14 }
  0xb1   :  { %v466_v36 = vadd.f32 %v465_v13, %v447_v33 }
  0xb6   :  { %v449_v16 = vpop.f32.mrf.mxu2  ;;  %v413_v17 = vpop.f32.mrf.mxu0 }
  0xb7   :  { %v432_v18 = vpop.f32.mrf.mxu1  ;;  %v468_v21 = vpop.f32.mrf.mxu3  ;;  %v450_v23 = vadd.f32 %v449_v16, %v431_v20 }
  0xb8   :  { %v433_v30 = vadd.f32 %v432_v18, %v413_v17 }
  0xb9   :  { %v469_v25 = vadd.f32 %v468_v21, %v450_v23 }
  0xbe   :  { %v451_v26 = vpop.f32.mrf.mxu2  ;;  %v482_v27 = vpop.f32.mrf.mxu0 }
  0xbf   :  { %v487_v28 = vpop.f32.mrf.mxu1  ;;  %v483_v31 = vadd.f32 %v482_v27, %v464_v24  ;;  %v452_v34 = vadd.f32 %v451_v26, %v433_v30  ;;  %v470_v35 = vpop.f32.mrf.mxu3 }
  0xc0   :  { %v488_v32 = vadd.f32 %v487_v28, %v469_v25 }
  0xc1   :  { %492 = vst [vmem:[%s1004_s2] sm:$0xff] %v483_v31  ;;  %v471_v37 = vadd.f32 %v470_v35, %v452_v34  ;;  %v505_v42 = vmul.f32 %v483_v31, %v483_v31 }
  0xc2   :  { %494 = vst [vmem:[%s1004_s2 + $0x10] sm:$0xff] %v488_v32  ;;  %v507_v45 = vmul.f32 %v488_v32, %v488_v32 }
  0xc6   :  { %v484_v38 = vpop.f32.mrf.mxu0 }
  0xc7   :  { %v489_v39 = vpop.f32.mrf.mxu1  ;;  %v485_v40 = vadd.f32 %v484_v38, %v466_v36 }
  0xc8   :  { %v490_v41 = vadd.f32 %v489_v39, %v471_v37 }
  0xc9   :  { %493 = vst [vmem:[%s1004_s2 + $0x8] sm:$0xff] %v485_v40  ;;  %v496_v43 = vadd.f32 %v485_v40, %v483_v31  ;;  %v506_v44 = vmul.f32 %v485_v40, %v485_v40 }
  0xca   :  { %495 = vst [vmem:[%s1004_s2 + $0x18] sm:$0xff] %v490_v41  ;;  %v508_v49 = vmul.f32 %v490_v41, %v490_v41 }
  0xcb   :  { %v509_v46 = vadd.f32 %v506_v44, %v505_v42  ;;  %v497_v47 = vadd.f32 %v496_v43, %v488_v32 }
  0xcd   :  { %v498_v48 = vadd.f32 %v497_v47, %v490_v41  ;;  %v510_v50 = vadd.f32 %v509_v46, %v507_v45 }
  0xcf   :  { %v499_v51 = vrot.slane %v498_v48, 4  ;;  %v511_v52 = vadd.f32 %v510_v50, %v508_v49 }
  0xd1   :  { %v500_v53 = vadd.f32 %v499_v51, %v498_v48  ;;  %v512_v54 = vrot.slane %v511_v52, 4 }
  0xd3   :  { %v501_v55 = vrot.slane %v500_v53, 2  ;;  %v513_v56 = vadd.f32 %v512_v54, %v511_v52 }
  0xd5   :  { %v502_v57 = vadd.f32 %v501_v55, %v500_v53  ;;  %v514_v58 = vrot.slane %v513_v56, 2 }
  0xd7   :  { %v503_v59 = vrot.slane %v502_v57, 1  ;;  %v515_v60 = vadd.f32 %v514_v58, %v513_v56 }
  0xd9   :  { %v516_v61 = vrot.slane %v515_v60, 1  ;;  %v504_v62 = vadd.f32 %v503_v59, %v502_v57 }
  0xdb   :  { %v517_v63 = vadd.f32 %v516_v61, %v515_v60 }
  0xdd   :  { %v519_v0 = vsel %vm518_vm0, %v504_v62, %v517_v63 }
  0xde   :  { %520 = vst [vmem:[%s1005_s3] sm:$0x3] %v519_v0 }

// kernel: resnet_forward.61
= control target key start
LH: loop header
LB: loop body
LE: loop exit
PB: predicated region body
PF: predicated region fallthrough
CT: control target
= control target key end

     0   :  { %s132_s0 = inlined_call_operand.vmem [shape: f32[32,256], index: 0, kind: input, shape index: {}]   ;;  %s133_s1 = inlined_call_operand.vmem [shape: f32[1,256], index: 1, kind: input, shape index: {}]   ;;  %s134_s2 = inlined_call_operand.vmem [shape: f32[1,256], index: 2, kind: input, shape index: {}]   ;;  %s135_s3 = inlined_call_operand.vmem [shape: bf16[32,256], index: 3, kind: output, shape index: {}]  }
   0x1   :  { %v14_v0 = vld [vmem:[%s132_s0] sm:$0xff]  ;;  %v15_v1 = vld [vmem:[%s132_s0 + $0x8] sm:$0xff]  ;;  %v16_v6 = vld [vmem:[%s132_s0 + $0x10] sm:$0xff] }
   0x2   :  { %v22_v2 = vld [vmem:[%s133_s1] sm:$0x3]  ;;  %v17_v7 = vld [vmem:[%s132_s0 + $0x18] sm:$0xff]  ;;  %v19_v11 = vld [vmem:[%s132_s0 + $0x28] sm:$0xff] }
   0x3   :  { %v24_v3 = vperm.slane %v22_v2, 0  ;;  %v25_v4 = vperm.slane %v22_v2, 1  ;;  %v36_v5 = vld [vmem:[%s134_s2] sm:$0x3]  ;;  %v20_v12 = vld [vmem:[%s132_s0 + $0x30] sm:$0xff]  ;;  %v21_v17 = vld [vmem:[%s132_s0 + $0x38] sm:$0xff] }
   0x4   :  { %v38_v8 = vperm.slane %v36_v5, 0  ;;  %v39_v9 = vperm.slane %v36_v5, 1  ;;  %v18_v10 = vld [vmem:[%s132_s0 + $0x20] sm:$0xff] }
   0x5   :  { %v28_v13 = vmul.f32 %v24_v3, %v14_v0  ;;  %v29_v14 = vmul.f32 %v25_v4, %v15_v1  ;;  %v30_v15 = vmul.f32 %v24_v3, %v16_v6  ;;  %v31_v16 = vmul.f32 %v25_v4, %v17_v7 }
   0x6   :  { %v32_v18 = vmul.f32 %v24_v3, %v18_v10  ;;  %v33_v19 = vmul.f32 %v25_v4, %v19_v11  ;;  %v34_v20 = vmul.f32 %v24_v3, %v20_v12  ;;  %v35_v21 = vmul.f32 %v25_v4, %v21_v17 }
   0x7   :  { %v42_v22 = vadd.f32 %v38_v8, %v28_v13  ;;  %v43_v23 = vadd.f32 %v39_v9, %v29_v14  ;;  %v44_v24 = vadd.f32 %v38_v8, %v30_v15  ;;  %v45_v25 = vadd.f32 %v39_v9, %v31_v16 }
   0x8   :  { %v46_v26 = vadd.f32 %v38_v8, %v32_v18  ;;  %v47_v27 = vadd.f32 %v39_v9, %v33_v19  ;;  %v48_v28 = vadd.f32 %v38_v8, %v34_v20  ;;  %v49_v29 = vadd.f32 %v39_v9, %v35_v21 }
   0x9   :  { %v50_v30 = vmax.f32 %v42_v22, 0.0  ;;  %v51_v31 = vmax.f32 %v43_v23, 0.0  ;;  %v52_v32 = vmax.f32 %v44_v24, 0.0  ;;  %v53_v33 = vmax.f32 %v45_v25, 0.0 }
   0xa   :  { %v54_v34 = vmax.f32 %v46_v26, 0.0  ;;  %v55_v35 = vmax.f32 %v47_v27, 0.0  ;;  %v56_v36 = vmax.f32 %v48_v28, 0.0  ;;  %v57_v37 = vmax.f32 %v49_v29, 0.0 }
   0xb   :  { %v58_v38 = vpack.c.bf16 %v51_v31, %v50_v30  ;;  %v59_v39 = vpack.c.bf16 %v53_v33, %v52_v32 }
   0xc   :  { %v60_v40 = vpack.c.bf16 %v55_v35, %v54_v34  ;;  %v61_v41 = vpack.c.bf16 %v57_v37, %v56_v36 }
   0xd   :  { %62 = vst [vmem:[%s135_s3] sm:$0xff] %v58_v38 }
   0xe   :  { %63 = vst [vmem:[%s135_s3 + $0x8] sm:$0xff] %v59_v39 }
   0xf   :  { %64 = vst [vmem:[%s135_s3 + $0x10] sm:$0xff] %v60_v40 }
  0x10   :  { %65 = vst [vmem:[%s135_s3 + $0x18] sm:$0xff] %v61_v41 }

// kernel: resnet_forward.52
= control target key start
LH: loop header
LB: loop body
LE: loop exit
PB: predicated region body
PF: predicated region fallthrough
CT: control target
= control target key end

     0   :  { %vm898_vm0 = vcmask 1040384   ;;  %s1726_s1 = inlined_call_operand.vmem [shape: bf16[1152,128], index: 1, kind: input, shape index: {}]   ;;  %s1727_s0 = inlined_call_operand.vmem [shape: bf16[32,1152], index: 0, kind: input, shape index: {}]   ;;  %s1728_s2 = inlined_call_operand.vmem [shape: f32[32,128], index: 2, kind: output, shape index: {0}]   ;;  %s1729_s3 = inlined_call_operand.vmem [shape: f32[1,2,128], index: 3, kind: output, shape index: {1}]  }
   0x1   :  { %v1294_v0 = vld [vmem:[%s1726_s1 + $0x38] sm:$0xff]  ;;  %v1293_v4 = vld [vmem:[%s1726_s1 + $0x30] sm:$0xff]  ;;  %v1292_v8 = vld [vmem:[%s1726_s1 + $0x28] sm:$0xff] }
   0x2   :  { %v1302_v1 = vld [vmem:[%s1726_s1 + $0x78] sm:$0xff]  ;;  %701 = vmatpush.bf16.msra.mxu0 %v1294_v0  ;;  %v1301_v5 = vld [vmem:[%s1726_s1 + $0x70] sm:$0xff]  ;;  %v1300_v9 = vld [vmem:[%s1726_s1 + $0x68] sm:$0xff] }
   0x3   :  { %v1310_v2 = vld [vmem:[%s1726_s1 + $0xb8] sm:$0xff]  ;;  %720 = vmatpush.bf16.msra.mxu1 %v1302_v1  ;;  %v1309_v6 = vld [vmem:[%s1726_s1 + $0xb0] sm:$0xff]  ;;  %v1308_v10 = vld [vmem:[%s1726_s1 + $0xa8] sm:$0xff] }
   0x4   :  { %v1318_v3 = vld [vmem:[%s1726_s1 + $0xf8] sm:$0xff]  ;;  %739 = vmatpush.bf16.msra.mxu2 %v1310_v2  ;;  %v1317_v7 = vld [vmem:[%s1726_s1 + $0xf0] sm:$0xff]  ;;  %v1316_v11 = vld [vmem:[%s1726_s1 + $0xe8] sm:$0xff] }
   0x5   :  { %758 = vmatpush.bf16.msra.mxu3 %v1318_v3  ;;  %v1291_v12 = vld [vmem:[%s1726_s1 + $0x20] sm:$0xff]  ;;  %v1290_v16 = vld [vmem:[%s1726_s1 + $0x18] sm:$0xff]  ;;  %v1289_v20 = vld [vmem:[%s1726_s1 + $0x10] sm:$0xff] }
   0x6   :  { %702 = vmatpush.bf16.msra.mxu0 %v1293_v4  ;;  %v1299_v13 = vld [vmem:[%s1726_s1 + $0x60] sm:$0xff]  ;;  %v1298_v17 = vld [vmem:[%s1726_s1 + $0x58] sm:$0xff]  ;;  %v1297_v21 = vld [vmem:[%s1726_s1 + $0x50] sm:$0xff] }
   0x7   :  { %721 = vmatpush.bf16.msra.mxu1 %v1301_v5  ;;  %v1307_v14 = vld [vmem:[%s1726_s1 + $0xa0] sm:$0xff]  ;;  %v1306_v18 = vld [vmem:[%s1726_s1 + $0x98] sm:$0xff]  ;;  %v1305_v22 = vld [vmem:[%s1726_s1 + $0x90] sm:$0xff] }
   0x8   :  { %740 = vmatpush.bf16.msra.mxu2 %v1309_v6  ;;  %v1315_v15 = vld [vmem:[%s1726_s1 + $0xe0] sm:$0xff]  ;;  %v1314_v19 = vld [vmem:[%s1726_s1 + $0xd8] sm:$0xff]  ;;  %v1313_v23 = vld [vmem:[%s1726_s1 + $0xd0] sm:$0xff] }
   0x9   :  { %759 = vmatpush.bf16.msra.mxu3 %v1317_v7  ;;  %v1288_v24 = vld [vmem:[%s1726_s1 + $0x8] sm:$0xff]  ;;  %v1287_v28 = vld [vmem:[%s1726_s1] sm:$0xff]  ;;  %v921_v39 = vld [vmem:[%s1727_s0 + $0x2c] sm:$0xf0] }
   0xa   :  { %703 = vmatpush.bf16.msra.mxu0 %v1292_v8  ;;  %v1296_v25 = vld [vmem:[%s1726_s1 + $0x48] sm:$0xff]  ;;  %v1295_v29 = vld [vmem:[%s1726_s1 + $0x40] sm:$0xff]  ;;  %v1326_v40 = vld [vmem:[%s1726_s1 + $0x138] sm:$0xff] }
   0xb   :  { %722 = vmatpush.bf16.msra.mxu1 %v1300_v9  ;;  %v1304_v26 = vld [vmem:[%s1726_s1 + $0x88] sm:$0xff]  ;;  %v1303_v30 = vld [vmem:[%s1726_s1 + $0x80] sm:$0xff]  ;;  %v1334_v41 = vld [vmem:[%s1726_s1 + $0x178] sm:$0xff] }
   0xc   :  { %741 = vmatpush.bf16.msra.mxu2 %v1308_v10  ;;  %v1312_v27 = vld [vmem:[%s1726_s1 + $0xc8] sm:$0xff]  ;;  %v1311_v31 = vld [vmem:[%s1726_s1 + $0xc0] sm:$0xff]  ;;  %v1342_v46 = vld [vmem:[%s1726_s1 + $0x1b8] sm:$0xff] }
   0xd   :  { %760 = vmatpush.bf16.msra.mxu3 %v1316_v11  ;;  %v911_v32 = vld [vmem:[%s1727_s0] sm:$0xf]  ;;  %v1273_v33 = vld [vmem:[%s1727_s0 + $0x20] sm:$0xf0]  ;;  %v913_v35 = vld [vmem:[%s1727_s0 + $0x24] sm:$0xf0] }
   0xe   :  { %704 = vmatpush.bf16.msra.mxu0 %v1291_v12  ;;  %v1269_v34 = vld [vmem:[%s1727_s0 + $0x4] sm:$0xf]  ;;  %v919_v36 = vld [vmem:[%s1727_s0 + $0x8] sm:$0xf]  ;;  %v1274_v37 = vld [vmem:[%s1727_s0 + $0x28] sm:$0xf0]  ;;  %v912_v42 = vor.u32 %v1273_v33, %v911_v32 }
   0xf   :  { %723 = vmatpush.bf16.msra.mxu1 %v1299_v13  ;;  %v1270_v38 = vld [vmem:[%s1727_s0 + $0xc] sm:$0xf]  ;;  %v916_v43 = vor.u32 %v1269_v34, %v913_v35  ;;  %v920_v44 = vor.u32 %v1274_v37, %v919_v36  ;;  %v1350_v47 = vld [vmem:[%s1726_s1 + $0x1f8] sm:$0xff]  ;;  %v1325_v48 = vld [vmem:[%s1726_s1 + $0x130] sm:$0xff] }
  0x10   :  { %742 = vmatpush.bf16.msra.mxu2 %v1307_v14  ;;  %v924_v45 = vor.u32 %v1270_v38, %v921_v39  ;;  %v1333_v49 = vld [vmem:[%s1726_s1 + $0x170] sm:$0xff]  ;;  %v1324_v52 = vld [vmem:[%s1726_s1 + $0x128] sm:$0xff]  ;;  %v1323_v56 = vld [vmem:[%s1726_s1 + $0x120] sm:$0xff] }
  0x11   :  { %761 = vmatpush.bf16.msra.mxu3 %v1315_v15  ;;  %v1341_v50 = vld [vmem:[%s1726_s1 + $0x1b0] sm:$0xff]  ;;  %v1332_v53 = vld [vmem:[%s1726_s1 + $0x168] sm:$0xff]  ;;  %v1331_v57 = vld [vmem:[%s1726_s1 + $0x160] sm:$0xff] }
  0x12   :  { %705 = vmatpush.bf16.msra.mxu0 %v1290_v16  ;;  %v1349_v51 = vld [vmem:[%s1726_s1 + $0x1f0] sm:$0xff]  ;;  %v1340_v54 = vld [vmem:[%s1726_s1 + $0x1a8] sm:$0xff]  ;;  %v1339_v58 = vld [vmem:[%s1726_s1 + $0x1a0] sm:$0xff] }
  0x13   :  { %724 = vmatpush.bf16.msra.mxu1 %v1298_v17  ;;  %v1348_v55 = vld [vmem:[%s1726_s1 + $0x1e8] sm:$0xff]  ;;  %v1347_v59 = vld [vmem:[%s1726_s1 + $0x1e0] sm:$0xff]  ;;  %v949_v63 = vld [vmem:[%s1727_s0 + $0x6c] sm:$0xf0] }
  0x14   :  { %743 = vmatpush.bf16.msra.mxu2 %v1306_v18  ;;  %v947_v60 = vld [vmem:[%s1727_s0 + $0x48] sm:$0xf]  ;;  %v1282_v61 = vld [vmem:[%s1727_s0 + $0x68] sm:$0xf0]  ;;  %v955_v0 = vld [vmem:[%s1727_s0 + $0x50] sm:$0xf] }
  0x15   :  { %762 = vmatpush.bf16.msra.mxu3 %v1314_v19  ;;  %v1278_v62 = vld [vmem:[%s1727_s0 + $0x4c] sm:$0xf]  ;;  %v1283_v1 = vld [vmem:[%s1727_s0 + $0x70] sm:$0xf0]  ;;  %v957_v3 = vld [vmem:[%s1727_s0 + $0x74] sm:$0xf0]  ;;  %v948_v6 = vor.u32 %v1282_v61, %v947_v60 }
  0x16   :  { %706 = vmatpush.bf16.msra.mxu0 %v1289_v20  ;;  %v1279_v2 = vld [vmem:[%s1727_s0 + $0x54] sm:$0xf]  ;;  %v1322_v4 = vld [vmem:[%s1726_s1 + $0x118] sm:$0xff]  ;;  %v952_v7 = vor.u32 %v1278_v62, %v949_v63  ;;  %v956_v8 = vor.u32 %v1283_v1, %v955_v0  ;;  %v1320_v16 = vld [vmem:[%s1726_s1 + $0x108] sm:$0xff] }
  0x17   :  { %725 = vmatpush.bf16.msra.mxu1 %v1297_v21  ;;  %v1330_v5 = vld [vmem:[%s1726_s1 + $0x158] sm:$0xff]  ;;  %v960_v9 = vor.u32 %v1279_v2, %v957_v3  ;;  %v1321_v12 = vld [vmem:[%s1726_s1 + $0x110] sm:$0xff]  ;;  %v1328_v17 = vld [vmem:[%s1726_s1 + $0x148] sm:$0xff] }
  0x18   :  { %744 = vmatpush.bf16.msra.mxu2 %v1305_v22  ;;  %v1338_v10 = vld [vmem:[%s1726_s1 + $0x198] sm:$0xff]  ;;  %v1329_v13 = vld [vmem:[%s1726_s1 + $0x150] sm:$0xff]  ;;  %v1336_v18 = vld [vmem:[%s1726_s1 + $0x188] sm:$0xff] }
  0x19   :  { %763 = vmatpush.bf16.msra.mxu3 %v1313_v23  ;;  %v1346_v11 = vld [vmem:[%s1726_s1 + $0x1d8] sm:$0xff]  ;;  %v1337_v14 = vld [vmem:[%s1726_s1 + $0x190] sm:$0xff]  ;;  %v1344_v19 = vld [vmem:[%s1726_s1 + $0x1c8] sm:$0xff] }
  0x1a   :  { %707 = vmatpush.bf16.msra.mxu0 %v1288_v24  ;;  %v1345_v15 = vld [vmem:[%s1726_s1 + $0x1d0] sm:$0xff]  ;;  %v1319_v20 = vld [vmem:[%s1726_s1 + $0x100] sm:$0xff]  ;;  %v1356_v38 = vld [vmem:[%s1726_s1 + $0x228] sm:$0xff] }
  0x1b   :  { %726 = vmatpush.bf16.msra.mxu1 %v1296_v25  ;;  %v1327_v21 = vld [vmem:[%s1726_s1 + $0x140] sm:$0xff]  ;;  %v927_v24 = vld [vmem:[%s1727_s0 + $0x10] sm:$0xf]  ;;  %v1275_v25 = vld [vmem:[%s1727_s0 + $0x30] sm:$0xf0] }
  0x1c   :  { %745 = vmatpush.bf16.msra.mxu2 %v1304_v26  ;;  %v1335_v22 = vld [vmem:[%s1726_s1 + $0x180] sm:$0xff]  ;;  %v1358_v26 = vld [vmem:[%s1726_s1 + $0x238] sm:$0xff]  ;;  %v928_v33 = vor.u32 %v1275_v25, %v927_v24  ;;  %v1357_v37 = vld [vmem:[%s1726_s1 + $0x230] sm:$0xff] }
  0x1d   :  { %764 = vmatpush.bf16.msra.mxu3 %v1312_v27  ;;  %v1343_v23 = vld [vmem:[%s1726_s1 + $0x1c0] sm:$0xff]  ;;  %v1271_v27 = vld [vmem:[%s1727_s0 + $0x14] sm:$0xf] }
  0x1e   :  { %708 = vmatpush.bf16.msra.mxu0 %v1287_v28  ;;  %v929_v28 = vld [vmem:[%s1727_s0 + $0x34] sm:$0xf0]  ;;  %v937_v32 = vld [vmem:[%s1727_s0 + $0x3c] sm:$0xf0] }
  0x1f   :  { %727 = vmatpush.bf16.msra.mxu1 %v1295_v29  ;;  %v935_v29 = vld [vmem:[%s1727_s0 + $0x18] sm:$0xf]  ;;  %v932_v34 = vor.u32 %v1271_v27, %v929_v28  ;;  %v1355_v39 = vld [vmem:[%s1726_s1 + $0x220] sm:$0xff] }
  0x20   :  { %746 = vmatpush.bf16.msra.mxu2 %v1303_v30  ;;  %v1276_v30 = vld [vmem:[%s1727_s0 + $0x38] sm:$0xf0] }
  0x21   :  { %765 = vmatpush.bf16.msra.mxu3 %v1311_v31  ;;  %709 = vmatmul.bf16.vlgmr.msra.gmra.mxu0 %v912_v42  ;;  %v1272_v31 = vld [vmem:[%s1727_s0 + $0x1c] sm:$0xf]  ;;  %v936_v35 = vor.u32 %v1276_v30, %v935_v29 }
  0x22   :  { %777 = vmatpush.bf16.msrb.mxu0 %v1326_v40  ;;  %728 = vmatmul.bf16.vlgmr.msra.gmra.mxu1 %v916_v43  ;;  %v940_v36 = vor.u32 %v1272_v31, %v937_v32  ;;  %v963_v40 = vld [vmem:[%s1727_s0 + $0x58] sm:$0xf]  ;;  %v1280_v42 = vld [vmem:[%s1727_s0 + $0x5c] sm:$0xf]  ;;  %v965_v43 = vld [vmem:[%s1727_s0 + $0x7c] sm:$0xf0] }
  0x23   :  { %796 = vmatpush.bf16.msrb.mxu1 %v1334_v41  ;;  %747 = vmatmul.bf16.vlgmr.msra.gmra.mxu2 %v920_v44  ;;  %v1284_v41 = vld [vmem:[%s1727_s0 + $0x78] sm:$0xf0]  ;;  %v971_v44 = vld [vmem:[%s1727_s0 + $0x60] sm:$0xf] }
  0x24   :  { %766 = vmatmul.bf16.vlgmr.msra.gmra.mxu3 %v924_v45  ;;  %815 = vmatpush.bf16.msrb.mxu2 %v1342_v46  ;;  %v1285_v45 = vld [vmem:[%s1727_s0 + $0x80] sm:$0xf0]  ;;  %v1354_v46 = vld [vmem:[%s1726_s1 + $0x218] sm:$0xff] }
  0x25   :  { %834 = vmatpush.bf16.msrb.mxu3 %v1350_v47  ;;  %v1281_v47 = vld [vmem:[%s1727_s0 + $0x64] sm:$0xf] }
  0x26   :  { %778 = vmatpush.bf16.msrb.mxu0 %v1325_v48  ;;  %v973_v48 = vld [vmem:[%s1727_s0 + $0x84] sm:$0xf0] }
  0x27   :  { %797 = vmatpush.bf16.msrb.mxu1 %v1333_v49  ;;  %v964_v49 = vor.u32 %v1284_v41, %v963_v40 }
  0x28   :  { %816 = vmatpush.bf16.msrb.mxu2 %v1341_v50  ;;  %v968_v50 = vor.u32 %v1280_v42, %v965_v43 }
  0x29   :  { %835 = vmatpush.bf16.msrb.mxu3 %v1349_v51  ;;  %v972_v51 = vor.u32 %v1285_v45, %v971_v44 }
  0x2a   :  { %779 = vmatpush.bf16.msrb.mxu0 %v1324_v52  ;;  %v976_v52 = vor.u32 %v1281_v47, %v973_v48 }
  0x2b   :  { %798 = vmatpush.bf16.msrb.mxu1 %v1332_v53  ;;  %v1353_v53 = vld [vmem:[%s1726_s1 + $0x210] sm:$0xff] }
  0x2c   :  { %817 = vmatpush.bf16.msrb.mxu2 %v1340_v54  ;;  %v1352_v54 = vld [vmem:[%s1726_s1 + $0x208] sm:$0xff] }
  0x2d   :  { %836 = vmatpush.bf16.msrb.mxu3 %v1348_v55  ;;  %v1351_v55 = vld [vmem:[%s1726_s1 + $0x200] sm:$0xff] }
  0x2e   :  { %780 = vmatpush.bf16.msrb.mxu0 %v1323_v56  ;;  %v943_v56 = vld [vmem:[%s1727_s0 + $0x20] sm:$0xf] }
  0x2f   :  { %799 = vmatpush.bf16.msrb.mxu1 %v1331_v57  ;;  %v1277_v57 = vld [vmem:[%s1727_s0 + $0x40] sm:$0xf0] }
  0x30   :  { %818 = vmatpush.bf16.msrb.mxu2 %v1339_v58  ;;  %v979_v58 = vld [vmem:[%s1727_s0 + $0x68] sm:$0xf]  ;;  %v944_v60 = vor.u32 %v1277_v57, %v943_v56 }
  0x31   :  { %837 = vmatpush.bf16.msrb.mxu3 %v1347_v59  ;;  %714 = vmatmul.bf16.gmra.mxu0 %v948_v6  ;;  %v1286_v59 = vld [vmem:[%s1727_s0 + $0x88] sm:$0xf0] }
  0x32   :  { %781 = vmatpush.bf16.msrb.mxu0 %v1322_v4  ;;  %733 = vmatmul.bf16.gmra.mxu1 %v952_v7  ;;  %v980_v61 = vor.u32 %v1286_v59, %v979_v58 }
  0x33   :  { %800 = vmatpush.bf16.msrb.mxu1 %v1330_v5  ;;  %752 = vmatmul.bf16.gmra.mxu2 %v956_v8 }
  0x34   :  { %771 = vmatmul.bf16.gmra.mxu3 %v960_v9  ;;  %819 = vmatpush.bf16.msrb.mxu2 %v1338_v10 }
  0x35   :  { %838 = vmatpush.bf16.msrb.mxu3 %v1346_v11 }
  0x36   :  { %782 = vmatpush.bf16.msrb.mxu0 %v1321_v12 }
  0x37   :  { %801 = vmatpush.bf16.msrb.mxu1 %v1329_v13 }
  0x38   :  { %820 = vmatpush.bf16.msrb.mxu2 %v1337_v14 }
  0x39   :  { %839 = vmatpush.bf16.msrb.mxu3 %v1345_v15 }
  0x3a   :  { %783 = vmatpush.bf16.msrb.mxu0 %v1320_v16 }
  0x3b   :  { %802 = vmatpush.bf16.msrb.mxu1 %v1328_v17 }
  0x3c   :  { %821 = vmatpush.bf16.msrb.mxu2 %v1336_v18 }
  0x3d   :  { %840 = vmatpush.bf16.msrb.mxu3 %v1344_v19 }
  0x3e   :  { %784 = vmatpush.bf16.msrb.mxu0 %v1319_v20 }
  0x3f   :  { %803 = vmatpush.bf16.msrb.mxu1 %v1327_v21 }
  0x40   :  { %822 = vmatpush.bf16.msrb.mxu2 %v1335_v22 }
  0x41   :  { %841 = vmatpush.bf16.msrb.mxu3 %v1343_v23  ;;  %785 = vmatmul.bf16.vlgmr.msrb.gmra.mxu0 %v928_v33 }
  0x42   :  { %853 = vmatpush.bf16.msra.mxu0 %v1358_v26  ;;  %804 = vmatmul.bf16.vlgmr.msrb.gmra.mxu1 %v932_v34 }
  0x43   :  { %1359 = vmatpush.bf16.msra.mxu1 %v1358_v26  ;;  %823 = vmatmul.bf16.vlgmr.msrb.gmra.mxu2 %v936_v35 }
  0x44   :  { %842 = vmatmul.bf16.vlgmr.msrb.gmra.mxu3 %v940_v36 }
  0x46   :  { %854 = vmatpush.bf16.msra.mxu0 %v1357_v37 }
  0x47   :  { %1360 = vmatpush.bf16.msra.mxu1 %v1357_v37 }
  0x4a   :  { %855 = vmatpush.bf16.msra.mxu0 %v1356_v38 }
  0x4b   :  { %1361 = vmatpush.bf16.msra.mxu1 %v1356_v38 }
  0x4e   :  { %856 = vmatpush.bf16.msra.mxu0 %v1355_v39 }
  0x4f   :  { %1362 = vmatpush.bf16.msra.mxu1 %v1355_v39 }
  0x51   :  { %790 = vmatmul.bf16.gmra.mxu0 %v964_v49 }
  0x52   :  { %857 = vmatpush.bf16.msra.mxu0 %v1354_v46  ;;  %809 = vmatmul.bf16.gmra.mxu1 %v968_v50 }
  0x53   :  { %1363 = vmatpush.bf16.msra.mxu1 %v1354_v46  ;;  %828 = vmatmul.bf16.gmra.mxu2 %v972_v51 }
  0x54   :  { %847 = vmatmul.bf16.gmra.mxu3 %v976_v52 }
  0x56   :  { %858 = vmatpush.bf16.msra.mxu0 %v1353_v53 }
  0x57   :  { %1364 = vmatpush.bf16.msra.mxu1 %v1353_v53 }
  0x5a   :  { %859 = vmatpush.bf16.msra.mxu0 %v1352_v54 }
  0x5b   :  { %1365 = vmatpush.bf16.msra.mxu1 %v1352_v54 }
  0x5e   :  { %860 = vmatpush.bf16.msra.mxu0 %v1351_v55 }
  0x5f   :  { %1366 = vmatpush.bf16.msra.mxu1 %v1351_v55 }
  0x61   :  { %861 = vmatmul.bf16.vlgmr.msra.gmra.mxu0 %v944_v60 }
  0x62   :  { %866 = vmatmul.bf16.vlgmr.msra.gmra.mxu1 %v980_v61 }
  0x9e   :  { %v710_v62 = vpop.f32.mrf.mxu0 }
  0x9f   :  { %v729_v63 = vpop.f32.mrf.mxu1 }
  0xa0   :  { %v730_v20 = vadd.f32 %v729_v63, %v710_v62 }
  0xa6   :  { %v748_v0 = vpop.f32.mrf.mxu2  ;;  %v712_v2 = vpop.f32.mrf.mxu0 }
  0xa7   :  { %v767_v1 = vpop.f32.mrf.mxu3  ;;  %v731_v3 = vpop.f32.mrf.mxu1  ;;  %v749_v22 = vadd.f32 %v748_v0, %v730_v20 }
  0xa8   :  { %v732_v30 = vadd.f32 %v731_v3, %v712_v2 }
  0xa9   :  { %v768_v28 = vadd.f32 %v767_v1, %v749_v22 }
  0xae   :  { %v750_v4 = vpop.f32.mrf.mxu2  ;;  %v715_v6 = vpop.f32.mrf.mxu0 }
  0xaf   :  { %v769_v5 = vpop.f32.mrf.mxu3  ;;  %v734_v7 = vpop.f32.mrf.mxu1  ;;  %v751_v34 = vadd.f32 %v750_v4, %v732_v30 }
  0xb0   :  { %v735_v21 = vadd.f32 %v734_v7, %v715_v6 }
  0xb1   :  { %v770_v42 = vadd.f32 %v769_v5, %v751_v34 }
  0xb6   :  { %v753_v8 = vpop.f32.mrf.mxu2  ;;  %v717_v10 = vpop.f32.mrf.mxu0 }
  0xb7   :  { %v772_v9 = vpop.f32.mrf.mxu3  ;;  %v736_v11 = vpop.f32.mrf.mxu1  ;;  %v754_v23 = vadd.f32 %v753_v8, %v735_v21 }
  0xb8   :  { %v737_v31 = vadd.f32 %v736_v11, %v717_v10 }
  0xb9   :  { %v773_v29 = vadd.f32 %v772_v9, %v754_v23 }
  0xbe   :  { %v755_v12 = vpop.f32.mrf.mxu2  ;;  %v786_v14 = vpop.f32.mrf.mxu0 }
  0xbf   :  { %v774_v13 = vpop.f32.mrf.mxu3  ;;  %v805_v15 = vpop.f32.mrf.mxu1  ;;  %v787_v32 = vadd.f32 %v786_v14, %v768_v28  ;;  %v756_v35 = vadd.f32 %v755_v12, %v737_v31 }
  0xc1   :  { %v806_v39 = vadd.f32 %v805_v15, %v787_v32  ;;  %v775_v43 = vadd.f32 %v774_v13, %v756_v35 }
  0xc6   :  { %v824_v16 = vpop.f32.mrf.mxu2  ;;  %v788_v18 = vpop.f32.mrf.mxu0 }
  0xc7   :  { %v843_v17 = vpop.f32.mrf.mxu3  ;;  %v807_v19 = vpop.f32.mrf.mxu1  ;;  %v825_v44 = vadd.f32 %v824_v16, %v806_v39  ;;  %v789_v46 = vadd.f32 %v788_v18, %v770_v42 }
  0xc9   :  { %v844_v48 = vadd.f32 %v843_v17, %v825_v44  ;;  %v808_v53 = vadd.f32 %v807_v19, %v789_v46 }
  0xce   :  { %v826_v24 = vpop.f32.mrf.mxu2  ;;  %v791_v26 = vpop.f32.mrf.mxu0 }
  0xcf   :  { %v845_v25 = vpop.f32.mrf.mxu3  ;;  %v810_v27 = vpop.f32.mrf.mxu1  ;;  %v792_v33 = vadd.f32 %v791_v26, %v773_v29  ;;  %v827_v57 = vadd.f32 %v826_v24, %v808_v53 }
  0xd1   :  { %v811_v40 = vadd.f32 %v810_v27, %v792_v33  ;;  %v846_v60 = vadd.f32 %v845_v25, %v827_v57 }
  0xd6   :  { %v829_v36 = vpop.f32.mrf.mxu2  ;;  %v793_v37 = vpop.f32.mrf.mxu0 }
  0xd7   :  { %v812_v38 = vpop.f32.mrf.mxu1  ;;  %v848_v41 = vpop.f32.mrf.mxu3  ;;  %v830_v45 = vadd.f32 %v829_v36, %v811_v40  ;;  %v794_v47 = vadd.f32 %v793_v37, %v775_v43 }
  0xd9   :  { %v849_v49 = vadd.f32 %v848_v41, %v830_v45  ;;  %v813_v54 = vadd.f32 %v812_v38, %v794_v47 }
  0xde   :  { %v831_v50 = vpop.f32.mrf.mxu2  ;;  %v862_v51 = vpop.f32.mrf.mxu0 }
  0xdf   :  { %v867_v52 = vpop.f32.mrf.mxu1  ;;  %v863_v55 = vadd.f32 %v862_v51, %v844_v48  ;;  %v832_v58 = vadd.f32 %v831_v50, %v813_v54  ;;  %v850_v59 = vpop.f32.mrf.mxu3 }
  0xe0   :  { %v868_v56 = vadd.f32 %v867_v52, %v849_v49 }
  0xe1   :  { %872 = vst [vmem:[%s1728_s2] sm:$0xff] %v863_v55  ;;  %v851_v61 = vadd.f32 %v850_v59, %v832_v58  ;;  %v885_v2 = vmul.f32 %v863_v55, %v863_v55 }
  0xe2   :  { %874 = vst [vmem:[%s1728_s2 + $0x10] sm:$0xff] %v868_v56  ;;  %v887_v5 = vmul.f32 %v868_v56, %v868_v56 }
  0xe6   :  { %v864_v62 = vpop.f32.mrf.mxu0 }
  0xe7   :  { %v869_v63 = vpop.f32.mrf.mxu1  ;;  %v865_v0 = vadd.f32 %v864_v62, %v846_v60 }
  0xe8   :  { %v870_v1 = vadd.f32 %v869_v63, %v851_v61 }
  0xe9   :  { %873 = vst [vmem:[%s1728_s2 + $0x8] sm:$0xff] %v865_v0  ;;  %v876_v3 = vadd.f32 %v865_v0, %v863_v55  ;;  %v886_v4 = vmul.f32 %v865_v0, %v865_v0 }
  0xea   :  { %875 = vst [vmem:[%s1728_s2 + $0x18] sm:$0xff] %v870_v1  ;;  %v888_v9 = vmul.f32 %v870_v1, %v870_v1 }
  0xeb   :  { %v889_v6 = vadd.f32 %v886_v4, %v885_v2  ;;  %v877_v7 = vadd.f32 %v876_v3, %v868_v56 }
  0xed   :  { %v878_v8 = vadd.f32 %v877_v7, %v870_v1  ;;  %v890_v10 = vadd.f32 %v889_v6, %v887_v5 }
  0xef   :  { %v879_v11 = vrot.slane %v878_v8, 4  ;;  %v891_v12 = vadd.f32 %v890_v10, %v888_v9 }
  0xf1   :  { %v880_v13 = vadd.f32 %v879_v11, %v878_v8  ;;  %v892_v14 = vrot.slane %v891_v12, 4 }
  0xf3   :  { %v881_v15 = vrot.slane %v880_v13, 2  ;;  %v893_v16 = vadd.f32 %v892_v14, %v891_v12 }
  0xf5   :  { %v882_v17 = vadd.f32 %v881_v15, %v880_v13  ;;  %v894_v18 = vrot.slane %v893_v16, 2 }
  0xf7   :  { %v883_v19 = vrot.slane %v882_v17, 1  ;;  %v895_v20 = vadd.f32 %v894_v18, %v893_v16 }
  0xf9   :  { %v896_v21 = vrot.slane %v895_v20, 1  ;;  %v884_v22 = vadd.f32 %v883_v19, %v882_v17 }
  0xfb   :  { %v897_v23 = vadd.f32 %v896_v21, %v895_v20 }
  0xfd   :  { %v899_v24 = vsel %vm898_vm0, %v884_v22, %v897_v23 }
  0xfe   :  { %900 = vst [vmem:[%s1729_s3] sm:$0x3] %v899_v24 }

// kernel: resnet_forward.64
= control target key start
LH: loop header
LB: loop body
LE: loop exit
PB: predicated region body
PF: predicated region fallthrough
CT: control target
= control target key end

     0   :  { %s136_s0 = inlined_call_operand.vmem [shape: f32[32,256], index: 0, kind: input, shape index: {}]   ;;  %s137_s1 = inlined_call_operand.vmem [shape: f32[1,256], index: 1, kind: input, shape index: {}]   ;;  %s138_s2 = inlined_call_operand.vmem [shape: f32[1,256], index: 2, kind: input, shape index: {}]   ;;  %s139_s3 = inlined_call_operand.vmem [shape: f32[32,256], index: 3, kind: output, shape index: {}]  }
   0x1   :  { %v14_v0 = vld [vmem:[%s136_s0] sm:$0xff]  ;;  %v15_v5 = vld [vmem:[%s136_s0 + $0x8] sm:$0xff]  ;;  %v16_v8 = vld [vmem:[%s136_s0 + $0x10] sm:$0xff] }
   0x2   :  { %v22_v1 = vld [vmem:[%s137_s1] sm:$0x3]  ;;  %v17_v9 = vld [vmem:[%s136_s0 + $0x18] sm:$0xff]  ;;  %v19_v11 = vld [vmem:[%s136_s0 + $0x28] sm:$0xff] }
   0x3   :  { %v36_v2 = vld [vmem:[%s138_s2] sm:$0x3]  ;;  %v24_v3 = vperm.slane %v22_v1, 0  ;;  %v25_v6 = vperm.slane %v22_v1, 1  ;;  %v20_v16 = vld [vmem:[%s136_s0 + $0x30] sm:$0xff]  ;;  %v21_v17 = vld [vmem:[%s136_s0 + $0x38] sm:$0xff] }
   0x4   :  { %v38_v4 = vperm.slane %v36_v2, 0  ;;  %v39_v7 = vperm.slane %v36_v2, 1  ;;  %v18_v10 = vld [vmem:[%s136_s0 + $0x20] sm:$0xff] }
   0x5   :  { %v28_v12 = vmul.f32 %v24_v3, %v14_v0  ;;  %v29_v13 = vmul.f32 %v25_v6, %v15_v5  ;;  %v30_v14 = vmul.f32 %v24_v3, %v16_v8  ;;  %v31_v15 = vmul.f32 %v25_v6, %v17_v9 }
   0x6   :  { %v32_v18 = vmul.f32 %v24_v3, %v18_v10  ;;  %v33_v19 = vmul.f32 %v25_v6, %v19_v11  ;;  %v34_v23 = vmul.f32 %v24_v3, %v20_v16  ;;  %v35_v25 = vmul.f32 %v25_v6, %v21_v17 }
   0x7   :  { %v42_v20 = vadd.f32 %v38_v4, %v28_v12  ;;  %v43_v21 = vadd.f32 %v39_v7, %v29_v13  ;;  %v44_v22 = vadd.f32 %v38_v4, %v30_v14  ;;  %v45_v24 = vadd.f32 %v39_v7, %v31_v15 }
   0x8   :  { %v46_v26 = vadd.f32 %v38_v4, %v32_v18  ;;  %v47_v27 = vadd.f32 %v39_v7, %v33_v19  ;;  %v48_v28 = vadd.f32 %v38_v4, %v34_v23  ;;  %v49_v29 = vadd.f32 %v39_v7, %v35_v25 }
   0x9   :  { %50 = vst [vmem:[%s139_s3] sm:$0xff] %v42_v20 }
   0xa   :  { %51 = vst [vmem:[%s139_s3 + $0x8] sm:$0xff] %v43_v21 }
   0xb   :  { %52 = vst [vmem:[%s139_s3 + $0x10] sm:$0xff] %v44_v22 }
   0xc   :  { %53 = vst [vmem:[%s139_s3 + $0x18] sm:$0xff] %v45_v24 }
   0xd   :  { %54 = vst [vmem:[%s139_s3 + $0x20] sm:$0xff] %v46_v26 }
   0xe   :  { %55 = vst [vmem:[%s139_s3 + $0x28] sm:$0xff] %v47_v27 }
   0xf   :  { %56 = vst [vmem:[%s139_s3 + $0x30] sm:$0xff] %v48_v28 }
  0x10   :  { %57 = vst [vmem:[%s139_s3 + $0x38] sm:$0xff] %v49_v29 }

// kernel: resnet_forward.60
= control target key start
LH: loop header
LB: loop body
LE: loop exit
PB: predicated region body
PF: predicated region fallthrough
CT: control target
= control target key end

     0   :  { %vm1383_vm0 = vcmask 1040384   ;;  %vm1389_vm1 = vcmask 1041408   ;;  %s3329_s1 = inlined_call_operand.vmem [shape: bf16[1152,256], index: 1, kind: input, shape index: {}]   ;;  %s3330_s0 = inlined_call_operand.vmem [shape: bf16[32,1152], index: 0, kind: input, shape index: {}]   ;;  %s3331_s2 = inlined_call_operand.vmem [shape: f32[32,256], index: 2, kind: output, shape index: {0}]   ;;  %s3332_s3 = inlined_call_operand.vmem [shape: f32[1,2,256], index: 3, kind: output, shape index: {1}]  }
   0x1   :  { %v1531_v0 = vld [vmem:[%s3329_s1 + $0x70] sm:$0xf]  ;;  %v2082_v1 = vld [vmem:[%s3329_s1 + $0x74] sm:$0xf0]  ;;  %v1523_v11 = vld [vmem:[%s3329_s1 + $0x60] sm:$0xf] }
   0x2   :  { %v1595_v2 = vld [vmem:[%s3329_s1 + $0xf0] sm:$0xf]  ;;  %v1532_v3 = vor.u32 %v2082_v1, %v1531_v0  ;;  %v2098_v4 = vld [vmem:[%s3329_s1 + $0xf4] sm:$0xf0]  ;;  %v2080_v13 = vld [vmem:[%s3329_s1 + $0x64] sm:$0xf0] }
   0x3   :  { %v1659_v5 = vld [vmem:[%s3329_s1 + $0x170] sm:$0xf]  ;;  %v2114_v6 = vld [vmem:[%s3329_s1 + $0x174] sm:$0xf0]  ;;  %v1596_v7 = vor.u32 %v2098_v4, %v1595_v2  ;;  %v1587_v14 = vld [vmem:[%s3329_s1 + $0xe0] sm:$0xf]  ;;  %v1524_v16 = vor.u32 %v2080_v13, %v1523_v11 }
   0x4   :  { %v1660_v8 = vor.u32 %v2114_v6, %v1659_v5  ;;  %v1723_v9 = vld [vmem:[%s3329_s1 + $0x1f0] sm:$0xf]  ;;  %v2130_v10 = vld [vmem:[%s3329_s1 + $0x1f4] sm:$0xf0]  ;;  %989 = vmatpush.bf16.msra.mxu0 %v1532_v3  ;;  %v2096_v15 = vld [vmem:[%s3329_s1 + $0xe4] sm:$0xf0] }
   0x5   :  { %v1724_v12 = vor.u32 %v2130_v10, %v1723_v9  ;;  %1008 = vmatpush.bf16.msra.mxu1 %v1596_v7  ;;  %v1588_v17 = vor.u32 %v2096_v15, %v1587_v14  ;;  %v1651_v18 = vld [vmem:[%s3329_s1 + $0x160] sm:$0xf]  ;;  %v2112_v19 = vld [vmem:[%s3329_s1 + $0x164] sm:$0xf0]  ;;  %v1515_v23 = vld [vmem:[%s3329_s1 + $0x50] sm:$0xf] }
   0x6   :  { %1027 = vmatpush.bf16.msra.mxu2 %v1660_v8  ;;  %v1715_v20 = vld [vmem:[%s3329_s1 + $0x1e0] sm:$0xf]  ;;  %v1652_v21 = vor.u32 %v2112_v19, %v1651_v18  ;;  %v2128_v22 = vld [vmem:[%s3329_s1 + $0x1e4] sm:$0xf0]  ;;  %v2078_v24 = vld [vmem:[%s3329_s1 + $0x54] sm:$0xf0] }
   0x7   :  { %1046 = vmatpush.bf16.msra.mxu3 %v1724_v12  ;;  %v1716_v25 = vor.u32 %v2128_v22, %v1715_v20  ;;  %v1579_v26 = vld [vmem:[%s3329_s1 + $0xd0] sm:$0xf]  ;;  %v2094_v27 = vld [vmem:[%s3329_s1 + $0xd4] sm:$0xf0]  ;;  %v1516_v29 = vor.u32 %v2078_v24, %v1515_v23  ;;  %v1507_v35 = vld [vmem:[%s3329_s1 + $0x40] sm:$0xf] }
   0x8   :  { %v1643_v28 = vld [vmem:[%s3329_s1 + $0x150] sm:$0xf]  ;;  %990 = vmatpush.bf16.msra.mxu0 %v1524_v16  ;;  %v2110_v30 = vld [vmem:[%s3329_s1 + $0x154] sm:$0xf0]  ;;  %v1580_v33 = vor.u32 %v2094_v27, %v1579_v26  ;;  %v2076_v36 = vld [vmem:[%s3329_s1 + $0x44] sm:$0xf0] }
   0x9   :  { %v1707_v31 = vld [vmem:[%s3329_s1 + $0x1d0] sm:$0xf]  ;;  %v2126_v32 = vld [vmem:[%s3329_s1 + $0x1d4] sm:$0xf0]  ;;  %1009 = vmatpush.bf16.msra.mxu1 %v1588_v17  ;;  %v1644_v34 = vor.u32 %v2110_v30, %v1643_v28  ;;  %v1571_v37 = vld [vmem:[%s3329_s1 + $0xc0] sm:$0xf]  ;;  %v1508_v44 = vor.u32 %v2076_v36, %v1507_v35 }
   0xa   :  { %1028 = vmatpush.bf16.msra.mxu2 %v1652_v21  ;;  %v1708_v38 = vor.u32 %v2126_v32, %v1707_v31  ;;  %v2092_v39 = vld [vmem:[%s3329_s1 + $0xc4] sm:$0xf0]  ;;  %v1635_v40 = vld [vmem:[%s3329_s1 + $0x140] sm:$0xf]  ;;  %v1499_v47 = vld [vmem:[%s3329_s1 + $0x30] sm:$0xf] }
   0xb   :  { %1047 = vmatpush.bf16.msra.mxu3 %v1716_v25  ;;  %v2108_v41 = vld [vmem:[%s3329_s1 + $0x144] sm:$0xf0]  ;;  %v1699_v42 = vld [vmem:[%s3329_s1 + $0x1c0] sm:$0xf]  ;;  %v1572_v45 = vor.u32 %v2092_v39, %v1571_v37  ;;  %v2074_v48 = vld [vmem:[%s3329_s1 + $0x34] sm:$0xf0] }
   0xc   :  { %v2124_v43 = vld [vmem:[%s3329_s1 + $0x1c4] sm:$0xf0]  ;;  %991 = vmatpush.bf16.msra.mxu0 %v1516_v29  ;;  %v1636_v46 = vor.u32 %v2108_v41, %v1635_v40  ;;  %v1563_v49 = vld [vmem:[%s3329_s1 + $0xb0] sm:$0xf]  ;;  %v2090_v51 = vld [vmem:[%s3329_s1 + $0xb4] sm:$0xf0]  ;;  %v1500_v56 = vor.u32 %v2074_v48, %v1499_v47 }
   0xd   :  { %1010 = vmatpush.bf16.msra.mxu1 %v1580_v33  ;;  %v1700_v50 = vor.u32 %v2124_v43, %v1699_v42  ;;  %v1627_v52 = vld [vmem:[%s3329_s1 + $0x130] sm:$0xf]  ;;  %v2106_v53 = vld [vmem:[%s3329_s1 + $0x134] sm:$0xf0]  ;;  %v1564_v57 = vor.u32 %v2090_v51, %v1563_v49  ;;  %v1491_v59 = vld [vmem:[%s3329_s1 + $0x20] sm:$0xf] }
   0xe   :  { %1029 = vmatpush.bf16.msra.mxu2 %v1644_v34  ;;  %v1691_v54 = vld [vmem:[%s3329_s1 + $0x1b0] sm:$0xf]  ;;  %v2122_v55 = vld [vmem:[%s3329_s1 + $0x1b4] sm:$0xf0]  ;;  %v1628_v58 = vor.u32 %v2106_v53, %v1627_v52  ;;  %v2072_v60 = vld [vmem:[%s3329_s1 + $0x24] sm:$0xf0] }
   0xf   :  { %1048 = vmatpush.bf16.msra.mxu3 %v1708_v38  ;;  %v1555_v61 = vld [vmem:[%s3329_s1 + $0xa0] sm:$0xf]  ;;  %v1692_v62 = vor.u32 %v2122_v55, %v1691_v54  ;;  %v2088_v63 = vld [vmem:[%s3329_s1 + $0xa4] sm:$0xf0]  ;;  %v1492_v4 = vor.u32 %v2072_v60, %v1491_v59  ;;  %v1483_v7 = vld [vmem:[%s3329_s1 + $0x10] sm:$0xf] }
  0x10   :  { %992 = vmatpush.bf16.msra.mxu0 %v1508_v44  ;;  %v1619_v0 = vld [vmem:[%s3329_s1 + $0x120] sm:$0xf]  ;;  %v2104_v1 = vld [vmem:[%s3329_s1 + $0x124] sm:$0xf0]  ;;  %v1556_v5 = vor.u32 %v2088_v63, %v1555_v61  ;;  %v2070_v8 = vld [vmem:[%s3329_s1 + $0x14] sm:$0xf0] }
  0x11   :  { %1011 = vmatpush.bf16.msra.mxu1 %v1572_v45  ;;  %v1683_v2 = vld [vmem:[%s3329_s1 + $0x1a0] sm:$0xf]  ;;  %v2120_v3 = vld [vmem:[%s3329_s1 + $0x1a4] sm:$0xf0]  ;;  %v1620_v6 = vor.u32 %v2104_v1, %v1619_v0  ;;  %v1547_v9 = vld [vmem:[%s3329_s1 + $0x90] sm:$0xf]  ;;  %v1484_v17 = vor.u32 %v2070_v8, %v1483_v7 }
  0x12   :  { %1030 = vmatpush.bf16.msra.mxu2 %v1636_v46  ;;  %v1684_v10 = vor.u32 %v2120_v3, %v1683_v2  ;;  %v2086_v11 = vld [vmem:[%s3329_s1 + $0x94] sm:$0xf0]  ;;  %v1611_v12 = vld [vmem:[%s3329_s1 + $0x110] sm:$0xf]  ;;  %v1475_v16 = vld [vmem:[%s3329_s1] sm:$0xf] }
  0x13   :  { %1049 = vmatpush.bf16.msra.mxu3 %v1700_v50  ;;  %v2102_v13 = vld [vmem:[%s3329_s1 + $0x114] sm:$0xf0]  ;;  %v1675_v14 = vld [vmem:[%s3329_s1 + $0x190] sm:$0xf]  ;;  %v2068_v18 = vld [vmem:[%s3329_s1 + $0x4] sm:$0xf0]  ;;  %v1548_v21 = vor.u32 %v2086_v11, %v1547_v9 }
  0x14   :  { %993 = vmatpush.bf16.msra.mxu0 %v1500_v56  ;;  %v2118_v15 = vld [vmem:[%s3329_s1 + $0x194] sm:$0xf0]  ;;  %v1539_v19 = vld [vmem:[%s3329_s1 + $0x80] sm:$0xf]  ;;  %v2084_v20 = vld [vmem:[%s3329_s1 + $0x84] sm:$0xf0]  ;;  %v1612_v22 = vor.u32 %v2102_v13, %v1611_v12  ;;  %v1476_v34 = vor.u32 %v2068_v18, %v1475_v16 }
  0x15   :  { %1012 = vmatpush.bf16.msra.mxu1 %v1564_v57  ;;  %v1603_v23 = vld [vmem:[%s3329_s1 + $0x100] sm:$0xf]  ;;  %v2100_v24 = vld [vmem:[%s3329_s1 + $0x104] sm:$0xf0]  ;;  %v1676_v26 = vor.u32 %v2118_v15, %v1675_v14  ;;  %v2053_v29 = vld [vmem:[%s3330_s0 + $0x20] sm:$0xf0]  ;;  %v1540_v38 = vor.u32 %v2084_v20, %v1539_v19 }
  0x16   :  { %1031 = vmatpush.bf16.msra.mxu2 %v1628_v58  ;;  %v1667_v25 = vld [vmem:[%s3329_s1 + $0x180] sm:$0xf]  ;;  %v2116_v27 = vld [vmem:[%s3329_s1 + $0x184] sm:$0xf0]  ;;  %v2049_v30 = vld [vmem:[%s3330_s0 + $0x4] sm:$0xf]  ;;  %v1604_v39 = vor.u32 %v2100_v24, %v1603_v23 }
  0x17   :  { %1050 = vmatpush.bf16.msra.mxu3 %v1692_v62  ;;  %v1403_v28 = vld [vmem:[%s3330_s0] sm:$0xf]  ;;  %v1405_v31 = vld [vmem:[%s3330_s0 + $0x24] sm:$0xf0]  ;;  %v1915_v32 = vld [vmem:[%s3329_s1 + $0x370] sm:$0xf]  ;;  %v1668_v43 = vor.u32 %v2116_v27, %v1667_v25 }
  0x18   :  { %994 = vmatpush.bf16.msra.mxu0 %v1492_v4  ;;  %v2178_v33 = vld [vmem:[%s3329_s1 + $0x374] sm:$0xf0]  ;;  %v1411_v35 = vld [vmem:[%s3330_s0 + $0x8] sm:$0xf]  ;;  %v1851_v36 = vld [vmem:[%s3329_s1 + $0x2f0] sm:$0xf]  ;;  %v2484_v48 = vor.u32 %v2053_v29, %v1403_v28  ;;  %v2495_v53 = vor.u32 %v2049_v30, %v1405_v31 }
  0x19   :  { %1013 = vmatpush.bf16.msra.mxu1 %v1556_v5  ;;  %v2162_v37 = vld [vmem:[%s3329_s1 + $0x2f4] sm:$0xf0]  ;;  %v2054_v40 = vld [vmem:[%s3330_s0 + $0x28] sm:$0xf0]  ;;  %v1413_v42 = vld [vmem:[%s3330_s0 + $0x2c] sm:$0xf0]  ;;  %v1916_v44 = vor.u32 %v2178_v33, %v1915_v32 }
  0x1a   :  { %1032 = vmatpush.bf16.msra.mxu2 %v1620_v6  ;;  %v2050_v41 = vld [vmem:[%s3330_s0 + $0xc] sm:$0xf]  ;;  %v1787_v45 = vld [vmem:[%s3329_s1 + $0x270] sm:$0xf]  ;;  %v2146_v46 = vld [vmem:[%s3329_s1 + $0x274] sm:$0xf0]  ;;  %v1852_v49 = vor.u32 %v2162_v37, %v1851_v36  ;;  %v2497_v54 = vor.u32 %v2054_v40, %v1411_v35 }
  0x1b   :  { %1051 = vmatpush.bf16.msra.mxu3 %v1684_v10  ;;  %v1979_v47 = vld [vmem:[%s3329_s1 + $0x3f0] sm:$0xf]  ;;  %v2194_v50 = vld [vmem:[%s3329_s1 + $0x3f4] sm:$0xf0]  ;;  %v1907_v51 = vld [vmem:[%s3329_s1 + $0x360] sm:$0xf]  ;;  %v2505_v57 = vor.u32 %v2050_v41, %v1413_v42  ;;  %v1788_v58 = vor.u32 %v2146_v46, %v1787_v45 }
  0x1c   :  { %995 = vmatpush.bf16.msra.mxu0 %v1484_v17  ;;  %v2176_v52 = vld [vmem:[%s3329_s1 + $0x364] sm:$0xf0]  ;;  %v1843_v55 = vld [vmem:[%s3329_s1 + $0x2e0] sm:$0xf]  ;;  %v1980_v59 = vor.u32 %v2194_v50, %v1979_v47  ;;  %v1899_v2 = vld [vmem:[%s3329_s1 + $0x350] sm:$0xf] }
  0x1d   :  { %1014 = vmatpush.bf16.msra.mxu1 %v1548_v21  ;;  %v2160_v56 = vld [vmem:[%s3329_s1 + $0x2e4] sm:$0xf0]  ;;  %v1908_v60 = vor.u32 %v2176_v52, %v1907_v51  ;;  %v1779_v61 = vld [vmem:[%s3329_s1 + $0x260] sm:$0xf]  ;;  %v2174_v3 = vld [vmem:[%s3329_s1 + $0x354] sm:$0xf0] }
  0x1e   :  { %1033 = vmatpush.bf16.msra.mxu2 %v1612_v22  ;;  %v2144_v62 = vld [vmem:[%s3329_s1 + $0x264] sm:$0xf0]  ;;  %v1971_v63 = vld [vmem:[%s3329_s1 + $0x3e0] sm:$0xf]  ;;  %v1844_v0 = vor.u32 %v2160_v56, %v1843_v55  ;;  %v1835_v4 = vld [vmem:[%s3329_s1 + $0x2d0] sm:$0xf]  ;;  %v1900_v8 = vor.u32 %v2174_v3, %v1899_v2 }
  0x1f   :  { %1052 = vmatpush.bf16.msra.mxu3 %v1676_v26  ;;  %v2192_v1 = vld [vmem:[%s3329_s1 + $0x3e4] sm:$0xf0]  ;;  %v2158_v5 = vld [vmem:[%s3329_s1 + $0x2d4] sm:$0xf0]  ;;  %v1780_v6 = vor.u32 %v2144_v62, %v1779_v61  ;;  %v1771_v9 = vld [vmem:[%s3329_s1 + $0x250] sm:$0xf] }
  0x20   :  { %996 = vmatpush.bf16.msra.mxu0 %v1476_v34  ;;  %v1972_v7 = vor.u32 %v2192_v1, %v1971_v63  ;;  %v2142_v10 = vld [vmem:[%s3329_s1 + $0x254] sm:$0xf0]  ;;  %v1963_v11 = vld [vmem:[%s3329_s1 + $0x3d0] sm:$0xf]  ;;  %v1836_v12 = vor.u32 %v2158_v5, %v1835_v4  ;;  %v1891_v14 = vld [vmem:[%s3329_s1 + $0x340] sm:$0xf] }
  0x21   :  { %1015 = vmatpush.bf16.msra.mxu1 %v1540_v38  ;;  %v2190_v13 = vld [vmem:[%s3329_s1 + $0x3d4] sm:$0xf0]  ;;  %v2172_v15 = vld [vmem:[%s3329_s1 + $0x344] sm:$0xf0]  ;;  %v1827_v16 = vld [vmem:[%s3329_s1 + $0x2c0] sm:$0xf]  ;;  %v1772_v18 = vor.u32 %v2142_v10, %v1771_v9 }
  0x22   :  { %1034 = vmatpush.bf16.msra.mxu2 %v1604_v39  ;;  %v2156_v17 = vld [vmem:[%s3329_s1 + $0x2c4] sm:$0xf0]  ;;  %v1763_v19 = vld [vmem:[%s3329_s1 + $0x240] sm:$0xf]  ;;  %v1964_v22 = vor.u32 %v2190_v13, %v1963_v11  ;;  %v1892_v23 = vor.u32 %v2172_v15, %v1891_v14  ;;  %v2062_v26 = vld [vmem:[%s3330_s0 + $0x68] sm:$0xf0] }
  0x23   :  { %1053 = vmatpush.bf16.msra.mxu3 %v1668_v43  ;;  %997 = vmatmul.bf16.vlgmr.msra.gmra.mxu0 %v2484_v48  ;;  %v2140_v20 = vld [vmem:[%s3329_s1 + $0x244] sm:$0xf0]  ;;  %v1955_v21 = vld [vmem:[%s3329_s1 + $0x3c0] sm:$0xf]  ;;  %v1828_v27 = vor.u32 %v2156_v17, %v1827_v16  ;;  %v2058_v28 = vld [vmem:[%s3330_s0 + $0x4c] sm:$0xf] }
  0x24   :  { %1016 = vmatmul.bf16.vlgmr.msra.gmra.mxu1 %v2495_v53  ;;  %1065 = vmatpush.bf16.msrb.mxu0 %v1788_v58  ;;  %v2188_v24 = vld [vmem:[%s3329_s1 + $0x3c4] sm:$0xf0]  ;;  %v1441_v29 = vld [vmem:[%s3330_s0 + $0x6c] sm:$0xf0]  ;;  %v2170_v31 = vld [vmem:[%s3329_s1 + $0x334] sm:$0xf0]  ;;  %v1764_v35 = vor.u32 %v2140_v20, %v1763_v19 }
  0x25   :  { %1084 = vmatpush.bf16.msrb.mxu1 %v1852_v49  ;;  %1035 = vmatmul.bf16.vlgmr.msra.gmra.mxu2 %v2497_v54  ;;  %v1439_v25 = vld [vmem:[%s3330_s0 + $0x48] sm:$0xf]  ;;  %v1883_v30 = vld [vmem:[%s3329_s1 + $0x330] sm:$0xf]  ;;  %v2154_v34 = vld [vmem:[%s3329_s1 + $0x2b4] sm:$0xf0]  ;;  %v1956_v39 = vor.u32 %v2188_v24, %v1955_v21  ;;  %v2627_v50 = vor.u32 %v2058_v28, %v1441_v29 }
  0x26   :  { %1103 = vmatpush.bf16.msrb.mxu2 %v1916_v44  ;;  %1054 = vmatmul.bf16.vlgmr.msra.gmra.mxu3 %v2505_v57  ;;  %v1447_v32 = vld [vmem:[%s3330_s0 + $0x50] sm:$0xf]  ;;  %v2063_v36 = vld [vmem:[%s3330_s0 + $0x70] sm:$0xf0]  ;;  %v1449_v38 = vld [vmem:[%s3330_s0 + $0x74] sm:$0xf0]  ;;  %v1884_v40 = vor.u32 %v2170_v31, %v1883_v30  ;;  %v2616_v44 = vor.u32 %v2062_v26, %v1439_v25 }
  0x27   :  { %1122 = vmatpush.bf16.msrb.mxu3 %v1980_v59  ;;  %v1819_v33 = vld [vmem:[%s3329_s1 + $0x2b0] sm:$0xf]  ;;  %v2059_v37 = vld [vmem:[%s3330_s0 + $0x54] sm:$0xf]  ;;  %v2138_v42 = vld [vmem:[%s3329_s1 + $0x234] sm:$0xf0]  ;;  %v2629_v51 = vor.u32 %v2063_v36, %v1447_v32 }
  0x28   :  { %1066 = vmatpush.bf16.msrb.mxu0 %v1780_v6  ;;  %v1755_v41 = vld [vmem:[%s3329_s1 + $0x230] sm:$0xf]  ;;  %v1820_v45 = vor.u32 %v2154_v34, %v1819_v33  ;;  %v2186_v46 = vld [vmem:[%s3329_s1 + $0x3b4] sm:$0xf0]  ;;  %v1875_v47 = vld [vmem:[%s3329_s1 + $0x320] sm:$0xf]  ;;  %v2637_v56 = vor.u32 %v2059_v37, %v1449_v38 }
  0x29   :  { %1085 = vmatpush.bf16.msrb.mxu1 %v1844_v0  ;;  %v1947_v43 = vld [vmem:[%s3329_s1 + $0x3b0] sm:$0xf]  ;;  %v2168_v49 = vld [vmem:[%s3329_s1 + $0x324] sm:$0xf0]  ;;  %v1811_v52 = vld [vmem:[%s3329_s1 + $0x2a0] sm:$0xf]  ;;  %v1756_v58 = vor.u32 %v2138_v42, %v1755_v41 }
  0x2a   :  { %1104 = vmatpush.bf16.msrb.mxu2 %v1908_v60  ;;  %v2152_v55 = vld [vmem:[%s3329_s1 + $0x2a4] sm:$0xf0]  ;;  %v1948_v59 = vor.u32 %v2186_v46, %v1947_v43  ;;  %v1876_v60 = vor.u32 %v2168_v49, %v1875_v47  ;;  %v1747_v61 = vld [vmem:[%s3329_s1 + $0x220] sm:$0xf]  ;;  %v1867_v2 = vld [vmem:[%s3329_s1 + $0x310] sm:$0xf] }
  0x2b   :  { %1123 = vmatpush.bf16.msrb.mxu3 %v1972_v7  ;;  %v2136_v62 = vld [vmem:[%s3329_s1 + $0x224] sm:$0xf0]  ;;  %v1939_v63 = vld [vmem:[%s3329_s1 + $0x3a0] sm:$0xf]  ;;  %v1812_v0 = vor.u32 %v2152_v55, %v1811_v52  ;;  %v2166_v3 = vld [vmem:[%s3329_s1 + $0x314] sm:$0xf0] }
  0x2c   :  { %1067 = vmatpush.bf16.msrb.mxu0 %v1772_v18  ;;  %v2184_v1 = vld [vmem:[%s3329_s1 + $0x3a4] sm:$0xf0]  ;;  %v1803_v4 = vld [vmem:[%s3329_s1 + $0x290] sm:$0xf]  ;;  %v2150_v5 = vld [vmem:[%s3329_s1 + $0x294] sm:$0xf0]  ;;  %v1748_v6 = vor.u32 %v2136_v62, %v1747_v61  ;;  %v1868_v9 = vor.u32 %v2166_v3, %v1867_v2 }
  0x2d   :  { %1086 = vmatpush.bf16.msrb.mxu1 %v1836_v12  ;;  %v1739_v7 = vld [vmem:[%s3329_s1 + $0x210] sm:$0xf]  ;;  %v2134_v10 = vld [vmem:[%s3329_s1 + $0x214] sm:$0xf0]  ;;  %v1804_v13 = vor.u32 %v2150_v5, %v1803_v4  ;;  %v1859_v14 = vld [vmem:[%s3329_s1 + $0x300] sm:$0xf] }
  0x2e   :  { %1105 = vmatpush.bf16.msrb.mxu2 %v1900_v8  ;;  %v1940_v8 = vor.u32 %v2184_v1, %v1939_v63  ;;  %v1931_v11 = vld [vmem:[%s3329_s1 + $0x390] sm:$0xf]  ;;  %v2182_v12 = vld [vmem:[%s3329_s1 + $0x394] sm:$0xf0]  ;;  %v2164_v15 = vld [vmem:[%s3329_s1 + $0x304] sm:$0xf0]  ;;  %v1740_v20 = vor.u32 %v2134_v10, %v1739_v7 }
  0x2f   :  { %1124 = vmatpush.bf16.msrb.mxu3 %v1964_v22  ;;  %v1795_v16 = vld [vmem:[%s3329_s1 + $0x280] sm:$0xf]  ;;  %v2148_v17 = vld [vmem:[%s3329_s1 + $0x284] sm:$0xf0]  ;;  %v2097_v18 = vld [vmem:[%s3329_s1 + $0xf4] sm:$0xf]  ;;  %v1932_v24 = vor.u32 %v2182_v12, %v1931_v11  ;;  %v1860_v25 = vor.u32 %v2164_v15, %v1859_v14 }
  0x30   :  { %1068 = vmatpush.bf16.msrb.mxu0 %v1764_v35  ;;  %v1597_v19 = vld [vmem:[%s3329_s1 + $0xf8] sm:$0xf0]  ;;  %v1731_v21 = vld [vmem:[%s3329_s1 + $0x200] sm:$0xf]  ;;  %v2081_v22 = vld [vmem:[%s3329_s1 + $0x74] sm:$0xf]  ;;  %v1796_v29 = vor.u32 %v2148_v17, %v1795_v16 }
  0x31   :  { %1087 = vmatpush.bf16.msrb.mxu1 %v1828_v27  ;;  %v2132_v26 = vld [vmem:[%s3329_s1 + $0x204] sm:$0xf0]  ;;  %v1923_v27 = vld [vmem:[%s3329_s1 + $0x380] sm:$0xf]  ;;  %v1419_v30 = vld [vmem:[%s3330_s0 + $0x10] sm:$0xf]  ;;  %v1600_v34 = vor.u32 %v2097_v18, %v1597_v19 }
  0x32   :  { %1106 = vmatpush.bf16.msrb.mxu2 %v1892_v23  ;;  %v1533_v23 = vld [vmem:[%s3329_s1 + $0x78] sm:$0xf0]  ;;  %v2180_v28 = vld [vmem:[%s3329_s1 + $0x384] sm:$0xf0]  ;;  %v2055_v31 = vld [vmem:[%s3330_s0 + $0x30] sm:$0xf0]  ;;  %v1732_v42 = vor.u32 %v2132_v26, %v1731_v21 }
  0x33   :  { %1125 = vmatpush.bf16.msrb.mxu3 %v1956_v39  ;;  %1002 = vmatmul.bf16.gmra.mxu0 %v2616_v44  ;;  %v2051_v32 = vld [vmem:[%s3330_s0 + $0x14] sm:$0xf]  ;;  %v1421_v33 = vld [vmem:[%s3330_s0 + $0x34] sm:$0xf0]  ;;  %v2043_v35 = vld [vmem:[%s3329_s1 + $0x470] sm:$0xf]  ;;  %v1536_v38 = vor.u32 %v2081_v22, %v1533_v23  ;;  %v1924_v47 = vor.u32 %v2180_v28, %v1923_v27 }
  0x34   :  { %1021 = vmatmul.bf16.gmra.mxu1 %v2627_v50  ;;  %1069 = vmatpush.bf16.msrb.mxu0 %v1756_v58  ;;  %v2210_v36 = vld [vmem:[%s3329_s1 + $0x474] sm:$0xf0]  ;;  %v2113_v37 = vld [vmem:[%s3329_s1 + $0x174] sm:$0xf]  ;;  %v1661_v39 = vld [vmem:[%s3329_s1 + $0x178] sm:$0xf0]  ;;  %v2774_v1 = vor.u32 %v2051_v32, %v1421_v33 }
  0x35   :  { %1088 = vmatpush.bf16.msrb.mxu1 %v1820_v45  ;;  %1040 = vmatmul.bf16.gmra.mxu2 %v2629_v51  ;;  %v1589_v41 = vld [vmem:[%s3329_s1 + $0xe8] sm:$0xf0]  ;;  %v1427_v43 = vld [vmem:[%s3330_s0 + $0x18] sm:$0xf]  ;;  %v2056_v45 = vld [vmem:[%s3330_s0 + $0x38] sm:$0xf0]  ;;  %v2044_v52 = vor.u32 %v2210_v36, %v2043_v35 }
  0x36   :  { %1107 = vmatpush.bf16.msrb.mxu2 %v1884_v40  ;;  %1059 = vmatmul.bf16.gmra.mxu3 %v2637_v56  ;;  %v2095_v40 = vld [vmem:[%s3329_s1 + $0xe4] sm:$0xf]  ;;  %v2052_v46 = vld [vmem:[%s3330_s0 + $0x1c] sm:$0xf]  ;;  %v1429_v49 = vld [vmem:[%s3330_s0 + $0x3c] sm:$0xf0]  ;;  %v2785_v5 = vor.u32 %v2056_v45, %v1427_v43 }
  0x37   :  { %1126 = vmatpush.bf16.msrb.mxu3 %v1948_v59  ;;  %v2035_v55 = vld [vmem:[%s3329_s1 + $0x460] sm:$0xf]  ;;  %v2208_v58 = vld [vmem:[%s3329_s1 + $0x464] sm:$0xf0]  ;;  %v1664_v59 = vor.u32 %v2113_v37, %v1661_v39  ;;  %v2079_v61 = vld [vmem:[%s3329_s1 + $0x64] sm:$0xf] }
  0x38   :  { %1070 = vmatpush.bf16.msrb.mxu0 %v1748_v6  ;;  %v1525_v62 = vld [vmem:[%s3329_s1 + $0x68] sm:$0xf0]  ;;  %v2111_v63 = vld [vmem:[%s3329_s1 + $0x164] sm:$0xf]  ;;  %v2093_v3 = vld [vmem:[%s3329_s1 + $0xd4] sm:$0xf]  ;;  %v2787_v6 = vor.u32 %v2052_v46, %v1429_v49  ;;  %v2036_v7 = vor.u32 %v2208_v58, %v2035_v55 }
  0x39   :  { %1089 = vmatpush.bf16.msrb.mxu1 %v1812_v0  ;;  %v2772_v0 = vor.u32 %v2055_v31, %v1419_v30  ;;  %v1653_v2 = vld [vmem:[%s3329_s1 + $0x168] sm:$0xf0]  ;;  %v1581_v4 = vld [vmem:[%s3329_s1 + $0xd8] sm:$0xf0]  ;;  %v2206_v10 = vld [vmem:[%s3329_s1 + $0x454] sm:$0xf0] }
  0x3a   :  { %1108 = vmatpush.bf16.msrb.mxu2 %v1876_v60  ;;  %v1592_v60 = vor.u32 %v2095_v40, %v1589_v41  ;;  %v1656_v11 = vor.u32 %v2111_v63, %v1653_v2  ;;  %v1584_v12 = vor.u32 %v2093_v3, %v1581_v4  ;;  %v1517_v14 = vld [vmem:[%s3329_s1 + $0x58] sm:$0xf0]  ;;  %v2109_v15 = vld [vmem:[%s3329_s1 + $0x154] sm:$0xf]  ;;  %v2091_v17 = vld [vmem:[%s3329_s1 + $0xc4] sm:$0xf] }
  0x3b   :  { %1127 = vmatpush.bf16.msrb.mxu3 %v1940_v8  ;;  %v1528_v8 = vor.u32 %v2079_v61, %v1525_v62  ;;  %v1645_v16 = vld [vmem:[%s3329_s1 + $0x158] sm:$0xf0]  ;;  %v1573_v18 = vld [vmem:[%s3329_s1 + $0xc8] sm:$0xf0]  ;;  %v2019_v21 = vld [vmem:[%s3329_s1 + $0x440] sm:$0xf] }
  0x3c   :  { %1071 = vmatpush.bf16.msrb.mxu0 %v1740_v20  ;;  %v2204_v22 = vld [vmem:[%s3329_s1 + $0x444] sm:$0xf0]  ;;  %v1648_v23 = vor.u32 %v2109_v15, %v1645_v16  ;;  %v1509_v26 = vld [vmem:[%s3329_s1 + $0x48] sm:$0xf0]  ;;  %v2107_v27 = vld [vmem:[%s3329_s1 + $0x144] sm:$0xf] }
  0x3d   :  { %1090 = vmatpush.bf16.msrb.mxu1 %v1804_v13  ;;  %v2077_v13 = vld [vmem:[%s3329_s1 + $0x54] sm:$0xf]  ;;  %v1637_v28 = vld [vmem:[%s3329_s1 + $0x148] sm:$0xf0]  ;;  %v1565_v30 = vld [vmem:[%s3329_s1 + $0xb8] sm:$0xf0]  ;;  %v2020_v31 = vor.u32 %v2204_v22, %v2019_v21 }
  0x3e   :  { %1109 = vmatpush.bf16.msrb.mxu2 %v1868_v9  ;;  %v2027_v9 = vld [vmem:[%s3329_s1 + $0x450] sm:$0xf]  ;;  %v1520_v20 = vor.u32 %v2077_v13, %v1517_v14  ;;  %v1640_v35 = vor.u32 %v2107_v27, %v1637_v28  ;;  %v1455_v36 = vld [vmem:[%s3330_s0 + $0x58] sm:$0xf]  ;;  %v2064_v37 = vld [vmem:[%s3330_s0 + $0x78] sm:$0xf0] }
  0x3f   :  { %1128 = vmatpush.bf16.msrb.mxu3 %v1932_v24  ;;  %v2028_v19 = vor.u32 %v2206_v10, %v2027_v9  ;;  %v1576_v24 = vor.u32 %v2091_v17, %v1573_v18  ;;  %v2011_v33 = vld [vmem:[%s3329_s1 + $0x430] sm:$0xf]  ;;  %v1457_v39 = vld [vmem:[%s3330_s0 + $0x7c] sm:$0xf0]  ;;  %v2073_v41 = vld [vmem:[%s3329_s1 + $0x34] sm:$0xf] }
  0x40   :  { %1072 = vmatpush.bf16.msrb.mxu0 %v1732_v42  ;;  %v1501_v42 = vld [vmem:[%s3329_s1 + $0x38] sm:$0xf0]  ;;  %v2105_v43 = vld [vmem:[%s3329_s1 + $0x134] sm:$0xf]  ;;  %v2087_v46 = vld [vmem:[%s3329_s1 + $0xa4] sm:$0xf] }
  0x41   :  { %1091 = vmatpush.bf16.msrb.mxu1 %v1796_v29  ;;  %v2089_v29 = vld [vmem:[%s3329_s1 + $0xb4] sm:$0xf]  ;;  %v1629_v45 = vld [vmem:[%s3329_s1 + $0x138] sm:$0xf0]  ;;  %v1463_v49 = vld [vmem:[%s3330_s0 + $0x60] sm:$0xf] }
  0x42   :  { %1110 = vmatpush.bf16.msrb.mxu2 %v1860_v25  ;;  %v2075_v25 = vld [vmem:[%s3329_s1 + $0x44] sm:$0xf]  ;;  %v1568_v40 = vor.u32 %v2089_v29, %v1565_v30  ;;  %v1465_v58 = vld [vmem:[%s3330_s0 + $0x84] sm:$0xf0]  ;;  %v2003_v61 = vld [vmem:[%s3329_s1 + $0x420] sm:$0xf]  ;;  %v1632_v63 = vor.u32 %v2105_v43, %v1629_v45 }
  0x43   :  { %1129 = vmatpush.bf16.msrb.mxu3 %v1924_v47  ;;  %1073 = vmatmul.bf16.vlgmr.msrb.gmra.mxu0 %v2772_v0  ;;  %v1512_v32 = vor.u32 %v2075_v25, %v1509_v26  ;;  %v1557_v47 = vld [vmem:[%s3329_s1 + $0xa8] sm:$0xf0]  ;;  %v2061_v55 = vld [vmem:[%s3330_s0 + $0x64] sm:$0xf]  ;;  %v2200_v62 = vld [vmem:[%s3329_s1 + $0x424] sm:$0xf0] }
  0x44   :  { %1141 = vmatpush.bf16.msra.mxu0 %v2044_v52  ;;  %1092 = vmatmul.bf16.vlgmr.msrb.gmra.mxu1 %v2774_v1  ;;  %v2065_v52 = vld [vmem:[%s3330_s0 + $0x80] sm:$0xf0]  ;;  %v1560_v2 = vor.u32 %v2087_v46, %v1557_v47  ;;  %v1493_v4 = vld [vmem:[%s3329_s1 + $0x28] sm:$0xf0]  ;;  %v2919_v14 = vor.u32 %v2061_v55, %v1465_v58  ;;  %v2004_v15 = vor.u32 %v2200_v62, %v2003_v61  ;;  %v1995_v17 = vld [vmem:[%s3329_s1 + $0x410] sm:$0xf] }
  0x45   :  { %1160 = vmatpush.bf16.msra.mxu1 %v1536_v38  ;;  %1111 = vmatmul.bf16.vlgmr.msrb.gmra.mxu2 %v2785_v5  ;;  %v2060_v38 = vld [vmem:[%s3330_s0 + $0x5c] sm:$0xf]  ;;  %v2071_v3 = vld [vmem:[%s3329_s1 + $0x24] sm:$0xf]  ;;  %v1621_v10 = vld [vmem:[%s3329_s1 + $0x128] sm:$0xf0]  ;;  %v2917_v13 = vor.u32 %v2065_v52, %v1463_v49 }
  0x46   :  { %1179 = vmatpush.bf16.msra.mxu2 %v1600_v34  ;;  %1130 = vmatmul.bf16.vlgmr.msrb.gmra.mxu3 %v2787_v6  ;;  %v2202_v34 = vld [vmem:[%s3329_s1 + $0x434] sm:$0xf0]  ;;  %v2906_v9 = vor.u32 %v2060_v38, %v1457_v39  ;;  %v1496_v16 = vor.u32 %v2071_v3, %v1493_v4  ;;  %v2069_v21 = vld [vmem:[%s3329_s1 + $0x14] sm:$0xf]  ;;  %v1485_v22 = vld [vmem:[%s3329_s1 + $0x18] sm:$0xf0] }
  0x47   :  { %1198 = vmatpush.bf16.msra.mxu3 %v1664_v59  ;;  %v2012_v59 = vor.u32 %v2202_v34, %v2011_v33  ;;  %v2198_v18 = vld [vmem:[%s3329_s1 + $0x414] sm:$0xf0]  ;;  %v2083_v25 = vld [vmem:[%s3329_s1 + $0x84] sm:$0xf]  ;;  %v1541_v26 = vld [vmem:[%s3329_s1 + $0x88] sm:$0xf0]  ;;  %v1488_v30 = vor.u32 %v2069_v21, %v1485_v22 }
  0x48   :  { %1142 = vmatpush.bf16.msra.mxu0 %v2036_v7  ;;  %v2103_v7 = vld [vmem:[%s3329_s1 + $0x124] sm:$0xf]  ;;  %v2161_v27 = vld [vmem:[%s3329_s1 + $0x2f4] sm:$0xf]  ;;  %v1853_v28 = vld [vmem:[%s3329_s1 + $0x2f8] sm:$0xf0]  ;;  %v1996_v29 = vor.u32 %v2198_v18, %v1995_v17 }
  0x49   :  { %1161 = vmatpush.bf16.msra.mxu1 %v1528_v8  ;;  %v2904_v8 = vor.u32 %v2064_v37, %v1455_v36  ;;  %v2067_v33 = vld [vmem:[%s3329_s1 + $0x4] sm:$0xf]  ;;  %v1477_v36 = vld [vmem:[%s3329_s1 + $0x8] sm:$0xf0]  ;;  %v1856_v39 = vor.u32 %v2161_v27, %v1853_v28  ;;  %v1789_v43 = vld [vmem:[%s3329_s1 + $0x278] sm:$0xf0] }
  0x4a   :  { %1180 = vmatpush.bf16.msra.mxu2 %v1592_v60  ;;  %v1504_v60 = vor.u32 %v2073_v41, %v1501_v42  ;;  %v2099_v37 = vld [vmem:[%s3329_s1 + $0x104] sm:$0xf]  ;;  %v1605_v38 = vld [vmem:[%s3329_s1 + $0x108] sm:$0xf0]  ;;  %v1725_v41 = vld [vmem:[%s3329_s1 + $0x1f8] sm:$0xf0]  ;;  %v1480_v49 = vor.u32 %v2067_v33, %v1477_v36 }
  0x4b   :  { %1199 = vmatpush.bf16.msra.mxu3 %v1656_v11  ;;  %v2085_v11 = vld [vmem:[%s3329_s1 + $0x94] sm:$0xf]  ;;  %v1917_v46 = vld [vmem:[%s3329_s1 + $0x378] sm:$0xf0]  ;;  %v2159_v52 = vld [vmem:[%s3329_s1 + $0x2e4] sm:$0xf]  ;;  %v1608_v58 = vor.u32 %v2099_v37, %v1605_v38 }
  0x4c   :  { %1143 = vmatpush.bf16.msra.mxu0 %v2028_v19  ;;  %v1624_v19 = vor.u32 %v2103_v7, %v1621_v10  ;;  %v2145_v42 = vld [vmem:[%s3329_s1 + $0x274] sm:$0xf]  ;;  %v1845_v55 = vld [vmem:[%s3329_s1 + $0x2e8] sm:$0xf0]  ;;  %v2127_v62 = vld [vmem:[%s3329_s1 + $0x1e4] sm:$0xf] }
  0x4d   :  { %1162 = vmatpush.bf16.msra.mxu1 %v1520_v20  ;;  %v2177_v45 = vld [vmem:[%s3329_s1 + $0x374] sm:$0xf]  ;;  %v2057_v3 = vld [vmem:[%s3330_s0 + $0x40] sm:$0xf0]  ;;  %v1848_v4 = vor.u32 %v2159_v52, %v1845_v55  ;;  %v1781_v10 = vld [vmem:[%s3329_s1 + $0x268] sm:$0xf0] }
  0x4e   :  { %1181 = vmatpush.bf16.msra.mxu2 %v1584_v12  ;;  %v1549_v12 = vld [vmem:[%s3329_s1 + $0x98] sm:$0xf0]  ;;  %v1920_v61 = vor.u32 %v2177_v45, %v1917_v46  ;;  %v2143_v7 = vld [vmem:[%s3329_s1 + $0x264] sm:$0xf]  ;;  %v2173_v27 = vld [vmem:[%s3329_s1 + $0x354] sm:$0xf] }
  0x4f   :  { %1200 = vmatpush.bf16.msra.mxu3 %v1648_v23  ;;  %v1552_v20 = vor.u32 %v2085_v11, %v1549_v12  ;;  %v2101_v23 = vld [vmem:[%s3329_s1 + $0x114] sm:$0xf]  ;;  %v2175_v12 = vld [vmem:[%s3329_s1 + $0x364] sm:$0xf]  ;;  %v1837_v18 = vld [vmem:[%s3329_s1 + $0x2d8] sm:$0xf0]  ;;  %v1784_v21 = vor.u32 %v2143_v7, %v1781_v10 }
  0x50   :  { %1144 = vmatpush.bf16.msra.mxu0 %v2020_v31  ;;  %v1987_v31 = vld [vmem:[%s3329_s1 + $0x400] sm:$0xf]  ;;  %v1901_v28 = vld [vmem:[%s3329_s1 + $0x358] sm:$0xf0]  ;;  %v2153_v38 = vld [vmem:[%s3329_s1 + $0x2b4] sm:$0xf] }
  0x51   :  { %1163 = vmatpush.bf16.msra.mxu1 %v1512_v32  ;;  %v2196_v32 = vld [vmem:[%s3329_s1 + $0x404] sm:$0xf0]  ;;  %v2137_v45 = vld [vmem:[%s3329_s1 + $0x234] sm:$0xf]  ;;  %v1757_v46 = vld [vmem:[%s3329_s1 + $0x238] sm:$0xf0] }
  0x52   :  { %1182 = vmatpush.bf16.msra.mxu2 %v1576_v24  ;;  %v1613_v24 = vld [vmem:[%s3329_s1 + $0x118] sm:$0xf0]  ;;  %v1988_v47 = vor.u32 %v2196_v32, %v1987_v31  ;;  %v2123_v31 = vld [vmem:[%s3329_s1 + $0x1c4] sm:$0xf]  ;;  %v1701_v32 = vld [vmem:[%s3329_s1 + $0x1c8] sm:$0xf0] }
  0x53   :  { %1201 = vmatpush.bf16.msra.mxu3 %v1640_v35  ;;  %1078 = vmatmul.bf16.gmra.mxu0 %v2904_v8  ;;  %v1616_v34 = vor.u32 %v2101_v23, %v1613_v24  ;;  %v1544_v35 = vor.u32 %v2083_v25, %v1541_v26  ;;  %v2141_v23 = vld [vmem:[%s3329_s1 + $0x254] sm:$0xf]  ;;  %v1773_v24 = vld [vmem:[%s3329_s1 + $0x258] sm:$0xf0]  ;;  %v1704_v37 = vor.u32 %v2123_v31, %v1701_v32  ;;  %v1749_v7 = vld [vmem:[%s3329_s1 + $0x228] sm:$0xf0] }
  0x54   :  { %1145 = vmatpush.bf16.msra.mxu0 %v2012_v59  ;;  %1097 = vmatmul.bf16.gmra.mxu1 %v2906_v9  ;;  %v1776_v33 = vor.u32 %v2141_v23, %v1773_v24  ;;  %v2169_v52 = vld [vmem:[%s3329_s1 + $0x334] sm:$0xf]  ;;  %v1885_v55 = vld [vmem:[%s3329_s1 + $0x338] sm:$0xf0]  ;;  %v1797_v31 = vld [vmem:[%s3329_s1 + $0x288] sm:$0xf0] }
  0x55   :  { %1164 = vmatpush.bf16.msra.mxu1 %v1504_v60  ;;  %1116 = vmatmul.bf16.gmra.mxu2 %v2917_v13  ;;  %v1792_v60 = vor.u32 %v2145_v42, %v1789_v43  ;;  %v2133_v24 = vld [vmem:[%s3329_s1 + $0x214] sm:$0xf]  ;;  %v2115_v32 = vld [vmem:[%s3329_s1 + $0x184] sm:$0xf] }
  0x56   :  { %1183 = vmatpush.bf16.msra.mxu2 %v1568_v40  ;;  %1135 = vmatmul.bf16.gmra.mxu3 %v2919_v14  ;;  %v2129_v40 = vld [vmem:[%s3329_s1 + $0x1f4] sm:$0xf] }
  0x57   :  { %1202 = vmatpush.bf16.msra.mxu3 %v1632_v63  ;;  %v1728_v59 = vor.u32 %v2129_v40, %v1725_v41  ;;  %v1717_v63 = vld [vmem:[%s3329_s1 + $0x1e8] sm:$0xf0]  ;;  %v2121_v40 = vld [vmem:[%s3329_s1 + $0x1b4] sm:$0xf]  ;;  %v1693_v41 = vld [vmem:[%s3329_s1 + $0x1b8] sm:$0xf0] }
  0x58   :  { %1146 = vmatpush.bf16.msra.mxu0 %v2004_v15  ;;  %v1720_v11 = vor.u32 %v2127_v62, %v1717_v63  ;;  %v1909_v15 = vld [vmem:[%s3329_s1 + $0x368] sm:$0xf0]  ;;  %v1471_v62 = vld [vmem:[%s3330_s0 + $0x68] sm:$0xf] }
  0x59   :  { %1165 = vmatpush.bf16.msra.mxu1 %v1496_v16  ;;  %v2157_v16 = vld [vmem:[%s3329_s1 + $0x2d4] sm:$0xf]  ;;  %v1912_v22 = vor.u32 %v2175_v12, %v1909_v15  ;;  %v2066_v63 = vld [vmem:[%s3330_s0 + $0x88] sm:$0xf0]  ;;  %v2167_v12 = vld [vmem:[%s3329_s1 + $0x324] sm:$0xf] }
  0x5a   :  { %1184 = vmatpush.bf16.msra.mxu2 %v1560_v2  ;;  %v1435_v2 = vld [vmem:[%s3330_s0 + $0x20] sm:$0xf]  ;;  %v1840_v25 = vor.u32 %v2157_v16, %v1837_v18  ;;  %v1877_v15 = vld [vmem:[%s3329_s1 + $0x328] sm:$0xf0]  ;;  %v2149_v16 = vld [vmem:[%s3329_s1 + $0x294] sm:$0xf]  ;;  %v3132_v18 = vor.u32 %v2066_v63, %v1471_v62 }
  0x5b   :  { %1203 = vmatpush.bf16.msra.mxu3 %v1624_v19  ;;  %v3024_v17 = vor.u32 %v2057_v3, %v1435_v2  ;;  %v2125_v19 = vld [vmem:[%s3329_s1 + $0x1d4] sm:$0xf]  ;;  %v1760_v2 = vor.u32 %v2137_v45, %v1757_v46  ;;  %v1888_v3 = vor.u32 %v2169_v52, %v1885_v55  ;;  %v1880_v23 = vor.u32 %v2167_v12, %v1877_v15  ;;  %v2037_v52 = vld [vmem:[%s3329_s1 + $0x468] sm:$0xf0] }
  0x5c   :  { %1147 = vmatpush.bf16.msra.mxu0 %v1996_v29  ;;  %v2155_v29 = vld [vmem:[%s3329_s1 + $0x2c4] sm:$0xf] }
  0x5d   :  { %1166 = vmatpush.bf16.msra.mxu1 %v1488_v30  ;;  %v1829_v30 = vld [vmem:[%s3329_s1 + $0x2c8] sm:$0xf0] }
  0x5e   :  { %1185 = vmatpush.bf16.msra.mxu2 %v1552_v20  ;;  %v1709_v20 = vld [vmem:[%s3329_s1 + $0x1d8] sm:$0xf0]  ;;  %v1832_v36 = vor.u32 %v2155_v29, %v1829_v30  ;;  %v2147_v30 = vld [vmem:[%s3329_s1 + $0x284] sm:$0xf] }
  0x5f   :  { %1204 = vmatpush.bf16.msra.mxu3 %v1616_v34  ;;  %v1712_v26 = vor.u32 %v2125_v19, %v1709_v20  ;;  %v2139_v34 = vld [vmem:[%s3329_s1 + $0x244] sm:$0xf]  ;;  %v1805_v19 = vld [vmem:[%s3329_s1 + $0x298] sm:$0xf0]  ;;  %v2117_v20 = vld [vmem:[%s3329_s1 + $0x194] sm:$0xf] }
  0x60   :  { %1148 = vmatpush.bf16.msra.mxu0 %v1988_v47  ;;  %v1869_v29 = vld [vmem:[%s3329_s1 + $0x318] sm:$0xf0] }
  0x61   :  { %1167 = vmatpush.bf16.msra.mxu1 %v1480_v49  ;;  %v1696_v49 = vor.u32 %v2121_v40, %v1693_v41  ;;  %v2045_v40 = vld [vmem:[%s3329_s1 + $0x478] sm:$0xf0]  ;;  %v2191_v41 = vld [vmem:[%s3329_s1 + $0x3e4] sm:$0xf] }
  0x62   :  { %1186 = vmatpush.bf16.msra.mxu2 %v1544_v35  ;;  %v1765_v35 = vld [vmem:[%s3329_s1 + $0x248] sm:$0xf0] }
  0x63   :  { %1205 = vmatpush.bf16.msra.mxu3 %v1608_v58  ;;  %1149 = vmatmul.bf16.vlgmr.msra.gmra.mxu0 %v3024_v17  ;;  %v1768_v42 = vor.u32 %v2139_v34, %v1765_v35  ;;  %v2151_v58 = vld [vmem:[%s3329_s1 + $0x2a4] sm:$0xf] }
  0x64   :  { %1217 = vmatpush.bf16.msrb.mxu0 %v1728_v59  ;;  %1168 = vmatmul.bf16.vlgmr.msra.gmra.mxu1 %v2484_v48  ;;  %v1904_v48 = vor.u32 %v2173_v27, %v1901_v28  ;;  %v1813_v59 = vld [vmem:[%s3329_s1 + $0x2a8] sm:$0xf0]  ;;  %v2165_v28 = vld [vmem:[%s3329_s1 + $0x314] sm:$0xf] }
  0x65   :  { %1236 = vmatpush.bf16.msrb.mxu1 %v1792_v60  ;;  %1187 = vmatmul.bf16.vlgmr.msra.gmra.mxu2 %v2495_v53  ;;  %v2171_v53 = vld [vmem:[%s3329_s1 + $0x344] sm:$0xf]  ;;  %v1816_v10 = vor.u32 %v2151_v58, %v1813_v59  ;;  %v1872_v35 = vor.u32 %v2165_v28, %v1869_v29  ;;  %v2189_v58 = vld [vmem:[%s3329_s1 + $0x3d4] sm:$0xf]  ;;  %v1965_v59 = vld [vmem:[%s3329_s1 + $0x3d8] sm:$0xf0] }
  0x66   :  { %1255 = vmatpush.bf16.msrb.mxu2 %v1856_v39  ;;  %1206 = vmatmul.bf16.vlgmr.msra.gmra.mxu3 %v2497_v54  ;;  %v1893_v54 = vld [vmem:[%s3329_s1 + $0x348] sm:$0xf0]  ;;  %v1821_v39 = vld [vmem:[%s3329_s1 + $0x2b8] sm:$0xf0]  ;;  %v2119_v60 = vld [vmem:[%s3329_s1 + $0x1a4] sm:$0xf]  ;;  %v1968_v62 = vor.u32 %v2189_v58, %v1965_v59 }
  0x67   :  { %1274 = vmatpush.bf16.msrb.mxu3 %v1920_v61  ;;  %v1896_v43 = vor.u32 %v2171_v53, %v1893_v54  ;;  %v1824_v47 = vor.u32 %v2153_v38, %v1821_v39  ;;  %v1685_v61 = vld [vmem:[%s3329_s1 + $0x1a8] sm:$0xf0]  ;;  %v2163_v53 = vld [vmem:[%s3329_s1 + $0x304] sm:$0xf]  ;;  %v2209_v39 = vld [vmem:[%s3329_s1 + $0x474] sm:$0xf] }
  0x68   :  { %1218 = vmatpush.bf16.msrb.mxu0 %v1720_v11  ;;  %v1688_v11 = vor.u32 %v2119_v60, %v1685_v61  ;;  %v1861_v54 = vld [vmem:[%s3329_s1 + $0x308] sm:$0xf0]  ;;  %v2048_v46 = vor.u32 %v2209_v39, %v2045_v40  ;;  %v2205_v60 = vld [vmem:[%s3329_s1 + $0x454] sm:$0xf]  ;;  %v2029_v61 = vld [vmem:[%s3329_s1 + $0x458] sm:$0xf0] }
  0x69   :  { %1237 = vmatpush.bf16.msrb.mxu1 %v1784_v21  ;;  %v1677_v21 = vld [vmem:[%s3329_s1 + $0x198] sm:$0xf0]  ;;  %v1864_v45 = vor.u32 %v2163_v53, %v1861_v54  ;;  %v2032_v63 = vor.u32 %v2205_v60, %v2029_v61 }
  0x6a   :  { %1256 = vmatpush.bf16.msrb.mxu2 %v1848_v4  ;;  %v2135_v4 = vld [vmem:[%s3329_s1 + $0x224] sm:$0xf]  ;;  %v1680_v27 = vor.u32 %v2117_v20, %v1677_v21  ;;  %v2005_v21 = vld [vmem:[%s3329_s1 + $0x428] sm:$0xf0] }
  0x6b   :  { %1275 = vmatpush.bf16.msrb.mxu3 %v1912_v22  ;;  %v1752_v22 = vor.u32 %v2135_v4, %v1749_v7  ;;  %v2203_v4 = vld [vmem:[%s3329_s1 + $0x444] sm:$0xf]  ;;  %v2021_v7 = vld [vmem:[%s3329_s1 + $0x448] sm:$0xf0] }
  0x6c   :  { %1219 = vmatpush.bf16.msrb.mxu0 %v1712_v26  ;;  %v1808_v26 = vor.u32 %v2149_v16, %v1805_v19  ;;  %v2183_v16 = vld [vmem:[%s3329_s1 + $0x3a4] sm:$0xf]  ;;  %v1941_v19 = vld [vmem:[%s3329_s1 + $0x3a8] sm:$0xf0] }
  0x6d   :  { %1238 = vmatpush.bf16.msrb.mxu1 %v1776_v33  ;;  %v1669_v33 = vld [vmem:[%s3329_s1 + $0x188] sm:$0xf0]  ;;  %v2199_v20 = vld [vmem:[%s3329_s1 + $0x424] sm:$0xf] }
  0x6e   :  { %1257 = vmatpush.bf16.msrb.mxu2 %v1840_v25  ;;  %v1741_v25 = vld [vmem:[%s3329_s1 + $0x218] sm:$0xf0] }
  0x6f   :  { %1276 = vmatpush.bf16.msrb.mxu3 %v1904_v48  ;;  %v1981_v48 = vld [vmem:[%s3329_s1 + $0x3f8] sm:$0xf0]  ;;  %v1744_v34 = vor.u32 %v2133_v24, %v1741_v25  ;;  %v2181_v24 = vld [vmem:[%s3329_s1 + $0x394] sm:$0xf] }
  0x70   :  { %1220 = vmatpush.bf16.msrb.mxu0 %v1704_v37  ;;  %v1733_v37 = vld [vmem:[%s3329_s1 + $0x208] sm:$0xf0]  ;;  %v1933_v25 = vld [vmem:[%s3329_s1 + $0x398] sm:$0xf0] }
  0x71   :  { %1239 = vmatpush.bf16.msrb.mxu1 %v1768_v42  ;;  %v1973_v42 = vld [vmem:[%s3329_s1 + $0x3e8] sm:$0xf0]  ;;  %v1936_v28 = vor.u32 %v2181_v24, %v1933_v25 }
  0x72   :  { %1258 = vmatpush.bf16.msrb.mxu2 %v1832_v36  ;;  %v2131_v36 = vld [vmem:[%s3329_s1 + $0x204] sm:$0xf] }
  0x73   :  { %1277 = vmatpush.bf16.msrb.mxu3 %v1896_v43  ;;  %1154 = vmatmul.bf16.gmra.mxu0 %v3132_v18  ;;  %v1736_v43 = vor.u32 %v2131_v36, %v1733_v37 }
  0x74   :  { %1221 = vmatpush.bf16.msrb.mxu0 %v1696_v49  ;;  %1173 = vmatmul.bf16.gmra.mxu1 %v2616_v44  ;;  %v2193_v44 = vld [vmem:[%s3329_s1 + $0x3f4] sm:$0xf]  ;;  %v2207_v49 = vld [vmem:[%s3329_s1 + $0x464] sm:$0xf] }
  0x75   :  { %1240 = vmatpush.bf16.msrb.mxu1 %v1760_v2  ;;  %1192 = vmatmul.bf16.gmra.mxu2 %v2627_v50  ;;  %v1800_v50 = vor.u32 %v2147_v30, %v1797_v31  ;;  %v1984_v38 = vor.u32 %v2193_v44, %v1981_v48  ;;  %v2040_v55 = vor.u32 %v2207_v49, %v2037_v52  ;;  %v2187_v2 = vld [vmem:[%s3329_s1 + $0x3c4] sm:$0xf]  ;;  %v1925_v31 = vld [vmem:[%s3329_s1 + $0x388] sm:$0xf0] }
  0x76   :  { %1259 = vmatpush.bf16.msrb.mxu2 %v1824_v47  ;;  %1211 = vmatmul.bf16.gmra.mxu3 %v2629_v51  ;;  %v1672_v51 = vor.u32 %v2115_v32, %v1669_v33  ;;  %v1976_v47 = vor.u32 %v2191_v41, %v1973_v42  ;;  %v2179_v30 = vld [vmem:[%s3329_s1 + $0x384] sm:$0xf]  ;;  %v1989_v33 = vld [vmem:[%s3329_s1 + $0x408] sm:$0xf0] }
  0x77   :  { %1278 = vmatpush.bf16.msrb.mxu3 %v1888_v3  ;;  %v1957_v3 = vld [vmem:[%s3329_s1 + $0x3c8] sm:$0xf0]  ;;  %v2195_v32 = vld [vmem:[%s3329_s1 + $0x404] sm:$0xf]  ;;  %v1928_v44 = vor.u32 %v2179_v30, %v1925_v31 }
  0x78   :  { %1222 = vmatpush.bf16.msrb.mxu0 %v1688_v11  ;;  %v1949_v11 = vld [vmem:[%s3329_s1 + $0x3b8] sm:$0xf0] }
  0x79   :  { %1241 = vmatpush.bf16.msrb.mxu1 %v1752_v22  ;;  %v1944_v22 = vor.u32 %v2183_v16, %v1941_v19 }
  0x7a   :  { %1260 = vmatpush.bf16.msrb.mxu2 %v1816_v10  ;;  %v1960_v10 = vor.u32 %v2187_v2, %v1957_v3 }
  0x7b   :  { %1279 = vmatpush.bf16.msrb.mxu3 %v1880_v23  ;;  %v2008_v23 = vor.u32 %v2199_v20, %v2005_v21 }
  0x7c   :  { %1223 = vmatpush.bf16.msrb.mxu0 %v1680_v27  ;;  %v1997_v27 = vld [vmem:[%s3329_s1 + $0x418] sm:$0xf0] }
  0x7d   :  { %1242 = vmatpush.bf16.msrb.mxu1 %v1744_v34 }
  0x7e   :  { %1261 = vmatpush.bf16.msrb.mxu2 %v1808_v26  ;;  %v2197_v26 = vld [vmem:[%s3329_s1 + $0x414] sm:$0xf] }
  0x7f   :  { %1280 = vmatpush.bf16.msrb.mxu3 %v1872_v35  ;;  %v2000_v29 = vor.u32 %v2197_v26, %v1997_v27 }
  0x80   :  { %1224 = vmatpush.bf16.msrb.mxu0 %v1672_v51 }
  0x81   :  { %1243 = vmatpush.bf16.msrb.mxu1 %v1736_v43 }
  0x82   :  { %1262 = vmatpush.bf16.msrb.mxu2 %v1800_v50 }
  0x83   :  { %1281 = vmatpush.bf16.msrb.mxu3 %v1864_v45  ;;  %1225 = vmatmul.bf16.vlgmr.msrb.gmra.mxu0 %v2505_v57  ;;  %v2024_v57 = vor.u32 %v2203_v4, %v2021_v7 }
  0x84   :  { %1293 = vmatpush.bf16.msra.mxu0 %v1984_v38  ;;  %1244 = vmatmul.bf16.vlgmr.msrb.gmra.mxu1 %v2772_v0  ;;  %v2185_v0 = vld [vmem:[%s3329_s1 + $0x3b4] sm:$0xf] }
  0x85   :  { %1312 = vmatpush.bf16.msra.mxu1 %v2048_v46  ;;  %1263 = vmatmul.bf16.vlgmr.msrb.gmra.mxu2 %v2774_v1  ;;  %v2201_v1 = vld [vmem:[%s3329_s1 + $0x434] sm:$0xf]  ;;  %v1952_v12 = vor.u32 %v2185_v0, %v1949_v11 }
  0x86   :  { %2211 = vmatpush.bf16.msra.mxu2 %v1984_v38  ;;  %1282 = vmatmul.bf16.vlgmr.msrb.gmra.mxu3 %v2785_v5  ;;  %v2013_v5 = vld [vmem:[%s3329_s1 + $0x438] sm:$0xf0] }
  0x87   :  { %2219 = vmatpush.bf16.msra.mxu3 %v2048_v46  ;;  %v2016_v15 = vor.u32 %v2201_v1, %v2013_v5 }
  0x88   :  { %1294 = vmatpush.bf16.msra.mxu0 %v1976_v47 }
  0x89   :  { %1313 = vmatpush.bf16.msra.mxu1 %v2040_v55 }
  0x8a   :  { %2212 = vmatpush.bf16.msra.mxu2 %v1976_v47 }
  0x8b   :  { %2220 = vmatpush.bf16.msra.mxu3 %v2040_v55 }
  0x8c   :  { %1295 = vmatpush.bf16.msra.mxu0 %v1968_v62 }
  0x8d   :  { %1314 = vmatpush.bf16.msra.mxu1 %v2032_v63 }
  0x8e   :  { %2213 = vmatpush.bf16.msra.mxu2 %v1968_v62 }
  0x8f   :  { %2221 = vmatpush.bf16.msra.mxu3 %v2032_v63 }
  0x90   :  { %1296 = vmatpush.bf16.msra.mxu0 %v1960_v10 }
  0x91   :  { %1315 = vmatpush.bf16.msra.mxu1 %v2024_v57 }
  0x92   :  { %2214 = vmatpush.bf16.msra.mxu2 %v1960_v10 }
  0x93   :  { %2222 = vmatpush.bf16.msra.mxu3 %v2024_v57  ;;  %1230 = vmatmul.bf16.gmra.mxu0 %v2637_v56  ;;  %v1992_v56 = vor.u32 %v2195_v32, %v1989_v33 }
  0x94   :  { %1297 = vmatpush.bf16.msra.mxu0 %v1952_v12  ;;  %1249 = vmatmul.bf16.gmra.mxu1 %v2904_v8 }
  0x95   :  { %1316 = vmatpush.bf16.msra.mxu1 %v2016_v15  ;;  %1268 = vmatmul.bf16.gmra.mxu2 %v2906_v9 }
  0x96   :  { %2215 = vmatpush.bf16.msra.mxu2 %v1952_v12  ;;  %1287 = vmatmul.bf16.gmra.mxu3 %v2917_v13 }
  0x97   :  { %2223 = vmatpush.bf16.msra.mxu3 %v2016_v15 }
  0x98   :  { %1298 = vmatpush.bf16.msra.mxu0 %v1944_v22 }
  0x99   :  { %1317 = vmatpush.bf16.msra.mxu1 %v2008_v23 }
  0x9a   :  { %2216 = vmatpush.bf16.msra.mxu2 %v1944_v22 }
  0x9b   :  { %2224 = vmatpush.bf16.msra.mxu3 %v2008_v23 }
  0x9c   :  { %1299 = vmatpush.bf16.msra.mxu0 %v1936_v28 }
  0x9d   :  { %1318 = vmatpush.bf16.msra.mxu1 %v2000_v29 }
  0x9e   :  { %2217 = vmatpush.bf16.msra.mxu2 %v1936_v28 }
  0x9f   :  { %2225 = vmatpush.bf16.msra.mxu3 %v2000_v29 }
  0xa0   :  { %1300 = vmatpush.bf16.msra.mxu0 %v1928_v44  ;;  %v998_v8 = vpop.f32.mrf.mxu0 }
  0xa1   :  { %1319 = vmatpush.bf16.msra.mxu1 %v1992_v56  ;;  %v1017_v48 = vpop.f32.mrf.mxu1 }
  0xa2   :  { %2218 = vmatpush.bf16.msra.mxu2 %v1928_v44  ;;  %v1018_v45 = vadd.f32 %v1017_v48, %v998_v8 }
  0xa3   :  { %2226 = vmatpush.bf16.msra.mxu3 %v1992_v56  ;;  %1301 = vmatmul.bf16.vlgmr.msra.gmra.mxu0 %v2787_v6 }
  0xa4   :  { %1320 = vmatmul.bf16.vlgmr.msra.gmra.mxu1 %v3024_v17 }
  0xa5   :  { %1306 = vmatmul.bf16.vlgmr.msra.gmra.mxu2 %v2919_v14 }
  0xa6   :  { %1325 = vmatmul.bf16.vlgmr.msra.gmra.mxu3 %v3132_v18 }
  0xa8   :  { %v1036_v9 = vpop.f32.mrf.mxu2  ;;  %v1000_v34 = vpop.f32.mrf.mxu0 }
  0xa9   :  { %v1055_v13 = vpop.f32.mrf.mxu3  ;;  %v1019_v35 = vpop.f32.mrf.mxu1  ;;  %v1037_v46 = vadd.f32 %v1036_v9, %v1018_v45 }
  0xaa   :  { %v1020_v59 = vadd.f32 %v1019_v35, %v1000_v34 }
  0xab   :  { %v1056_v58 = vadd.f32 %v1055_v13, %v1037_v46 }
  0xb0   :  { %v1038_v36 = vpop.f32.mrf.mxu2  ;;  %v1003_v51 = vpop.f32.mrf.mxu0 }
  0xb1   :  { %v1057_v50 = vpop.f32.mrf.mxu3  ;;  %v1022_v37 = vpop.f32.mrf.mxu1  ;;  %v1039_v61 = vadd.f32 %v1038_v36, %v1020_v59 }
  0xb2   :  { %v1023_v57 = vadd.f32 %v1022_v37, %v1003_v51 }
  0xb3   :  { %v1058_v7 = vadd.f32 %v1057_v50, %v1039_v61 }
  0xb8   :  { %v1041_v53 = vpop.f32.mrf.mxu2  ;;  %v1005_v38 = vpop.f32.mrf.mxu0 }
  0xb9   :  { %v1060_v54 = vpop.f32.mrf.mxu3  ;;  %v1024_v39 = vpop.f32.mrf.mxu1  ;;  %v1042_v11 = vadd.f32 %v1041_v53, %v1023_v57 }
  0xba   :  { %v1025_v23 = vadd.f32 %v1024_v39, %v1005_v38 }
  0xbb   :  { %v1061_v21 = vadd.f32 %v1060_v54, %v1042_v11 }
  0xc0   :  { %v1043_v40 = vpop.f32.mrf.mxu2  ;;  %v1074_v41 = vpop.f32.mrf.mxu0 }
  0xc1   :  { %v1062_v6 = vpop.f32.mrf.mxu3  ;;  %v1093_v17 = vpop.f32.mrf.mxu1  ;;  %v1075_v60 = vadd.f32 %v1074_v41, %v1056_v58  ;;  %v1044_v25 = vadd.f32 %v1043_v40, %v1025_v23 }
  0xc3   :  { %v1094_v4 = vadd.f32 %v1093_v17, %v1075_v60  ;;  %v1063_v33 = vadd.f32 %v1062_v6, %v1044_v25 }
  0xc8   :  { %v1112_v42 = vpop.f32.mrf.mxu2  ;;  %v1076_v43 = vpop.f32.mrf.mxu0 }
  0xc9   :  { %v1131_v14 = vpop.f32.mrf.mxu3  ;;  %v1095_v18 = vpop.f32.mrf.mxu1  ;;  %v1113_v10 = vadd.f32 %v1112_v42, %v1094_v4  ;;  %v1077_v0 = vadd.f32 %v1076_v43, %v1058_v7 }
  0xcb   :  { %v1132_v1 = vadd.f32 %v1131_v14, %v1113_v10  ;;  %v1096_v19 = vadd.f32 %v1095_v18, %v1077_v0 }
  0xd0   :  { %v1114_v47 = vpop.f32.mrf.mxu2  ;;  %v1079_v52 = vpop.f32.mrf.mxu0 }
  0xd1   :  { %v1133_v49 = vpop.f32.mrf.mxu3  ;;  %v1098_v55 = vpop.f32.mrf.mxu1  ;;  %v1115_v22 = vadd.f32 %v1114_v47, %v1096_v19  ;;  %v1080_v24 = vadd.f32 %v1079_v52, %v1061_v21 }
  0xd3   :  { %v1134_v26 = vadd.f32 %v1133_v49, %v1115_v22  ;;  %v1099_v31 = vadd.f32 %v1098_v55, %v1080_v24 }
  0xd8   :  { %v1117_v62 = vpop.f32.mrf.mxu2  ;;  %v1081_v2 = vpop.f32.mrf.mxu0 }
  0xd9   :  { %v1136_v63 = vpop.f32.mrf.mxu3  ;;  %v1100_v3 = vpop.f32.mrf.mxu1  ;;  %v1118_v44 = vadd.f32 %v1117_v62, %v1099_v31  ;;  %v1082_v9 = vadd.f32 %v1081_v2, %v1063_v33 }
  0xdb   :  { %v1137_v34 = vadd.f32 %v1136_v63, %v1118_v44  ;;  %v1101_v37 = vadd.f32 %v1100_v3, %v1082_v9 }
  0xe0   :  { %v1119_v5 = vpop.f32.mrf.mxu2  ;;  %v1150_v15 = vpop.f32.mrf.mxu0 }
  0xe1   :  { %v1138_v12 = vpop.f32.mrf.mxu3  ;;  %v3291_v16 = vpop.f32.mrf.mxu1  ;;  %v1151_v20 = vadd.f32 %v1150_v15, %v1132_v1  ;;  %v1120_v54 = vadd.f32 %v1119_v5, %v1101_v37 }
  0xe3   :  { %1331 = vst [vmem:[%s3331_s2] sm:$0xff] %v1151_v20  ;;  %v1357_v56 = vmul.f32 %v1151_v20, %v1151_v20  ;;  %v1139_v6 = vadd.f32 %v1138_v12, %v1120_v54 }
  0xe8   :  { %v1188_v27 = vpop.f32.mrf.mxu2  ;;  %v1152_v29 = vpop.f32.mrf.mxu0 }
  0xe9   :  { %v1207_v28 = vpop.f32.mrf.mxu3  ;;  %v3296_v30 = vpop.f32.mrf.mxu1  ;;  %v1153_v32 = vadd.f32 %v1152_v29, %v1134_v26  ;;  %v1189_v15 = vadd.f32 %v1188_v27, %v3291_v16 }
  0xeb   :  { %1333 = vst [vmem:[%s3331_s2 + $0x10] sm:$0xff] %v1153_v32  ;;  %v1339_v8 = vadd.f32 %v1153_v32, %v1151_v20  ;;  %v1359_v48 = vmul.f32 %v1153_v32, %v1153_v32  ;;  %v1208_v23 = vadd.f32 %v1207_v28, %v1189_v15 }
  0xed   :  { %v1365_v13 = vadd.f32 %v1359_v48, %v1357_v56 }
  0xf0   :  { %v1190_v35 = vpop.f32.mrf.mxu2  ;;  %v1155_v50 = vpop.f32.mrf.mxu0 }
  0xf1   :  { %v1209_v36 = vpop.f32.mrf.mxu3  ;;  %v1174_v51 = vpop.f32.mrf.mxu1  ;;  %v1156_v53 = vadd.f32 %v1155_v50, %v1137_v34  ;;  %v1191_v26 = vadd.f32 %v1190_v35, %v3296_v30 }
  0xf3   :  { %1335 = vst [vmem:[%s3331_s2 + $0x20] sm:$0xff] %v1156_v53  ;;  %v1340_v38 = vadd.f32 %v1339_v8, %v1156_v53  ;;  %v1361_v39 = vmul.f32 %v1156_v53, %v1156_v53  ;;  %v1210_v8 = vadd.f32 %v1209_v36, %v1191_v26 }
  0xf5   :  { %v1366_v40 = vadd.f32 %v1365_v13, %v1361_v39 }
  0xf8   :  { %v1193_v41 = vpop.f32.mrf.mxu2  ;;  %v1157_v42 = vpop.f32.mrf.mxu0 }
  0xf9   :  { %v1212_v17 = vpop.f32.mrf.mxu3  ;;  %v1176_v14 = vpop.f32.mrf.mxu1  ;;  %v1158_v43 = vadd.f32 %v1157_v42, %v1139_v6  ;;  %v1194_v25 = vadd.f32 %v1193_v41, %v1174_v51 }
  0xfb   :  { %1337 = vst [vmem:[%s3331_s2 + $0x30] sm:$0xff] %v1158_v43  ;;  %v1341_v18 = vadd.f32 %v1340_v38, %v1158_v43  ;;  %v1363_v45 = vmul.f32 %v1158_v43, %v1158_v43  ;;  %v1213_v56 = vadd.f32 %v1212_v17, %v1194_v25 }
  0xfd   :  { %v1342_v46 = vrot.slane %v1341_v18, 4  ;;  %v1367_v47 = vadd.f32 %v1366_v40, %v1363_v45 }
  0xff   :  { %v1343_v49 = vadd.f32 %v1342_v46, %v1341_v18  ;;  %v1368_v52 = vrot.slane %v1367_v47, 4 }
 0x100   :  { %v1195_v55 = vpop.f32.mrf.mxu2  ;;  %v1226_v59 = vpop.f32.mrf.mxu0 }
 0x101   :  { %v1214_v58 = vpop.f32.mrf.mxu3  ;;  %v1245_v60 = vpop.f32.mrf.mxu1  ;;  %v1344_v61 = vrot.slane %v1343_v49, 2  ;;  %v1369_v62 = vadd.f32 %v1368_v52, %v1367_v47  ;;  %v1227_v24 = vadd.f32 %v1226_v59, %v1208_v23  ;;  %v1196_v16 = vadd.f32 %v1195_v55, %v1176_v14 }
 0x103   :  { %v1345_v63 = vadd.f32 %v1344_v61, %v1343_v49  ;;  %v1370_v2 = vrot.slane %v1369_v62, 2  ;;  %v1246_v44 = vadd.f32 %v1245_v60, %v1227_v24  ;;  %v1215_v30 = vadd.f32 %v1214_v58, %v1196_v16 }
 0x105   :  { %v1346_v3 = vrot.slane %v1345_v63, 1  ;;  %v1371_v4 = vadd.f32 %v1370_v2, %v1369_v62 }
 0x107   :  { %v1372_v7 = vrot.slane %v1371_v4, 1  ;;  %v1347_v1 = vadd.f32 %v1346_v3, %v1345_v63 }
 0x108   :  { %v1264_v10 = vpop.f32.mrf.mxu2  ;;  %v1228_v0 = vpop.f32.mrf.mxu0 }
 0x109   :  { %v1283_v57 = vpop.f32.mrf.mxu3  ;;  %v1247_v11 = vpop.f32.mrf.mxu1  ;;  %v1373_v5 = vadd.f32 %v1372_v7, %v1371_v4  ;;  %v1265_v48 = vadd.f32 %v1264_v10, %v1246_v44  ;;  %v1229_v13 = vadd.f32 %v1228_v0, %v1210_v8 }
 0x10b   :  { %v3308_v12 = vsel %vm1383_vm0, %v1347_v1, %v1373_v5  ;;  %v1284_v27 = vadd.f32 %v1283_v57, %v1265_v48  ;;  %v1248_v51 = vadd.f32 %v1247_v11, %v1229_v13 }
 0x110   :  { %v1266_v19 = vpop.f32.mrf.mxu2  ;;  %v1231_v21 = vpop.f32.mrf.mxu0 }
 0x111   :  { %v1285_v20 = vpop.f32.mrf.mxu3  ;;  %v1250_v22 = vpop.f32.mrf.mxu1  ;;  %v1232_v9 = vadd.f32 %v1231_v21, %v1213_v56  ;;  %v1267_v38 = vadd.f32 %v1266_v19, %v1248_v51 }
 0x113   :  { %v1251_v37 = vadd.f32 %v1250_v22, %v1232_v9  ;;  %v1286_v6 = vadd.f32 %v1285_v20, %v1267_v38 }
 0x118   :  { %v1269_v29 = vpop.f32.mrf.mxu2  ;;  %v1233_v32 = vpop.f32.mrf.mxu0 }
 0x119   :  { %v1288_v31 = vpop.f32.mrf.mxu3  ;;  %v1252_v33 = vpop.f32.mrf.mxu1  ;;  %v1270_v35 = vadd.f32 %v1269_v29, %v1251_v37  ;;  %v1234_v40 = vadd.f32 %v1233_v32, %v1215_v30 }
 0x11b   :  { %v1289_v36 = vadd.f32 %v1288_v31, %v1270_v35  ;;  %v1253_v42 = vadd.f32 %v1252_v33, %v1234_v40 }
 0x120   :  { %v1271_v34 = vpop.f32.mrf.mxu2  ;;  %v1302_v28 = vpop.f32.mrf.mxu0 }
 0x121   :  { %v1290_v50 = vpop.f32.mrf.mxu3  ;;  %v1321_v53 = vpop.f32.mrf.mxu1  ;;  %v1303_v54 = vadd.f32 %v1302_v28, %v1284_v27  ;;  %v1272_v45 = vadd.f32 %v1271_v34, %v1253_v42 }
 0x123   :  { %v1322_v39 = vadd.f32 %v1321_v53, %v1303_v54  ;;  %v1291_v55 = vadd.f32 %v1290_v50, %v1272_v45 }
 0x125   :  { %1332 = vst [vmem:[%s3331_s2 + $0x8] sm:$0xff] %v1322_v39  ;;  %v1358_v58 = vmul.f32 %v1322_v39, %v1322_v39 }
 0x128   :  { %v1307_v41 = vpop.f32.mrf.mxu2  ;;  %v1304_v43 = vpop.f32.mrf.mxu0 }
 0x129   :  { %v1326_v17 = vpop.f32.mrf.mxu3  ;;  %v1308_v14 = vadd.f32 %v1307_v41, %v1289_v36  ;;  %v1305_v18 = vadd.f32 %v1304_v43, %v1286_v6  ;;  %v1323_v47 = vpop.f32.mrf.mxu1 }
 0x12b   :  { %v1327_v46 = vadd.f32 %v1326_v17, %v1308_v14  ;;  %v1324_v49 = vadd.f32 %v1323_v47, %v1305_v18 }
 0x12d   :  { %1336 = vst [vmem:[%s3331_s2 + $0x28] sm:$0xff] %v1327_v46  ;;  %v1360_v52 = vmul.f32 %v1324_v49, %v1324_v49  ;;  %v1348_v59 = vadd.f32 %v1324_v49, %v1322_v39  ;;  %v1362_v2 = vmul.f32 %v1327_v46, %v1327_v46 }
 0x12e   :  { %1334 = vst [vmem:[%s3331_s2 + $0x18] sm:$0xff] %v1324_v49 }
 0x12f   :  { %v1374_v61 = vadd.f32 %v1360_v52, %v1358_v58  ;;  %v1349_v4 = vadd.f32 %v1348_v59, %v1327_v46 }
 0x130   :  { %v1309_v60 = vpop.f32.mrf.mxu2 }
 0x131   :  { %v1310_v62 = vadd.f32 %v1309_v60, %v1291_v55  ;;  %v1328_v63 = vpop.f32.mrf.mxu3  ;;  %v1375_v57 = vadd.f32 %v1374_v61, %v1362_v2 }
 0x133   :  { %v1329_v3 = vadd.f32 %v1328_v63, %v1310_v62 }
 0x135   :  { %1338 = vst [vmem:[%s3331_s2 + $0x38] sm:$0xff] %v1329_v3  ;;  %v1350_v7 = vadd.f32 %v1349_v4, %v1329_v3  ;;  %v1364_v10 = vmul.f32 %v1329_v3, %v1329_v3 }
 0x137   :  { %v1351_v0 = vrot.slane %v1350_v7, 4  ;;  %v1376_v11 = vadd.f32 %v1375_v57, %v1364_v10 }
 0x139   :  { %v1352_v1 = vadd.f32 %v1351_v0, %v1350_v7  ;;  %v1377_v5 = vrot.slane %v1376_v11, 4 }
 0x13b   :  { %v1353_v15 = vrot.slane %v1352_v1, 2  ;;  %v1378_v19 = vadd.f32 %v1377_v5, %v1376_v11 }
 0x13d   :  { %v1354_v20 = vadd.f32 %v1353_v15, %v1352_v1  ;;  %v1379_v21 = vrot.slane %v1378_v19, 2 }
 0x13f   :  { %v1355_v22 = vrot.slane %v1354_v20, 1  ;;  %v1380_v23 = vadd.f32 %v1379_v21, %v1378_v19 }
 0x141   :  { %v1381_v24 = vrot.slane %v1380_v23, 1  ;;  %v1356_v25 = vadd.f32 %v1355_v22, %v1354_v20 }
 0x143   :  { %v1382_v26 = vadd.f32 %v1381_v24, %v1380_v23 }
 0x145   :  { %v1385_v29 = vsel %vm1383_vm0, %v1356_v25, %v1382_v26 }
 0x146   :  { %v1388_v31 = vrot.slane %v1385_v29, 6 }
 0x148   :  { %v1390_v32 = vsel %vm1389_vm1, %v3308_v12, %v1388_v31 }
 0x149   :  { %1392 = vst [vmem:[%s3332_s3] sm:$0xf] %v1390_v32 }

// kernel: resnet_forward.65
= control target key start
LH: loop header
LB: loop body
LE: loop exit
PB: predicated region body
PF: predicated region fallthrough
CT: control target
= control target key end

     0   :  { %s192_s0 = inlined_call_operand.vmem [shape: f32[32,256], index: 0, kind: input, shape index: {}]   ;;  %s193_s1 = inlined_call_operand.vmem [shape: f32[1,256], index: 1, kind: input, shape index: {}]   ;;  %s194_s2 = inlined_call_operand.vmem [shape: f32[1,256], index: 2, kind: input, shape index: {}]   ;;  %s195_s3 = inlined_call_operand.vmem [shape: f32[32,256], index: 3, kind: input, shape index: {}]   ;;  %s196_s4 = inlined_call_operand.vmem [shape: f32[32,256], index: 4, kind: output, shape index: {}]  }
   0x1   :  { %v17_v0 = vld [vmem:[%s192_s0] sm:$0xff]  ;;  %v18_v5 = vld [vmem:[%s192_s0 + $0x8] sm:$0xff]  ;;  %v19_v9 = vld [vmem:[%s192_s0 + $0x10] sm:$0xff] }
   0x2   :  { %v25_v1 = vld [vmem:[%s193_s1] sm:$0x3]  ;;  %v54_v12 = vld [vmem:[%s195_s3 + $0x8] sm:$0xff]  ;;  %v20_v14 = vld [vmem:[%s192_s0 + $0x18] sm:$0xff] }
   0x3   :  { %v39_v2 = vld [vmem:[%s194_s2] sm:$0x3]  ;;  %v27_v3 = vperm.slane %v25_v1, 0  ;;  %v28_v6 = vperm.slane %v25_v1, 1  ;;  %v55_v16 = vld [vmem:[%s195_s3 + $0x10] sm:$0xff]  ;;  %v56_v18 = vld [vmem:[%s195_s3 + $0x18] sm:$0xff] }
   0x4   :  { %v41_v4 = vperm.slane %v39_v2, 0  ;;  %v42_v7 = vperm.slane %v39_v2, 1  ;;  %v53_v8 = vld [vmem:[%s195_s3] sm:$0xff]  ;;  %v22_v20 = vld [vmem:[%s192_s0 + $0x28] sm:$0xff]  ;;  %v23_v26 = vld [vmem:[%s192_s0 + $0x30] sm:$0xff] }
   0x5   :  { %v31_v10 = vmul.f32 %v27_v3, %v17_v0  ;;  %v32_v11 = vmul.f32 %v28_v6, %v18_v5  ;;  %v33_v13 = vmul.f32 %v27_v3, %v19_v9  ;;  %v21_v15 = vld [vmem:[%s192_s0 + $0x20] sm:$0xff]  ;;  %v34_v17 = vmul.f32 %v28_v6, %v20_v14  ;;  %v24_v27 = vld [vmem:[%s192_s0 + $0x38] sm:$0xff]  ;;  %v58_v30 = vld [vmem:[%s195_s3 + $0x28] sm:$0xff] }
   0x6   :  { %v35_v19 = vmul.f32 %v27_v3, %v21_v15  ;;  %v57_v24 = vld [vmem:[%s195_s3 + $0x20] sm:$0xff]  ;;  %v36_v25 = vmul.f32 %v28_v6, %v22_v20  ;;  %v37_v31 = vmul.f32 %v27_v3, %v23_v26  ;;  %v38_v32 = vmul.f32 %v28_v6, %v24_v27  ;;  %v59_v37 = vld [vmem:[%s195_s3 + $0x30] sm:$0xff]  ;;  %v60_v38 = vld [vmem:[%s195_s3 + $0x38] sm:$0xff] }
   0x7   :  { %v45_v21 = vadd.f32 %v41_v4, %v31_v10  ;;  %v46_v22 = vadd.f32 %v42_v7, %v32_v11  ;;  %v47_v23 = vadd.f32 %v41_v4, %v33_v13  ;;  %v48_v28 = vadd.f32 %v42_v7, %v34_v17 }
   0x8   :  { %v49_v29 = vadd.f32 %v41_v4, %v35_v19  ;;  %v50_v36 = vadd.f32 %v42_v7, %v36_v25  ;;  %v51_v41 = vadd.f32 %v41_v4, %v37_v31  ;;  %v52_v42 = vadd.f32 %v42_v7, %v38_v32 }
   0x9   :  { %v61_v33 = vadd.f32 %v53_v8, %v45_v21  ;;  %v62_v34 = vadd.f32 %v54_v12, %v46_v22  ;;  %v63_v35 = vadd.f32 %v55_v16, %v47_v23  ;;  %v64_v39 = vadd.f32 %v56_v18, %v48_v28 }
   0xa   :  { %v65_v40 = vadd.f32 %v57_v24, %v49_v29  ;;  %v66_v46 = vadd.f32 %v58_v30, %v50_v36  ;;  %v67_v48 = vadd.f32 %v59_v37, %v51_v41  ;;  %v68_v49 = vadd.f32 %v60_v38, %v52_v42 }
   0xb   :  { %v69_v43 = vmax.f32 %v61_v33, 0.0  ;;  %v70_v44 = vmax.f32 %v62_v34, 0.0  ;;  %v71_v45 = vmax.f32 %v63_v35, 0.0  ;;  %v72_v47 = vmax.f32 %v64_v39, 0.0 }
   0xc   :  { %v73_v50 = vmax.f32 %v65_v40, 0.0  ;;  %v74_v51 = vmax.f32 %v66_v46, 0.0  ;;  %v75_v52 = vmax.f32 %v67_v48, 0.0  ;;  %v76_v53 = vmax.f32 %v68_v49, 0.0 }
   0xd   :  { %77 = vst [vmem:[%s196_s4] sm:$0xff] %v69_v43 }
   0xe   :  { %78 = vst [vmem:[%s196_s4 + $0x8] sm:$0xff] %v70_v44 }
   0xf   :  { %79 = vst [vmem:[%s196_s4 + $0x10] sm:$0xff] %v71_v45 }
  0x10   :  { %80 = vst [vmem:[%s196_s4 + $0x18] sm:$0xff] %v72_v47 }
  0x11   :  { %81 = vst [vmem:[%s196_s4 + $0x20] sm:$0xff] %v73_v50 }
  0x12   :  { %82 = vst [vmem:[%s196_s4 + $0x28] sm:$0xff] %v74_v51 }
  0x13   :  { %83 = vst [vmem:[%s196_s4 + $0x30] sm:$0xff] %v75_v52 }
  0x14   :  { %84 = vst [vmem:[%s196_s4 + $0x38] sm:$0xff] %v76_v53 }

// kernel: resnet_forward.62
= control target key start
LH: loop header
LB: loop body
LE: loop exit
PB: predicated region body
PF: predicated region fallthrough
CT: control target
= control target key end

     0   :  { %vm2693_vm0 = vcmask 1040384   ;;  %vm2699_vm1 = vcmask 1041408   ;;  %s6573_s1 = inlined_call_operand.vmem [shape: bf16[2304,256], index: 1, kind: input, shape index: {}]   ;;  %s6574_s0 = inlined_call_operand.vmem [shape: bf16[32,2304], index: 0, kind: input, shape index: {}]   ;;  %s6575_s2 = inlined_call_operand.vmem [shape: f32[32,256], index: 2, kind: output, shape index: {0}]   ;;  %s6576_s3 = inlined_call_operand.vmem [shape: f32[1,2,256], index: 3, kind: output, shape index: {1}]  }
   0x1   :  { %v2913_v0 = vld [vmem:[%s6573_s1 + $0x70] sm:$0xf]  ;;  %v4058_v1 = vld [vmem:[%s6573_s1 + $0x74] sm:$0xf0]  ;;  %v2905_v11 = vld [vmem:[%s6573_s1 + $0x60] sm:$0xf] }
   0x2   :  { %v2977_v2 = vld [vmem:[%s6573_s1 + $0xf0] sm:$0xf]  ;;  %v2914_v3 = vor.u32 %v4058_v1, %v2913_v0  ;;  %v4074_v4 = vld [vmem:[%s6573_s1 + $0xf4] sm:$0xf0]  ;;  %v4056_v13 = vld [vmem:[%s6573_s1 + $0x64] sm:$0xf0] }
   0x3   :  { %v3041_v5 = vld [vmem:[%s6573_s1 + $0x170] sm:$0xf]  ;;  %v4090_v6 = vld [vmem:[%s6573_s1 + $0x174] sm:$0xf0]  ;;  %v2978_v7 = vor.u32 %v4074_v4, %v2977_v2  ;;  %v2969_v14 = vld [vmem:[%s6573_s1 + $0xe0] sm:$0xf]  ;;  %v2906_v16 = vor.u32 %v4056_v13, %v2905_v11 }
   0x4   :  { %v3042_v8 = vor.u32 %v4090_v6, %v3041_v5  ;;  %v3105_v9 = vld [vmem:[%s6573_s1 + $0x1f0] sm:$0xf]  ;;  %v4106_v10 = vld [vmem:[%s6573_s1 + $0x1f4] sm:$0xf0]  ;;  %1957 = vmatpush.bf16.msra.mxu0 %v2914_v3  ;;  %v4072_v15 = vld [vmem:[%s6573_s1 + $0xe4] sm:$0xf0] }
   0x5   :  { %v3106_v12 = vor.u32 %v4106_v10, %v3105_v9  ;;  %1976 = vmatpush.bf16.msra.mxu1 %v2978_v7  ;;  %v2970_v17 = vor.u32 %v4072_v15, %v2969_v14  ;;  %v3033_v18 = vld [vmem:[%s6573_s1 + $0x160] sm:$0xf]  ;;  %v4088_v19 = vld [vmem:[%s6573_s1 + $0x164] sm:$0xf0]  ;;  %v2897_v23 = vld [vmem:[%s6573_s1 + $0x50] sm:$0xf] }
   0x6   :  { %1995 = vmatpush.bf16.msra.mxu2 %v3042_v8  ;;  %v3097_v20 = vld [vmem:[%s6573_s1 + $0x1e0] sm:$0xf]  ;;  %v3034_v21 = vor.u32 %v4088_v19, %v3033_v18  ;;  %v4104_v22 = vld [vmem:[%s6573_s1 + $0x1e4] sm:$0xf0]  ;;  %v4054_v24 = vld [vmem:[%s6573_s1 + $0x54] sm:$0xf0] }
   0x7   :  { %2014 = vmatpush.bf16.msra.mxu3 %v3106_v12  ;;  %v3098_v25 = vor.u32 %v4104_v22, %v3097_v20  ;;  %v2961_v26 = vld [vmem:[%s6573_s1 + $0xd0] sm:$0xf]  ;;  %v4070_v27 = vld [vmem:[%s6573_s1 + $0xd4] sm:$0xf0]  ;;  %v2898_v29 = vor.u32 %v4054_v24, %v2897_v23  ;;  %v2889_v35 = vld [vmem:[%s6573_s1 + $0x40] sm:$0xf] }
   0x8   :  { %v3025_v28 = vld [vmem:[%s6573_s1 + $0x150] sm:$0xf]  ;;  %1958 = vmatpush.bf16.msra.mxu0 %v2906_v16  ;;  %v4086_v30 = vld [vmem:[%s6573_s1 + $0x154] sm:$0xf0]  ;;  %v2962_v33 = vor.u32 %v4070_v27, %v2961_v26  ;;  %v4052_v36 = vld [vmem:[%s6573_s1 + $0x44] sm:$0xf0] }
   0x9   :  { %v3089_v31 = vld [vmem:[%s6573_s1 + $0x1d0] sm:$0xf]  ;;  %v4102_v32 = vld [vmem:[%s6573_s1 + $0x1d4] sm:$0xf0]  ;;  %1977 = vmatpush.bf16.msra.mxu1 %v2970_v17  ;;  %v3026_v34 = vor.u32 %v4086_v30, %v3025_v28  ;;  %v2953_v37 = vld [vmem:[%s6573_s1 + $0xc0] sm:$0xf]  ;;  %v2890_v44 = vor.u32 %v4052_v36, %v2889_v35 }
   0xa   :  { %1996 = vmatpush.bf16.msra.mxu2 %v3034_v21  ;;  %v3090_v38 = vor.u32 %v4102_v32, %v3089_v31  ;;  %v4068_v39 = vld [vmem:[%s6573_s1 + $0xc4] sm:$0xf0]  ;;  %v3017_v40 = vld [vmem:[%s6573_s1 + $0x140] sm:$0xf]  ;;  %v2881_v47 = vld [vmem:[%s6573_s1 + $0x30] sm:$0xf] }
   0xb   :  { %2015 = vmatpush.bf16.msra.mxu3 %v3098_v25  ;;  %v4084_v41 = vld [vmem:[%s6573_s1 + $0x144] sm:$0xf0]  ;;  %v3081_v42 = vld [vmem:[%s6573_s1 + $0x1c0] sm:$0xf]  ;;  %v2954_v45 = vor.u32 %v4068_v39, %v2953_v37  ;;  %v4050_v48 = vld [vmem:[%s6573_s1 + $0x34] sm:$0xf0] }
   0xc   :  { %v4100_v43 = vld [vmem:[%s6573_s1 + $0x1c4] sm:$0xf0]  ;;  %1959 = vmatpush.bf16.msra.mxu0 %v2898_v29  ;;  %v3018_v46 = vor.u32 %v4084_v41, %v3017_v40  ;;  %v2945_v49 = vld [vmem:[%s6573_s1 + $0xb0] sm:$0xf]  ;;  %v4066_v51 = vld [vmem:[%s6573_s1 + $0xb4] sm:$0xf0]  ;;  %v2882_v56 = vor.u32 %v4050_v48, %v2881_v47 }
   0xd   :  { %1978 = vmatpush.bf16.msra.mxu1 %v2962_v33  ;;  %v3082_v50 = vor.u32 %v4100_v43, %v3081_v42  ;;  %v3009_v52 = vld [vmem:[%s6573_s1 + $0x130] sm:$0xf]  ;;  %v4082_v53 = vld [vmem:[%s6573_s1 + $0x134] sm:$0xf0]  ;;  %v2946_v57 = vor.u32 %v4066_v51, %v2945_v49  ;;  %v2873_v59 = vld [vmem:[%s6573_s1 + $0x20] sm:$0xf] }
   0xe   :  { %1997 = vmatpush.bf16.msra.mxu2 %v3026_v34  ;;  %v3073_v54 = vld [vmem:[%s6573_s1 + $0x1b0] sm:$0xf]  ;;  %v4098_v55 = vld [vmem:[%s6573_s1 + $0x1b4] sm:$0xf0]  ;;  %v3010_v58 = vor.u32 %v4082_v53, %v3009_v52  ;;  %v4048_v60 = vld [vmem:[%s6573_s1 + $0x24] sm:$0xf0] }
   0xf   :  { %2016 = vmatpush.bf16.msra.mxu3 %v3090_v38  ;;  %v2937_v61 = vld [vmem:[%s6573_s1 + $0xa0] sm:$0xf]  ;;  %v3074_v62 = vor.u32 %v4098_v55, %v3073_v54  ;;  %v4064_v63 = vld [vmem:[%s6573_s1 + $0xa4] sm:$0xf0]  ;;  %v2874_v4 = vor.u32 %v4048_v60, %v2873_v59  ;;  %v2865_v7 = vld [vmem:[%s6573_s1 + $0x10] sm:$0xf] }
  0x10   :  { %1960 = vmatpush.bf16.msra.mxu0 %v2890_v44  ;;  %v3001_v0 = vld [vmem:[%s6573_s1 + $0x120] sm:$0xf]  ;;  %v4080_v1 = vld [vmem:[%s6573_s1 + $0x124] sm:$0xf0]  ;;  %v2938_v5 = vor.u32 %v4064_v63, %v2937_v61  ;;  %v4046_v8 = vld [vmem:[%s6573_s1 + $0x14] sm:$0xf0] }
  0x11   :  { %1979 = vmatpush.bf16.msra.mxu1 %v2954_v45  ;;  %v3065_v2 = vld [vmem:[%s6573_s1 + $0x1a0] sm:$0xf]  ;;  %v4096_v3 = vld [vmem:[%s6573_s1 + $0x1a4] sm:$0xf0]  ;;  %v3002_v6 = vor.u32 %v4080_v1, %v3001_v0  ;;  %v2929_v9 = vld [vmem:[%s6573_s1 + $0x90] sm:$0xf]  ;;  %v2866_v17 = vor.u32 %v4046_v8, %v2865_v7 }
  0x12   :  { %1998 = vmatpush.bf16.msra.mxu2 %v3018_v46  ;;  %v3066_v10 = vor.u32 %v4096_v3, %v3065_v2  ;;  %v4062_v11 = vld [vmem:[%s6573_s1 + $0x94] sm:$0xf0]  ;;  %v2993_v12 = vld [vmem:[%s6573_s1 + $0x110] sm:$0xf]  ;;  %v2857_v16 = vld [vmem:[%s6573_s1] sm:$0xf] }
  0x13   :  { %2017 = vmatpush.bf16.msra.mxu3 %v3082_v50  ;;  %v4078_v13 = vld [vmem:[%s6573_s1 + $0x114] sm:$0xf0]  ;;  %v3057_v14 = vld [vmem:[%s6573_s1 + $0x190] sm:$0xf]  ;;  %v4044_v18 = vld [vmem:[%s6573_s1 + $0x4] sm:$0xf0]  ;;  %v2930_v21 = vor.u32 %v4062_v11, %v2929_v9 }
  0x14   :  { %1961 = vmatpush.bf16.msra.mxu0 %v2882_v56  ;;  %v4094_v15 = vld [vmem:[%s6573_s1 + $0x194] sm:$0xf0]  ;;  %v2921_v19 = vld [vmem:[%s6573_s1 + $0x80] sm:$0xf]  ;;  %v4060_v20 = vld [vmem:[%s6573_s1 + $0x84] sm:$0xf0]  ;;  %v2994_v22 = vor.u32 %v4078_v13, %v2993_v12  ;;  %v2858_v34 = vor.u32 %v4044_v18, %v2857_v16 }
  0x15   :  { %1980 = vmatpush.bf16.msra.mxu1 %v2946_v57  ;;  %v2985_v23 = vld [vmem:[%s6573_s1 + $0x100] sm:$0xf]  ;;  %v4076_v24 = vld [vmem:[%s6573_s1 + $0x104] sm:$0xf0]  ;;  %v3058_v26 = vor.u32 %v4094_v15, %v3057_v14  ;;  %v4007_v30 = vld [vmem:[%s6574_s0 + $0x4] sm:$0xf]  ;;  %v2922_v38 = vor.u32 %v4060_v20, %v2921_v19 }
  0x16   :  { %1999 = vmatpush.bf16.msra.mxu2 %v3010_v58  ;;  %v3049_v25 = vld [vmem:[%s6573_s1 + $0x180] sm:$0xf]  ;;  %v4092_v27 = vld [vmem:[%s6573_s1 + $0x184] sm:$0xf0]  ;;  %v2715_v31 = vld [vmem:[%s6574_s0 + $0x48] sm:$0xf0]  ;;  %v2986_v39 = vor.u32 %v4076_v24, %v2985_v23 }
  0x17   :  { %2018 = vmatpush.bf16.msra.mxu3 %v3074_v62  ;;  %v2713_v28 = vld [vmem:[%s6574_s0] sm:$0xf]  ;;  %v4016_v29 = vld [vmem:[%s6574_s0 + $0x44] sm:$0xf0]  ;;  %v3297_v32 = vld [vmem:[%s6573_s1 + $0x370] sm:$0xf]  ;;  %v3050_v43 = vor.u32 %v4092_v27, %v3049_v25  ;;  %v4599_v53 = vor.u32 %v4007_v30, %v2715_v31 }
  0x18   :  { %1962 = vmatpush.bf16.msra.mxu0 %v2874_v4  ;;  %v4154_v33 = vld [vmem:[%s6573_s1 + $0x374] sm:$0xf0]  ;;  %v2721_v35 = vld [vmem:[%s6574_s0 + $0x8] sm:$0xf]  ;;  %v3233_v36 = vld [vmem:[%s6573_s1 + $0x2f0] sm:$0xf]  ;;  %v4588_v48 = vor.u32 %v4016_v29, %v2713_v28 }
  0x19   :  { %1981 = vmatpush.bf16.msra.mxu1 %v2938_v5  ;;  %v4138_v37 = vld [vmem:[%s6573_s1 + $0x2f4] sm:$0xf0]  ;;  %v4017_v40 = vld [vmem:[%s6574_s0 + $0x4c] sm:$0xf0]  ;;  %v4008_v41 = vld [vmem:[%s6574_s0 + $0xc] sm:$0xf]  ;;  %v3298_v44 = vor.u32 %v4154_v33, %v3297_v32 }
  0x1a   :  { %2000 = vmatpush.bf16.msra.mxu2 %v3002_v6  ;;  %v2723_v42 = vld [vmem:[%s6574_s0 + $0x50] sm:$0xf0]  ;;  %v3169_v45 = vld [vmem:[%s6573_s1 + $0x270] sm:$0xf]  ;;  %v4122_v46 = vld [vmem:[%s6573_s1 + $0x274] sm:$0xf0]  ;;  %v3234_v49 = vor.u32 %v4138_v37, %v3233_v36  ;;  %v4601_v54 = vor.u32 %v4017_v40, %v2721_v35 }
  0x1b   :  { %2019 = vmatpush.bf16.msra.mxu3 %v3066_v10  ;;  %v3361_v47 = vld [vmem:[%s6573_s1 + $0x3f0] sm:$0xf]  ;;  %v4170_v50 = vld [vmem:[%s6573_s1 + $0x3f4] sm:$0xf0]  ;;  %v3289_v51 = vld [vmem:[%s6573_s1 + $0x360] sm:$0xf]  ;;  %v4609_v57 = vor.u32 %v4008_v41, %v2723_v42  ;;  %v3170_v58 = vor.u32 %v4122_v46, %v3169_v45 }
  0x1c   :  { %1963 = vmatpush.bf16.msra.mxu0 %v2866_v17  ;;  %v4152_v52 = vld [vmem:[%s6573_s1 + $0x364] sm:$0xf0]  ;;  %v3225_v55 = vld [vmem:[%s6573_s1 + $0x2e0] sm:$0xf]  ;;  %v3362_v59 = vor.u32 %v4170_v50, %v3361_v47  ;;  %v3281_v2 = vld [vmem:[%s6573_s1 + $0x350] sm:$0xf] }
  0x1d   :  { %1982 = vmatpush.bf16.msra.mxu1 %v2930_v21  ;;  %v4136_v56 = vld [vmem:[%s6573_s1 + $0x2e4] sm:$0xf0]  ;;  %v3290_v60 = vor.u32 %v4152_v52, %v3289_v51  ;;  %v3161_v61 = vld [vmem:[%s6573_s1 + $0x260] sm:$0xf]  ;;  %v4150_v3 = vld [vmem:[%s6573_s1 + $0x354] sm:$0xf0] }
  0x1e   :  { %2001 = vmatpush.bf16.msra.mxu2 %v2994_v22  ;;  %v4120_v62 = vld [vmem:[%s6573_s1 + $0x264] sm:$0xf0]  ;;  %v3353_v63 = vld [vmem:[%s6573_s1 + $0x3e0] sm:$0xf]  ;;  %v3226_v0 = vor.u32 %v4136_v56, %v3225_v55  ;;  %v3217_v4 = vld [vmem:[%s6573_s1 + $0x2d0] sm:$0xf]  ;;  %v3282_v8 = vor.u32 %v4150_v3, %v3281_v2 }
  0x1f   :  { %2020 = vmatpush.bf16.msra.mxu3 %v3058_v26  ;;  %v4168_v1 = vld [vmem:[%s6573_s1 + $0x3e4] sm:$0xf0]  ;;  %v4134_v5 = vld [vmem:[%s6573_s1 + $0x2d4] sm:$0xf0]  ;;  %v3162_v6 = vor.u32 %v4120_v62, %v3161_v61  ;;  %v3153_v9 = vld [vmem:[%s6573_s1 + $0x250] sm:$0xf] }
  0x20   :  { %1964 = vmatpush.bf16.msra.mxu0 %v2858_v34  ;;  %v3354_v7 = vor.u32 %v4168_v1, %v3353_v63  ;;  %v4118_v10 = vld [vmem:[%s6573_s1 + $0x254] sm:$0xf0]  ;;  %v3345_v11 = vld [vmem:[%s6573_s1 + $0x3d0] sm:$0xf]  ;;  %v3218_v12 = vor.u32 %v4134_v5, %v3217_v4  ;;  %v3273_v14 = vld [vmem:[%s6573_s1 + $0x340] sm:$0xf] }
  0x21   :  { %1983 = vmatpush.bf16.msra.mxu1 %v2922_v38  ;;  %v4166_v13 = vld [vmem:[%s6573_s1 + $0x3d4] sm:$0xf0]  ;;  %v4148_v15 = vld [vmem:[%s6573_s1 + $0x344] sm:$0xf0]  ;;  %v3209_v16 = vld [vmem:[%s6573_s1 + $0x2c0] sm:$0xf]  ;;  %v3154_v18 = vor.u32 %v4118_v10, %v3153_v9 }
  0x22   :  { %2002 = vmatpush.bf16.msra.mxu2 %v2986_v39  ;;  %v4132_v17 = vld [vmem:[%s6573_s1 + $0x2c4] sm:$0xf0]  ;;  %v3145_v19 = vld [vmem:[%s6573_s1 + $0x240] sm:$0xf]  ;;  %v3346_v22 = vor.u32 %v4166_v13, %v3345_v11  ;;  %v3274_v23 = vor.u32 %v4148_v15, %v3273_v14  ;;  %v2785_v25 = vld [vmem:[%s6574_s0 + $0x90] sm:$0xf] }
  0x23   :  { %2021 = vmatpush.bf16.msra.mxu3 %v3050_v43  ;;  %1965 = vmatmul.bf16.vlgmr.msra.gmra.mxu0 %v4588_v48  ;;  %v4116_v20 = vld [vmem:[%s6573_s1 + $0x244] sm:$0xf0]  ;;  %v3337_v21 = vld [vmem:[%s6573_s1 + $0x3c0] sm:$0xf]  ;;  %v4034_v26 = vld [vmem:[%s6574_s0 + $0xd4] sm:$0xf0]  ;;  %v3210_v27 = vor.u32 %v4132_v17, %v3209_v16 }
  0x24   :  { %1984 = vmatmul.bf16.vlgmr.msra.gmra.mxu1 %v4599_v53  ;;  %2033 = vmatpush.bf16.msrb.mxu0 %v3170_v58  ;;  %v4164_v24 = vld [vmem:[%s6573_s1 + $0x3c4] sm:$0xf0]  ;;  %v4025_v28 = vld [vmem:[%s6574_s0 + $0x94] sm:$0xf]  ;;  %v2787_v29 = vld [vmem:[%s6574_s0 + $0xd8] sm:$0xf0]  ;;  %v3146_v35 = vor.u32 %v4116_v20, %v3145_v19 }
  0x25   :  { %2052 = vmatpush.bf16.msrb.mxu1 %v3234_v49  ;;  %2003 = vmatmul.bf16.vlgmr.msra.gmra.mxu2 %v4601_v54  ;;  %v3265_v30 = vld [vmem:[%s6573_s1 + $0x330] sm:$0xf]  ;;  %v4146_v31 = vld [vmem:[%s6573_s1 + $0x334] sm:$0xf0]  ;;  %v4035_v36 = vld [vmem:[%s6574_s0 + $0xdc] sm:$0xf0]  ;;  %v3338_v39 = vor.u32 %v4164_v24, %v3337_v21  ;;  %v4731_v50 = vor.u32 %v4025_v28, %v2787_v29 }
  0x26   :  { %2071 = vmatpush.bf16.msrb.mxu2 %v3298_v44  ;;  %2022 = vmatmul.bf16.vlgmr.msra.gmra.mxu3 %v4609_v57  ;;  %v2793_v32 = vld [vmem:[%s6574_s0 + $0x98] sm:$0xf]  ;;  %v3201_v33 = vld [vmem:[%s6573_s1 + $0x2b0] sm:$0xf]  ;;  %v4026_v37 = vld [vmem:[%s6574_s0 + $0x9c] sm:$0xf]  ;;  %v3266_v40 = vor.u32 %v4146_v31, %v3265_v30  ;;  %v4720_v44 = vor.u32 %v4034_v26, %v2785_v25 }
  0x27   :  { %2090 = vmatpush.bf16.msrb.mxu3 %v3362_v59  ;;  %v4130_v34 = vld [vmem:[%s6573_s1 + $0x2b4] sm:$0xf0]  ;;  %v2795_v38 = vld [vmem:[%s6574_s0 + $0xe0] sm:$0xf0]  ;;  %v3137_v41 = vld [vmem:[%s6573_s1 + $0x230] sm:$0xf]  ;;  %v4733_v51 = vor.u32 %v4035_v36, %v2793_v32 }
  0x28   :  { %2034 = vmatpush.bf16.msrb.mxu0 %v3162_v6  ;;  %v4114_v42 = vld [vmem:[%s6573_s1 + $0x234] sm:$0xf0]  ;;  %v3329_v43 = vld [vmem:[%s6573_s1 + $0x3b0] sm:$0xf]  ;;  %v3202_v45 = vor.u32 %v4130_v34, %v3201_v33  ;;  %v3257_v47 = vld [vmem:[%s6573_s1 + $0x320] sm:$0xf]  ;;  %v4741_v56 = vor.u32 %v4026_v37, %v2795_v38 }
  0x29   :  { %2053 = vmatpush.bf16.msrb.mxu1 %v3226_v0  ;;  %v4162_v46 = vld [vmem:[%s6573_s1 + $0x3b4] sm:$0xf0]  ;;  %v4144_v49 = vld [vmem:[%s6573_s1 + $0x324] sm:$0xf0]  ;;  %v3193_v52 = vld [vmem:[%s6573_s1 + $0x2a0] sm:$0xf]  ;;  %v3138_v58 = vor.u32 %v4114_v42, %v3137_v41 }
  0x2a   :  { %2072 = vmatpush.bf16.msrb.mxu2 %v3290_v60  ;;  %v4128_v55 = vld [vmem:[%s6573_s1 + $0x2a4] sm:$0xf0]  ;;  %v3330_v59 = vor.u32 %v4162_v46, %v3329_v43  ;;  %v3258_v60 = vor.u32 %v4144_v49, %v3257_v47  ;;  %v3129_v61 = vld [vmem:[%s6573_s1 + $0x220] sm:$0xf]  ;;  %v3249_v2 = vld [vmem:[%s6573_s1 + $0x310] sm:$0xf] }
  0x2b   :  { %2091 = vmatpush.bf16.msrb.mxu3 %v3354_v7  ;;  %v4112_v62 = vld [vmem:[%s6573_s1 + $0x224] sm:$0xf0]  ;;  %v3321_v63 = vld [vmem:[%s6573_s1 + $0x3a0] sm:$0xf]  ;;  %v3194_v0 = vor.u32 %v4128_v55, %v3193_v52  ;;  %v4142_v3 = vld [vmem:[%s6573_s1 + $0x314] sm:$0xf0] }
  0x2c   :  { %2035 = vmatpush.bf16.msrb.mxu0 %v3154_v18  ;;  %v4160_v1 = vld [vmem:[%s6573_s1 + $0x3a4] sm:$0xf0]  ;;  %v3185_v4 = vld [vmem:[%s6573_s1 + $0x290] sm:$0xf]  ;;  %v4126_v5 = vld [vmem:[%s6573_s1 + $0x294] sm:$0xf0]  ;;  %v3130_v6 = vor.u32 %v4112_v62, %v3129_v61  ;;  %v3250_v9 = vor.u32 %v4142_v3, %v3249_v2 }
  0x2d   :  { %2054 = vmatpush.bf16.msrb.mxu1 %v3218_v12  ;;  %v3121_v7 = vld [vmem:[%s6573_s1 + $0x210] sm:$0xf]  ;;  %v4110_v10 = vld [vmem:[%s6573_s1 + $0x214] sm:$0xf0]  ;;  %v3186_v13 = vor.u32 %v4126_v5, %v3185_v4  ;;  %v3241_v14 = vld [vmem:[%s6573_s1 + $0x300] sm:$0xf] }
  0x2e   :  { %2073 = vmatpush.bf16.msrb.mxu2 %v3282_v8  ;;  %v3322_v8 = vor.u32 %v4160_v1, %v3321_v63  ;;  %v3313_v11 = vld [vmem:[%s6573_s1 + $0x390] sm:$0xf]  ;;  %v4158_v12 = vld [vmem:[%s6573_s1 + $0x394] sm:$0xf0]  ;;  %v4140_v15 = vld [vmem:[%s6573_s1 + $0x304] sm:$0xf0]  ;;  %v3122_v20 = vor.u32 %v4110_v10, %v3121_v7 }
  0x2f   :  { %2092 = vmatpush.bf16.msrb.mxu3 %v3346_v22  ;;  %v3177_v16 = vld [vmem:[%s6573_s1 + $0x280] sm:$0xf]  ;;  %v4124_v17 = vld [vmem:[%s6573_s1 + $0x284] sm:$0xf0]  ;;  %v3553_v18 = vld [vmem:[%s6573_s1 + $0x570] sm:$0xf]  ;;  %v3314_v24 = vor.u32 %v4158_v12, %v3313_v11  ;;  %v3242_v25 = vor.u32 %v4140_v15, %v3241_v14 }
  0x30   :  { %2036 = vmatpush.bf16.msrb.mxu0 %v3146_v35  ;;  %v4218_v19 = vld [vmem:[%s6573_s1 + $0x574] sm:$0xf0]  ;;  %v3113_v21 = vld [vmem:[%s6573_s1 + $0x200] sm:$0xf]  ;;  %v3489_v22 = vld [vmem:[%s6573_s1 + $0x4f0] sm:$0xf]  ;;  %v3178_v29 = vor.u32 %v4124_v17, %v3177_v16 }
  0x31   :  { %2055 = vmatpush.bf16.msrb.mxu1 %v3210_v27  ;;  %v4108_v26 = vld [vmem:[%s6573_s1 + $0x204] sm:$0xf0]  ;;  %v3305_v27 = vld [vmem:[%s6573_s1 + $0x380] sm:$0xf]  ;;  %v2729_v30 = vld [vmem:[%s6574_s0 + $0x10] sm:$0xf]  ;;  %v3554_v34 = vor.u32 %v4218_v19, %v3553_v18 }
  0x32   :  { %2074 = vmatpush.bf16.msrb.mxu2 %v3274_v23  ;;  %v4202_v23 = vld [vmem:[%s6573_s1 + $0x4f4] sm:$0xf0]  ;;  %v4156_v28 = vld [vmem:[%s6573_s1 + $0x384] sm:$0xf0]  ;;  %v4009_v32 = vld [vmem:[%s6574_s0 + $0x14] sm:$0xf]  ;;  %v3114_v42 = vor.u32 %v4108_v26, %v3113_v21 }
  0x33   :  { %2093 = vmatpush.bf16.msrb.mxu3 %v3338_v39  ;;  %1970 = vmatmul.bf16.gmra.mxu0 %v4720_v44  ;;  %v4018_v31 = vld [vmem:[%s6574_s0 + $0x54] sm:$0xf0]  ;;  %v2731_v33 = vld [vmem:[%s6574_s0 + $0x58] sm:$0xf0]  ;;  %v3425_v35 = vld [vmem:[%s6573_s1 + $0x470] sm:$0xf]  ;;  %v3490_v38 = vor.u32 %v4202_v23, %v3489_v22  ;;  %v3306_v47 = vor.u32 %v4156_v28, %v3305_v27 }
  0x34   :  { %1989 = vmatmul.bf16.gmra.mxu1 %v4731_v50  ;;  %2037 = vmatpush.bf16.msrb.mxu0 %v3138_v58  ;;  %v4186_v36 = vld [vmem:[%s6573_s1 + $0x474] sm:$0xf0]  ;;  %v3617_v37 = vld [vmem:[%s6573_s1 + $0x5f0] sm:$0xf]  ;;  %v4216_v41 = vld [vmem:[%s6573_s1 + $0x564] sm:$0xf0]  ;;  %v4878_v1 = vor.u32 %v4009_v32, %v2731_v33 }
  0x35   :  { %2056 = vmatpush.bf16.msrb.mxu1 %v3202_v45  ;;  %2008 = vmatmul.bf16.gmra.mxu2 %v4733_v51  ;;  %v4234_v39 = vld [vmem:[%s6573_s1 + $0x5f4] sm:$0xf0]  ;;  %v4019_v45 = vld [vmem:[%s6574_s0 + $0x5c] sm:$0xf0]  ;;  %v4010_v46 = vld [vmem:[%s6574_s0 + $0x1c] sm:$0xf]  ;;  %v3426_v52 = vor.u32 %v4186_v36, %v3425_v35 }
  0x36   :  { %2075 = vmatpush.bf16.msrb.mxu2 %v3266_v40  ;;  %2027 = vmatmul.bf16.gmra.mxu3 %v4741_v56  ;;  %v3545_v40 = vld [vmem:[%s6573_s1 + $0x560] sm:$0xf]  ;;  %v2737_v43 = vld [vmem:[%s6574_s0 + $0x18] sm:$0xf]  ;;  %v2739_v49 = vld [vmem:[%s6574_s0 + $0x60] sm:$0xf0] }
  0x37   :  { %2094 = vmatpush.bf16.msrb.mxu3 %v3330_v59  ;;  %v3417_v55 = vld [vmem:[%s6573_s1 + $0x460] sm:$0xf]  ;;  %v4184_v58 = vld [vmem:[%s6573_s1 + $0x464] sm:$0xf0]  ;;  %v3618_v59 = vor.u32 %v4234_v39, %v3617_v37  ;;  %v3537_v3 = vld [vmem:[%s6573_s1 + $0x550] sm:$0xf]  ;;  %v4889_v5 = vor.u32 %v4019_v45, %v2737_v43 }
  0x38   :  { %2038 = vmatpush.bf16.msrb.mxu0 %v3130_v6  ;;  %v3481_v61 = vld [vmem:[%s6573_s1 + $0x4e0] sm:$0xf]  ;;  %v4200_v62 = vld [vmem:[%s6573_s1 + $0x4e4] sm:$0xf0]  ;;  %v4214_v4 = vld [vmem:[%s6573_s1 + $0x554] sm:$0xf0]  ;;  %v4891_v6 = vor.u32 %v4010_v46, %v2739_v49  ;;  %v3418_v7 = vor.u32 %v4184_v58, %v3417_v55 }
  0x39   :  { %2057 = vmatpush.bf16.msrb.mxu1 %v3194_v0  ;;  %v3609_v63 = vld [vmem:[%s6573_s1 + $0x5e0] sm:$0xf]  ;;  %v4876_v0 = vor.u32 %v4018_v31, %v2729_v30  ;;  %v4232_v2 = vld [vmem:[%s6573_s1 + $0x5e4] sm:$0xf0]  ;;  %v4182_v10 = vld [vmem:[%s6573_s1 + $0x454] sm:$0xf0]  ;;  %v3538_v12 = vor.u32 %v4214_v4, %v3537_v3 }
  0x3a   :  { %2076 = vmatpush.bf16.msrb.mxu2 %v3258_v60  ;;  %v3546_v60 = vor.u32 %v4216_v41, %v3545_v40  ;;  %v3610_v11 = vor.u32 %v4232_v2, %v3609_v63  ;;  %v4198_v14 = vld [vmem:[%s6573_s1 + $0x4d4] sm:$0xf0]  ;;  %v3601_v15 = vld [vmem:[%s6573_s1 + $0x5d0] sm:$0xf]  ;;  %v3529_v17 = vld [vmem:[%s6573_s1 + $0x540] sm:$0xf] }
  0x3b   :  { %2095 = vmatpush.bf16.msrb.mxu3 %v3322_v8  ;;  %v3482_v8 = vor.u32 %v4200_v62, %v3481_v61  ;;  %v4230_v16 = vld [vmem:[%s6573_s1 + $0x5d4] sm:$0xf0]  ;;  %v4212_v18 = vld [vmem:[%s6573_s1 + $0x544] sm:$0xf0]  ;;  %v3401_v21 = vld [vmem:[%s6573_s1 + $0x440] sm:$0xf] }
  0x3c   :  { %2039 = vmatpush.bf16.msrb.mxu0 %v3122_v20  ;;  %v4180_v22 = vld [vmem:[%s6573_s1 + $0x444] sm:$0xf0]  ;;  %v3602_v23 = vor.u32 %v4230_v16, %v3601_v15  ;;  %v3593_v27 = vld [vmem:[%s6573_s1 + $0x5c0] sm:$0xf]  ;;  %v4210_v30 = vld [vmem:[%s6573_s1 + $0x534] sm:$0xf0] }
  0x3d   :  { %2058 = vmatpush.bf16.msrb.mxu1 %v3186_v13  ;;  %v3473_v13 = vld [vmem:[%s6573_s1 + $0x4d0] sm:$0xf]  ;;  %v4196_v26 = vld [vmem:[%s6573_s1 + $0x4c4] sm:$0xf0]  ;;  %v3402_v31 = vor.u32 %v4180_v22, %v3401_v21  ;;  %v2801_v36 = vld [vmem:[%s6574_s0 + $0xa0] sm:$0xf] }
  0x3e   :  { %2077 = vmatpush.bf16.msrb.mxu2 %v3250_v9  ;;  %v3409_v9 = vld [vmem:[%s6573_s1 + $0x450] sm:$0xf]  ;;  %v3474_v20 = vor.u32 %v4198_v14, %v3473_v13  ;;  %v4228_v28 = vld [vmem:[%s6573_s1 + $0x5c4] sm:$0xf0]  ;;  %v2803_v39 = vld [vmem:[%s6574_s0 + $0xe8] sm:$0xf0] }
  0x3f   :  { %2096 = vmatpush.bf16.msrb.mxu3 %v3314_v24  ;;  %v3410_v19 = vor.u32 %v4182_v10, %v3409_v9  ;;  %v3530_v24 = vor.u32 %v4212_v18, %v3529_v17  ;;  %v3393_v33 = vld [vmem:[%s6573_s1 + $0x430] sm:$0xf]  ;;  %v3594_v35 = vor.u32 %v4228_v28, %v3593_v27  ;;  %v4036_v37 = vld [vmem:[%s6574_s0 + $0xe4] sm:$0xf0]  ;;  %v4226_v45 = vld [vmem:[%s6573_s1 + $0x5b4] sm:$0xf0] }
  0x40   :  { %2040 = vmatpush.bf16.msrb.mxu0 %v3114_v42  ;;  %v3457_v41 = vld [vmem:[%s6573_s1 + $0x4b0] sm:$0xf]  ;;  %v4194_v42 = vld [vmem:[%s6573_s1 + $0x4b4] sm:$0xf0]  ;;  %v3513_v46 = vld [vmem:[%s6573_s1 + $0x520] sm:$0xf] }
  0x41   :  { %2059 = vmatpush.bf16.msrb.mxu1 %v3178_v29  ;;  %v3521_v29 = vld [vmem:[%s6573_s1 + $0x530] sm:$0xf]  ;;  %v2809_v49 = vld [vmem:[%s6574_s0 + $0xa8] sm:$0xf]  ;;  %v4028_v55 = vld [vmem:[%s6574_s0 + $0xac] sm:$0xf] }
  0x42   :  { %2078 = vmatpush.bf16.msrb.mxu2 %v3242_v25  ;;  %v3465_v25 = vld [vmem:[%s6573_s1 + $0x4c0] sm:$0xf]  ;;  %v3522_v40 = vor.u32 %v4210_v30, %v3521_v29  ;;  %v3585_v43 = vld [vmem:[%s6573_s1 + $0x5b0] sm:$0xf]  ;;  %v2811_v58 = vld [vmem:[%s6574_s0 + $0xf0] sm:$0xf0] }
  0x43   :  { %2097 = vmatpush.bf16.msrb.mxu3 %v3306_v47  ;;  %2041 = vmatmul.bf16.vlgmr.msrb.gmra.mxu0 %v4876_v0  ;;  %v3466_v32 = vor.u32 %v4196_v26, %v3465_v25  ;;  %v4208_v47 = vld [vmem:[%s6573_s1 + $0x524] sm:$0xf0]  ;;  %v3385_v61 = vld [vmem:[%s6573_s1 + $0x420] sm:$0xf]  ;;  %v3586_v63 = vor.u32 %v4226_v45, %v3585_v43  ;;  %v5023_v14 = vor.u32 %v4028_v55, %v2811_v58  ;;  %v3377_v17 = vld [vmem:[%s6573_s1 + $0x410] sm:$0xf] }
  0x44   :  { %2109 = vmatpush.bf16.msra.mxu0 %v3426_v52  ;;  %2060 = vmatmul.bf16.vlgmr.msrb.gmra.mxu1 %v4878_v1  ;;  %v4037_v52 = vld [vmem:[%s6574_s0 + $0xec] sm:$0xf0]  ;;  %v4176_v62 = vld [vmem:[%s6573_s1 + $0x424] sm:$0xf0]  ;;  %v3514_v2 = vor.u32 %v4208_v47, %v3513_v46  ;;  %v3449_v3 = vld [vmem:[%s6573_s1 + $0x4a0] sm:$0xf] }
  0x45   :  { %2128 = vmatpush.bf16.msra.mxu1 %v3490_v38  ;;  %2079 = vmatmul.bf16.vlgmr.msrb.gmra.mxu2 %v4889_v5  ;;  %v4027_v38 = vld [vmem:[%s6574_s0 + $0xa4] sm:$0xf]  ;;  %v4192_v4 = vld [vmem:[%s6573_s1 + $0x4a4] sm:$0xf0]  ;;  %v5021_v13 = vor.u32 %v4037_v52, %v2809_v49  ;;  %v3386_v15 = vor.u32 %v4176_v62, %v3385_v61  ;;  %v4174_v18 = vld [vmem:[%s6573_s1 + $0x414] sm:$0xf0] }
  0x46   :  { %2147 = vmatpush.bf16.msra.mxu2 %v3554_v34  ;;  %2098 = vmatmul.bf16.vlgmr.msrb.gmra.mxu3 %v4891_v6  ;;  %v4178_v34 = vld [vmem:[%s6573_s1 + $0x434] sm:$0xf0]  ;;  %v5010_v9 = vor.u32 %v4027_v38, %v2803_v39  ;;  %v4224_v10 = vld [vmem:[%s6573_s1 + $0x5a4] sm:$0xf0]  ;;  %v3450_v16 = vor.u32 %v4192_v4, %v3449_v3  ;;  %v3441_v21 = vld [vmem:[%s6573_s1 + $0x490] sm:$0xf]  ;;  %v3378_v29 = vor.u32 %v4174_v18, %v3377_v17 }
  0x47   :  { %2166 = vmatpush.bf16.msra.mxu3 %v3618_v59  ;;  %v3394_v59 = vor.u32 %v4178_v34, %v3393_v33  ;;  %v4190_v22 = vld [vmem:[%s6573_s1 + $0x494] sm:$0xf0]  ;;  %v3497_v25 = vld [vmem:[%s6573_s1 + $0x500] sm:$0xf]  ;;  %v4204_v26 = vld [vmem:[%s6573_s1 + $0x504] sm:$0xf0] }
  0x48   :  { %2110 = vmatpush.bf16.msra.mxu0 %v3418_v7  ;;  %v3577_v7 = vld [vmem:[%s6573_s1 + $0x5a0] sm:$0xf]  ;;  %v3809_v27 = vld [vmem:[%s6573_s1 + $0x770] sm:$0xf]  ;;  %v4282_v28 = vld [vmem:[%s6573_s1 + $0x774] sm:$0xf0]  ;;  %v3442_v30 = vor.u32 %v4190_v22, %v3441_v21 }
  0x49   :  { %2129 = vmatpush.bf16.msra.mxu1 %v3482_v8  ;;  %v5008_v8 = vor.u32 %v4036_v37, %v2801_v36  ;;  %v3433_v33 = vld [vmem:[%s6573_s1 + $0x480] sm:$0xf]  ;;  %v4188_v36 = vld [vmem:[%s6573_s1 + $0x484] sm:$0xf0]  ;;  %v3810_v39 = vor.u32 %v4282_v28, %v3809_v27  ;;  %v4266_v43 = vld [vmem:[%s6573_s1 + $0x6f4] sm:$0xf0] }
  0x4a   :  { %2148 = vmatpush.bf16.msra.mxu2 %v3546_v60  ;;  %v3458_v60 = vor.u32 %v4194_v42, %v3457_v41  ;;  %v3561_v37 = vld [vmem:[%s6573_s1 + $0x580] sm:$0xf]  ;;  %v4220_v38 = vld [vmem:[%s6573_s1 + $0x584] sm:$0xf0]  ;;  %v4250_v41 = vld [vmem:[%s6573_s1 + $0x674] sm:$0xf0]  ;;  %v3434_v49 = vor.u32 %v4188_v36, %v3433_v33 }
  0x4b   :  { %2167 = vmatpush.bf16.msra.mxu3 %v3610_v11  ;;  %v3505_v11 = vld [vmem:[%s6573_s1 + $0x510] sm:$0xf]  ;;  %v4298_v46 = vld [vmem:[%s6573_s1 + $0x7f4] sm:$0xf0]  ;;  %v3801_v52 = vld [vmem:[%s6573_s1 + $0x760] sm:$0xf]  ;;  %v3562_v58 = vor.u32 %v4220_v38, %v3561_v37 }
  0x4c   :  { %2111 = vmatpush.bf16.msra.mxu0 %v3410_v19  ;;  %v3578_v19 = vor.u32 %v4224_v10, %v3577_v7  ;;  %v3745_v42 = vld [vmem:[%s6573_s1 + $0x6f0] sm:$0xf]  ;;  %v4280_v55 = vld [vmem:[%s6573_s1 + $0x764] sm:$0xf0]  ;;  %v4011_v61 = vld [vmem:[%s6574_s0 + $0x24] sm:$0xf] }
  0x4d   :  { %2130 = vmatpush.bf16.msra.mxu1 %v3474_v20  ;;  %v3873_v45 = vld [vmem:[%s6573_s1 + $0x7f0] sm:$0xf]  ;;  %v3673_v4 = vld [vmem:[%s6573_s1 + $0x660] sm:$0xf]  ;;  %v4248_v7 = vld [vmem:[%s6573_s1 + $0x664] sm:$0xf0] }
  0x4e   :  { %2149 = vmatpush.bf16.msra.mxu2 %v3538_v12  ;;  %v4206_v12 = vld [vmem:[%s6573_s1 + $0x514] sm:$0xf0]  ;;  %v3874_v3 = vor.u32 %v4298_v46, %v3873_v45  ;;  %v2753_v10 = vld [vmem:[%s6574_s0 + $0x28] sm:$0xf]  ;;  %v3737_v17 = vld [vmem:[%s6573_s1 + $0x6e0] sm:$0xf] }
  0x4f   :  { %2168 = vmatpush.bf16.msra.mxu3 %v3602_v23  ;;  %v3506_v20 = vor.u32 %v4206_v12, %v3505_v11  ;;  %v3569_v23 = vld [vmem:[%s6573_s1 + $0x590] sm:$0xf]  ;;  %v4012_v12 = vld [vmem:[%s6574_s0 + $0x2c] sm:$0xf]  ;;  %v4264_v18 = vld [vmem:[%s6573_s1 + $0x6e4] sm:$0xf0] }
  0x50   :  { %2112 = vmatpush.bf16.msra.mxu0 %v3402_v31  ;;  %v3369_v31 = vld [vmem:[%s6573_s1 + $0x400] sm:$0xf]  ;;  %v4021_v11 = vld [vmem:[%s6574_s0 + $0x6c] sm:$0xf0]  ;;  %v4296_v21 = vld [vmem:[%s6573_s1 + $0x7e4] sm:$0xf0] }
  0x51   :  { %2131 = vmatpush.bf16.msra.mxu1 %v3466_v32  ;;  %v4172_v32 = vld [vmem:[%s6573_s1 + $0x404] sm:$0xf0]  ;;  %v3793_v22 = vld [vmem:[%s6573_s1 + $0x750] sm:$0xf]  ;;  %v4246_v27 = vld [vmem:[%s6573_s1 + $0x654] sm:$0xf0]  ;;  %v5159_v28 = vor.u32 %v4021_v11, %v2753_v10 }
  0x52   :  { %2150 = vmatpush.bf16.msra.mxu2 %v3530_v24  ;;  %v4222_v24 = vld [vmem:[%s6573_s1 + $0x594] sm:$0xf0]  ;;  %v3370_v47 = vor.u32 %v4172_v32, %v3369_v31  ;;  %v3729_v32 = vld [vmem:[%s6573_s1 + $0x6d0] sm:$0xf]  ;;  %v3785_v38 = vld [vmem:[%s6573_s1 + $0x740] sm:$0xf] }
  0x53   :  { %2169 = vmatpush.bf16.msra.mxu3 %v3594_v35  ;;  %2046 = vmatmul.bf16.gmra.mxu0 %v5008_v8  ;;  %v3570_v34 = vor.u32 %v4222_v24, %v3569_v23  ;;  %v3498_v35 = vor.u32 %v4204_v26, %v3497_v25  ;;  %v4278_v25 = vld [vmem:[%s6573_s1 + $0x754] sm:$0xf0]  ;;  %v3665_v26 = vld [vmem:[%s6573_s1 + $0x650] sm:$0xf]  ;;  %v3721_v45 = vld [vmem:[%s6573_s1 + $0x6c0] sm:$0xf] }
  0x54   :  { %2113 = vmatpush.bf16.msra.mxu0 %v3394_v59  ;;  %2065 = vmatmul.bf16.gmra.mxu1 %v5010_v9  ;;  %v2745_v59 = vld [vmem:[%s6574_s0 + $0x20] sm:$0xf]  ;;  %v4262_v33 = vld [vmem:[%s6573_s1 + $0x6d4] sm:$0xf0]  ;;  %v3857_v36 = vld [vmem:[%s6573_s1 + $0x7d0] sm:$0xf] }
  0x55   :  { %2132 = vmatpush.bf16.msra.mxu1 %v3458_v60  ;;  %2084 = vmatmul.bf16.gmra.mxu2 %v5021_v13  ;;  %v4020_v60 = vld [vmem:[%s6574_s0 + $0x64] sm:$0xf0]  ;;  %v4294_v37 = vld [vmem:[%s6573_s1 + $0x7d4] sm:$0xf0]  ;;  %v4029_v10 = vld [vmem:[%s6574_s0 + $0xb4] sm:$0xf] }
  0x56   :  { %2151 = vmatpush.bf16.msra.mxu2 %v3522_v40  ;;  %2103 = vmatmul.bf16.gmra.mxu3 %v5023_v14  ;;  %v3681_v40 = vld [vmem:[%s6573_s1 + $0x670] sm:$0xf]  ;;  %v5146_v23 = vor.u32 %v4020_v60, %v2745_v59  ;;  %v4260_v46 = vld [vmem:[%s6573_s1 + $0x6c4] sm:$0xf0]  ;;  %v4274_v59 = vld [vmem:[%s6573_s1 + $0x734] sm:$0xf0] }
  0x57   :  { %2170 = vmatpush.bf16.msra.mxu3 %v3586_v63  ;;  %v3682_v62 = vor.u32 %v4250_v41, %v3681_v40  ;;  %v2747_v63 = vld [vmem:[%s6574_s0 + $0x68] sm:$0xf0]  ;;  %v3657_v40 = vld [vmem:[%s6573_s1 + $0x640] sm:$0xf]  ;;  %v4244_v41 = vld [vmem:[%s6573_s1 + $0x644] sm:$0xf0] }
  0x58   :  { %2114 = vmatpush.bf16.msra.mxu0 %v3386_v15  ;;  %v3802_v15 = vor.u32 %v4280_v55, %v3801_v52  ;;  %v5148_v24 = vor.u32 %v4011_v61, %v2747_v63  ;;  %v3849_v52 = vld [vmem:[%s6573_s1 + $0x7c0] sm:$0xf]  ;;  %v4292_v55 = vld [vmem:[%s6573_s1 + $0x7c4] sm:$0xf0]  ;;  %v3649_v60 = vld [vmem:[%s6573_s1 + $0x630] sm:$0xf] }
  0x59   :  { %2133 = vmatpush.bf16.msra.mxu1 %v3450_v16  ;;  %v2755_v16 = vld [vmem:[%s6574_s0 + $0x70] sm:$0xf0]  ;;  %v4242_v61 = vld [vmem:[%s6573_s1 + $0x634] sm:$0xf0]  ;;  %v3850_v63 = vor.u32 %v4292_v55, %v3849_v52  ;;  %v2819_v11 = vld [vmem:[%s6574_s0 + $0xf8] sm:$0xf0] }
  0x5a   :  { %2152 = vmatpush.bf16.msra.mxu2 %v3514_v2  ;;  %v3746_v2 = vor.u32 %v4266_v43, %v3745_v42  ;;  %v3730_v42 = vor.u32 %v4262_v33, %v3729_v32  ;;  %v3858_v43 = vor.u32 %v4294_v37, %v3857_v36  ;;  %v3705_v32 = vld [vmem:[%s6573_s1 + $0x6a0] sm:$0xf]  ;;  %v4256_v33 = vld [vmem:[%s6573_s1 + $0x6a4] sm:$0xf0]  ;;  %v3697_v52 = vld [vmem:[%s6573_s1 + $0x690] sm:$0xf] }
  0x5b   :  { %2171 = vmatpush.bf16.msra.mxu3 %v3578_v19  ;;  %v3674_v19 = vor.u32 %v4248_v7, %v3673_v4  ;;  %v2817_v4 = vld [vmem:[%s6574_s0 + $0xb0] sm:$0xf]  ;;  %v4038_v7 = vld [vmem:[%s6574_s0 + $0xf4] sm:$0xf0]  ;;  %v3833_v36 = vld [vmem:[%s6573_s1 + $0x7a0] sm:$0xf] }
  0x5c   :  { %2115 = vmatpush.bf16.msra.mxu0 %v3378_v29  ;;  %v5161_v29 = vor.u32 %v4012_v12, %v2755_v16  ;;  %v3841_v16 = vld [vmem:[%s6573_s1 + $0x7b0] sm:$0xf]  ;;  %v4288_v37 = vld [vmem:[%s6573_s1 + $0x7a4] sm:$0xf0]  ;;  %v4254_v55 = vld [vmem:[%s6573_s1 + $0x694] sm:$0xf0] }
  0x5d   :  { %2134 = vmatpush.bf16.msra.mxu1 %v3442_v30  ;;  %v3738_v30 = vor.u32 %v4264_v18, %v3737_v17  ;;  %v4290_v17 = vld [vmem:[%s6573_s1 + $0x7b4] sm:$0xf0]  ;;  %v3769_v18 = vld [vmem:[%s6573_s1 + $0x720] sm:$0xf] }
  0x5e   :  { %2153 = vmatpush.bf16.msra.mxu2 %v3506_v20  ;;  %v3865_v20 = vld [vmem:[%s6573_s1 + $0x7e0] sm:$0xf] }
  0x5f   :  { %2172 = vmatpush.bf16.msra.mxu3 %v3570_v34  ;;  %v3866_v31 = vor.u32 %v4296_v21, %v3865_v20  ;;  %v3794_v34 = vor.u32 %v4278_v25, %v3793_v22  ;;  %v3641_v20 = vld [vmem:[%s6573_s1 + $0x620] sm:$0xf]  ;;  %v4240_v21 = vld [vmem:[%s6573_s1 + $0x624] sm:$0xf0]  ;;  %v2825_v22 = vld [vmem:[%s6574_s0 + $0xb8] sm:$0xf] }
  0x60   :  { %2116 = vmatpush.bf16.msra.mxu0 %v3370_v47  ;;  %v4039_v25 = vld [vmem:[%s6574_s0 + $0xfc] sm:$0xf0] }
  0x61   :  { %2135 = vmatpush.bf16.msra.mxu1 %v3434_v49  ;;  %v3658_v49 = vor.u32 %v4244_v41, %v3657_v40  ;;  %v5280_v40 = vor.u32 %v4029_v10, %v2819_v11  ;;  %v4270_v41 = vld [vmem:[%s6573_s1 + $0x714] sm:$0xf0]  ;;  %v3937_v10 = vld [vmem:[%s6573_s1 + $0x870] sm:$0xf] }
  0x62   :  { %2154 = vmatpush.bf16.msra.mxu2 %v3498_v35  ;;  %v3666_v35 = vor.u32 %v4246_v27, %v3665_v26  ;;  %v4030_v26 = vld [vmem:[%s6574_s0 + $0xbc] sm:$0xf]  ;;  %v2827_v27 = vld [vmem:[%s6574_s0 + $0x100] sm:$0xf0]  ;;  %v4314_v11 = vld [vmem:[%s6573_s1 + $0x874] sm:$0xf0] }
  0x63   :  { %2173 = vmatpush.bf16.msra.mxu3 %v3562_v58  ;;  %2117 = vmatmul.bf16.vlgmr.msra.gmra.mxu0 %v5146_v23  ;;  %v3777_v58 = vld [vmem:[%s6573_s1 + $0x730] sm:$0xf] }
  0x64   :  { %2185 = vmatpush.bf16.msrb.mxu0 %v3682_v62  ;;  %2136 = vmatmul.bf16.vlgmr.msra.gmra.mxu1 %v5148_v24  ;;  %v3722_v62 = vor.u32 %v4260_v46, %v3721_v45  ;;  %v3778_v12 = vor.u32 %v4274_v59, %v3777_v58  ;;  %v5291_v45 = vor.u32 %v4039_v25, %v2825_v22  ;;  %v3825_v58 = vld [vmem:[%s6573_s1 + $0x790] sm:$0xf]  ;;  %v4330_v25 = vld [vmem:[%s6573_s1 + $0x8f4] sm:$0xf0] }
  0x65   :  { %2204 = vmatpush.bf16.msrb.mxu1 %v3746_v2  ;;  %2155 = vmatmul.bf16.vlgmr.msra.gmra.mxu2 %v5159_v28  ;;  %v3713_v2 = vld [vmem:[%s6573_s1 + $0x6b0] sm:$0xf]  ;;  %v5293_v46 = vor.u32 %v4030_v26, %v2827_v27  ;;  %v3938_v27 = vor.u32 %v4314_v11, %v3937_v10 }
  0x66   :  { %2223 = vmatpush.bf16.msrb.mxu2 %v3810_v39  ;;  %v4276_v39 = vld [vmem:[%s6573_s1 + $0x744] sm:$0xf0]  ;;  %2174 = vmatmul.bf16.vlgmr.msra.gmra.mxu3 %v5161_v29  ;;  %v4001_v22 = vld [vmem:[%s6573_s1 + $0x8f0] sm:$0xf] }
  0x67   :  { %2242 = vmatpush.bf16.msrb.mxu3 %v3874_v3  ;;  %v3786_v47 = vor.u32 %v4276_v39, %v3785_v38  ;;  %v4258_v3 = vld [vmem:[%s6573_s1 + $0x6b4] sm:$0xf0]  ;;  %v3761_v38 = vld [vmem:[%s6573_s1 + $0x710] sm:$0xf]  ;;  %v5278_v39 = vor.u32 %v4038_v7, %v2817_v4  ;;  %v4057_v4 = vld [vmem:[%s6573_s1 + $0x74] sm:$0xf] }
  0x68   :  { %2186 = vmatpush.bf16.msrb.mxu0 %v3674_v19  ;;  %v4272_v19 = vld [vmem:[%s6573_s1 + $0x724] sm:$0xf0]  ;;  %v3762_v59 = vor.u32 %v4270_v41, %v3761_v38  ;;  %v2915_v7 = vld [vmem:[%s6573_s1 + $0x78] sm:$0xf0]  ;;  %v2761_v38 = vld [vmem:[%s6574_s0 + $0x30] sm:$0xf] }
  0x69   :  { %2205 = vmatpush.bf16.msrb.mxu1 %v3738_v30  ;;  %v3714_v30 = vor.u32 %v4258_v3, %v3713_v2  ;;  %v3625_v2 = vld [vmem:[%s6573_s1 + $0x600] sm:$0xf]  ;;  %v4236_v3 = vld [vmem:[%s6573_s1 + $0x604] sm:$0xf0]  ;;  %v2918_v26 = vor.u32 %v4057_v4, %v2915_v7  ;;  %v4022_v41 = vld [vmem:[%s6574_s0 + $0x74] sm:$0xf0] }
  0x6a   :  { %2224 = vmatpush.bf16.msrb.mxu2 %v3802_v15  ;;  %v3650_v15 = vor.u32 %v4242_v61, %v3649_v60  ;;  %v4286_v61 = vld [vmem:[%s6573_s1 + $0x794] sm:$0xf0]  ;;  %v4053_v4 = vld [vmem:[%s6573_s1 + $0x54] sm:$0xf]  ;;  %v2899_v7 = vld [vmem:[%s6573_s1 + $0x58] sm:$0xf0] }
  0x6b   :  { %2243 = vmatpush.bf16.msrb.mxu3 %v3866_v31  ;;  %v3842_v31 = vor.u32 %v4290_v17, %v3841_v16  ;;  %v3689_v16 = vld [vmem:[%s6573_s1 + $0x680] sm:$0xf]  ;;  %v4252_v17 = vld [vmem:[%s6573_s1 + $0x684] sm:$0xf0] }
  0x6c   :  { %2187 = vmatpush.bf16.msrb.mxu0 %v3666_v35  ;;  %v3642_v35 = vor.u32 %v4240_v21, %v3641_v20  ;;  %v3626_v20 = vor.u32 %v4236_v3, %v3625_v2  ;;  %v4284_v21 = vld [vmem:[%s6573_s1 + $0x784] sm:$0xf0]  ;;  %v4014_v2 = vld [vmem:[%s6574_s0 + $0x3c] sm:$0xf]  ;;  %v2771_v3 = vld [vmem:[%s6574_s0 + $0x80] sm:$0xf0] }
  0x6d   :  { %2206 = vmatpush.bf16.msrb.mxu1 %v3730_v42  ;;  %v3633_v42 = vld [vmem:[%s6573_s1 + $0x610] sm:$0xf] }
  0x6e   :  { %2225 = vmatpush.bf16.msrb.mxu2 %v3794_v34  ;;  %v3770_v34 = vor.u32 %v4272_v19, %v3769_v18  ;;  %v3817_v18 = vld [vmem:[%s6573_s1 + $0x780] sm:$0xf] }
  0x6f   :  { %2244 = vmatpush.bf16.msrb.mxu3 %v3858_v43  ;;  %v4238_v43 = vld [vmem:[%s6573_s1 + $0x614] sm:$0xf0] }
  0x70   :  { %2188 = vmatpush.bf16.msrb.mxu0 %v3658_v49  ;;  %v3834_v49 = vor.u32 %v4288_v37, %v3833_v36  ;;  %v3634_v60 = vor.u32 %v4238_v43, %v3633_v42  ;;  %v3690_v36 = vor.u32 %v4252_v17, %v3689_v16  ;;  %v3818_v37 = vor.u32 %v4284_v21, %v3817_v18  ;;  %v4013_v42 = vld [vmem:[%s6574_s0 + $0x34] sm:$0xf]  ;;  %v2763_v43 = vld [vmem:[%s6574_s0 + $0x78] sm:$0xf0]  ;;  %v3985_v16 = vld [vmem:[%s6573_s1 + $0x8d0] sm:$0xf] }
  0x71   :  { %2207 = vmatpush.bf16.msrb.mxu1 %v3722_v62  ;;  %v3753_v62 = vld [vmem:[%s6573_s1 + $0x700] sm:$0xf]  ;;  %v5422_v17 = vor.u32 %v4022_v41, %v2761_v38  ;;  %v5424_v18 = vor.u32 %v4013_v42, %v2763_v43  ;;  %v2963_v21 = vld [vmem:[%s6573_s1 + $0xd8] sm:$0xf0]  ;;  %v4067_v38 = vld [vmem:[%s6573_s1 + $0xc4] sm:$0xf] }
  0x72   :  { %2226 = vmatpush.bf16.msrb.mxu2 %v3786_v47  ;;  %v3706_v47 = vor.u32 %v4256_v33, %v3705_v32  ;;  %v4055_v32 = vld [vmem:[%s6573_s1 + $0x64] sm:$0xf]  ;;  %v2907_v33 = vld [vmem:[%s6573_s1 + $0x68] sm:$0xf0] }
  0x73   :  { %2245 = vmatpush.bf16.msrb.mxu3 %v3850_v63  ;;  %v4268_v63 = vld [vmem:[%s6573_s1 + $0x704] sm:$0xf0]  ;;  %2122 = vmatmul.bf16.gmra.mxu0 %v5278_v39  ;;  %v2955_v41 = vld [vmem:[%s6573_s1 + $0xc8] sm:$0xf0] }
  0x74   :  { %2189 = vmatpush.bf16.msrb.mxu0 %v3650_v15  ;;  %2141 = vmatmul.bf16.gmra.mxu1 %v5280_v40  ;;  %v3826_v15 = vor.u32 %v4286_v61, %v3825_v58  ;;  %v3754_v19 = vor.u32 %v4268_v63, %v3753_v62  ;;  %v2971_v61 = vld [vmem:[%s6573_s1 + $0xe8] sm:$0xf0]  ;;  %v2769_v62 = vld [vmem:[%s6574_s0 + $0x38] sm:$0xf]  ;;  %v4023_v63 = vld [vmem:[%s6574_s0 + $0x7c] sm:$0xf0] }
  0x75   :  { %2208 = vmatpush.bf16.msrb.mxu1 %v3714_v30  ;;  %2160 = vmatmul.bf16.gmra.mxu2 %v5291_v45  ;;  %v4073_v30 = vld [vmem:[%s6573_s1 + $0xf4] sm:$0xf] }
  0x76   :  { %2227 = vmatpush.bf16.msrb.mxu2 %v3778_v12  ;;  %2179 = vmatmul.bf16.gmra.mxu3 %v5293_v46  ;;  %v3698_v12 = vor.u32 %v4254_v55, %v3697_v52  ;;  %v3993_v52 = vld [vmem:[%s6573_s1 + $0x8e0] sm:$0xf]  ;;  %v2910_v55 = vor.u32 %v4055_v32, %v2907_v33 }
  0x77   :  { %2246 = vmatpush.bf16.msrb.mxu3 %v3842_v31  ;;  %v2979_v31 = vld [vmem:[%s6573_s1 + $0xf8] sm:$0xf0] }
  0x78   :  { %2190 = vmatpush.bf16.msrb.mxu0 %v3642_v35  ;;  %v4312_v35 = vld [vmem:[%s6573_s1 + $0x864] sm:$0xf0] }
  0x79   :  { %2209 = vmatpush.bf16.msrb.mxu1 %v3706_v47  ;;  %v4002_v47 = vor.u32 %v4330_v25, %v4001_v22  ;;  %v5435_v22 = vor.u32 %v4023_v63, %v2769_v62  ;;  %v5437_v25 = vor.u32 %v4014_v2, %v2771_v3  ;;  %v4065_v62 = vld [vmem:[%s6573_s1 + $0xb4] sm:$0xf]  ;;  %v2947_v63 = vld [vmem:[%s6573_s1 + $0xb8] sm:$0xf0] }
  0x7a   :  { %2228 = vmatpush.bf16.msrb.mxu2 %v3770_v34  ;;  %v3929_v34 = vld [vmem:[%s6573_s1 + $0x860] sm:$0xf] }
  0x7b   :  { %2247 = vmatpush.bf16.msrb.mxu3 %v3834_v49  ;;  %v2982_v49 = vor.u32 %v4073_v30, %v2979_v31  ;;  %v3930_v58 = vor.u32 %v4312_v35, %v3929_v34  ;;  %v4051_v30 = vld [vmem:[%s6573_s1 + $0x44] sm:$0xf]  ;;  %v2891_v31 = vld [vmem:[%s6573_s1 + $0x48] sm:$0xf0]  ;;  %v3913_v34 = vld [vmem:[%s6573_s1 + $0x840] sm:$0xf] }
  0x7c   :  { %2191 = vmatpush.bf16.msrb.mxu0 %v3634_v60  ;;  %v4071_v60 = vld [vmem:[%s6573_s1 + $0xe4] sm:$0xf]  ;;  %v4308_v35 = vld [vmem:[%s6573_s1 + $0x844] sm:$0xf0]  ;;  %v2894_v42 = vor.u32 %v4051_v30, %v2891_v31  ;;  %v2939_v31 = vld [vmem:[%s6573_s1 + $0xa8] sm:$0xf0] }
  0x7d   :  { %2210 = vmatpush.bf16.msrb.mxu1 %v3698_v12  ;;  %v2974_v11 = vor.u32 %v4071_v60, %v2971_v61  ;;  %v3921_v12 = vld [vmem:[%s6573_s1 + $0x850] sm:$0xf]  ;;  %v3914_v43 = vor.u32 %v4308_v35, %v3913_v34  ;;  %v4322_v61 = vld [vmem:[%s6573_s1 + $0x8b4] sm:$0xf0]  ;;  %v4063_v30 = vld [vmem:[%s6573_s1 + $0xa4] sm:$0xf] }
  0x7e   :  { %2229 = vmatpush.bf16.msrb.mxu2 %v3762_v59  ;;  %v4328_v59 = vld [vmem:[%s6573_s1 + $0x8e4] sm:$0xf0]  ;;  %v3969_v60 = vld [vmem:[%s6573_s1 + $0x8b0] sm:$0xf]  ;;  %v4032_v34 = vld [vmem:[%s6574_s0 + $0xcc] sm:$0xf] }
  0x7f   :  { %2248 = vmatpush.bf16.msrb.mxu3 %v3826_v15  ;;  %v3994_v10 = vor.u32 %v4328_v59, %v3993_v52  ;;  %v4310_v15 = vld [vmem:[%s6573_s1 + $0x854] sm:$0xf0]  ;;  %v2843_v35 = vld [vmem:[%s6574_s0 + $0x110] sm:$0xf0] }
  0x80   :  { %2192 = vmatpush.bf16.msrb.mxu0 %v3626_v20  ;;  %v4069_v20 = vld [vmem:[%s6573_s1 + $0xd4] sm:$0xf]  ;;  %v4306_v59 = vld [vmem:[%s6573_s1 + $0x834] sm:$0xf0] }
  0x81   :  { %2211 = vmatpush.bf16.msrb.mxu1 %v3690_v36  ;;  %v2966_v33 = vor.u32 %v4069_v20, %v2963_v21  ;;  %v3977_v36 = vld [vmem:[%s6573_s1 + $0x8c0] sm:$0xf]  ;;  %v4304_v21 = vld [vmem:[%s6573_s1 + $0x824] sm:$0xf0] }
  0x82   :  { %2230 = vmatpush.bf16.msrb.mxu2 %v3754_v19  ;;  %v4326_v19 = vld [vmem:[%s6573_s1 + $0x8d4] sm:$0xf0]  ;;  %v3897_v20 = vld [vmem:[%s6573_s1 + $0x820] sm:$0xf] }
  0x83   :  { %2249 = vmatpush.bf16.msrb.mxu3 %v3818_v37  ;;  %v3986_v32 = vor.u32 %v4326_v19, %v3985_v16  ;;  %2193 = vmatmul.bf16.vlgmr.msrb.gmra.mxu0 %v5422_v17  ;;  %v4324_v37 = vld [vmem:[%s6573_s1 + $0x8c4] sm:$0xf0]  ;;  %v3970_v16 = vor.u32 %v4322_v61, %v3969_v60  ;;  %v2950_v19 = vor.u32 %v4065_v62, %v2947_v63  ;;  %v4061_v60 = vld [vmem:[%s6573_s1 + $0x94] sm:$0xf]  ;;  %v2931_v61 = vld [vmem:[%s6573_s1 + $0x98] sm:$0xf0] }
  0x84   :  { %2261 = vmatpush.bf16.msra.mxu0 %v3938_v27  ;;  %v3922_v27 = vor.u32 %v4310_v15, %v3921_v12  ;;  %2212 = vmatmul.bf16.vlgmr.msrb.gmra.mxu1 %v5424_v18  ;;  %v3978_v52 = vor.u32 %v4324_v37, %v3977_v36  ;;  %v4031_v12 = vld [vmem:[%s6574_s0 + $0xc4] sm:$0xf]  ;;  %v2835_v15 = vld [vmem:[%s6574_s0 + $0x108] sm:$0xf0]  ;;  %v3898_v37 = vor.u32 %v4304_v21, %v3897_v20 }
  0x85   :  { %2280 = vmatpush.bf16.msra.mxu1 %v4002_v47  ;;  %2231 = vmatmul.bf16.vlgmr.msrb.gmra.mxu2 %v5435_v22  ;;  %v4049_v47 = vld [vmem:[%s6573_s1 + $0x34] sm:$0xf]  ;;  %v5569_v63 = vor.u32 %v4032_v34, %v2843_v35  ;;  %v4059_v20 = vld [vmem:[%s6573_s1 + $0x84] sm:$0xf]  ;;  %v2923_v21 = vld [vmem:[%s6573_s1 + $0x88] sm:$0xf0] }
  0x86   :  { %2299 = vmatpush.bf16.msra.mxu2 %v2918_v26  ;;  %v2902_v26 = vor.u32 %v4053_v4, %v2899_v7  ;;  %2250 = vmatmul.bf16.vlgmr.msrb.gmra.mxu3 %v5437_v25  ;;  %v4047_v4 = vld [vmem:[%s6573_s1 + $0x24] sm:$0xf]  ;;  %v2875_v7 = vld [vmem:[%s6573_s1 + $0x28] sm:$0xf0]  ;;  %v3107_v35 = vld [vmem:[%s6573_s1 + $0x1f8] sm:$0xf0] }
  0x87   :  { %2318 = vmatpush.bf16.msra.mxu3 %v2982_v49  ;;  %v2883_v49 = vld [vmem:[%s6573_s1 + $0x38] sm:$0xf0]  ;;  %v2878_v36 = vor.u32 %v4047_v4, %v2875_v7  ;;  %v2859_v7 = vld [vmem:[%s6573_s1 + $0x8] sm:$0xf0] }
  0x88   :  { %2262 = vmatpush.bf16.msra.mxu0 %v3930_v58  ;;  %v3905_v58 = vld [vmem:[%s6573_s1 + $0x830] sm:$0xf]  ;;  %v2886_v2 = vor.u32 %v4049_v47, %v2883_v49  ;;  %v4302_v49 = vld [vmem:[%s6573_s1 + $0x814] sm:$0xf0] }
  0x89   :  { %2281 = vmatpush.bf16.msra.mxu1 %v3994_v10  ;;  %v3906_v3 = vor.u32 %v4306_v59, %v3905_v58  ;;  %v2833_v10 = vld [vmem:[%s6574_s0 + $0xc0] sm:$0xf]  ;;  %v3889_v47 = vld [vmem:[%s6573_s1 + $0x810] sm:$0xf]  ;;  %v5556_v58 = vor.u32 %v4031_v12, %v2835_v15  ;;  %v4318_v59 = vld [vmem:[%s6573_s1 + $0x894] sm:$0xf0]  ;;  %v2934_v15 = vor.u32 %v4061_v60, %v2931_v61 }
  0x8a   :  { %2300 = vmatpush.bf16.msra.mxu2 %v2910_v55  ;;  %v2958_v55 = vor.u32 %v4067_v38, %v2955_v41  ;;  %v4045_v38 = vld [vmem:[%s6573_s1 + $0x14] sm:$0xf]  ;;  %v2867_v41 = vld [vmem:[%s6573_s1 + $0x18] sm:$0xf0]  ;;  %v3890_v4 = vor.u32 %v4302_v49, %v3889_v47  ;;  %v4119_v47 = vld [vmem:[%s6573_s1 + $0x264] sm:$0xf] }
  0x8b   :  { %2319 = vmatpush.bf16.msra.mxu3 %v2974_v11  ;;  %v4040_v11 = vld [vmem:[%s6574_s0 + $0x104] sm:$0xf0]  ;;  %v3163_v49 = vld [vmem:[%s6573_s1 + $0x268] sm:$0xf0]  ;;  %v4087_v60 = vld [vmem:[%s6573_s1 + $0x164] sm:$0xf] }
  0x8c   :  { %2263 = vmatpush.bf16.msra.mxu0 %v3922_v27  ;;  %v4320_v27 = vld [vmem:[%s6573_s1 + $0x8a4] sm:$0xf0]  ;;  %v3035_v61 = vld [vmem:[%s6573_s1 + $0x168] sm:$0xf0] }
  0x8d   :  { %2282 = vmatpush.bf16.msra.mxu1 %v3986_v32  ;;  %v2841_v32 = vld [vmem:[%s6574_s0 + $0xc8] sm:$0xf] }
  0x8e   :  { %2301 = vmatpush.bf16.msra.mxu2 %v2902_v26  ;;  %v3961_v26 = vld [vmem:[%s6573_s1 + $0x8a0] sm:$0xf] }
  0x8f   :  { %2320 = vmatpush.bf16.msra.mxu3 %v2966_v33  ;;  %v4041_v33 = vld [vmem:[%s6574_s0 + $0x10c] sm:$0xf0] }
  0x90   :  { %2264 = vmatpush.bf16.msra.mxu0 %v3914_v43  ;;  %v2942_v43 = vor.u32 %v4063_v30, %v2939_v31  ;;  %v5567_v62 = vor.u32 %v4041_v33, %v2841_v32  ;;  %v4089_v30 = vld [vmem:[%s6573_s1 + $0x174] sm:$0xf]  ;;  %v3043_v31 = vld [vmem:[%s6573_s1 + $0x178] sm:$0xf0] }
  0x91   :  { %2283 = vmatpush.bf16.msra.mxu1 %v3978_v52  ;;  %v3953_v52 = vld [vmem:[%s6573_s1 + $0x890] sm:$0xf]  ;;  %v4105_v32 = vld [vmem:[%s6573_s1 + $0x1f4] sm:$0xf] }
  0x92   :  { %2302 = vmatpush.bf16.msra.mxu2 %v2894_v42  ;;  %v3962_v42 = vor.u32 %v4320_v27, %v3961_v26  ;;  %v3954_v12 = vor.u32 %v4318_v59, %v3953_v52  ;;  %v4121_v26 = vld [vmem:[%s6573_s1 + $0x274] sm:$0xf]  ;;  %v3171_v27 = vld [vmem:[%s6573_s1 + $0x278] sm:$0xf0]  ;;  %v3110_v52 = vor.u32 %v4105_v32, %v3107_v35 }
  0x93   :  { %2321 = vmatpush.bf16.msra.mxu3 %v2958_v55  ;;  %v5554_v55 = vor.u32 %v4040_v11, %v2833_v10  ;;  %v3881_v10 = vld [vmem:[%s6573_s1 + $0x800] sm:$0xf]  ;;  %v4300_v11 = vld [vmem:[%s6573_s1 + $0x804] sm:$0xf0]  ;;  %v4101_v32 = vld [vmem:[%s6573_s1 + $0x1d4] sm:$0xf] }
  0x94   :  { %2265 = vmatpush.bf16.msra.mxu0 %v3906_v3  ;;  %v2870_v3 = vor.u32 %v4045_v38, %v2867_v41  ;;  %2217 = vmatmul.bf16.gmra.mxu1 %v5556_v58  ;;  %v3882_v34 = vor.u32 %v4300_v11, %v3881_v10  ;;  %v2926_v41 = vor.u32 %v4059_v20, %v2923_v21  ;;  %v2777_v10 = vld [vmem:[%s6574_s0 + $0x40] sm:$0xf] }
  0x95   :  { %2284 = vmatpush.bf16.msra.mxu1 %v3970_v16  ;;  %v3945_v16 = vld [vmem:[%s6573_s1 + $0x880] sm:$0xf]  ;;  %2198 = vmatmul.bf16.gmra.mxu0 %v5554_v55  ;;  %v3166_v11 = vor.u32 %v4119_v47, %v3163_v49  ;;  %v4115_v49 = vld [vmem:[%s6573_s1 + $0x244] sm:$0xf] }
  0x96   :  { %2303 = vmatpush.bf16.msra.mxu2 %v2886_v2  ;;  %v4043_v2 = vld [vmem:[%s6573_s1 + $0x4] sm:$0xf]  ;;  %2255 = vmatmul.bf16.gmra.mxu3 %v5569_v63 }
  0x97   :  { %2322 = vmatpush.bf16.msra.mxu3 %v2950_v19  ;;  %v4316_v19 = vld [vmem:[%s6573_s1 + $0x884] sm:$0xf0]  ;;  %2236 = vmatmul.bf16.gmra.mxu2 %v5567_v62  ;;  %v2862_v33 = vor.u32 %v4043_v2, %v2859_v7  ;;  %v4103_v2 = vld [vmem:[%s6573_s1 + $0x1e4] sm:$0xf]  ;;  %v3227_v7 = vld [vmem:[%s6573_s1 + $0x2e8] sm:$0xf0] }
  0x98   :  { %2266 = vmatpush.bf16.msra.mxu0 %v3898_v37  ;;  %v3235_v37 = vld [vmem:[%s6573_s1 + $0x2f8] sm:$0xf0]  ;;  %v3946_v38 = vor.u32 %v4316_v19, %v3945_v16  ;;  %v4015_v16 = vld [vmem:[%s6574_s0 + $0x44] sm:$0xf]  ;;  %v2779_v19 = vld [vmem:[%s6574_s0 + $0x88] sm:$0xf0] }
  0x99   :  { %2285 = vmatpush.bf16.msra.mxu1 %v3962_v42  ;;  %v3174_v42 = vor.u32 %v4121_v26, %v3171_v27  ;;  %v4117_v26 = vld [vmem:[%s6573_s1 + $0x254] sm:$0xf]  ;;  %v3155_v27 = vld [vmem:[%s6573_s1 + $0x258] sm:$0xf0]  ;;  %v5676_v35 = vor.u32 %v4015_v16, %v2779_v19 }
  0x9a   :  { %2304 = vmatpush.bf16.msra.mxu2 %v2878_v36  ;;  %v4137_v36 = vld [vmem:[%s6573_s1 + $0x2f4] sm:$0xf]  ;;  %v3139_v16 = vld [vmem:[%s6573_s1 + $0x238] sm:$0xf0] }
  0x9b   :  { %2323 = vmatpush.bf16.msra.mxu3 %v2942_v43  ;;  %v3046_v43 = vor.u32 %v4089_v30, %v3043_v31  ;;  %v3238_v59 = vor.u32 %v4137_v36, %v3235_v37  ;;  %v4085_v30 = vld [vmem:[%s6573_s1 + $0x154] sm:$0xf]  ;;  %v3027_v31 = vld [vmem:[%s6573_s1 + $0x158] sm:$0xf0] }
  0x9c   :  { %2267 = vmatpush.bf16.msra.mxu0 %v3890_v4  ;;  %v4135_v4 = vld [vmem:[%s6573_s1 + $0x2e4] sm:$0xf]  ;;  %v3091_v36 = vld [vmem:[%s6573_s1 + $0x1d8] sm:$0xf0]  ;;  %v4133_v37 = vld [vmem:[%s6573_s1 + $0x2d4] sm:$0xf]  ;;  %v3030_v47 = vor.u32 %v4085_v30, %v3027_v31 }
  0x9d   :  { %2286 = vmatpush.bf16.msra.mxu1 %v3954_v12  ;;  %v3038_v12 = vor.u32 %v4087_v60, %v3035_v61  ;;  %v3230_v21 = vor.u32 %v4135_v4, %v3227_v7  ;;  %v4083_v61 = vld [vmem:[%s6573_s1 + $0x144] sm:$0xf]  ;;  %v3083_v4 = vld [vmem:[%s6573_s1 + $0x1c8] sm:$0xf0] }
  0x9e   :  { %2305 = vmatpush.bf16.msra.mxu2 %v2870_v3  ;;  %v3099_v3 = vld [vmem:[%s6573_s1 + $0x1e8] sm:$0xf0]  ;;  %v4131_v7 = vld [vmem:[%s6573_s1 + $0x2c4] sm:$0xf] }
  0x9f   :  { %2324 = vmatpush.bf16.msra.mxu3 %v2934_v15  ;;  %v4024_v15 = vld [vmem:[%s6574_s0 + $0x84] sm:$0xf0]  ;;  %v3102_v20 = vor.u32 %v4103_v2, %v3099_v3  ;;  %v3019_v2 = vld [vmem:[%s6573_s1 + $0x148] sm:$0xf0]  ;;  %v4099_v3 = vld [vmem:[%s6573_s1 + $0x1c4] sm:$0xf] }
  0xa0   :  { %2268 = vmatpush.bf16.msra.mxu0 %v3882_v34  ;;  %v5674_v34 = vor.u32 %v4024_v15, %v2777_v10  ;;  %v3211_v10 = vld [vmem:[%s6573_s1 + $0x2c8] sm:$0xf0]  ;;  %v4113_v15 = vld [vmem:[%s6573_s1 + $0x234] sm:$0xf] }
  0xa1   :  { %2287 = vmatpush.bf16.msra.mxu1 %v3946_v38  ;;  %v3219_v38 = vld [vmem:[%s6573_s1 + $0x2d8] sm:$0xf0] }
  0xa2   :  { %2306 = vmatpush.bf16.msra.mxu2 %v2862_v33  ;;  %v1966_v33 = vpop.f32.mrf.mxu0  ;;  %v3222_v60 = vor.u32 %v4133_v37, %v3219_v38  ;;  %v3142_v38 = vor.u32 %v4113_v15, %v3139_v16  ;;  %v2851_v15 = vld [vmem:[%s6574_s0 + $0x118] sm:$0xf0] }
  0xa3   :  { %2325 = vmatpush.bf16.msra.mxu3 %v2926_v41  ;;  %v1985_v41 = vpop.f32.mrf.mxu1 }
  0xa4   :  { %2337 = vmatpush.bf16.msrb.mxu0 %v3046_v43  ;;  %v3158_v43 = vor.u32 %v4117_v26, %v3155_v27  ;;  %2288 = vmatmul.bf16.vlgmr.msra.gmra.mxu1 %v5676_v35  ;;  %v4097_v26 = vld [vmem:[%s6573_s1 + $0x1b4] sm:$0xf] }
  0xa5   :  { %2356 = vmatpush.bf16.msrb.mxu1 %v3110_v52  ;;  %v3147_v52 = vld [vmem:[%s6573_s1 + $0x248] sm:$0xf0]  ;;  %2269 = vmatmul.bf16.vlgmr.msra.gmra.mxu0 %v5674_v34 }
  0xa6   :  { %2375 = vmatpush.bf16.msrb.mxu2 %v3174_v42  ;;  %v1986_v42 = vadd.f32 %v1985_v41, %v1966_v33  ;;  %2326 = vmatmul.bf16.vlgmr.msra.gmra.mxu3 %v4599_v53  ;;  %v3011_v53 = vld [vmem:[%s6573_s1 + $0x138] sm:$0xf0]  ;;  %v4129_v33 = vld [vmem:[%s6573_s1 + $0x2b4] sm:$0xf] }
  0xa7   :  { %2394 = vmatpush.bf16.msrb.mxu3 %v3238_v59  ;;  %v3094_v59 = vor.u32 %v4101_v32, %v3091_v36  ;;  %2307 = vmatmul.bf16.vlgmr.msra.gmra.mxu2 %v4588_v48  ;;  %v4081_v48 = vld [vmem:[%s6573_s1 + $0x134] sm:$0xf]  ;;  %v3075_v32 = vld [vmem:[%s6573_s1 + $0x1b8] sm:$0xf0] }
  0xa8   :  { %2338 = vmatpush.bf16.msrb.mxu0 %v3038_v12  ;;  %v3022_v12 = vor.u32 %v4083_v61, %v3019_v2  ;;  %v2004_v19 = vpop.f32.mrf.mxu2  ;;  %v3203_v36 = vld [vmem:[%s6573_s1 + $0x2b8] sm:$0xf0]  ;;  %v4079_v61 = vld [vmem:[%s6573_s1 + $0x124] sm:$0xf]  ;;  %v3003_v2 = vld [vmem:[%s6573_s1 + $0x128] sm:$0xf0] }
  0xa9   :  { %2357 = vmatpush.bf16.msrb.mxu1 %v3102_v20  ;;  %v3086_v20 = vor.u32 %v4099_v3, %v3083_v4  ;;  %v2005_v27 = vadd.f32 %v2004_v19, %v1986_v42  ;;  %v2023_v30 = vpop.f32.mrf.mxu3  ;;  %v3014_v42 = vor.u32 %v4081_v48, %v3011_v53  ;;  %v4095_v3 = vld [vmem:[%s6573_s1 + $0x1a4] sm:$0xf]  ;;  %v3067_v4 = vld [vmem:[%s6573_s1 + $0x1a8] sm:$0xf0]  ;;  %v3006_v19 = vor.u32 %v4079_v61, %v3003_v2 }
  0xaa   :  { %2376 = vmatpush.bf16.msrb.mxu2 %v3166_v11  ;;  %v3150_v11 = vor.u32 %v4115_v49, %v3147_v52  ;;  %v1968_v31 = vpop.f32.mrf.mxu0  ;;  %v3131_v49 = vld [vmem:[%s6573_s1 + $0x228] sm:$0xf0]  ;;  %v2849_v52 = vld [vmem:[%s6574_s0 + $0xd0] sm:$0xf]  ;;  %v3070_v53 = vor.u32 %v4095_v3, %v3067_v4  ;;  %v4075_v4 = vld [vmem:[%s6573_s1 + $0x104] sm:$0xf] }
  0xab   :  { %2395 = vmatpush.bf16.msrb.mxu3 %v3230_v21  ;;  %v3214_v21 = vor.u32 %v4131_v7, %v3211_v10  ;;  %v1987_v37 = vpop.f32.mrf.mxu1  ;;  %v5739_v41 = vadd.f32 %v2023_v30, %v2005_v27  ;;  %v4127_v7 = vld [vmem:[%s6573_s1 + $0x2a4] sm:$0xf]  ;;  %v3195_v10 = vld [vmem:[%s6573_s1 + $0x2a8] sm:$0xf0]  ;;  %v4077_v27 = vld [vmem:[%s6573_s1 + $0x114] sm:$0xf] }
  0xac   :  { %2339 = vmatpush.bf16.msrb.mxu0 %v3030_v47  ;;  %v4111_v47 = vld [vmem:[%s6573_s1 + $0x224] sm:$0xf]  ;;  %v2995_v30 = vld [vmem:[%s6573_s1 + $0x118] sm:$0xf0]  ;;  %v3115_v3 = vld [vmem:[%s6573_s1 + $0x208] sm:$0xf0] }
  0xad   :  { %2358 = vmatpush.bf16.msrb.mxu1 %v3094_v59  ;;  %v3078_v59 = vor.u32 %v4097_v26, %v3075_v32  ;;  %v3134_v16 = vor.u32 %v4111_v47, %v3131_v49  ;;  %v3198_v26 = vor.u32 %v4127_v7, %v3195_v10  ;;  %v4125_v47 = vld [vmem:[%s6573_s1 + $0x294] sm:$0xf]  ;;  %v3187_v49 = vld [vmem:[%s6573_s1 + $0x298] sm:$0xf0]  ;;  %v2998_v2 = vor.u32 %v4077_v27, %v2995_v30  ;;  %v2987_v7 = vld [vmem:[%s6573_s1 + $0x108] sm:$0xf0] }
  0xae   :  { %2377 = vmatpush.bf16.msrb.mxu2 %v3158_v43  ;;  %v1988_v43 = vadd.f32 %v1987_v37, %v1968_v31  ;;  %v4093_v31 = vld [vmem:[%s6573_s1 + $0x194] sm:$0xf]  ;;  %v2990_v30 = vor.u32 %v4075_v4, %v2987_v7 }
  0xaf   :  { %2396 = vmatpush.bf16.msrb.mxu3 %v3222_v60  ;;  %v3206_v60 = vor.u32 %v4129_v33, %v3203_v36 }
  0xb0   :  { %2340 = vmatpush.bf16.msrb.mxu0 %v3022_v12  ;;  %v4033_v12 = vld [vmem:[%s6574_s0 + $0xd4] sm:$0xf]  ;;  %v2006_v48 = vpop.f32.mrf.mxu2 }
  0xb1   :  { %2359 = vmatpush.bf16.msrb.mxu1 %v3086_v20  ;;  %v4109_v20 = vld [vmem:[%s6573_s1 + $0x214] sm:$0xf]  ;;  %v2007_v32 = vadd.f32 %v2006_v48, %v1988_v43  ;;  %v2025_v33 = vpop.f32.mrf.mxu3 }
  0xb2   :  { %2378 = vmatpush.bf16.msrb.mxu2 %v3150_v11  ;;  %v4042_v11 = vld [vmem:[%s6574_s0 + $0x114] sm:$0xf0]  ;;  %v1971_v36 = vpop.f32.mrf.mxu0  ;;  %v4153_v48 = vld [vmem:[%s6573_s1 + $0x374] sm:$0xf] }
  0xb3   :  { %2397 = vmatpush.bf16.msrb.mxu3 %v3214_v21  ;;  %v3123_v21 = vld [vmem:[%s6573_s1 + $0x218] sm:$0xf0]  ;;  %v5792_v37 = vor.u32 %v4042_v11, %v2849_v52  ;;  %v4107_v52 = vld [vmem:[%s6573_s1 + $0x204] sm:$0xf]  ;;  %v3190_v11 = vor.u32 %v4125_v47, %v3187_v49 }
  0xb4   :  { %2341 = vmatpush.bf16.msrb.mxu0 %v3014_v42  ;;  %v3059_v42 = vld [vmem:[%s6573_s1 + $0x198] sm:$0xf0]  ;;  %v3126_v43 = vor.u32 %v4109_v20, %v3123_v21  ;;  %v4185_v20 = vld [vmem:[%s6573_s1 + $0x474] sm:$0xf]  ;;  %v3118_v27 = vor.u32 %v4107_v52, %v3115_v3  ;;  %v4183_v52 = vld [vmem:[%s6573_s1 + $0x464] sm:$0xf] }
  0xb5   :  { %2360 = vmatpush.bf16.msrb.mxu1 %v3078_v59  ;;  %v1990_v59 = vpop.f32.mrf.mxu1  ;;  %v3062_v10 = vor.u32 %v4093_v31, %v3059_v42  ;;  %2274 = vmatmul.bf16.gmra.mxu0 %v5792_v37  ;;  %v3427_v21 = vld [vmem:[%s6573_s1 + $0x478] sm:$0xf0] }
  0xb6   :  { %2379 = vmatpush.bf16.msrb.mxu2 %v3142_v38  ;;  %v5794_v38 = vor.u32 %v4033_v12, %v2851_v15  ;;  %v1991_v61 = vadd.f32 %v1990_v59, %v1971_v36  ;;  %v4091_v12 = vld [vmem:[%s6573_s1 + $0x184] sm:$0xf]  ;;  %v3051_v15 = vld [vmem:[%s6573_s1 + $0x188] sm:$0xf0]  ;;  %2331 = vmatmul.bf16.gmra.mxu3 %v4731_v50  ;;  %v4201_v50 = vld [vmem:[%s6573_s1 + $0x4f4] sm:$0xf]  ;;  %v3430_v59 = vor.u32 %v4185_v20, %v3427_v21 }
  0xb7   :  { %2398 = vmatpush.bf16.msrb.mxu3 %v3206_v60  ;;  %v5808_v60 = vadd.f32 %v2025_v33, %v2007_v32  ;;  %2312 = vmatmul.bf16.gmra.mxu2 %v4720_v44  ;;  %v3363_v44 = vld [vmem:[%s6573_s1 + $0x3f8] sm:$0xf0]  ;;  %v3054_v33 = vor.u32 %v4091_v12, %v3051_v15  ;;  %v3483_v20 = vld [vmem:[%s6573_s1 + $0x4e8] sm:$0xf0] }
  0xb8   :  { %2342 = vmatpush.bf16.msrb.mxu0 %v3006_v19  ;;  %2293 = vmatmul.bf16.gmra.mxu1 %v5794_v38  ;;  %v3179_v19 = vld [vmem:[%s6573_s1 + $0x288] sm:$0xf0]  ;;  %v3491_v31 = vld [vmem:[%s6573_s1 + $0x4f8] sm:$0xf0]  ;;  %v2009_v32 = vpop.f32.mrf.mxu2 }
  0xb9   :  { %2361 = vmatpush.bf16.msrb.mxu1 %v3070_v53  ;;  %v3299_v53 = vld [vmem:[%s6573_s1 + $0x378] sm:$0xf0]  ;;  %v2010_v42 = vadd.f32 %v2009_v32, %v1991_v61  ;;  %v2028_v47 = vpop.f32.mrf.mxu3  ;;  %v3494_v7 = vor.u32 %v4201_v50, %v3491_v31  ;;  %v3291_v61 = vld [vmem:[%s6573_s1 + $0x368] sm:$0xf0]  ;;  %v4149_v50 = vld [vmem:[%s6573_s1 + $0x354] sm:$0xf] }
  0xba   :  { %2380 = vmatpush.bf16.msrb.mxu2 %v3134_v16  ;;  %v4123_v16 = vld [vmem:[%s6573_s1 + $0x284] sm:$0xf]  ;;  %v1973_v49 = vpop.f32.mrf.mxu0  ;;  %v3283_v31 = vld [vmem:[%s6573_s1 + $0x358] sm:$0xf0]  ;;  %v4165_v32 = vld [vmem:[%s6573_s1 + $0x3d4] sm:$0xf] }
  0xbb   :  { %2399 = vmatpush.bf16.msrb.mxu3 %v3198_v26  ;;  %v4169_v26 = vld [vmem:[%s6573_s1 + $0x3f4] sm:$0xf]  ;;  %v3182_v36 = vor.u32 %v4123_v16, %v3179_v19  ;;  %v5874_v12 = vadd.f32 %v2028_v47, %v2010_v42  ;;  %v3355_v16 = vld [vmem:[%s6573_s1 + $0x3e8] sm:$0xf0]  ;;  %v4199_v19 = vld [vmem:[%s6573_s1 + $0x4e4] sm:$0xf] }
  0xbc   :  { %2343 = vmatpush.bf16.msrb.mxu0 %v2998_v2  ;;  %v3419_v2 = vld [vmem:[%s6573_s1 + $0x468] sm:$0xf0]  ;;  %v3366_v4 = vor.u32 %v4169_v26, %v3363_v44  ;;  %v3486_v26 = vor.u32 %v4199_v19, %v3483_v20  ;;  %v3347_v42 = vld [vmem:[%s6573_s1 + $0x3d8] sm:$0xf0]  ;;  %v4197_v47 = vld [vmem:[%s6573_s1 + $0x4d4] sm:$0xf] }
  0xbd   :  { %2362 = vmatpush.bf16.msrb.mxu1 %v3062_v10  ;;  %v1992_v3 = vpop.f32.mrf.mxu1  ;;  %v4151_v10 = vld [vmem:[%s6573_s1 + $0x364] sm:$0xf]  ;;  %v3422_v21 = vor.u32 %v4183_v52, %v3419_v2  ;;  %v3339_v20 = vld [vmem:[%s6573_s1 + $0x3c8] sm:$0xf0] }
  0xbe   :  { %2381 = vmatpush.bf16.msrb.mxu2 %v3126_v43  ;;  %v3302_v43 = vor.u32 %v4153_v48, %v3299_v53  ;;  %v1993_v15 = vadd.f32 %v1992_v3, %v1973_v49  ;;  %v3294_v48 = vor.u32 %v4151_v10, %v3291_v61  ;;  %v3475_v49 = vld [vmem:[%s6573_s1 + $0x4d8] sm:$0xf0]  ;;  %v3403_v10 = vld [vmem:[%s6573_s1 + $0x448] sm:$0xf0]  ;;  %v3350_v61 = vor.u32 %v4165_v32, %v3347_v42 }
  0xbf   :  { %2400 = vmatpush.bf16.msrb.mxu3 %v3190_v11  ;;  %v4167_v11 = vld [vmem:[%s6573_s1 + $0x3e4] sm:$0xf]  ;;  %v3331_v32 = vld [vmem:[%s6573_s1 + $0x3b8] sm:$0xf0] }
  0xc0   :  { %2344 = vmatpush.bf16.msrb.mxu0 %v2990_v30  ;;  %v3358_v53 = vor.u32 %v4167_v11, %v3355_v16  ;;  %v3411_v30 = vld [vmem:[%s6573_s1 + $0x458] sm:$0xf0]  ;;  %v2011_v44 = vpop.f32.mrf.mxu2  ;;  %v3478_v11 = vor.u32 %v4197_v47, %v3475_v49  ;;  %v4163_v16 = vld [vmem:[%s6573_s1 + $0x3c4] sm:$0xf] }
  0xc1   :  { %2363 = vmatpush.bf16.msrb.mxu1 %v3054_v33  ;;  %v2012_v33 = vadd.f32 %v2011_v44, %v1993_v15  ;;  %v4147_v15 = vld [vmem:[%s6573_s1 + $0x344] sm:$0xf]  ;;  %v4161_v44 = vld [vmem:[%s6573_s1 + $0x3b4] sm:$0xf] }
  0xc2   :  { %2382 = vmatpush.bf16.msrb.mxu2 %v3118_v27  ;;  %v4181_v27 = vld [vmem:[%s6573_s1 + $0x454] sm:$0xf] }
  0xc3   :  { %2401 = vmatpush.bf16.msrb.mxu3 %v3182_v36  ;;  %v2030_v36 = vpop.f32.mrf.mxu3  ;;  %v3414_v3 = vor.u32 %v4181_v27, %v3411_v30  ;;  %v3342_v27 = vor.u32 %v4163_v16, %v3339_v20  ;;  %v3323_v16 = vld [vmem:[%s6573_s1 + $0x3a8] sm:$0xf0] }
  0xc4   :  { %2413 = vmatpush.bf16.msra.mxu0 %v3302_v43  ;;  %v5909_v52 = vadd.f32 %v2030_v36, %v2012_v33  ;;  %v4193_v33 = vld [vmem:[%s6573_s1 + $0x4b4] sm:$0xf]  ;;  %v3459_v36 = vld [vmem:[%s6573_s1 + $0x4b8] sm:$0xf0]  ;;  %v3451_v20 = vld [vmem:[%s6573_s1 + $0x4a8] sm:$0xf0] }
  0xc5   :  { %2432 = vmatpush.bf16.msra.mxu1 %v3366_v4  ;;  %v2061_v43 = vpop.f32.mrf.mxu1  ;;  %v3286_v4 = vor.u32 %v4149_v50, %v3283_v31  ;;  %2345 = vmatmul.bf16.vlgmr.msrb.gmra.mxu0 %v4601_v54 }
  0xc6   :  { %2451 = vmatpush.bf16.msra.mxu2 %v3430_v59  ;;  %v2042_v59 = vpop.f32.mrf.mxu0  ;;  %2402 = vmatmul.bf16.vlgmr.msrb.gmra.mxu3 %v4878_v1  ;;  %v3267_v1 = vld [vmem:[%s6573_s1 + $0x338] sm:$0xf0] }
  0xc7   :  { %2470 = vmatpush.bf16.msra.mxu3 %v3494_v7  ;;  %v2043_v2 = vadd.f32 %v2042_v59, %v5739_v41  ;;  %v4179_v7 = vld [vmem:[%s6573_s1 + $0x444] sm:$0xf]  ;;  %v3275_v41 = vld [vmem:[%s6573_s1 + $0x348] sm:$0xf0]  ;;  %2383 = vmatmul.bf16.vlgmr.msrb.gmra.mxu2 %v4876_v0  ;;  %v4145_v0 = vld [vmem:[%s6573_s1 + $0x334] sm:$0xf] }
  0xc8   :  { %2414 = vmatpush.bf16.msra.mxu0 %v3294_v48  ;;  %2364 = vmatmul.bf16.vlgmr.msrb.gmra.mxu1 %v4609_v57  ;;  %v3467_v48 = vld [vmem:[%s6573_s1 + $0x4c8] sm:$0xf0]  ;;  %v3406_v54 = vor.u32 %v4179_v7, %v3403_v10  ;;  %v3278_v57 = vor.u32 %v4147_v15, %v3275_v41  ;;  %v2080_v50 = vpop.f32.mrf.mxu2  ;;  %v3334_v10 = vor.u32 %v4161_v44, %v3331_v32  ;;  %v4159_v15 = vld [vmem:[%s6573_s1 + $0x3a4] sm:$0xf]  ;;  %v3443_v32 = vld [vmem:[%s6573_s1 + $0x498] sm:$0xf0] }
  0xc9   :  { %2433 = vmatpush.bf16.msra.mxu1 %v3358_v53  ;;  %v2062_v19 = vadd.f32 %v2061_v43, %v2043_v2  ;;  %v4177_v53 = vld [vmem:[%s6573_s1 + $0x434] sm:$0xf]  ;;  %v3270_v2 = vor.u32 %v4145_v0, %v3267_v1 }
  0xca   :  { %2452 = vmatpush.bf16.msra.mxu2 %v3422_v21  ;;  %v4195_v21 = vld [vmem:[%s6573_s1 + $0x4c4] sm:$0xf]  ;;  %v4157_v0 = vld [vmem:[%s6573_s1 + $0x394] sm:$0xf] }
  0xcb   :  { %2471 = vmatpush.bf16.msra.mxu3 %v3486_v26  ;;  %v3395_v26 = vld [vmem:[%s6573_s1 + $0x438] sm:$0xf0]  ;;  %v3470_v30 = vor.u32 %v4195_v21, %v3467_v48  ;;  %v2099_v31 = vpop.f32.mrf.mxu3  ;;  %v2081_v42 = vadd.f32 %v2080_v50, %v2062_v19  ;;  %v4191_v19 = vld [vmem:[%s6573_s1 + $0x4a4] sm:$0xf] }
  0xcc   :  { %2415 = vmatpush.bf16.msra.mxu0 %v3286_v4  ;;  %v3398_v43 = vor.u32 %v4177_v53, %v3395_v26  ;;  %v3387_v4 = vld [vmem:[%s6573_s1 + $0x428] sm:$0xf0]  ;;  %v3326_v53 = vor.u32 %v4159_v15, %v3323_v16  ;;  %v3454_v26 = vor.u32 %v4191_v19, %v3451_v20  ;;  %v3315_v50 = vld [vmem:[%s6573_s1 + $0x398] sm:$0xf0]  ;;  %v4187_v15 = vld [vmem:[%s6573_s1 + $0x484] sm:$0xf] }
  0xcd   :  { %2434 = vmatpush.bf16.msra.mxu1 %v3350_v61  ;;  %v2063_v49 = vpop.f32.mrf.mxu1  ;;  %v5971_v7 = vadd.f32 %v2099_v31, %v2081_v42  ;;  %v3462_v61 = vor.u32 %v4193_v33, %v3459_v36  ;;  %v4189_v31 = vld [vmem:[%s6573_s1 + $0x494] sm:$0xf]  ;;  %v3435_v16 = vld [vmem:[%s6573_s1 + $0x488] sm:$0xf0]  ;;  %v3683_v20 = vld [vmem:[%s6573_s1 + $0x678] sm:$0xf0] }
  0xce   :  { %2453 = vmatpush.bf16.msra.mxu2 %v3414_v3  ;;  %v2044_v47 = vpop.f32.mrf.mxu0  ;;  %v4175_v3 = vld [vmem:[%s6573_s1 + $0x424] sm:$0xf]  ;;  %v4249_v19 = vld [vmem:[%s6573_s1 + $0x674] sm:$0xf] }
  0xcf   :  { %2472 = vmatpush.bf16.msra.mxu3 %v3478_v11  ;;  %v2045_v59 = vadd.f32 %v2044_v47, %v5808_v60  ;;  %v4143_v60 = vld [vmem:[%s6573_s1 + $0x324] sm:$0xf]  ;;  %v3259_v11 = vld [vmem:[%s6573_s1 + $0x328] sm:$0xf0]  ;;  %v3390_v21 = vor.u32 %v4175_v3, %v3387_v4 }
  0xd0   :  { %2416 = vmatpush.bf16.msra.mxu0 %v3278_v57  ;;  %v3262_v48 = vor.u32 %v4143_v60, %v3259_v11  ;;  %v3379_v57 = vld [vmem:[%s6573_s1 + $0x418] sm:$0xf0]  ;;  %v2082_v1 = vpop.f32.mrf.mxu2  ;;  %v4171_v47 = vld [vmem:[%s6573_s1 + $0x404] sm:$0xf]  ;;  %v3243_v4 = vld [vmem:[%s6573_s1 + $0x308] sm:$0xf0] }
  0xd1   :  { %2435 = vmatpush.bf16.msra.mxu1 %v3342_v27  ;;  %v2064_v41 = vadd.f32 %v2063_v49, %v2045_v59  ;;  %v4141_v27 = vld [vmem:[%s6573_s1 + $0x314] sm:$0xf]  ;;  %v4139_v3 = vld [vmem:[%s6573_s1 + $0x304] sm:$0xf]  ;;  %v3307_v11 = vld [vmem:[%s6573_s1 + $0x388] sm:$0xf0] }
  0xd2   :  { %2454 = vmatpush.bf16.msra.mxu2 %v3406_v54  ;;  %v4173_v54 = vld [vmem:[%s6573_s1 + $0x414] sm:$0xf]  ;;  %v4155_v60 = vld [vmem:[%s6573_s1 + $0x384] sm:$0xf] }
  0xd3   :  { %2473 = vmatpush.bf16.msra.mxu3 %v3470_v30  ;;  %v3251_v30 = vld [vmem:[%s6573_s1 + $0x318] sm:$0xf0]  ;;  %v2101_v44 = vpop.f32.mrf.mxu3  ;;  %v2083_v33 = vadd.f32 %v2082_v1, %v2064_v41  ;;  %v3382_v59 = vor.u32 %v4173_v54, %v3379_v57  ;;  %v3246_v54 = vor.u32 %v4139_v3, %v3243_v4  ;;  %v4263_v3 = vld [vmem:[%s6573_s1 + $0x6e4] sm:$0xf]  ;;  %v3739_v4 = vld [vmem:[%s6573_s1 + $0x6e8] sm:$0xf0] }
  0xd4   :  { %2417 = vmatpush.bf16.msra.mxu0 %v3270_v2  ;;  %v3371_v2 = vld [vmem:[%s6573_s1 + $0x408] sm:$0xf0]  ;;  %v3747_v57 = vld [vmem:[%s6573_s1 + $0x6f8] sm:$0xf0] }
  0xd5   :  { %2436 = vmatpush.bf16.msra.mxu1 %v3334_v10  ;;  %v2066_v42 = vpop.f32.mrf.mxu1  ;;  %v6028_v10 = vadd.f32 %v2101_v44, %v2083_v33  ;;  %2350 = vmatmul.bf16.gmra.mxu0 %v4733_v51  ;;  %v4217_v51 = vld [vmem:[%s6573_s1 + $0x574] sm:$0xf]  ;;  %v4247_v44 = vld [vmem:[%s6573_s1 + $0x664] sm:$0xf] }
  0xd6   :  { %2455 = vmatpush.bf16.msra.mxu2 %v3398_v43  ;;  %v2047_v36 = vpop.f32.mrf.mxu0  ;;  %v3254_v43 = vor.u32 %v4141_v27, %v3251_v30  ;;  %2407 = vmatmul.bf16.gmra.mxu3 %v5010_v9  ;;  %v4265_v9 = vld [vmem:[%s6573_s1 + $0x6f4] sm:$0xf] }
  0xd7   :  { %2474 = vmatpush.bf16.msra.mxu3 %v3462_v61  ;;  %v2048_v49 = vadd.f32 %v2047_v36, %v5874_v12  ;;  %v3318_v12 = vor.u32 %v4157_v0, %v3315_v50  ;;  %v3446_v61 = vor.u32 %v4189_v31, %v3443_v32  ;;  %2388 = vmatmul.bf16.gmra.mxu2 %v5008_v8  ;;  %v3619_v8 = vld [vmem:[%s6573_s1 + $0x5f8] sm:$0xf0]  ;;  %v3675_v50 = vld [vmem:[%s6573_s1 + $0x668] sm:$0xf0] }
  0xd8   :  { %2418 = vmatpush.bf16.msra.mxu0 %v3262_v48  ;;  %2369 = vmatmul.bf16.gmra.mxu1 %v4741_v56  ;;  %v3555_v56 = vld [vmem:[%s6573_s1 + $0x578] sm:$0xf0]  ;;  %v3374_v48 = vor.u32 %v4171_v47, %v3371_v2  ;;  %v2085_v27 = vpop.f32.mrf.mxu2  ;;  %v3686_v0 = vor.u32 %v4249_v19, %v3683_v20  ;;  %v4215_v47 = vld [vmem:[%s6573_s1 + $0x564] sm:$0xf]  ;;  %v3611_v2 = vld [vmem:[%s6573_s1 + $0x5e8] sm:$0xf0] }
  0xd9   :  { %2437 = vmatpush.bf16.msra.mxu1 %v3326_v53  ;;  %v2067_v41 = vadd.f32 %v2066_v42, %v2048_v49  ;;  %v3310_v53 = vor.u32 %v4155_v60, %v3307_v11  ;;  %v3558_v1 = vor.u32 %v4217_v51, %v3555_v56  ;;  %v3750_v42 = vor.u32 %v4265_v9, %v3747_v57  ;;  %v3547_v49 = vld [vmem:[%s6573_s1 + $0x568] sm:$0xf0]  ;;  %v4213_v19 = vld [vmem:[%s6573_s1 + $0x554] sm:$0xf]  ;;  %v3539_v20 = vld [vmem:[%s6573_s1 + $0x558] sm:$0xf0] }
  0xda   :  { %2456 = vmatpush.bf16.msra.mxu2 %v3390_v21  ;;  %v4233_v21 = vld [vmem:[%s6573_s1 + $0x5f4] sm:$0xf]  ;;  %v3550_v60 = vor.u32 %v4215_v47, %v3547_v49  ;;  %v3723_v47 = vld [vmem:[%s6573_s1 + $0x6c8] sm:$0xf0] }
  0xdb   :  { %2475 = vmatpush.bf16.msra.mxu3 %v3454_v26  ;;  %v3438_v26 = vor.u32 %v4187_v15, %v3435_v16  ;;  %v2104_v30 = vpop.f32.mrf.mxu3  ;;  %v2086_v31 = vadd.f32 %v2085_v27, %v2067_v41  ;;  %v3622_v36 = vor.u32 %v4233_v21, %v3619_v8  ;;  %v3742_v15 = vor.u32 %v4263_v3, %v3739_v4  ;;  %v4245_v41 = vld [vmem:[%s6573_s1 + $0x654] sm:$0xf]  ;;  %v3667_v16 = vld [vmem:[%s6573_s1 + $0x658] sm:$0xf0] }
  0xdc   :  { %2419 = vmatpush.bf16.msra.mxu0 %v3254_v43  ;;  %v4229_v51 = vld [vmem:[%s6573_s1 + $0x5d4] sm:$0xf]  ;;  %v3731_v8 = vld [vmem:[%s6573_s1 + $0x6d8] sm:$0xf0]  ;;  %v3542_v27 = vor.u32 %v4213_v19, %v3539_v20  ;;  %v4239_v20 = vld [vmem:[%s6573_s1 + $0x624] sm:$0xf] }
  0xdd   :  { %2438 = vmatpush.bf16.msra.mxu1 %v3318_v12  ;;  %v2068_v33 = vpop.f32.mrf.mxu1  ;;  %v6095_v12 = vadd.f32 %v2104_v30, %v2086_v31  ;;  %v4243_v30 = vld [vmem:[%s6573_s1 + $0x644] sm:$0xf]  ;;  %v4241_v49 = vld [vmem:[%s6573_s1 + $0x634] sm:$0xf] }
  0xde   :  { %2457 = vmatpush.bf16.msra.mxu2 %v3382_v59  ;;  %v2049_v32 = vpop.f32.mrf.mxu0  ;;  %v4231_v59 = vld [vmem:[%s6573_s1 + $0x5e4] sm:$0xf]  ;;  %v4225_v3 = vld [vmem:[%s6573_s1 + $0x5b4] sm:$0xf] }
  0xdf   :  { %2476 = vmatpush.bf16.msra.mxu3 %v3446_v61  ;;  %v2050_v43 = vadd.f32 %v2049_v32, %v5909_v52  ;;  %v3678_v52 = vor.u32 %v4247_v44, %v3675_v50  ;;  %v3614_v11 = vor.u32 %v4231_v59, %v3611_v2  ;;  %v4211_v31 = vld [vmem:[%s6573_s1 + $0x544] sm:$0xf]  ;;  %v3531_v32 = vld [vmem:[%s6573_s1 + $0x548] sm:$0xf0]  ;;  %v3651_v59 = vld [vmem:[%s6573_s1 + $0x638] sm:$0xf0] }
  0xe0   :  { %2420 = vmatpush.bf16.msra.mxu0 %v3246_v54  ;;  %v2087_v56 = vpop.f32.mrf.mxu2  ;;  %v4261_v54 = vld [vmem:[%s6573_s1 + $0x6d4] sm:$0xf] }
  0xe1   :  { %2439 = vmatpush.bf16.msra.mxu1 %v3310_v53  ;;  %v2069_v61 = vadd.f32 %v2068_v33, %v2050_v43  ;;  %v3734_v50 = vor.u32 %v4261_v54, %v3731_v8  ;;  %v4227_v33 = vld [vmem:[%s6573_s1 + $0x5c4] sm:$0xf]  ;;  %v3515_v54 = vld [vmem:[%s6573_s1 + $0x528] sm:$0xf0] }
  0xe2   :  { %2458 = vmatpush.bf16.msra.mxu2 %v3374_v48  ;;  %v3603_v48 = vld [vmem:[%s6573_s1 + $0x5d8] sm:$0xf0]  ;;  %v4223_v8 = vld [vmem:[%s6573_s1 + $0x5a4] sm:$0xf] }
  0xe3   :  { %2477 = vmatpush.bf16.msra.mxu3 %v3438_v26  ;;  %v2106_v21 = vpop.f32.mrf.mxu3  ;;  %v2088_v9 = vadd.f32 %v2087_v56, %v2069_v61  ;;  %v3670_v26 = vor.u32 %v4245_v41, %v3667_v16  ;;  %v3606_v44 = vor.u32 %v4229_v51, %v3603_v48  ;;  %v3654_v16 = vor.u32 %v4241_v49, %v3651_v59  ;;  %v3643_v51 = vld [vmem:[%s6573_s1 + $0x628] sm:$0xf0]  ;;  %v4207_v48 = vld [vmem:[%s6573_s1 + $0x524] sm:$0xf]  ;;  %v4253_v49 = vld [vmem:[%s6573_s1 + $0x694] sm:$0xf] }
  0xe4   :  { %2489 = vmatpush.bf16.msrb.mxu0 %v3558_v1  ;;  %v3699_v59 = vld [vmem:[%s6573_s1 + $0x698] sm:$0xf0] }
  0xe5   :  { %2508 = vmatpush.bf16.msrb.mxu1 %v3622_v36  ;;  %v6123_v53 = vpop.f32.mrf.mxu1  ;;  %v6131_v1 = vadd.f32 %v2106_v21, %v2088_v9  ;;  %2421 = vmatmul.bf16.vlgmr.msra.gmra.mxu0 %v4889_v5  ;;  %v3595_v36 = vld [vmem:[%s6573_s1 + $0x5c8] sm:$0xf0] }
  0xe6   :  { %2527 = vmatpush.bf16.msrb.mxu2 %v3686_v0  ;;  %v6121_v57 = vpop.f32.mrf.mxu0  ;;  %v3659_v0 = vld [vmem:[%s6573_s1 + $0x648] sm:$0xf0]  ;;  %2478 = vmatmul.bf16.vlgmr.msra.gmra.mxu3 %v5148_v24  ;;  %v3598_v43 = vor.u32 %v4227_v33, %v3595_v36  ;;  %v3523_v24 = vld [vmem:[%s6573_s1 + $0x538] sm:$0xf0]  ;;  %v4205_v33 = vld [vmem:[%s6573_s1 + $0x514] sm:$0xf] }
  0xe7   :  { %2546 = vmatpush.bf16.msrb.mxu3 %v3750_v42  ;;  %v4259_v42 = vld [vmem:[%s6573_s1 + $0x6c4] sm:$0xf]  ;;  %2459 = vmatmul.bf16.vlgmr.msra.gmra.mxu2 %v5146_v23  ;;  %v3662_v5 = vor.u32 %v4243_v30, %v3659_v0  ;;  %v4209_v23 = vld [vmem:[%s6573_s1 + $0x534] sm:$0xf]  ;;  %v3579_v9 = vld [vmem:[%s6573_s1 + $0x5a8] sm:$0xf0]  ;;  %v3646_v30 = vor.u32 %v4239_v20, %v3643_v51  ;;  %v3518_v0 = vor.u32 %v4207_v48, %v3515_v54 }
  0xe8   :  { %2490 = vmatpush.bf16.msrb.mxu0 %v3550_v60  ;;  %2440 = vmatmul.bf16.vlgmr.msra.gmra.mxu1 %v4891_v6  ;;  %v3534_v6 = vor.u32 %v4211_v31, %v3531_v32  ;;  %v3726_v2 = vor.u32 %v4259_v42, %v3723_v47  ;;  %v6170_v4 = vpop.f32.mrf.mxu2  ;;  %v4257_v60 = vld [vmem:[%s6573_s1 + $0x6b4] sm:$0xf]  ;;  %v3526_v19 = vor.u32 %v4209_v23, %v3523_v24  ;;  %v3507_v36 = vld [vmem:[%s6573_s1 + $0x518] sm:$0xf0]  ;;  %v4235_v23 = vld [vmem:[%s6573_s1 + $0x604] sm:$0xf] }
  0xe9   :  { %2509 = vmatpush.bf16.msrb.mxu1 %v3614_v11  ;;  %v3715_v11 = vld [vmem:[%s6573_s1 + $0x6b8] sm:$0xf0]  ;;  %v3582_v31 = vor.u32 %v4223_v8, %v3579_v9  ;;  %v4221_v42 = vld [vmem:[%s6573_s1 + $0x594] sm:$0xf]  ;;  %v4219_v20 = vld [vmem:[%s6573_s1 + $0x584] sm:$0xf] }
  0xea   :  { %2528 = vmatpush.bf16.msrb.mxu2 %v3678_v52  ;;  %v3587_v52 = vld [vmem:[%s6573_s1 + $0x5b8] sm:$0xf0]  ;;  %v3718_v21 = vor.u32 %v4257_v60, %v3715_v11  ;;  %v4203_v60 = vld [vmem:[%s6573_s1 + $0x504] sm:$0xf]  ;;  %v3499_v11 = vld [vmem:[%s6573_s1 + $0x508] sm:$0xf0] }
  0xeb   :  { %2547 = vmatpush.bf16.msrb.mxu3 %v3742_v15  ;;  %v6172_v61 = vpop.f32.mrf.mxu3  ;;  %v3590_v56 = vor.u32 %v4225_v3, %v3587_v52  ;;  %v3510_v3 = vor.u32 %v4205_v33, %v3507_v36  ;;  %v3627_v52 = vld [vmem:[%s6573_s1 + $0x608] sm:$0xf0]  ;;  %v4313_v48 = vld [vmem:[%s6573_s1 + $0x874] sm:$0xf]  ;;  %v3939_v54 = vld [vmem:[%s6573_s1 + $0x878] sm:$0xf0] }
  0xec   :  { %2491 = vmatpush.bf16.msrb.mxu0 %v3542_v27  ;;  %v3707_v27 = vld [vmem:[%s6573_s1 + $0x6a8] sm:$0xf0]  ;;  %v4297_v8 = vld [vmem:[%s6573_s1 + $0x7f4] sm:$0xf]  ;;  %v3630_v9 = vor.u32 %v4235_v23, %v3627_v52  ;;  %v4311_v33 = vld [vmem:[%s6573_s1 + $0x864] sm:$0xf] }
  0xed   :  { %2510 = vmatpush.bf16.msrb.mxu1 %v3606_v44  ;;  %v6185_v41 = vpop.f32.mrf.mxu1  ;;  %v4237_v44 = vld [vmem:[%s6573_s1 + $0x614] sm:$0xf]  ;;  %v3563_v51 = vld [vmem:[%s6573_s1 + $0x588] sm:$0xf0]  ;;  %v4279_v23 = vld [vmem:[%s6573_s1 + $0x764] sm:$0xf] }
  0xee   :  { %2529 = vmatpush.bf16.msrb.mxu2 %v3670_v26  ;;  %v6183_v15 = vpop.f32.mrf.mxu0  ;;  %v4255_v26 = vld [vmem:[%s6573_s1 + $0x6a4] sm:$0xf]  ;;  %v3931_v36 = vld [vmem:[%s6573_s1 + $0x868] sm:$0xf0] }
  0xef   :  { %2548 = vmatpush.bf16.msrb.mxu3 %v3734_v50  ;;  %v3635_v50 = vld [vmem:[%s6573_s1 + $0x618] sm:$0xf0]  ;;  %v3710_v32 = vor.u32 %v4255_v26, %v3707_v27  ;;  %v3502_v26 = vor.u32 %v4203_v60, %v3499_v11  ;;  %v3867_v52 = vld [vmem:[%s6573_s1 + $0x7e8] sm:$0xf0]  ;;  %v4327_v60 = vld [vmem:[%s6573_s1 + $0x8e4] sm:$0xf] }
  0xf0   :  { %2492 = vmatpush.bf16.msrb.mxu0 %v3534_v6  ;;  %v6226_v47 = vpop.f32.mrf.mxu2  ;;  %v3571_v6 = vld [vmem:[%s6573_s1 + $0x598] sm:$0xf0]  ;;  %v3638_v24 = vor.u32 %v4237_v44, %v3635_v50  ;;  %v3995_v11 = vld [vmem:[%s6573_s1 + $0x8e8] sm:$0xf0] }
  0xf1   :  { %2511 = vmatpush.bf16.msrb.mxu1 %v3598_v43  ;;  %v4003_v27 = vld [vmem:[%s6573_s1 + $0x8f8] sm:$0xf0] }
  0xf2   :  { %2530 = vmatpush.bf16.msrb.mxu2 %v3662_v5 }
  0xf3   :  { %2549 = vmatpush.bf16.msrb.mxu3 %v3726_v2  ;;  %v6228_v5 = vpop.f32.mrf.mxu3 }
  0xf4   :  { %2493 = vmatpush.bf16.msrb.mxu0 %v3526_v19  ;;  %v3702_v19 = vor.u32 %v4253_v49, %v3699_v59 }
  0xf5   :  { %2512 = vmatpush.bf16.msrb.mxu1 %v3590_v56  ;;  %v6241_v2 = vpop.f32.mrf.mxu1  ;;  %v4251_v56 = vld [vmem:[%s6573_s1 + $0x684] sm:$0xf]  ;;  %2426 = vmatmul.bf16.gmra.mxu0 %v5021_v13  ;;  %v4281_v13 = vld [vmem:[%s6573_s1 + $0x774] sm:$0xf] }
  0xf6   :  { %2531 = vmatpush.bf16.msrb.mxu2 %v3654_v16  ;;  %v6239_v43 = vpop.f32.mrf.mxu0  ;;  %v3574_v16 = vor.u32 %v4221_v42, %v3571_v6  ;;  %2483 = vmatmul.bf16.gmra.mxu3 %v5280_v40  ;;  %v4329_v40 = vld [vmem:[%s6573_s1 + $0x8f4] sm:$0xf] }
  0xf7   :  { %2550 = vmatpush.bf16.msrb.mxu3 %v3718_v21  ;;  %v3691_v21 = vld [vmem:[%s6573_s1 + $0x688] sm:$0xf0]  ;;  %2464 = vmatmul.bf16.gmra.mxu2 %v5278_v39  ;;  %v3875_v39 = vld [vmem:[%s6573_s1 + $0x7f8] sm:$0xf0]  ;;  %v4006_v59 = vor.u32 %v4329_v40, %v4003_v27 }
  0xf8   :  { %2494 = vmatpush.bf16.msrb.mxu0 %v3518_v0  ;;  %2445 = vmatmul.bf16.gmra.mxu1 %v5023_v14  ;;  %v3811_v14 = vld [vmem:[%s6573_s1 + $0x778] sm:$0xf0]  ;;  %v3694_v0 = vor.u32 %v4251_v56, %v3691_v21  ;;  %v6295_v44 = vpop.f32.mrf.mxu2  ;;  %v3878_v49 = vor.u32 %v4297_v8, %v3875_v39  ;;  %v4309_v56 = vld [vmem:[%s6573_s1 + $0x854] sm:$0xf] }
  0xf9   :  { %2513 = vmatpush.bf16.msrb.mxu1 %v3582_v31  ;;  %v3942_v31 = vor.u32 %v4313_v48, %v3939_v54  ;;  %v3923_v21 = vld [vmem:[%s6573_s1 + $0x858] sm:$0xf0]  ;;  %v4277_v48 = vld [vmem:[%s6573_s1 + $0x754] sm:$0xf] }
  0xfa   :  { %2532 = vmatpush.bf16.msrb.mxu2 %v3646_v30  ;;  %v3566_v30 = vor.u32 %v4219_v20, %v3563_v51  ;;  %v3998_v51 = vor.u32 %v4327_v60, %v3995_v11  ;;  %v3795_v54 = vld [vmem:[%s6573_s1 + $0x758] sm:$0xf0]  ;;  %v4305_v60 = vld [vmem:[%s6573_s1 + $0x834] sm:$0xf] }
  0xfb   :  { %2551 = vmatpush.bf16.msrb.mxu3 %v3710_v32  ;;  %v6297_v50 = vpop.f32.mrf.mxu3  ;;  %v3814_v32 = vor.u32 %v4281_v13, %v3811_v14  ;;  %v4293_v13 = vld [vmem:[%s6573_s1 + $0x7d4] sm:$0xf]  ;;  %v3987_v39 = vld [vmem:[%s6573_s1 + $0x8d8] sm:$0xf0] }
  0xfc   :  { %2495 = vmatpush.bf16.msrb.mxu0 %v3510_v3  ;;  %v4295_v3 = vld [vmem:[%s6573_s1 + $0x7e4] sm:$0xf]  ;;  %v3907_v11 = vld [vmem:[%s6573_s1 + $0x838] sm:$0xf0] }
  0xfd   :  { %2514 = vmatpush.bf16.msrb.mxu1 %v3574_v16  ;;  %v6307_v6 = vpop.f32.mrf.mxu1  ;;  %v3934_v16 = vor.u32 %v4311_v33, %v3931_v36  ;;  %v3870_v20 = vor.u32 %v4295_v3, %v3867_v52  ;;  %v4323_v3 = vld [vmem:[%s6573_s1 + $0x8c4] sm:$0xf]  ;;  %v3979_v52 = vld [vmem:[%s6573_s1 + $0x8c8] sm:$0xf0] }
  0xfe   :  { %2533 = vmatpush.bf16.msrb.mxu2 %v3638_v24  ;;  %v6305_v42 = vpop.f32.mrf.mxu0  ;;  %v3803_v24 = vld [vmem:[%s6573_s1 + $0x768] sm:$0xf0] }
  0xff   :  { %2552 = vmatpush.bf16.msrb.mxu3 %v3702_v19  ;;  %v3806_v19 = vor.u32 %v4279_v23, %v3803_v24  ;;  %v4291_v23 = vld [vmem:[%s6573_s1 + $0x7c4] sm:$0xf]  ;;  %v3851_v24 = vld [vmem:[%s6573_s1 + $0x7c8] sm:$0xf0] }
 0x100   :  { %2496 = vmatpush.bf16.msrb.mxu0 %v3502_v26  ;;  %v6342_v14 = vpop.f32.mrf.mxu2  ;;  %v4325_v26 = vld [vmem:[%s6573_s1 + $0x8d4] sm:$0xf] }
 0x101   :  { %2515 = vmatpush.bf16.msrb.mxu1 %v3566_v30  ;;  %v3926_v30 = vor.u32 %v4309_v56, %v3923_v21  ;;  %v3990_v36 = vor.u32 %v4325_v26, %v3987_v39  ;;  %v3843_v21 = vld [vmem:[%s6573_s1 + $0x7b8] sm:$0xf0]  ;;  %v2119_v26 = vadd.f32 %v6121_v57, %v5971_v7  ;;  %v3910_v39 = vor.u32 %v4305_v60, %v3907_v11  ;;  %v4271_v7 = vld [vmem:[%s6573_s1 + $0x724] sm:$0xf]  ;;  %v3771_v57 = vld [vmem:[%s6573_s1 + $0x728] sm:$0xf0] }
 0x102   :  { %2534 = vmatpush.bf16.msrb.mxu2 %v3630_v9  ;;  %v3859_v9 = vld [vmem:[%s6573_s1 + $0x7d8] sm:$0xf0] }
 0x103   :  { %2553 = vmatpush.bf16.msrb.mxu3 %v3694_v0  ;;  %v6344_v8 = vpop.f32.mrf.mxu3  ;;  %v3798_v0 = vor.u32 %v4277_v48, %v3795_v54  ;;  %v3862_v33 = vor.u32 %v4293_v13, %v3859_v9  ;;  %v4321_v48 = vld [vmem:[%s6573_s1 + $0x8b4] sm:$0xf]  ;;  %v3971_v54 = vld [vmem:[%s6573_s1 + $0x8b8] sm:$0xf0] }
 0x104   :  { %2565 = vmatpush.bf16.msra.mxu0 %v3814_v32  ;;  %v3915_v32 = vld [vmem:[%s6573_s1 + $0x848] sm:$0xf0] }
 0x105   :  { %2584 = vmatpush.bf16.msra.mxu1 %v3878_v49  ;;  %v6357_v27 = vpop.f32.mrf.mxu1  ;;  %v4275_v49 = vld [vmem:[%s6573_s1 + $0x744] sm:$0xf]  ;;  %2497 = vmatmul.bf16.vlgmr.msrb.gmra.mxu0 %v5159_v28 }
 0x106   :  { %2603 = vmatpush.bf16.msra.mxu2 %v3942_v31  ;;  %v6355_v40 = vpop.f32.mrf.mxu0  ;;  %v4307_v31 = vld [vmem:[%s6573_s1 + $0x844] sm:$0xf]  ;;  %2554 = vmatmul.bf16.vlgmr.msrb.gmra.mxu3 %v5424_v18  ;;  %v3779_v18 = vld [vmem:[%s6573_s1 + $0x738] sm:$0xf0] }
 0x107   :  { %2622 = vmatpush.bf16.msra.mxu3 %v4006_v59  ;;  %v3787_v59 = vld [vmem:[%s6573_s1 + $0x748] sm:$0xf0]  ;;  %2535 = vmatmul.bf16.vlgmr.msrb.gmra.mxu2 %v5422_v17  ;;  %v3918_v28 = vor.u32 %v4307_v31, %v3915_v32  ;;  %v4273_v17 = vld [vmem:[%s6573_s1 + $0x734] sm:$0xf] }
 0x108   :  { %2566 = vmatpush.bf16.msra.mxu0 %v3806_v19  ;;  %2516 = vmatmul.bf16.vlgmr.msrb.gmra.mxu1 %v5161_v29  ;;  %v3790_v29 = vor.u32 %v4275_v49, %v3787_v59  ;;  %v3982_v19 = vor.u32 %v4323_v3, %v3979_v52  ;;  %v3899_v31 = vld [vmem:[%s6573_s1 + $0x828] sm:$0xf0]  ;;  %v4319_v59 = vld [vmem:[%s6573_s1 + $0x8a4] sm:$0xf]  ;;  %v3774_v52 = vor.u32 %v4271_v7, %v3771_v57 }
 0x109   :  { %2585 = vmatpush.bf16.msra.mxu1 %v3870_v20  ;;  %v4289_v20 = vld [vmem:[%s6573_s1 + $0x7b4] sm:$0xf]  ;;  %v3835_v49 = vld [vmem:[%s6573_s1 + $0x7a8] sm:$0xf0]  ;;  %v4283_v57 = vld [vmem:[%s6573_s1 + $0x784] sm:$0xf] }
 0x10a   :  { %2604 = vmatpush.bf16.msra.mxu2 %v3934_v16  ;;  %v3854_v16 = vor.u32 %v4291_v23, %v3851_v24  ;;  %v3846_v32 = vor.u32 %v4289_v20, %v3843_v21  ;;  %v3963_v23 = vld [vmem:[%s6573_s1 + $0x8a8] sm:$0xf0]  ;;  %v2138_v24 = vadd.f32 %v6123_v53, %v2119_v26  ;;  %v4269_v53 = vld [vmem:[%s6573_s1 + $0x714] sm:$0xf]  ;;  %v3827_v21 = vld [vmem:[%s6573_s1 + $0x798] sm:$0xf0]  ;;  %v2121_v26 = vadd.f32 %v6183_v15, %v6028_v10 }
 0x10b   :  { %2623 = vmatpush.bf16.msra.mxu3 %v3998_v51  ;;  %v6402_v51 = vpop.f32.mrf.mxu2  ;;  %v6404_v56 = vpop.f32.mrf.mxu3  ;;  %v3966_v11 = vor.u32 %v4319_v59, %v3963_v23  ;;  %v4267_v15 = vld [vmem:[%s6573_s1 + $0x704] sm:$0xf]  ;;  %v3755_v7 = vld [vmem:[%s6573_s1 + $0x708] sm:$0xf0] }
 0x10c   :  { %2567 = vmatpush.bf16.msra.mxu0 %v3798_v0  ;;  %v4303_v0 = vld [vmem:[%s6573_s1 + $0x824] sm:$0xf]  ;;  %v3947_v23 = vld [vmem:[%s6573_s1 + $0x888] sm:$0xf0] }
 0x10d   :  { %2586 = vmatpush.bf16.msra.mxu1 %v3862_v33  ;;  %v6417_v9 = vpop.f32.mrf.mxu1  ;;  %v3974_v33 = vor.u32 %v4321_v48, %v3971_v54  ;;  %v3902_v3 = vor.u32 %v4303_v0, %v3899_v31  ;;  %v4317_v48 = vld [vmem:[%s6573_s1 + $0x894] sm:$0xf]  ;;  %v3955_v54 = vld [vmem:[%s6573_s1 + $0x898] sm:$0xf0]  ;;  %v4299_v31 = vld [vmem:[%s6573_s1 + $0x804] sm:$0xf] }
 0x10e   :  { %2605 = vmatpush.bf16.msra.mxu2 %v3926_v30  ;;  %v6415_v13 = vpop.f32.mrf.mxu0  ;;  %v3782_v30 = vor.u32 %v4273_v17, %v3779_v18  ;;  %v2157_v17 = vadd.f32 %v6170_v4, %v2138_v24  ;;  %v3958_v10 = vor.u32 %v4317_v48, %v3955_v54  ;;  %v4315_v59 = vld [vmem:[%s6573_s1 + $0x884] sm:$0xf]  ;;  %v2140_v24 = vadd.f32 %v6185_v41, %v2121_v26 }
 0x10f   :  { %2624 = vmatpush.bf16.msra.mxu3 %v3990_v36  ;;  %v4287_v36 = vld [vmem:[%s6573_s1 + $0x7a4] sm:$0xf]  ;;  %v2126_v48 = vadd.f32 %v6305_v42, %v6131_v1 }
 0x110   :  { %2568 = vmatpush.bf16.msra.mxu0 %v3790_v29  ;;  %v3891_v29 = vld [vmem:[%s6573_s1 + $0x818] sm:$0xf0]  ;;  %v3838_v60 = vor.u32 %v4287_v36, %v3835_v49  ;;  %v2176_v36 = vadd.f32 %v6172_v61, %v2157_v17  ;;  %v3819_v49 = vld [vmem:[%s6573_s1 + $0x788] sm:$0xf0]  ;;  %v3758_v61 = vor.u32 %v4267_v15, %v3755_v7 }
 0x111   :  { %2587 = vmatpush.bf16.msra.mxu1 %v3854_v16  ;;  %v3763_v16 = vld [vmem:[%s6573_s1 + $0x718] sm:$0xf0] }
 0x112   :  { %2606 = vmatpush.bf16.msra.mxu2 %v3918_v28  ;;  %v4301_v28 = vld [vmem:[%s6573_s1 + $0x814] sm:$0xf]  ;;  %v3766_v0 = vor.u32 %v4269_v53, %v3763_v16 }
 0x113   :  { %2625 = vmatpush.bf16.msra.mxu3 %v3982_v19  ;;  %v4285_v19 = vld [vmem:[%s6573_s1 + $0x794] sm:$0xf]  ;;  %v6462_v18 = vpop.f32.mrf.mxu2  ;;  %v6464_v20 = vpop.f32.mrf.mxu3 }
 0x114   :  { %2569 = vmatpush.bf16.msra.mxu0 %v3782_v30  ;;  %v3894_v30 = vor.u32 %v4301_v28, %v3891_v29  ;;  %v2159_v28 = vadd.f32 %v6226_v47, %v2140_v24 }
 0x115   :  { %2588 = vmatpush.bf16.msra.mxu1 %v3846_v32  ;;  %v3883_v32 = vld [vmem:[%s6573_s1 + $0x808] sm:$0xf0]  ;;  %2502 = vmatmul.bf16.gmra.mxu0 %v5291_v45  ;;  %v2195_v45 = vadd.f32 %v6355_v40, %v2176_v36 }
 0x116   :  { %2607 = vmatpush.bf16.msra.mxu2 %v3910_v39  ;;  %v6477_v4 = vpop.f32.mrf.mxu0  ;;  %v6479_v39 = vpop.f32.mrf.mxu1  ;;  %2559 = vmatmul.bf16.gmra.mxu3 %v5556_v58  ;;  %v2178_v40 = vadd.f32 %v6228_v5, %v2159_v28 }
 0x117   :  { %2626 = vmatpush.bf16.msra.mxu3 %v3974_v33  ;;  %v3830_v33 = vor.u32 %v4285_v19, %v3827_v21  ;;  %2540 = vmatmul.bf16.gmra.mxu2 %v5554_v55  ;;  %v2124_v55 = vadd.f32 %v6239_v43, %v6095_v12  ;;  %v2214_v58 = vadd.f32 %v6357_v27, %v2195_v45 }
 0x118   :  { %2570 = vmatpush.bf16.msra.mxu0 %v3774_v52  ;;  %2521 = vmatmul.bf16.gmra.mxu1 %v5293_v46  ;;  %v3886_v46 = vor.u32 %v4299_v31, %v3883_v32  ;;  %v3950_v52 = vor.u32 %v4315_v59, %v3947_v23  ;;  %v2197_v47 = vadd.f32 %v6415_v13, %v2178_v40 }
 0x119   :  { %2589 = vmatpush.bf16.msra.mxu1 %v3838_v60  ;;  %v2233_v53 = vadd.f32 %v6402_v51, %v2214_v58  ;;  %v2143_v16 = vadd.f32 %v6241_v2, %v2124_v55 }
 0x11a   :  { %2608 = vmatpush.bf16.msra.mxu2 %v3902_v3  ;;  %v3822_v3 = vor.u32 %v4283_v57, %v3819_v49  ;;  %v2216_v54 = vadd.f32 %v6417_v9, %v2197_v47 }
 0x11b   :  { %2627 = vmatpush.bf16.msra.mxu3 %v3966_v11  ;;  %v2237_v29 = vpop.f32.mrf.mxu2  ;;  %v2256_v60 = vpop.f32.mrf.mxu3  ;;  %v2162_v19 = vadd.f32 %v6295_v44, %v2143_v16  ;;  %v2252_v17 = vadd.f32 %v6404_v56, %v2233_v53  ;;  %v2145_v44 = vadd.f32 %v6307_v6, %v2126_v48 }
 0x11c   :  { %2571 = vmatpush.bf16.msra.mxu0 %v3766_v0  ;;  %v2235_v2 = vadd.f32 %v6462_v18, %v2216_v54 }
 0x11d   :  { %2590 = vmatpush.bf16.msra.mxu1 %v3830_v33  ;;  %v2181_v51 = vadd.f32 %v6297_v50, %v2162_v19  ;;  %v2164_v50 = vadd.f32 %v6342_v14, %v2145_v44 }
 0x11e   :  { %2609 = vmatpush.bf16.msra.mxu2 %v3894_v30  ;;  %v2201_v11 = vpop.f32.mrf.mxu0  ;;  %v2220_v41 = vpop.f32.mrf.mxu1  ;;  %v2254_v42 = vadd.f32 %v6464_v20, %v2235_v2 }
 0x11f   :  { %2628 = vmatpush.bf16.msra.mxu3 %v3958_v10  ;;  %v2200_v1 = vadd.f32 %v6477_v4, %v2181_v51  ;;  %v2183_v6 = vadd.f32 %v6344_v8, %v2164_v50 }
 0x120   :  { %2572 = vmatpush.bf16.msra.mxu0 %v3758_v61 }
 0x121   :  { %2591 = vmatpush.bf16.msra.mxu1 %v3822_v3  ;;  %v2202_v30 = vadd.f32 %v2201_v11, %v2183_v6 }
 0x122   :  { %2610 = vmatpush.bf16.msra.mxu2 %v3886_v46 }
 0x123   :  { %2629 = vmatpush.bf16.msra.mxu3 %v3950_v52  ;;  %v2239_v21 = vpop.f32.mrf.mxu2  ;;  %v2258_v12 = vpop.f32.mrf.mxu3  ;;  %v2221_v57 = vadd.f32 %v2220_v41, %v2202_v30 }
 0x125   :  { %2573 = vmatmul.bf16.vlgmr.msra.gmra.mxu0 %v5435_v22  ;;  %v2240_v8 = vadd.f32 %v2239_v21, %v2221_v57 }
 0x126   :  { %v2270_v43 = vpop.f32.mrf.mxu0  ;;  %v2289_v27 = vpop.f32.mrf.mxu1  ;;  %2630 = vmatmul.bf16.vlgmr.msra.gmra.mxu3 %v5676_v35 }
 0x127   :  { %v2271_v5 = vadd.f32 %v2270_v43, %v2252_v17  ;;  %2611 = vmatmul.bf16.vlgmr.msra.gmra.mxu2 %v5674_v34  ;;  %v2219_v34 = vadd.f32 %v6479_v39, %v2200_v1  ;;  %v2259_v24 = vadd.f32 %v2258_v12, %v2240_v8 }
 0x128   :  { %2592 = vmatmul.bf16.vlgmr.msra.gmra.mxu1 %v5437_v25 }
 0x129   :  { %v2290_v26 = vadd.f32 %v2289_v27, %v2271_v5  ;;  %v2238_v18 = vadd.f32 %v2237_v29, %v2219_v34 }
 0x12b   :  { %2641 = vst [vmem:[%s6575_s2] sm:$0xff] %v2290_v26  ;;  %v2308_v56 = vpop.f32.mrf.mxu2  ;;  %v2327_v22 = vpop.f32.mrf.mxu3  ;;  %v2667_v0 = vmul.f32 %v2290_v26, %v2290_v26  ;;  %v2257_v31 = vadd.f32 %v2256_v60, %v2238_v18 }
 0x12c   :  { %v2328_v13 = vadd.f32 %v2327_v22, %v2308_v56 }
 0x12e   :  { %v2272_v25 = vpop.f32.mrf.mxu0  ;;  %v2291_v9 = vpop.f32.mrf.mxu1 }
 0x12f   :  { %v2273_v35 = vadd.f32 %v2272_v25, %v2254_v42 }
 0x131   :  { %v2292_v4 = vadd.f32 %v2291_v9, %v2273_v35 }
 0x133   :  { %2643 = vst [vmem:[%s6575_s2 + $0x10] sm:$0xff] %v2292_v4  ;;  %v2649_v14 = vadd.f32 %v2292_v4, %v2290_v26  ;;  %v2669_v20 = vmul.f32 %v2292_v4, %v2292_v4  ;;  %v2310_v33 = vpop.f32.mrf.mxu2  ;;  %v2329_v10 = vpop.f32.mrf.mxu3 }
 0x134   :  { %v2330_v15 = vadd.f32 %v2329_v10, %v2310_v33 }
 0x135   :  { %v2675_v32 = vadd.f32 %v2669_v20, %v2667_v0  ;;  %2578 = vmatmul.bf16.gmra.mxu0 %v5567_v62 }
 0x136   :  { %v2275_v7 = vpop.f32.mrf.mxu0  ;;  %v2294_v39 = vpop.f32.mrf.mxu1  ;;  %2635 = vmatmul.bf16.gmra.mxu3 %v5794_v38 }
 0x137   :  { %v2276_v36 = vadd.f32 %v2275_v7, %v2257_v31  ;;  %2616 = vmatmul.bf16.gmra.mxu2 %v5792_v37 }
 0x138   :  { %2597 = vmatmul.bf16.gmra.mxu1 %v5569_v63 }
 0x139   :  { %v2295_v49 = vadd.f32 %v2294_v39, %v2276_v36 }
 0x13b   :  { %2645 = vst [vmem:[%s6575_s2 + $0x20] sm:$0xff] %v2295_v49  ;;  %v2650_v59 = vadd.f32 %v2649_v14, %v2295_v49  ;;  %v2671_v23 = vmul.f32 %v2295_v49, %v2295_v49  ;;  %v2313_v46 = vpop.f32.mrf.mxu2  ;;  %v2332_v61 = vpop.f32.mrf.mxu3 }
 0x13c   :  { %v2333_v3 = vadd.f32 %v2332_v61, %v2313_v46 }
 0x13d   :  { %v2676_v45 = vadd.f32 %v2675_v32, %v2671_v23 }
 0x13e   :  { %v2277_v52 = vpop.f32.mrf.mxu0  ;;  %v2296_v28 = vpop.f32.mrf.mxu1 }
 0x13f   :  { %v2278_v62 = vadd.f32 %v2277_v52, %v2259_v24 }
 0x141   :  { %v2297_v29 = vadd.f32 %v2296_v28, %v2278_v62 }
 0x143   :  { %2647 = vst [vmem:[%s6575_s2 + $0x30] sm:$0xff] %v2297_v29  ;;  %v2651_v63 = vadd.f32 %v2650_v59, %v2297_v29  ;;  %v2673_v37 = vmul.f32 %v2297_v29, %v2297_v29  ;;  %v2315_v11 = vpop.f32.mrf.mxu2  ;;  %v2334_v41 = vpop.f32.mrf.mxu3 }
 0x144   :  { %v2335_v55 = vadd.f32 %v2334_v41, %v2315_v11 }
 0x145   :  { %v2652_v38 = vrot.slane %v2651_v63, 4  ;;  %v2677_v60 = vadd.f32 %v2676_v45, %v2673_v37 }
 0x146   :  { %v2346_v58 = vpop.f32.mrf.mxu0  ;;  %v2365_v40 = vpop.f32.mrf.mxu1 }
 0x147   :  { %v2653_v53 = vadd.f32 %v2652_v38, %v2651_v63  ;;  %v2678_v16 = vrot.slane %v2677_v60, 4  ;;  %v2347_v47 = vadd.f32 %v2346_v58, %v2328_v13 }
 0x149   :  { %v2654_v19 = vrot.slane %v2653_v53, 2  ;;  %v2679_v17 = vadd.f32 %v2678_v16, %v2677_v60  ;;  %v2366_v21 = vadd.f32 %v2365_v40, %v2347_v47 }
 0x14b   :  { %v2655_v12 = vadd.f32 %v2654_v19, %v2653_v53  ;;  %v2680_v43 = vrot.slane %v2679_v17, 2  ;;  %v2384_v54 = vpop.f32.mrf.mxu2  ;;  %v2403_v5 = vpop.f32.mrf.mxu3 }
 0x14c   :  { %v2385_v51 = vadd.f32 %v2384_v54, %v2366_v21 }
 0x14d   :  { %v2656_v27 = vrot.slane %v2655_v12, 1  ;;  %v2681_v48 = vadd.f32 %v2680_v43, %v2679_v17 }
 0x14e   :  { %v2348_v2 = vpop.f32.mrf.mxu0  ;;  %v2367_v26 = vpop.f32.mrf.mxu1  ;;  %v2404_v50 = vadd.f32 %v2403_v5, %v2385_v51 }
 0x14f   :  { %v2682_v44 = vrot.slane %v2681_v48, 1  ;;  %v2349_v1 = vadd.f32 %v2348_v2, %v2330_v15  ;;  %v2657_v42 = vadd.f32 %v2656_v27, %v2655_v12 }
 0x151   :  { %v2683_v56 = vadd.f32 %v2682_v44, %v2681_v48  ;;  %v2368_v22 = vadd.f32 %v2367_v26, %v2349_v1 }
 0x153   :  { %v6554_v13 = vsel %vm2693_vm0, %v2657_v42, %v2683_v56  ;;  %v2386_v25 = vpop.f32.mrf.mxu2  ;;  %v2405_v9 = vpop.f32.mrf.mxu3 }
 0x154   :  { %v2387_v34 = vadd.f32 %v2386_v25, %v2368_v22 }
 0x156   :  { %v2351_v35 = vpop.f32.mrf.mxu0  ;;  %v2370_v6 = vpop.f32.mrf.mxu1  ;;  %v2406_v4 = vadd.f32 %v2405_v9, %v2387_v34 }
 0x157   :  { %v2352_v18 = vadd.f32 %v2351_v35, %v2333_v3 }
 0x159   :  { %v2371_v30 = vadd.f32 %v2370_v6, %v2352_v18 }
 0x15b   :  { %v2389_v0 = vpop.f32.mrf.mxu2  ;;  %v2408_v14 = vpop.f32.mrf.mxu3 }
 0x15c   :  { %v2390_v20 = vadd.f32 %v2389_v0, %v2371_v30 }
 0x15e   :  { %v2353_v31 = vpop.f32.mrf.mxu0  ;;  %v2372_v32 = vpop.f32.mrf.mxu1  ;;  %v2409_v10 = vadd.f32 %v2408_v14, %v2390_v20 }
 0x15f   :  { %v2354_v33 = vadd.f32 %v2353_v31, %v2335_v55 }
 0x161   :  { %v2373_v15 = vadd.f32 %v2372_v32, %v2354_v33 }
 0x163   :  { %v2391_v7 = vpop.f32.mrf.mxu2  ;;  %v2410_v39 = vpop.f32.mrf.mxu3 }
 0x164   :  { %v2392_v57 = vadd.f32 %v2391_v7, %v2373_v15 }
 0x166   :  { %v2422_v36 = vpop.f32.mrf.mxu0  ;;  %v2441_v8 = vpop.f32.mrf.mxu1  ;;  %v2411_v49 = vadd.f32 %v2410_v39, %v2392_v57 }
 0x167   :  { %v2423_v53 = vadd.f32 %v2422_v36, %v2404_v50 }
 0x169   :  { %v2442_v16 = vadd.f32 %v2441_v8, %v2423_v53 }
 0x16b   :  { %v2460_v59 = vpop.f32.mrf.mxu2  ;;  %v2479_v23 = vpop.f32.mrf.mxu3 }
 0x16c   :  { %v2461_v17 = vadd.f32 %v2460_v59, %v2442_v16 }
 0x16e   :  { %v2424_v24 = vpop.f32.mrf.mxu0  ;;  %v2443_v45 = vpop.f32.mrf.mxu1  ;;  %v2480_v27 = vadd.f32 %v2479_v23, %v2461_v17 }
 0x16f   :  { %v2425_v43 = vadd.f32 %v2424_v24, %v2406_v4 }
 0x171   :  { %v2444_v48 = vadd.f32 %v2443_v45, %v2425_v43 }
 0x173   :  { %v2462_v46 = vpop.f32.mrf.mxu2  ;;  %v2481_v61 = vpop.f32.mrf.mxu3 }
 0x174   :  { %v2463_v2 = vadd.f32 %v2462_v46, %v2444_v48 }
 0x176   :  { %v2427_v3 = vpop.f32.mrf.mxu0  ;;  %v2446_v52 = vpop.f32.mrf.mxu1  ;;  %v2482_v56 = vadd.f32 %v2481_v61, %v2463_v2 }
 0x177   :  { %v2428_v1 = vadd.f32 %v2427_v3, %v2409_v10 }
 0x179   :  { %v2447_v50 = vadd.f32 %v2446_v52, %v2428_v1 }
 0x17b   :  { %v2465_v28 = vpop.f32.mrf.mxu2  ;;  %v2484_v62 = vpop.f32.mrf.mxu3 }
 0x17c   :  { %v2466_v35 = vadd.f32 %v2465_v28, %v2447_v50 }
 0x17e   :  { %v2429_v29 = vpop.f32.mrf.mxu0  ;;  %v2448_v63 = vpop.f32.mrf.mxu1  ;;  %v2485_v20 = vadd.f32 %v2484_v62, %v2466_v35 }
 0x17f   :  { %v2430_v30 = vadd.f32 %v2429_v29, %v2411_v49 }
 0x181   :  { %v2449_v32 = vadd.f32 %v2448_v63, %v2430_v30 }
 0x183   :  { %v2467_v37 = vpop.f32.mrf.mxu2  ;;  %v2486_v38 = vpop.f32.mrf.mxu3 }
 0x184   :  { %v2468_v39 = vadd.f32 %v2467_v37, %v2449_v32 }
 0x186   :  { %v2498_v60 = vpop.f32.mrf.mxu0  ;;  %v2517_v11 = vpop.f32.mrf.mxu1  ;;  %v2487_v46 = vadd.f32 %v2486_v38, %v2468_v39 }
 0x187   :  { %v2499_v54 = vadd.f32 %v2498_v60, %v2480_v27 }
 0x189   :  { %v2518_v42 = vadd.f32 %v2517_v11, %v2499_v54 }
 0x18b   :  { %v2536_v41 = vpop.f32.mrf.mxu2  ;;  %v2555_v55 = vpop.f32.mrf.mxu3 }
 0x18c   :  { %v2537_v22 = vadd.f32 %v2536_v41, %v2518_v42 }
 0x18e   :  { %v2500_v58 = vpop.f32.mrf.mxu0  ;;  %v2519_v40 = vpop.f32.mrf.mxu1  ;;  %v2556_v6 = vadd.f32 %v2555_v55, %v2537_v22 }
 0x18f   :  { %v2501_v25 = vadd.f32 %v2500_v58, %v2482_v56 }
 0x191   :  { %v2520_v0 = vadd.f32 %v2519_v40, %v2501_v25 }
 0x193   :  { %v2538_v47 = vpop.f32.mrf.mxu2  ;;  %v2557_v19 = vpop.f32.mrf.mxu3 }
 0x194   :  { %v2539_v31 = vadd.f32 %v2538_v47, %v2520_v0 }
 0x196   :  { %v2503_v21 = vpop.f32.mrf.mxu0  ;;  %v2522_v12 = vpop.f32.mrf.mxu1  ;;  %v2558_v57 = vadd.f32 %v2557_v19, %v2539_v31 }
 0x197   :  { %v2504_v33 = vadd.f32 %v2503_v21, %v2485_v20 }
 0x199   :  { %v2523_v23 = vadd.f32 %v2522_v12, %v2504_v33 }
 0x19b   :  { %v2541_v5 = vpop.f32.mrf.mxu2  ;;  %v2560_v51 = vpop.f32.mrf.mxu3 }
 0x19c   :  { %v2542_v61 = vadd.f32 %v2541_v5, %v2523_v23 }
 0x19e   :  { %v2505_v26 = vpop.f32.mrf.mxu0  ;;  %v2524_v44 = vpop.f32.mrf.mxu1  ;;  %v2561_v62 = vadd.f32 %v2560_v51, %v2542_v61 }
 0x19f   :  { %v2506_v49 = vadd.f32 %v2505_v26, %v2487_v46 }
 0x1a1   :  { %v2525_v37 = vadd.f32 %v2524_v44, %v2506_v49 }
 0x1a3   :  { %v2543_v9 = vpop.f32.mrf.mxu2  ;;  %v2562_v34 = vpop.f32.mrf.mxu3 }
 0x1a4   :  { %v2544_v55 = vadd.f32 %v2543_v9, %v2525_v37 }
 0x1a6   :  { %v2574_v18 = vpop.f32.mrf.mxu0  ;;  %v2593_v4 = vpop.f32.mrf.mxu1  ;;  %v2563_v17 = vadd.f32 %v2562_v34, %v2544_v55 }
 0x1a7   :  { %v2575_v14 = vadd.f32 %v2574_v18, %v2556_v6 }
 0x1a9   :  { %v2594_v15 = vadd.f32 %v2593_v4, %v2575_v14 }
 0x1ab   :  { %v2612_v10 = vpop.f32.mrf.mxu2  ;;  %v2631_v7 = vpop.f32.mrf.mxu3 }
 0x1ac   :  { %v2613_v36 = vadd.f32 %v2612_v10, %v2594_v15 }
 0x1ae   :  { %v2576_v8 = vpop.f32.mrf.mxu0  ;;  %v2595_v59 = vpop.f32.mrf.mxu1  ;;  %v2632_v24 = vadd.f32 %v2631_v7, %v2613_v36 }
 0x1af   :  { %v2577_v45 = vadd.f32 %v2576_v8, %v2558_v57 }
 0x1b0   :  { %2642 = vst [vmem:[%s6575_s2 + $0x8] sm:$0xff] %v2632_v24  ;;  %v2668_v58 = vmul.f32 %v2632_v24, %v2632_v24 }
 0x1b1   :  { %v2596_v3 = vadd.f32 %v2595_v59, %v2577_v45 }
 0x1b3   :  { %v2614_v52 = vpop.f32.mrf.mxu2  ;;  %v2633_v28 = vpop.f32.mrf.mxu3 }
 0x1b4   :  { %v2615_v29 = vadd.f32 %v2614_v52, %v2596_v3 }
 0x1b6   :  { %v2579_v63 = vpop.f32.mrf.mxu0  ;;  %v2634_v60 = vadd.f32 %v2633_v28, %v2615_v29  ;;  %v2598_v41 = vpop.f32.mrf.mxu1 }
 0x1b7   :  { %v2580_v11 = vadd.f32 %v2579_v63, %v2561_v62 }
 0x1b8   :  { %2644 = vst [vmem:[%s6575_s2 + $0x18] sm:$0xff] %v2634_v60  ;;  %v2658_v38 = vadd.f32 %v2634_v60, %v2632_v24  ;;  %v2670_v40 = vmul.f32 %v2634_v60, %v2634_v60 }
 0x1b9   :  { %v2599_v16 = vadd.f32 %v2598_v41, %v2580_v11 }
 0x1ba   :  { %v2684_v53 = vadd.f32 %v2670_v40, %v2668_v58 }
 0x1bb   :  { %v2617_v47 = vpop.f32.mrf.mxu2  ;;  %v2636_v19 = vpop.f32.mrf.mxu3 }
 0x1bc   :  { %v2618_v21 = vadd.f32 %v2617_v47, %v2599_v16 }
 0x1be   :  { %v2581_v12 = vpop.f32.mrf.mxu0  ;;  %v2637_v43 = vadd.f32 %v2636_v19, %v2618_v21  ;;  %v2600_v5 = vpop.f32.mrf.mxu1 }
 0x1bf   :  { %v2582_v27 = vadd.f32 %v2581_v12, %v2563_v17 }
 0x1c0   :  { %2646 = vst [vmem:[%s6575_s2 + $0x28] sm:$0xff] %v2637_v43  ;;  %v2659_v48 = vadd.f32 %v2658_v38, %v2637_v43  ;;  %v2672_v54 = vmul.f32 %v2637_v43, %v2637_v43 }
 0x1c1   :  { %v2601_v2 = vadd.f32 %v2600_v5, %v2582_v27 }
 0x1c2   :  { %v2685_v51 = vadd.f32 %v2684_v53, %v2672_v54 }
 0x1c3   :  { %v2619_v26 = vpop.f32.mrf.mxu2  ;;  %v2638_v1 = vpop.f32.mrf.mxu3 }
 0x1c4   :  { %v2620_v44 = vadd.f32 %v2619_v26, %v2601_v2 }
 0x1c6   :  { %v2639_v42 = vadd.f32 %v2638_v1, %v2620_v44 }
 0x1c8   :  { %2648 = vst [vmem:[%s6575_s2 + $0x38] sm:$0xff] %v2639_v42  ;;  %v2660_v56 = vadd.f32 %v2659_v48, %v2639_v42  ;;  %v2674_v22 = vmul.f32 %v2639_v42, %v2639_v42 }
 0x1ca   :  { %v2661_v50 = vrot.slane %v2660_v56, 4  ;;  %v2686_v25 = vadd.f32 %v2685_v51, %v2674_v22 }
 0x1cc   :  { %v2662_v9 = vadd.f32 %v2661_v50, %v2660_v56  ;;  %v2687_v34 = vrot.slane %v2686_v25, 4 }
 0x1ce   :  { %v2663_v35 = vrot.slane %v2662_v9, 2  ;;  %v2688_v6 = vadd.f32 %v2687_v34, %v2686_v25 }
 0x1d0   :  { %v2664_v18 = vadd.f32 %v2663_v35, %v2662_v9  ;;  %v2689_v4 = vrot.slane %v2688_v6, 2 }
 0x1d2   :  { %v2665_v30 = vrot.slane %v2664_v18, 1  ;;  %v2690_v0 = vadd.f32 %v2689_v4, %v2688_v6 }
 0x1d4   :  { %v2691_v14 = vrot.slane %v2690_v0, 1  ;;  %v2666_v20 = vadd.f32 %v2665_v30, %v2664_v18 }
 0x1d6   :  { %v2692_v31 = vadd.f32 %v2691_v14, %v2690_v0 }
 0x1d8   :  { %v2695_v32 = vsel %vm2693_vm0, %v2666_v20, %v2692_v31 }
 0x1d9   :  { %v2698_v33 = vrot.slane %v2695_v32, 6 }
 0x1db   :  { %v2700_v15 = vsel %vm2699_vm1, %v6554_v13, %v2698_v33 }
 0x1dc   :  { %2702 = vst [vmem:[%s6576_s3] sm:$0xf] %v2700_v15 }

</bundles_post_ra>
